<compile_context>
chip_gen: v6e
topology: v6e:2x2x1
jax: 0.10.0
libtpu: 0.0.40
codegen_flags: <defaults>
</compile_context>

<pallas_src>
import functools

import jax
import jax.numpy as jnp
from jax.experimental import pallas as pl
from jax.experimental.pallas import tpu as pltpu

LANE = 128  # TPU lane width: matmul output channels are padded to this in VMEM.


def _row_chunk(H, W, B):
    """Rows per conv grid step: as many as fit ~512 output pixels (feedback #1),
    while keeping >=2 total grid steps for the 2 TensorCores on v7x (#10)."""
    ch = 1
    for c in range(1, H + 1):
        if H % c == 0 and c * W <= 512:
            ch = c
    while B * (H // ch) < 2 and ch % 2 == 0:
        ch //= 2
    return ch


# ---------------------------------------------------------------------------
# Conv3x3 (padding=1) + bias + ReLU
#   in-kernel im2col: 9 shifted matmuls accumulated in a VMEM f32 scratch
# ---------------------------------------------------------------------------
def _conv3x3_kernel(x_ref, w_ref, b_ref, o_ref, acc_ref, *, W, Cin, Cout, CH):
    """One (batch, row-chunk) grid step.

    x_ref  : (1, H+2, W+2, Cin)  zero-padded NHWC input, bf16 (real channels)
    w_ref  : (9, Cin, LANE)      per-tap weight slices, bf16 (cout zero-padded)
    b_ref  : (1, LANE)           bias, f32 (zero-padded)
    o_ref  : (1, CH*W, Cout)     this chunk of the flattened output map, bf16
    acc_ref: (CH*W, LANE)        f32 VMEM accumulator scratch
    """
    r = pl.program_id(1)
    row0 = r * CH
    for dy in range(3):
        # Hoisted per-dy load (3 loads per chunk); f32 staging keeps all
        # slices/reshapes on well-supported layouts, bf16 only at the dot.
        slab = x_ref[0, pl.ds(row0 + dy, CH), :, :].astype(jnp.float32)  # (CH, W+2, Cin)
        for dx in range(3):
            patch = slab[:, dx:dx + W, :].reshape(CH * W, Cin).astype(jnp.bfloat16)
            contrib = jnp.dot(patch, w_ref[3 * dy + dx],
                              preferred_element_type=jnp.float32)
            if dy == 0 and dx == 0:
                acc_ref[...] = contrib          # first tap initializes the accumulator
            else:
                acc_ref[...] += contrib         # contiguous += chain (MRB-friendly)
    z = jnp.maximum(acc_ref[...] + b_ref[...], 0.0)        # f32 epilogue
    o_ref[0] = z[:, :Cout].astype(jnp.bfloat16)            # store real channels, bf16


def conv3x3_relu(x, w9, b, cout):
    """x: (B, H, W, Cin) bf16 -> (B, H, W, cout) bf16."""
    B, H, W, Cin = x.shape
    assert w9.shape == (9, Cin, LANE), (w9.shape, Cin)
    # TODO(synk): replace this XLA pad round-trip with in-kernel halo masking.
    xp = jnp.pad(x, ((0, 0), (1, 1), (1, 1), (0, 0)))
    CH = _row_chunk(H, W, B)
    R = H // CH
    flops = 2 * B * H * W * 9 * Cin * LANE
    bytes_accessed = (xp.size * 2 + w9.size * 2 + b.size * 4 + B * H * W * cout * 2)
    y = pl.pallas_call(
        functools.partial(_conv3x3_kernel, W=W, Cin=Cin, Cout=cout, CH=CH),
        out_shape=jax.ShapeDtypeStruct((B, H * W, cout), jnp.bfloat16),
        grid_spec=pltpu.PrefetchScalarGridSpec(
            num_scalar_prefetch=0,
            grid=(B, R),
            in_specs=[
                pl.BlockSpec((1, H + 2, W + 2, Cin), lambda b_, r_: (b_, 0, 0, 0)),
                pl.BlockSpec((9, Cin, LANE), lambda b_, r_: (0, 0, 0)),
                pl.BlockSpec((1, LANE), lambda b_, r_: (0, 0)),
            ],
            out_specs=pl.BlockSpec((1, CH * W, cout), lambda b_, r_: (b_, r_, 0)),
            scratch_shapes=[pltpu.VMEM((CH * W, LANE), jnp.float32)],
        ),
        compiler_params=pltpu.CompilerParams(
            dimension_semantics=("parallel", "parallel"),
            vmem_limit_bytes=32 * 1024 * 1024,
        ),
        cost_estimate=pl.CostEstimate(
            flops=flops, transcendentals=0, bytes_accessed=bytes_accessed),
    )(xp, w9, b)
    return y.reshape(B, H, W, cout)


# ---------------------------------------------------------------------------
# MaxPool2x2 : vectorized, single input (column pairs folded into lanes)
# ---------------------------------------------------------------------------
def _maxpool2x2_kernel(x_ref, o_ref, *, C):
    """x_ref: (1, H, Wo, 2*C) with column pairs adjacent in lanes; o_ref: (1, Ho, Wo, C)."""
    left = x_ref[0, :, :, :C]                    # even image columns, (H, Wo, C)
    right = x_ref[0, :, :, C:]                   # odd image columns
    h = jnp.maximum(left, right)                 # horizontal pair-max
    H, Wo = h.shape[0], h.shape[1]
    h4 = h.reshape(H // 2, 2, Wo, C)             # free outer-dim split
    o_ref[0] = jnp.maximum(h4[:, 0], h4[:, 1])   # vertical pair-max


def maxpool2x2(x):
    """x: (B, H, W, C) bf16, even H and W -> (B, H//2, W//2, C) bf16."""
    B, H, W, C = x.shape
    Ho, Wo = H // 2, W // 2
    xv = x.reshape(B, H, Wo, 2 * C)   # contiguous reshape: free in HBM
    return pl.pallas_call(
        functools.partial(_maxpool2x2_kernel, C=C),
        out_shape=jax.ShapeDtypeStruct((B, Ho, Wo, C), x.dtype),
        grid_spec=pltpu.PrefetchScalarGridSpec(
            num_scalar_prefetch=0,
            grid=(B,),
            in_specs=[pl.BlockSpec((1, H, Wo, 2 * C), lambda b_: (b_, 0, 0, 0))],
            out_specs=pl.BlockSpec((1, Ho, Wo, C), lambda b_: (b_, 0, 0, 0)),
        ),
        compiler_params=pltpu.CompilerParams(
            dimension_semantics=("parallel",),
            vmem_limit_bytes=32 * 1024 * 1024,
        ),
    )(xv)


# ---------------------------------------------------------------------------
# Fused classifier: (Linear -> ReLU)*M -> Linear in a single pallas_call
# ---------------------------------------------------------------------------
def _mlp_kernel(x_ref, *refs, n_layers):
    """refs = (w0, b0, ..., w_{n-1}, b_{n-1}, o_ref); weights bf16, bias/acc f32."""
    o_ref = refs[-1]
    h = x_ref[...]                                     # (BM, F) bf16
    for i in range(n_layers):
        w = refs[2 * i][...]                           # (K_i, LANE) bf16
        b = refs[2 * i + 1][...]                       # (1, LANE) f32
        h = jnp.dot(h.astype(jnp.bfloat16), w, preferred_element_type=jnp.float32) + b
        if i < n_layers - 1:
            h = jnp.maximum(h, 0.0)
    o_ref[...] = h


def mlp_forward(feat, fc_packed):
    B, F = feat.shape
    n = len(fc_packed)
    BM = B if B <= 256 else 256
    assert B % BM == 0, "batch must be a multiple of the MLP batch block"
    args = [feat]
    in_specs = [pl.BlockSpec((BM, F), lambda i: (i, 0))]
    for w, b in fc_packed:
        args += [w, b]
        in_specs += [pl.BlockSpec(w.shape, lambda i: (0, 0)),
                     pl.BlockSpec(b.shape, lambda i: (0, 0))]
    return pl.pallas_call(
        functools.partial(_mlp_kernel, n_layers=n),
        out_shape=jax.ShapeDtypeStruct((B, LANE), jnp.float32),
        grid_spec=pltpu.PrefetchScalarGridSpec(
            num_scalar_prefetch=0,
            grid=(B // BM,),
            in_specs=in_specs,
            out_specs=pl.BlockSpec((BM, LANE), lambda i: (i, 0)),
        ),
        compiler_params=pltpu.CompilerParams(
            dimension_semantics=("parallel",),
            vmem_limit_bytes=32 * 1024 * 1024,
        ),
    )(*args)


# ---------------------------------------------------------------------------
# Parameter init (PyTorch-layout, fan-in uniform) and kernel-friendly packing
# ---------------------------------------------------------------------------
def init_params(key, in_size, out_classes, channels, pool_every, hidden_dims):
    C, H, W = in_size
    params = {"conv": [], "fc": []}
    in_c, h, w = C, H, W
    pool_count = 0
    for ch in channels:
        key, k1, k2 = jax.random.split(key, 3)
        bound = 1.0 / float(in_c * 9) ** 0.5
        wgt = jax.random.uniform(k1, (ch, in_c, 3, 3), jnp.float32, -bound, bound)
        bias = jax.random.uniform(k2, (ch,), jnp.float32, -bound, bound)
        params["conv"].append((wgt, bias))
        in_c = ch
        pool_count += 1
        if pool_count == pool_every:
            pool_count = 0
            h //= 2
            w //= 2
    in_features = in_c * h * w
    for d in list(hidden_dims) + [out_classes]:
        key, k1, k2 = jax.random.split(key, 3)
        bound = 1.0 / float(in_features) ** 0.5
        wgt = jax.random.uniform(k1, (d, in_features), jnp.float32, -bound, bound)
        bias = jax.random.uniform(k2, (d,), jnp.float32, -bound, bound)
        params["fc"].append((wgt, bias))
        in_features = d
    return params


def pack_params(params, in_size, channels, pool_every):
    """Pack PyTorch-layout params into kernel weights.

    * conv (Cout, Cin, 3, 3) -> (9, Cin, LANE) bf16 (only Cout output columns
      non-zero); bias -> (1, LANE) f32.  Activations carry the REAL channel
      count in HBM, so the next layer's K has no dead rows.
    * fc (out, in) -> (K, LANE) bf16; the FIRST fc weight's rows are permuted
      from NCHW-flatten order to NHWC-flatten order, absorbing the transpose.
    """
    C0, H, W = in_size
    packed = {"conv": [], "fc": []}
    carried = C0
    h, w = H, W
    pool_count = 0
    for wgt, bias in params["conv"]:
        cout, cin = wgt.shape[0], wgt.shape[1]
        assert cout <= LANE and cin == carried
        w9 = jnp.transpose(wgt, (2, 3, 1, 0)).reshape(9, cin, cout)   # (dy*3+dx, cin, cout)
        w9p = jnp.zeros((9, cin, LANE), jnp.float32).at[:, :, :cout].set(w9)
        bp = jnp.zeros((1, LANE), jnp.float32).at[0, :cout].set(bias)
        packed["conv"].append((w9p.astype(jnp.bfloat16), bp))
        carried = cout                                  # real channels carried forward
        pool_count += 1
        if pool_count == pool_every:
            pool_count = 0
            h //= 2
            w //= 2
    c_last = channels[-1]
    for j, (wgt, bias) in enumerate(params["fc"]):
        out_d, in_d = wgt.shape
        assert out_d <= LANE
        wmat = wgt.T                                    # (in, out)
        if j == 0:
            # NCHW-flatten (c, h, w) row order -> NHWC-flatten (h, w, c) row order.
            wmat = wmat.reshape(c_last, h, w, out_d).transpose(1, 2, 0, 3).reshape(in_d, out_d)
        kin = in_d if j == 0 else LANE                  # later layers see LANE-padded acts
        wp = jnp.zeros((kin, LANE), jnp.float32).at[:in_d, :out_d].set(wmat)
        bp = jnp.zeros((1, LANE), jnp.float32).at[0, :out_d].set(bias)
        packed["fc"].append((wp.astype(jnp.bfloat16), bp))
    return packed


# ---------------------------------------------------------------------------
# Full forward pass
# ---------------------------------------------------------------------------
def conv_classifier_forward(packed, x_nchw, *, pool_every, channels, out_classes):
    x = jnp.transpose(x_nchw, (0, 2, 3, 1)).astype(jnp.bfloat16)   # NCHW -> NHWC, bf16
    pool_count = 0
    for layer_idx, (w9, b) in enumerate(packed["conv"]):
        x = conv3x3_relu(x, w9, b, channels[layer_idx])            # (B, H, W, Cout) bf16
        pool_count += 1
        if pool_count == pool_every:
            pool_count = 0
            x = maxpool2x2(x)
    B = x.shape[0]
    # NHWC flatten; the NCHW ordering of `features.view(B, -1)` is baked into
    # the first FC weight at pack time.
    feat = x.reshape(B, -1)
    logits = mlp_forward(feat, packed["fc"])
    return logits[:, :out_classes]


if __name__ == "__main__":
    # Small instantiation consistent with the module:
    #   in_size=(4,16,16), channels=[8,16], pool_every=2, hidden_dims=[32], 10 classes
    in_size = (4, 16, 16)
    out_classes = 10
    channels = [8, 16]
    pool_every = 2
    hidden_dims = [32]
    batch = 2

    key = jax.random.PRNGKey(0)
    key, xk, pk = jax.random.split(key, 3)
    x = jax.random.normal(xk, (batch,) + in_size, dtype=jnp.float32)
    params = init_params(pk, in_size, out_classes, channels, pool_every, hidden_dims)
    packed = pack_params(params, in_size, channels, pool_every)

    fwd = jax.jit(functools.partial(
        conv_classifier_forward,
        pool_every=pool_every, channels=tuple(channels), out_classes=out_classes))
    out = fwd(packed, x)
    jax.block_until_ready(out)
    assert out.shape == (batch, out_classes), out.shape
    assert out.dtype == jnp.float32
    print("KERNEL_OK")
</pallas_src>

<mosaic_0001>
module attributes {stable_mosaic.version = 11 : i64} {
  func.func @_conv3x3_kernel(%arg0: i32, %arg1: i32, %arg2: memref<1x18x18x4xbf16, #tpu.memory_space<vmem>>, %arg3: memref<9x4x128xbf16, #tpu.memory_space<vmem>>, %arg4: memref<1x128xf32, #tpu.memory_space<vmem>>, %arg5: memref<1x256x8xbf16, #tpu.memory_space<vmem>>, %arg6: memref<256x128xf32, #tpu.memory_space<vmem>>) attributes {dimension_semantics = [#tpu.dimension_semantics<parallel>, #tpu.dimension_semantics<parallel>], iteration_bounds = array<i64: 2, 1>, scalar_prefetch = 0 : i64, scratch_operands = 1 : i64, tpu.core_type = #tpu.core_type<tc>, window_params = [{transform_indices = @transform_0, window_bounds = array<i64: 1, 18, 18, 4>}, {pipeline_mode = #tpu.pipeline_mode<synchronous>, transform_indices = @transform_1, window_bounds = array<i64: 9, 4, 128>}, {pipeline_mode = #tpu.pipeline_mode<synchronous>, transform_indices = @transform_2, window_bounds = array<i64: 1, 128>}, {transform_indices = @transform_3, window_bounds = array<i64: 1, 256, 8>}]} {
    %c16_i32 = arith.constant 16 : i32
    %0 = arith.muli %arg1, %c16_i32 : i32
    %c0_i32 = arith.constant 0 : i32
    %1 = arith.addi %0, %c0_i32 : i32
    %c0 = arith.constant 0 : index
    %2 = arith.index_cast %1 : i32 to index
    %c0_0 = arith.constant 0 : index
    %c0_1 = arith.constant 0 : index
    %3 = vector.load %arg2[%c0, %2, %c0_0, %c0_1] : memref<1x18x18x4xbf16, #tpu.memory_space<vmem>>, vector<1x16x18x4xbf16>
    %4 = vector.shape_cast %3 : vector<1x16x18x4xbf16> to vector<16x18x4xbf16>
    %5 = arith.extf %4 : vector<16x18x4xbf16> to vector<16x18x4xf32>
    %6 = vector.extract_strided_slice %5 {offsets = [0, 0, 0], sizes = [16, 16, 4], strides = [1, 1, 1]} : vector<16x18x4xf32> to vector<16x16x4xf32>
    %7 = vector.shape_cast %6 : vector<16x16x4xf32> to vector<256x4xf32>
    %8 = arith.truncf %7 : vector<256x4xf32> to vector<256x4xbf16>
    %c0_2 = arith.constant 0 : index
    %c0_3 = arith.constant 0 : index
    %c0_4 = arith.constant 0 : index
    %9 = vector.load %arg3[%c0_2, %c0_3, %c0_4] : memref<9x4x128xbf16, #tpu.memory_space<vmem>>, vector<1x4x128xbf16>
    %10 = vector.shape_cast %9 : vector<1x4x128xbf16> to vector<4x128xbf16>
    %cst = arith.constant dense<0.000000e+00> : vector<256x128xf32>
    %11 = tpu.matmul %8, %10, %cst {dimension_numbers = #tpu.dot_dimension_numbers<[1], [0], [0], [1], [0, 0, 1, 1], [], []>} : vector<256x4xbf16>, vector<4x128xbf16>, vector<256x128xf32> -> vector<256x128xf32>
    %c0_5 = arith.constant 0 : index
    %c0_6 = arith.constant 0 : index
    %12 = vector.load %arg6[%c0_5, %c0_6] : memref<256x128xf32, #tpu.memory_space<vmem>>, vector<256x128xf32>
    tpu.vector_store %arg6[%c0_5, %c0_6], %11 {strides = array<i32>} : memref<256x128xf32, #tpu.memory_space<vmem>>, vector<256x128xf32>,
    %13 = vector.extract_strided_slice %5 {offsets = [0, 1, 0], sizes = [16, 16, 4], strides = [1, 1, 1]} : vector<16x18x4xf32> to vector<16x16x4xf32>
    %14 = vector.shape_cast %13 : vector<16x16x4xf32> to vector<256x4xf32>
    %15 = arith.truncf %14 : vector<256x4xf32> to vector<256x4xbf16>
    %c1 = arith.constant 1 : index
    %c0_7 = arith.constant 0 : index
    %c0_8 = arith.constant 0 : index
    %16 = vector.load %arg3[%c1, %c0_7, %c0_8] : memref<9x4x128xbf16, #tpu.memory_space<vmem>>, vector<1x4x128xbf16>
    %17 = vector.shape_cast %16 : vector<1x4x128xbf16> to vector<4x128xbf16>
    %cst_9 = arith.constant dense<0.000000e+00> : vector<256x128xf32>
    %18 = tpu.matmul %15, %17, %cst_9 {dimension_numbers = #tpu.dot_dimension_numbers<[1], [0], [0], [1], [0, 0, 1, 1], [], []>} : vector<256x4xbf16>, vector<4x128xbf16>, vector<256x128xf32> -> vector<256x128xf32>
    %c0_10 = arith.constant 0 : index
    %c0_11 = arith.constant 0 : index
    %19 = vector.load %arg6[%c0_10, %c0_11] : memref<256x128xf32, #tpu.memory_space<vmem>>, vector<256x128xf32>
    %20 = arith.addf %19, %18 : vector<256x128xf32>
    %c0_12 = arith.constant 0 : index
    %c0_13 = arith.constant 0 : index
    %21 = vector.load %arg6[%c0_12, %c0_13] : memref<256x128xf32, #tpu.memory_space<vmem>>, vector<256x128xf32>
    tpu.vector_store %arg6[%c0_12, %c0_13], %20 {strides = array<i32>} : memref<256x128xf32, #tpu.memory_space<vmem>>, vector<256x128xf32>,
    %22 = vector.extract_strided_slice %5 {offsets = [0, 2, 0], sizes = [16, 16, 4], strides = [1, 1, 1]} : vector<16x18x4xf32> to vector<16x16x4xf32>
    %23 = vector.shape_cast %22 : vector<16x16x4xf32> to vector<256x4xf32>
    %24 = arith.truncf %23 : vector<256x4xf32> to vector<256x4xbf16>
    %c2 = arith.constant 2 : index
    %c0_14 = arith.constant 0 : index
    %c0_15 = arith.constant 0 : index
    %25 = vector.load %arg3[%c2, %c0_14, %c0_15] : memref<9x4x128xbf16, #tpu.memory_space<vmem>>, vector<1x4x128xbf16>
    %26 = vector.shape_cast %25 : vector<1x4x128xbf16> to vector<4x128xbf16>
    %cst_16 = arith.constant dense<0.000000e+00> : vector<256x128xf32>
    %27 = tpu.matmul %24, %26, %cst_16 {dimension_numbers = #tpu.dot_dimension_numbers<[1], [0], [0], [1], [0, 0, 1, 1], [], []>} : vector<256x4xbf16>, vector<4x128xbf16>, vector<256x128xf32> -> vector<256x128xf32>
    %c0_17 = arith.constant 0 : index
    %c0_18 = arith.constant 0 : index
    %28 = vector.load %arg6[%c0_17, %c0_18] : memref<256x128xf32, #tpu.memory_space<vmem>>, vector<256x128xf32>
    %29 = arith.addf %28, %27 : vector<256x128xf32>
    %c0_19 = arith.constant 0 : index
    %c0_20 = arith.constant 0 : index
    %30 = vector.load %arg6[%c0_19, %c0_20] : memref<256x128xf32, #tpu.memory_space<vmem>>, vector<256x128xf32>
    tpu.vector_store %arg6[%c0_19, %c0_20], %29 {strides = array<i32>} : memref<256x128xf32, #tpu.memory_space<vmem>>, vector<256x128xf32>,
    %c1_i32 = arith.constant 1 : i32
    %31 = arith.addi %0, %c1_i32 : i32
    %c0_21 = arith.constant 0 : index
    %32 = arith.index_cast %31 : i32 to index
    %c0_22 = arith.constant 0 : index
    %c0_23 = arith.constant 0 : index
    %33 = vector.load %arg2[%c0_21, %32, %c0_22, %c0_23] : memref<1x18x18x4xbf16, #tpu.memory_space<vmem>>, vector<1x16x18x4xbf16>
    %34 = vector.shape_cast %33 : vector<1x16x18x4xbf16> to vector<16x18x4xbf16>
    %35 = arith.extf %34 : vector<16x18x4xbf16> to vector<16x18x4xf32>
    %36 = vector.extract_strided_slice %35 {offsets = [0, 0, 0], sizes = [16, 16, 4], strides = [1, 1, 1]} : vector<16x18x4xf32> to vector<16x16x4xf32>
    %37 = vector.shape_cast %36 : vector<16x16x4xf32> to vector<256x4xf32>
    %38 = arith.truncf %37 : vector<256x4xf32> to vector<256x4xbf16>
    %c3 = arith.constant 3 : index
    %c0_24 = arith.constant 0 : index
    %c0_25 = arith.constant 0 : index
    %39 = vector.load %arg3[%c3, %c0_24, %c0_25] : memref<9x4x128xbf16, #tpu.memory_space<vmem>>, vector<1x4x128xbf16>
    %40 = vector.shape_cast %39 : vector<1x4x128xbf16> to vector<4x128xbf16>
    %cst_26 = arith.constant dense<0.000000e+00> : vector<256x128xf32>
    %41 = tpu.matmul %38, %40, %cst_26 {dimension_numbers = #tpu.dot_dimension_numbers<[1], [0], [0], [1], [0, 0, 1, 1], [], []>} : vector<256x4xbf16>, vector<4x128xbf16>, vector<256x128xf32> -> vector<256x128xf32>
    %c0_27 = arith.constant 0 : index
    %c0_28 = arith.constant 0 : index
    %42 = vector.load %arg6[%c0_27, %c0_28] : memref<256x128xf32, #tpu.memory_space<vmem>>, vector<256x128xf32>
    %43 = arith.addf %42, %41 : vector<256x128xf32>
    %c0_29 = arith.constant 0 : index
    %c0_30 = arith.constant 0 : index
    %44 = vector.load %arg6[%c0_29, %c0_30] : memref<256x128xf32, #tpu.memory_space<vmem>>, vector<256x128xf32>
    tpu.vector_store %arg6[%c0_29, %c0_30], %43 {strides = array<i32>} : memref<256x128xf32, #tpu.memory_space<vmem>>, vector<256x128xf32>,
    %45 = vector.extract_strided_slice %35 {offsets = [0, 1, 0], sizes = [16, 16, 4], strides = [1, 1, 1]} : vector<16x18x4xf32> to vector<16x16x4xf32>
    %46 = vector.shape_cast %45 : vector<16x16x4xf32> to vector<256x4xf32>
    %47 = arith.truncf %46 : vector<256x4xf32> to vector<256x4xbf16>
    %c4 = arith.constant 4 : index
    %c0_31 = arith.constant 0 : index
    %c0_32 = arith.constant 0 : index
    %48 = vector.load %arg3[%c4, %c0_31, %c0_32] : memref<9x4x128xbf16, #tpu.memory_space<vmem>>, vector<1x4x128xbf16>
    %49 = vector.shape_cast %48 : vector<1x4x128xbf16> to vector<4x128xbf16>
    %cst_33 = arith.constant dense<0.000000e+00> : vector<256x128xf32>
    %50 = tpu.matmul %47, %49, %cst_33 {dimension_numbers = #tpu.dot_dimension_numbers<[1], [0], [0], [1], [0, 0, 1, 1], [], []>} : vector<256x4xbf16>, vector<4x128xbf16>, vector<256x128xf32> -> vector<256x128xf32>
    %c0_34 = arith.constant 0 : index
    %c0_35 = arith.constant 0 : index
    %51 = vector.load %arg6[%c0_34, %c0_35] : memref<256x128xf32, #tpu.memory_space<vmem>>, vector<256x128xf32>
    %52 = arith.addf %51, %50 : vector<256x128xf32>
    %c0_36 = arith.constant 0 : index
    %c0_37 = arith.constant 0 : index
    %53 = vector.load %arg6[%c0_36, %c0_37] : memref<256x128xf32, #tpu.memory_space<vmem>>, vector<256x128xf32>
    tpu.vector_store %arg6[%c0_36, %c0_37], %52 {strides = array<i32>} : memref<256x128xf32, #tpu.memory_space<vmem>>, vector<256x128xf32>,
    %54 = vector.extract_strided_slice %35 {offsets = [0, 2, 0], sizes = [16, 16, 4], strides = [1, 1, 1]} : vector<16x18x4xf32> to vector<16x16x4xf32>
    %55 = vector.shape_cast %54 : vector<16x16x4xf32> to vector<256x4xf32>
    %56 = arith.truncf %55 : vector<256x4xf32> to vector<256x4xbf16>
    %c5 = arith.constant 5 : index
    %c0_38 = arith.constant 0 : index
    %c0_39 = arith.constant 0 : index
    %57 = vector.load %arg3[%c5, %c0_38, %c0_39] : memref<9x4x128xbf16, #tpu.memory_space<vmem>>, vector<1x4x128xbf16>
    %58 = vector.shape_cast %57 : vector<1x4x128xbf16> to vector<4x128xbf16>
    %cst_40 = arith.constant dense<0.000000e+00> : vector<256x128xf32>
    %59 = tpu.matmul %56, %58, %cst_40 {dimension_numbers = #tpu.dot_dimension_numbers<[1], [0], [0], [1], [0, 0, 1, 1], [], []>} : vector<256x4xbf16>, vector<4x128xbf16>, vector<256x128xf32> -> vector<256x128xf32>
    %c0_41 = arith.constant 0 : index
    %c0_42 = arith.constant 0 : index
    %60 = vector.load %arg6[%c0_41, %c0_42] : memref<256x128xf32, #tpu.memory_space<vmem>>, vector<256x128xf32>
    %61 = arith.addf %60, %59 : vector<256x128xf32>
    %c0_43 = arith.constant 0 : index
    %c0_44 = arith.constant 0 : index
    %62 = vector.load %arg6[%c0_43, %c0_44] : memref<256x128xf32, #tpu.memory_space<vmem>>, vector<256x128xf32>
    tpu.vector_store %arg6[%c0_43, %c0_44], %61 {strides = array<i32>} : memref<256x128xf32, #tpu.memory_space<vmem>>, vector<256x128xf32>,
    %c2_i32 = arith.constant 2 : i32
    %63 = arith.addi %0, %c2_i32 : i32
    %c0_45 = arith.constant 0 : index
    %64 = arith.index_cast %63 : i32 to index
    %c0_46 = arith.constant 0 : index
    %c0_47 = arith.constant 0 : index
    %65 = vector.load %arg2[%c0_45, %64, %c0_46, %c0_47] : memref<1x18x18x4xbf16, #tpu.memory_space<vmem>>, vector<1x16x18x4xbf16>
    %66 = vector.shape_cast %65 : vector<1x16x18x4xbf16> to vector<16x18x4xbf16>
    %67 = arith.extf %66 : vector<16x18x4xbf16> to vector<16x18x4xf32>
    %68 = vector.extract_strided_slice %67 {offsets = [0, 0, 0], sizes = [16, 16, 4], strides = [1, 1, 1]} : vector<16x18x4xf32> to vector<16x16x4xf32>
    %69 = vector.shape_cast %68 : vector<16x16x4xf32> to vector<256x4xf32>
    %70 = arith.truncf %69 : vector<256x4xf32> to vector<256x4xbf16>
    %c6 = arith.constant 6 : index
    %c0_48 = arith.constant 0 : index
    %c0_49 = arith.constant 0 : index
    %71 = vector.load %arg3[%c6, %c0_48, %c0_49] : memref<9x4x128xbf16, #tpu.memory_space<vmem>>, vector<1x4x128xbf16>
    %72 = vector.shape_cast %71 : vector<1x4x128xbf16> to vector<4x128xbf16>
    %cst_50 = arith.constant dense<0.000000e+00> : vector<256x128xf32>
    %73 = tpu.matmul %70, %72, %cst_50 {dimension_numbers = #tpu.dot_dimension_numbers<[1], [0], [0], [1], [0, 0, 1, 1], [], []>} : vector<256x4xbf16>, vector<4x128xbf16>, vector<256x128xf32> -> vector<256x128xf32>
    %c0_51 = arith.constant 0 : index
    %c0_52 = arith.constant 0 : index
    %74 = vector.load %arg6[%c0_51, %c0_52] : memref<256x128xf32, #tpu.memory_space<vmem>>, vector<256x128xf32>
    %75 = arith.addf %74, %73 : vector<256x128xf32>
    %c0_53 = arith.constant 0 : index
    %c0_54 = arith.constant 0 : index
    %76 = vector.load %arg6[%c0_53, %c0_54] : memref<256x128xf32, #tpu.memory_space<vmem>>, vector<256x128xf32>
    tpu.vector_store %arg6[%c0_53, %c0_54], %75 {strides = array<i32>} : memref<256x128xf32, #tpu.memory_space<vmem>>, vector<256x128xf32>,
    %77 = vector.extract_strided_slice %67 {offsets = [0, 1, 0], sizes = [16, 16, 4], strides = [1, 1, 1]} : vector<16x18x4xf32> to vector<16x16x4xf32>
    %78 = vector.shape_cast %77 : vector<16x16x4xf32> to vector<256x4xf32>
    %79 = arith.truncf %78 : vector<256x4xf32> to vector<256x4xbf16>
    %c7 = arith.constant 7 : index
    %c0_55 = arith.constant 0 : index
    %c0_56 = arith.constant 0 : index
    %80 = vector.load %arg3[%c7, %c0_55, %c0_56] : memref<9x4x128xbf16, #tpu.memory_space<vmem>>, vector<1x4x128xbf16>
    %81 = vector.shape_cast %80 : vector<1x4x128xbf16> to vector<4x128xbf16>
    %cst_57 = arith.constant dense<0.000000e+00> : vector<256x128xf32>
    %82 = tpu.matmul %79, %81, %cst_57 {dimension_numbers = #tpu.dot_dimension_numbers<[1], [0], [0], [1], [0, 0, 1, 1], [], []>} : vector<256x4xbf16>, vector<4x128xbf16>, vector<256x128xf32> -> vector<256x128xf32>
    %c0_58 = arith.constant 0 : index
    %c0_59 = arith.constant 0 : index
    %83 = vector.load %arg6[%c0_58, %c0_59] : memref<256x128xf32, #tpu.memory_space<vmem>>, vector<256x128xf32>
    %84 = arith.addf %83, %82 : vector<256x128xf32>
    %c0_60 = arith.constant 0 : index
    %c0_61 = arith.constant 0 : index
    %85 = vector.load %arg6[%c0_60, %c0_61] : memref<256x128xf32, #tpu.memory_space<vmem>>, vector<256x128xf32>
    tpu.vector_store %arg6[%c0_60, %c0_61], %84 {strides = array<i32>} : memref<256x128xf32, #tpu.memory_space<vmem>>, vector<256x128xf32>,
    %86 = vector.extract_strided_slice %67 {offsets = [0, 2, 0], sizes = [16, 16, 4], strides = [1, 1, 1]} : vector<16x18x4xf32> to vector<16x16x4xf32>
    %87 = vector.shape_cast %86 : vector<16x16x4xf32> to vector<256x4xf32>
    %88 = arith.truncf %87 : vector<256x4xf32> to vector<256x4xbf16>
    %c8 = arith.constant 8 : index
    %c0_62 = arith.constant 0 : index
    %c0_63 = arith.constant 0 : index
    %89 = vector.load %arg3[%c8, %c0_62, %c0_63] : memref<9x4x128xbf16, #tpu.memory_space<vmem>>, vector<1x4x128xbf16>
    %90 = vector.shape_cast %89 : vector<1x4x128xbf16> to vector<4x128xbf16>
    %cst_64 = arith.constant dense<0.000000e+00> : vector<256x128xf32>
    %91 = tpu.matmul %88, %90, %cst_64 {dimension_numbers = #tpu.dot_dimension_numbers<[1], [0], [0], [1], [0, 0, 1, 1], [], []>} : vector<256x4xbf16>, vector<4x128xbf16>, vector<256x128xf32> -> vector<256x128xf32>
    %c0_65 = arith.constant 0 : index
    %c0_66 = arith.constant 0 : index
    %92 = vector.load %arg6[%c0_65, %c0_66] : memref<256x128xf32, #tpu.memory_space<vmem>>, vector<256x128xf32>
    %93 = arith.addf %92, %91 : vector<256x128xf32>
    %c0_67 = arith.constant 0 : index
    %c0_68 = arith.constant 0 : index
    %94 = vector.load %arg6[%c0_67, %c0_68] : memref<256x128xf32, #tpu.memory_space<vmem>>, vector<256x128xf32>
    tpu.vector_store %arg6[%c0_67, %c0_68], %93 {strides = array<i32>} : memref<256x128xf32, #tpu.memory_space<vmem>>, vector<256x128xf32>,
    %c0_69 = arith.constant 0 : index
    %c0_70 = arith.constant 0 : index
    %95 = vector.load %arg6[%c0_69, %c0_70] : memref<256x128xf32, #tpu.memory_space<vmem>>, vector<256x128xf32>
    %c0_71 = arith.constant 0 : index
    %c0_72 = arith.constant 0 : index
    %96 = vector.load %arg4[%c0_71, %c0_72] : memref<1x128xf32, #tpu.memory_space<vmem>>, vector<1x128xf32>
    %97 = vector.broadcast %96 : vector<1x128xf32> to vector<256x128xf32>
    %98 = arith.addf %95, %97 : vector<256x128xf32>
    %cst_73 = arith.constant 0.000000e+00 : f32
    %99 = vector.broadcast %cst_73 : f32 to vector<256x128xf32>
    %100 = arith.maximumf %98, %99 : vector<256x128xf32>
    %101 = vector.extract_strided_slice %100 {offsets = [0, 0], sizes = [256, 8], strides = [1, 1]} : vector<256x128xf32> to vector<256x8xf32>
    %102 = arith.truncf %101 : vector<256x8xf32> to vector<256x8xbf16>
    %c0_74 = arith.constant 0 : index
    %c0_75 = arith.constant 0 : index
    %c0_76 = arith.constant 0 : index
    %103 = vector.load %arg5[%c0_74, %c0_75, %c0_76] : memref<1x256x8xbf16, #tpu.memory_space<vmem>>, vector<1x256x8xbf16>
    %104 = vector.shape_cast %103 : vector<1x256x8xbf16> to vector<256x8xbf16>
    %105 = vector.shape_cast %102 : vector<256x8xbf16> to vector<1x256x8xbf16>
    tpu.vector_store %arg5[%c0_74, %c0_75, %c0_76], %105 {strides = array<i32>} : memref<1x256x8xbf16, #tpu.memory_space<vmem>>, vector<1x256x8xbf16>,
    return
  }
  func.func @transform_0(%arg0: i32, %arg1: i32) -> (i32, i32, i32, i32) {
    %c0_i32 = arith.constant 0 : i32
    %c0_i32_0 = arith.constant 0 : i32
    %c0_i32_1 = arith.constant 0 : i32
    %c0_i32_2 = arith.constant 0 : i32
    return %arg0, %c0_i32, %c0_i32_0, %c0_i32_1 : i32, i32, i32, i32
  }
  func.func @transform_1(%arg0: i32, %arg1: i32) -> (i32, i32, i32) {
    %c0_i32 = arith.constant 0 : i32
    %c0_i32_0 = arith.constant 0 : i32
    %c0_i32_1 = arith.constant 0 : i32
    %c0_i32_2 = arith.constant 0 : i32
    return %c0_i32, %c0_i32_0, %c0_i32_1 : i32, i32, i32
  }
  func.func @transform_2(%arg0: i32, %arg1: i32) -> (i32, i32) {
    %c0_i32 = arith.constant 0 : i32
    %c0_i32_0 = arith.constant 0 : i32
    %c0_i32_1 = arith.constant 0 : i32
    return %c0_i32, %c0_i32_0 : i32, i32
  }
  func.func @transform_3(%arg0: i32, %arg1: i32) -> (i32, i32, i32) {
    %c0_i32 = arith.constant 0 : i32
    %c0_i32_0 = arith.constant 0 : i32
    return %arg0, %arg1, %c0_i32 : i32, i32, i32
  }
}

module attributes {stable_mosaic.version = 11 : i64} {
  func.func @_conv3x3_kernel(%arg0: i32, %arg1: i32, %arg2: memref<1x18x18x8xbf16, #tpu.memory_space<vmem>>, %arg3: memref<9x8x128xbf16, #tpu.memory_space<vmem>>, %arg4: memref<1x128xf32, #tpu.memory_space<vmem>>, %arg5: memref<1x256x16xbf16, #tpu.memory_space<vmem>>, %arg6: memref<256x128xf32, #tpu.memory_space<vmem>>) attributes {dimension_semantics = [#tpu.dimension_semantics<parallel>, #tpu.dimension_semantics<parallel>], iteration_bounds = array<i64: 2, 1>, scalar_prefetch = 0 : i64, scratch_operands = 1 : i64, tpu.core_type = #tpu.core_type<tc>, window_params = [{transform_indices = @transform_0, window_bounds = array<i64: 1, 18, 18, 8>}, {pipeline_mode = #tpu.pipeline_mode<synchronous>, transform_indices = @transform_1, window_bounds = array<i64: 9, 8, 128>}, {pipeline_mode = #tpu.pipeline_mode<synchronous>, transform_indices = @transform_2, window_bounds = array<i64: 1, 128>}, {transform_indices = @transform_3, window_bounds = array<i64: 1, 256, 16>}]} {
    %c16_i32 = arith.constant 16 : i32
    %0 = arith.muli %arg1, %c16_i32 : i32
    %c0_i32 = arith.constant 0 : i32
    %1 = arith.addi %0, %c0_i32 : i32
    %c0 = arith.constant 0 : index
    %2 = arith.index_cast %1 : i32 to index
    %c0_0 = arith.constant 0 : index
    %c0_1 = arith.constant 0 : index
    %3 = vector.load %arg2[%c0, %2, %c0_0, %c0_1] : memref<1x18x18x8xbf16, #tpu.memory_space<vmem>>, vector<1x16x18x8xbf16>
    %4 = vector.shape_cast %3 : vector<1x16x18x8xbf16> to vector<16x18x8xbf16>
    %5 = arith.extf %4 : vector<16x18x8xbf16> to vector<16x18x8xf32>
    %6 = vector.extract_strided_slice %5 {offsets = [0, 0, 0], sizes = [16, 16, 8], strides = [1, 1, 1]} : vector<16x18x8xf32> to vector<16x16x8xf32>
    %7 = vector.shape_cast %6 : vector<16x16x8xf32> to vector<256x8xf32>
    %8 = arith.truncf %7 : vector<256x8xf32> to vector<256x8xbf16>
    %c0_2 = arith.constant 0 : index
    %c0_3 = arith.constant 0 : index
    %c0_4 = arith.constant 0 : index
    %9 = vector.load %arg3[%c0_2, %c0_3, %c0_4] : memref<9x8x128xbf16, #tpu.memory_space<vmem>>, vector<1x8x128xbf16>
    %10 = vector.shape_cast %9 : vector<1x8x128xbf16> to vector<8x128xbf16>
    %cst = arith.constant dense<0.000000e+00> : vector<256x128xf32>
    %11 = tpu.matmul %8, %10, %cst {dimension_numbers = #tpu.dot_dimension_numbers<[1], [0], [0], [1], [0, 0, 1, 1], [], []>} : vector<256x8xbf16>, vector<8x128xbf16>, vector<256x128xf32> -> vector<256x128xf32>
    %c0_5 = arith.constant 0 : index
    %c0_6 = arith.constant 0 : index
    %12 = vector.load %arg6[%c0_5, %c0_6] : memref<256x128xf32, #tpu.memory_space<vmem>>, vector<256x128xf32>
    tpu.vector_store %arg6[%c0_5, %c0_6], %11 {strides = array<i32>} : memref<256x128xf32, #tpu.memory_space<vmem>>, vector<256x128xf32>,
    %13 = vector.extract_strided_slice %5 {offsets = [0, 1, 0], sizes = [16, 16, 8], strides = [1, 1, 1]} : vector<16x18x8xf32> to vector<16x16x8xf32>
    %14 = vector.shape_cast %13 : vector<16x16x8xf32> to vector<256x8xf32>
    %15 = arith.truncf %14 : vector<256x8xf32> to vector<256x8xbf16>
    %c1 = arith.constant 1 : index
    %c0_7 = arith.constant 0 : index
    %c0_8 = arith.constant 0 : index
    %16 = vector.load %arg3[%c1, %c0_7, %c0_8] : memref<9x8x128xbf16, #tpu.memory_space<vmem>>, vector<1x8x128xbf16>
    %17 = vector.shape_cast %16 : vector<1x8x128xbf16> to vector<8x128xbf16>
    %cst_9 = arith.constant dense<0.000000e+00> : vector<256x128xf32>
    %18 = tpu.matmul %15, %17, %cst_9 {dimension_numbers = #tpu.dot_dimension_numbers<[1], [0], [0], [1], [0, 0, 1, 1], [], []>} : vector<256x8xbf16>, vector<8x128xbf16>, vector<256x128xf32> -> vector<256x128xf32>
    %c0_10 = arith.constant 0 : index
    %c0_11 = arith.constant 0 : index
    %19 = vector.load %arg6[%c0_10, %c0_11] : memref<256x128xf32, #tpu.memory_space<vmem>>, vector<256x128xf32>
    %20 = arith.addf %19, %18 : vector<256x128xf32>
    %c0_12 = arith.constant 0 : index
    %c0_13 = arith.constant 0 : index
    %21 = vector.load %arg6[%c0_12, %c0_13] : memref<256x128xf32, #tpu.memory_space<vmem>>, vector<256x128xf32>
    tpu.vector_store %arg6[%c0_12, %c0_13], %20 {strides = array<i32>} : memref<256x128xf32, #tpu.memory_space<vmem>>, vector<256x128xf32>,
    %22 = vector.extract_strided_slice %5 {offsets = [0, 2, 0], sizes = [16, 16, 8], strides = [1, 1, 1]} : vector<16x18x8xf32> to vector<16x16x8xf32>
    %23 = vector.shape_cast %22 : vector<16x16x8xf32> to vector<256x8xf32>
    %24 = arith.truncf %23 : vector<256x8xf32> to vector<256x8xbf16>
    %c2 = arith.constant 2 : index
    %c0_14 = arith.constant 0 : index
    %c0_15 = arith.constant 0 : index
    %25 = vector.load %arg3[%c2, %c0_14, %c0_15] : memref<9x8x128xbf16, #tpu.memory_space<vmem>>, vector<1x8x128xbf16>
    %26 = vector.shape_cast %25 : vector<1x8x128xbf16> to vector<8x128xbf16>
    %cst_16 = arith.constant dense<0.000000e+00> : vector<256x128xf32>
    %27 = tpu.matmul %24, %26, %cst_16 {dimension_numbers = #tpu.dot_dimension_numbers<[1], [0], [0], [1], [0, 0, 1, 1], [], []>} : vector<256x8xbf16>, vector<8x128xbf16>, vector<256x128xf32> -> vector<256x128xf32>
    %c0_17 = arith.constant 0 : index
    %c0_18 = arith.constant 0 : index
    %28 = vector.load %arg6[%c0_17, %c0_18] : memref<256x128xf32, #tpu.memory_space<vmem>>, vector<256x128xf32>
    %29 = arith.addf %28, %27 : vector<256x128xf32>
    %c0_19 = arith.constant 0 : index
    %c0_20 = arith.constant 0 : index
    %30 = vector.load %arg6[%c0_19, %c0_20] : memref<256x128xf32, #tpu.memory_space<vmem>>, vector<256x128xf32>
    tpu.vector_store %arg6[%c0_19, %c0_20], %29 {strides = array<i32>} : memref<256x128xf32, #tpu.memory_space<vmem>>, vector<256x128xf32>,
    %c1_i32 = arith.constant 1 : i32
    %31 = arith.addi %0, %c1_i32 : i32
    %c0_21 = arith.constant 0 : index
    %32 = arith.index_cast %31 : i32 to index
    %c0_22 = arith.constant 0 : index
    %c0_23 = arith.constant 0 : index
    %33 = vector.load %arg2[%c0_21, %32, %c0_22, %c0_23] : memref<1x18x18x8xbf16, #tpu.memory_space<vmem>>, vector<1x16x18x8xbf16>
    %34 = vector.shape_cast %33 : vector<1x16x18x8xbf16> to vector<16x18x8xbf16>
    %35 = arith.extf %34 : vector<16x18x8xbf16> to vector<16x18x8xf32>
    %36 = vector.extract_strided_slice %35 {offsets = [0, 0, 0], sizes = [16, 16, 8], strides = [1, 1, 1]} : vector<16x18x8xf32> to vector<16x16x8xf32>
    %37 = vector.shape_cast %36 : vector<16x16x8xf32> to vector<256x8xf32>
    %38 = arith.truncf %37 : vector<256x8xf32> to vector<256x8xbf16>
    %c3 = arith.constant 3 : index
    %c0_24 = arith.constant 0 : index
    %c0_25 = arith.constant 0 : index
    %39 = vector.load %arg3[%c3, %c0_24, %c0_25] : memref<9x8x128xbf16, #tpu.memory_space<vmem>>, vector<1x8x128xbf16>
    %40 = vector.shape_cast %39 : vector<1x8x128xbf16> to vector<8x128xbf16>
    %cst_26 = arith.constant dense<0.000000e+00> : vector<256x128xf32>
    %41 = tpu.matmul %38, %40, %cst_26 {dimension_numbers = #tpu.dot_dimension_numbers<[1], [0], [0], [1], [0, 0, 1, 1], [], []>} : vector<256x8xbf16>, vector<8x128xbf16>, vector<256x128xf32> -> vector<256x128xf32>
    %c0_27 = arith.constant 0 : index
    %c0_28 = arith.constant 0 : index
    %42 = vector.load %arg6[%c0_27, %c0_28] : memref<256x128xf32, #tpu.memory_space<vmem>>, vector<256x128xf32>
    %43 = arith.addf %42, %41 : vector<256x128xf32>
    %c0_29 = arith.constant 0 : index
    %c0_30 = arith.constant 0 : index
    %44 = vector.load %arg6[%c0_29, %c0_30] : memref<256x128xf32, #tpu.memory_space<vmem>>, vector<256x128xf32>
    tpu.vector_store %arg6[%c0_29, %c0_30], %43 {strides = array<i32>} : memref<256x128xf32, #tpu.memory_space<vmem>>, vector<256x128xf32>,
    %45 = vector.extract_strided_slice %35 {offsets = [0, 1, 0], sizes = [16, 16, 8], strides = [1, 1, 1]} : vector<16x18x8xf32> to vector<16x16x8xf32>
    %46 = vector.shape_cast %45 : vector<16x16x8xf32> to vector<256x8xf32>
    %47 = arith.truncf %46 : vector<256x8xf32> to vector<256x8xbf16>
    %c4 = arith.constant 4 : index
    %c0_31 = arith.constant 0 : index
    %c0_32 = arith.constant 0 : index
    %48 = vector.load %arg3[%c4, %c0_31, %c0_32] : memref<9x8x128xbf16, #tpu.memory_space<vmem>>, vector<1x8x128xbf16>
    %49 = vector.shape_cast %48 : vector<1x8x128xbf16> to vector<8x128xbf16>
    %cst_33 = arith.constant dense<0.000000e+00> : vector<256x128xf32>
    %50 = tpu.matmul %47, %49, %cst_33 {dimension_numbers = #tpu.dot_dimension_numbers<[1], [0], [0], [1], [0, 0, 1, 1], [], []>} : vector<256x8xbf16>, vector<8x128xbf16>, vector<256x128xf32> -> vector<256x128xf32>
    %c0_34 = arith.constant 0 : index
    %c0_35 = arith.constant 0 : index
    %51 = vector.load %arg6[%c0_34, %c0_35] : memref<256x128xf32, #tpu.memory_space<vmem>>, vector<256x128xf32>
    %52 = arith.addf %51, %50 : vector<256x128xf32>
    %c0_36 = arith.constant 0 : index
    %c0_37 = arith.constant 0 : index
    %53 = vector.load %arg6[%c0_36, %c0_37] : memref<256x128xf32, #tpu.memory_space<vmem>>, vector<256x128xf32>
    tpu.vector_store %arg6[%c0_36, %c0_37], %52 {strides = array<i32>} : memref<256x128xf32, #tpu.memory_space<vmem>>, vector<256x128xf32>,
    %54 = vector.extract_strided_slice %35 {offsets = [0, 2, 0], sizes = [16, 16, 8], strides = [1, 1, 1]} : vector<16x18x8xf32> to vector<16x16x8xf32>
    %55 = vector.shape_cast %54 : vector<16x16x8xf32> to vector<256x8xf32>
    %56 = arith.truncf %55 : vector<256x8xf32> to vector<256x8xbf16>
    %c5 = arith.constant 5 : index
    %c0_38 = arith.constant 0 : index
    %c0_39 = arith.constant 0 : index
    %57 = vector.load %arg3[%c5, %c0_38, %c0_39] : memref<9x8x128xbf16, #tpu.memory_space<vmem>>, vector<1x8x128xbf16>
    %58 = vector.shape_cast %57 : vector<1x8x128xbf16> to vector<8x128xbf16>
    %cst_40 = arith.constant dense<0.000000e+00> : vector<256x128xf32>
    %59 = tpu.matmul %56, %58, %cst_40 {dimension_numbers = #tpu.dot_dimension_numbers<[1], [0], [0], [1], [0, 0, 1, 1], [], []>} : vector<256x8xbf16>, vector<8x128xbf16>, vector<256x128xf32> -> vector<256x128xf32>
    %c0_41 = arith.constant 0 : index
    %c0_42 = arith.constant 0 : index
    %60 = vector.load %arg6[%c0_41, %c0_42] : memref<256x128xf32, #tpu.memory_space<vmem>>, vector<256x128xf32>
    %61 = arith.addf %60, %59 : vector<256x128xf32>
    %c0_43 = arith.constant 0 : index
    %c0_44 = arith.constant 0 : index
    %62 = vector.load %arg6[%c0_43, %c0_44] : memref<256x128xf32, #tpu.memory_space<vmem>>, vector<256x128xf32>
    tpu.vector_store %arg6[%c0_43, %c0_44], %61 {strides = array<i32>} : memref<256x128xf32, #tpu.memory_space<vmem>>, vector<256x128xf32>,
    %c2_i32 = arith.constant 2 : i32
    %63 = arith.addi %0, %c2_i32 : i32
    %c0_45 = arith.constant 0 : index
    %64 = arith.index_cast %63 : i32 to index
    %c0_46 = arith.constant 0 : index
    %c0_47 = arith.constant 0 : index
    %65 = vector.load %arg2[%c0_45, %64, %c0_46, %c0_47] : memref<1x18x18x8xbf16, #tpu.memory_space<vmem>>, vector<1x16x18x8xbf16>
    %66 = vector.shape_cast %65 : vector<1x16x18x8xbf16> to vector<16x18x8xbf16>
    %67 = arith.extf %66 : vector<16x18x8xbf16> to vector<16x18x8xf32>
    %68 = vector.extract_strided_slice %67 {offsets = [0, 0, 0], sizes = [16, 16, 8], strides = [1, 1, 1]} : vector<16x18x8xf32> to vector<16x16x8xf32>
    %69 = vector.shape_cast %68 : vector<16x16x8xf32> to vector<256x8xf32>
    %70 = arith.truncf %69 : vector<256x8xf32> to vector<256x8xbf16>
    %c6 = arith.constant 6 : index
    %c0_48 = arith.constant 0 : index
    %c0_49 = arith.constant 0 : index
    %71 = vector.load %arg3[%c6, %c0_48, %c0_49] : memref<9x8x128xbf16, #tpu.memory_space<vmem>>, vector<1x8x128xbf16>
    %72 = vector.shape_cast %71 : vector<1x8x128xbf16> to vector<8x128xbf16>
    %cst_50 = arith.constant dense<0.000000e+00> : vector<256x128xf32>
    %73 = tpu.matmul %70, %72, %cst_50 {dimension_numbers = #tpu.dot_dimension_numbers<[1], [0], [0], [1], [0, 0, 1, 1], [], []>} : vector<256x8xbf16>, vector<8x128xbf16>, vector<256x128xf32> -> vector<256x128xf32>
    %c0_51 = arith.constant 0 : index
    %c0_52 = arith.constant 0 : index
    %74 = vector.load %arg6[%c0_51, %c0_52] : memref<256x128xf32, #tpu.memory_space<vmem>>, vector<256x128xf32>
    %75 = arith.addf %74, %73 : vector<256x128xf32>
    %c0_53 = arith.constant 0 : index
    %c0_54 = arith.constant 0 : index
    %76 = vector.load %arg6[%c0_53, %c0_54] : memref<256x128xf32, #tpu.memory_space<vmem>>, vector<256x128xf32>
    tpu.vector_store %arg6[%c0_53, %c0_54], %75 {strides = array<i32>} : memref<256x128xf32, #tpu.memory_space<vmem>>, vector<256x128xf32>,
    %77 = vector.extract_strided_slice %67 {offsets = [0, 1, 0], sizes = [16, 16, 8], strides = [1, 1, 1]} : vector<16x18x8xf32> to vector<16x16x8xf32>
    %78 = vector.shape_cast %77 : vector<16x16x8xf32> to vector<256x8xf32>
    %79 = arith.truncf %78 : vector<256x8xf32> to vector<256x8xbf16>
    %c7 = arith.constant 7 : index
    %c0_55 = arith.constant 0 : index
    %c0_56 = arith.constant 0 : index
    %80 = vector.load %arg3[%c7, %c0_55, %c0_56] : memref<9x8x128xbf16, #tpu.memory_space<vmem>>, vector<1x8x128xbf16>
    %81 = vector.shape_cast %80 : vector<1x8x128xbf16> to vector<8x128xbf16>
    %cst_57 = arith.constant dense<0.000000e+00> : vector<256x128xf32>
    %82 = tpu.matmul %79, %81, %cst_57 {dimension_numbers = #tpu.dot_dimension_numbers<[1], [0], [0], [1], [0, 0, 1, 1], [], []>} : vector<256x8xbf16>, vector<8x128xbf16>, vector<256x128xf32> -> vector<256x128xf32>
    %c0_58 = arith.constant 0 : index
    %c0_59 = arith.constant 0 : index
    %83 = vector.load %arg6[%c0_58, %c0_59] : memref<256x128xf32, #tpu.memory_space<vmem>>, vector<256x128xf32>
    %84 = arith.addf %83, %82 : vector<256x128xf32>
    %c0_60 = arith.constant 0 : index
    %c0_61 = arith.constant 0 : index
    %85 = vector.load %arg6[%c0_60, %c0_61] : memref<256x128xf32, #tpu.memory_space<vmem>>, vector<256x128xf32>
    tpu.vector_store %arg6[%c0_60, %c0_61], %84 {strides = array<i32>} : memref<256x128xf32, #tpu.memory_space<vmem>>, vector<256x128xf32>,
    %86 = vector.extract_strided_slice %67 {offsets = [0, 2, 0], sizes = [16, 16, 8], strides = [1, 1, 1]} : vector<16x18x8xf32> to vector<16x16x8xf32>
    %87 = vector.shape_cast %86 : vector<16x16x8xf32> to vector<256x8xf32>
    %88 = arith.truncf %87 : vector<256x8xf32> to vector<256x8xbf16>
    %c8 = arith.constant 8 : index
    %c0_62 = arith.constant 0 : index
    %c0_63 = arith.constant 0 : index
    %89 = vector.load %arg3[%c8, %c0_62, %c0_63] : memref<9x8x128xbf16, #tpu.memory_space<vmem>>, vector<1x8x128xbf16>
    %90 = vector.shape_cast %89 : vector<1x8x128xbf16> to vector<8x128xbf16>
    %cst_64 = arith.constant dense<0.000000e+00> : vector<256x128xf32>
    %91 = tpu.matmul %88, %90, %cst_64 {dimension_numbers = #tpu.dot_dimension_numbers<[1], [0], [0], [1], [0, 0, 1, 1], [], []>} : vector<256x8xbf16>, vector<8x128xbf16>, vector<256x128xf32> -> vector<256x128xf32>
    %c0_65 = arith.constant 0 : index
    %c0_66 = arith.constant 0 : index
    %92 = vector.load %arg6[%c0_65, %c0_66] : memref<256x128xf32, #tpu.memory_space<vmem>>, vector<256x128xf32>
    %93 = arith.addf %92, %91 : vector<256x128xf32>
    %c0_67 = arith.constant 0 : index
    %c0_68 = arith.constant 0 : index
    %94 = vector.load %arg6[%c0_67, %c0_68] : memref<256x128xf32, #tpu.memory_space<vmem>>, vector<256x128xf32>
    tpu.vector_store %arg6[%c0_67, %c0_68], %93 {strides = array<i32>} : memref<256x128xf32, #tpu.memory_space<vmem>>, vector<256x128xf32>,
    %c0_69 = arith.constant 0 : index
    %c0_70 = arith.constant 0 : index
    %95 = vector.load %arg6[%c0_69, %c0_70] : memref<256x128xf32, #tpu.memory_space<vmem>>, vector<256x128xf32>
    %c0_71 = arith.constant 0 : index
    %c0_72 = arith.constant 0 : index
    %96 = vector.load %arg4[%c0_71, %c0_72] : memref<1x128xf32, #tpu.memory_space<vmem>>, vector<1x128xf32>
    %97 = vector.broadcast %96 : vector<1x128xf32> to vector<256x128xf32>
    %98 = arith.addf %95, %97 : vector<256x128xf32>
    %cst_73 = arith.constant 0.000000e+00 : f32
    %99 = vector.broadcast %cst_73 : f32 to vector<256x128xf32>
    %100 = arith.maximumf %98, %99 : vector<256x128xf32>
    %101 = vector.extract_strided_slice %100 {offsets = [0, 0], sizes = [256, 16], strides = [1, 1]} : vector<256x128xf32> to vector<256x16xf32>
    %102 = arith.truncf %101 : vector<256x16xf32> to vector<256x16xbf16>
    %c0_74 = arith.constant 0 : index
    %c0_75 = arith.constant 0 : index
    %c0_76 = arith.constant 0 : index
    %103 = vector.load %arg5[%c0_74, %c0_75, %c0_76] : memref<1x256x16xbf16, #tpu.memory_space<vmem>>, vector<1x256x16xbf16>
    %104 = vector.shape_cast %103 : vector<1x256x16xbf16> to vector<256x16xbf16>
    %105 = vector.shape_cast %102 : vector<256x16xbf16> to vector<1x256x16xbf16>
    tpu.vector_store %arg5[%c0_74, %c0_75, %c0_76], %105 {strides = array<i32>} : memref<1x256x16xbf16, #tpu.memory_space<vmem>>, vector<1x256x16xbf16>,
    return
  }
  func.func @transform_0(%arg0: i32, %arg1: i32) -> (i32, i32, i32, i32) {
    %c0_i32 = arith.constant 0 : i32
    %c0_i32_0 = arith.constant 0 : i32
    %c0_i32_1 = arith.constant 0 : i32
    %c0_i32_2 = arith.constant 0 : i32
    return %arg0, %c0_i32, %c0_i32_0, %c0_i32_1 : i32, i32, i32, i32
  }
  func.func @transform_1(%arg0: i32, %arg1: i32) -> (i32, i32, i32) {
    %c0_i32 = arith.constant 0 : i32
    %c0_i32_0 = arith.constant 0 : i32
    %c0_i32_1 = arith.constant 0 : i32
    %c0_i32_2 = arith.constant 0 : i32
    return %c0_i32, %c0_i32_0, %c0_i32_1 : i32, i32, i32
  }
  func.func @transform_2(%arg0: i32, %arg1: i32) -> (i32, i32) {
    %c0_i32 = arith.constant 0 : i32
    %c0_i32_0 = arith.constant 0 : i32
    %c0_i32_1 = arith.constant 0 : i32
    return %c0_i32, %c0_i32_0 : i32, i32
  }
  func.func @transform_3(%arg0: i32, %arg1: i32) -> (i32, i32, i32) {
    %c0_i32 = arith.constant 0 : i32
    %c0_i32_0 = arith.constant 0 : i32
    return %arg0, %arg1, %c0_i32 : i32, i32, i32
  }
}

module attributes {stable_mosaic.version = 11 : i64} {
  func.func @_maxpool2x2_kernel(%arg0: i32, %arg1: memref<1x16x8x32xbf16, #tpu.memory_space<vmem>>, %arg2: memref<1x8x8x16xbf16, #tpu.memory_space<vmem>>) attributes {dimension_semantics = [#tpu.dimension_semantics<parallel>], iteration_bounds = array<i64: 2>, scalar_prefetch = 0 : i64, scratch_operands = 0 : i64, tpu.core_type = #tpu.core_type<tc>, window_params = [{transform_indices = @transform_0, window_bounds = array<i64: 1, 16, 8, 32>}, {transform_indices = @transform_1, window_bounds = array<i64: 1, 8, 8, 16>}]} {
    %c0 = arith.constant 0 : index
    %c0_0 = arith.constant 0 : index
    %c0_1 = arith.constant 0 : index
    %c0_2 = arith.constant 0 : index
    %0 = vector.load %arg1[%c0, %c0_0, %c0_1, %c0_2] : memref<1x16x8x32xbf16, #tpu.memory_space<vmem>>, vector<1x16x8x16xbf16>
    %1 = vector.shape_cast %0 : vector<1x16x8x16xbf16> to vector<16x8x16xbf16>
    %c0_3 = arith.constant 0 : index
    %c0_4 = arith.constant 0 : index
    %c0_5 = arith.constant 0 : index
    %c16 = arith.constant 16 : index
    %2 = vector.load %arg1[%c0_3, %c0_4, %c0_5, %c16] : memref<1x16x8x32xbf16, #tpu.memory_space<vmem>>, vector<1x16x8x16xbf16>
    %3 = vector.shape_cast %2 : vector<1x16x8x16xbf16> to vector<16x8x16xbf16>
    %4 = arith.maximumf %1, %3 : vector<16x8x16xbf16>
    %5 = vector.shape_cast %4 : vector<16x8x16xbf16> to vector<8x2x8x16xbf16>
    %6 = vector.extract_strided_slice %5 {offsets = [0, 0, 0, 0], sizes = [8, 1, 8, 16], strides = [1, 1, 1, 1]} : vector<8x2x8x16xbf16> to vector<8x1x8x16xbf16>
    %7 = vector.shape_cast %6 : vector<8x1x8x16xbf16> to vector<8x8x16xbf16>
    %8 = vector.extract_strided_slice %5 {offsets = [0, 1, 0, 0], sizes = [8, 1, 8, 16], strides = [1, 1, 1, 1]} : vector<8x2x8x16xbf16> to vector<8x1x8x16xbf16>
    %9 = vector.shape_cast %8 : vector<8x1x8x16xbf16> to vector<8x8x16xbf16>
    %10 = arith.maximumf %7, %9 : vector<8x8x16xbf16>
    %c0_6 = arith.constant 0 : index
    %c0_7 = arith.constant 0 : index
    %c0_8 = arith.constant 0 : index
    %c0_9 = arith.constant 0 : index
    %11 = vector.load %arg2[%c0_6, %c0_7, %c0_8, %c0_9] : memref<1x8x8x16xbf16, #tpu.memory_space<vmem>>, vector<1x8x8x16xbf16>
    %12 = vector.shape_cast %11 : vector<1x8x8x16xbf16> to vector<8x8x16xbf16>
    %13 = vector.shape_cast %10 : vector<8x8x16xbf16> to vector<1x8x8x16xbf16>
    tpu.vector_store %arg2[%c0_6, %c0_7, %c0_8, %c0_9], %13 {strides = array<i32>} : memref<1x8x8x16xbf16, #tpu.memory_space<vmem>>, vector<1x8x8x16xbf16>,
    return
  }
  func.func @transform_0(%arg0: i32) -> (i32, i32, i32, i32) {
    %c0_i32 = arith.constant 0 : i32
    %c0_i32_0 = arith.constant 0 : i32
    %c0_i32_1 = arith.constant 0 : i32
    %c0_i32_2 = arith.constant 0 : i32
    return %arg0, %c0_i32, %c0_i32_0, %c0_i32_1 : i32, i32, i32, i32
  }
  func.func @transform_1(%arg0: i32) -> (i32, i32, i32, i32) {
    %c0_i32 = arith.constant 0 : i32
    %c0_i32_0 = arith.constant 0 : i32
    %c0_i32_1 = arith.constant 0 : i32
    %c0_i32_2 = arith.constant 0 : i32
    return %arg0, %c0_i32, %c0_i32_0, %c0_i32_1 : i32, i32, i32, i32
  }
}

module attributes {stable_mosaic.version = 11 : i64} {
  func.func @_mlp_kernel(%arg0: i32, %arg1: memref<2x1024xbf16, #tpu.memory_space<vmem>>, %arg2: memref<1024x128xbf16, #tpu.memory_space<vmem>>, %arg3: memref<1x128xf32, #tpu.memory_space<vmem>>, %arg4: memref<128x128xbf16, #tpu.memory_space<vmem>>, %arg5: memref<1x128xf32, #tpu.memory_space<vmem>>, %arg6: memref<2x128xf32, #tpu.memory_space<vmem>>) attributes {dimension_semantics = [#tpu.dimension_semantics<parallel>], iteration_bounds = array<i64: 1>, scalar_prefetch = 0 : i64, scratch_operands = 0 : i64, tpu.core_type = #tpu.core_type<tc>, window_params = [{transform_indices = @transform_0, window_bounds = array<i64: 2, 1024>}, {pipeline_mode = #tpu.pipeline_mode<synchronous>, transform_indices = @transform_1, window_bounds = array<i64: 1024, 128>}, {pipeline_mode = #tpu.pipeline_mode<synchronous>, transform_indices = @transform_2, window_bounds = array<i64: 1, 128>}, {pipeline_mode = #tpu.pipeline_mode<synchronous>, transform_indices = @transform_3, window_bounds = array<i64: 128, 128>}, {pipeline_mode = #tpu.pipeline_mode<synchronous>, transform_indices = @transform_4, window_bounds = array<i64: 1, 128>}, {transform_indices = @transform_5, window_bounds = array<i64: 2, 128>}]} {
    %c0 = arith.constant 0 : index
    %c0_0 = arith.constant 0 : index
    %0 = vector.load %arg1[%c0, %c0_0] : memref<2x1024xbf16, #tpu.memory_space<vmem>>, vector<2x1024xbf16>
    %c0_1 = arith.constant 0 : index
    %c0_2 = arith.constant 0 : index
    %1 = vector.load %arg2[%c0_1, %c0_2] : memref<1024x128xbf16, #tpu.memory_space<vmem>>, vector<1024x128xbf16>
    %c0_3 = arith.constant 0 : index
    %c0_4 = arith.constant 0 : index
    %2 = vector.load %arg3[%c0_3, %c0_4] : memref<1x128xf32, #tpu.memory_space<vmem>>, vector<1x128xf32>
    %cst = arith.constant dense<0.000000e+00> : vector<2x128xf32>
    %3 = tpu.matmul %0, %1, %cst {dimension_numbers = #tpu.dot_dimension_numbers<[1], [0], [0], [1], [0, 0, 1, 1], [], []>} : vector<2x1024xbf16>, vector<1024x128xbf16>, vector<2x128xf32> -> vector<2x128xf32>
    %4 = vector.broadcast %2 : vector<1x128xf32> to vector<2x128xf32>
    %5 = arith.addf %3, %4 : vector<2x128xf32>
    %cst_5 = arith.constant 0.000000e+00 : f32
    %6 = vector.broadcast %cst_5 : f32 to vector<2x128xf32>
    %7 = arith.maximumf %5, %6 : vector<2x128xf32>
    %c0_6 = arith.constant 0 : index
    %c0_7 = arith.constant 0 : index
    %8 = vector.load %arg4[%c0_6, %c0_7] : memref<128x128xbf16, #tpu.memory_space<vmem>>, vector<128x128xbf16>
    %c0_8 = arith.constant 0 : index
    %c0_9 = arith.constant 0 : index
    %9 = vector.load %arg5[%c0_8, %c0_9] : memref<1x128xf32, #tpu.memory_space<vmem>>, vector<1x128xf32>
    %10 = arith.truncf %7 : vector<2x128xf32> to vector<2x128xbf16>
    %cst_10 = arith.constant dense<0.000000e+00> : vector<2x128xf32>
    %11 = tpu.matmul %10, %8, %cst_10 {dimension_numbers = #tpu.dot_dimension_numbers<[1], [0], [0], [1], [0, 0, 1, 1], [], []>} : vector<2x128xbf16>, vector<128x128xbf16>, vector<2x128xf32> -> vector<2x128xf32>
    %12 = vector.broadcast %9 : vector<1x128xf32> to vector<2x128xf32>
    %13 = arith.addf %11, %12 : vector<2x128xf32>
    %c0_11 = arith.constant 0 : index
    %c0_12 = arith.constant 0 : index
    %14 = vector.load %arg6[%c0_11, %c0_12] : memref<2x128xf32, #tpu.memory_space<vmem>>, vector<2x128xf32>
    tpu.vector_store %arg6[%c0_11, %c0_12], %13 {strides = array<i32>} : memref<2x128xf32, #tpu.memory_space<vmem>>, vector<2x128xf32>,
    return
  }
  func.func @transform_0(%arg0: i32) -> (i32, i32) {
    %c0_i32 = arith.constant 0 : i32
    %c0_i32_0 = arith.constant 0 : i32
    return %arg0, %c0_i32 : i32, i32
  }
  func.func @transform_1(%arg0: i32) -> (i32, i32) {
    %c0_i32 = arith.constant 0 : i32
    %c0_i32_0 = arith.constant 0 : i32
    %c0_i32_1 = arith.constant 0 : i32
    return %c0_i32, %c0_i32_0 : i32, i32
  }
  func.func @transform_2(%arg0: i32) -> (i32, i32) {
    %c0_i32 = arith.constant 0 : i32
    %c0_i32_0 = arith.constant 0 : i32
    %c0_i32_1 = arith.constant 0 : i32
    return %c0_i32, %c0_i32_0 : i32, i32
  }
  func.func @transform_3(%arg0: i32) -> (i32, i32) {
    %c0_i32 = arith.constant 0 : i32
    %c0_i32_0 = arith.constant 0 : i32
    %c0_i32_1 = arith.constant 0 : i32
    return %c0_i32, %c0_i32_0 : i32, i32
  }
  func.func @transform_4(%arg0: i32) -> (i32, i32) {
    %c0_i32 = arith.constant 0 : i32
    %c0_i32_0 = arith.constant 0 : i32
    %c0_i32_1 = arith.constant 0 : i32
    return %c0_i32, %c0_i32_0 : i32, i32
  }
  func.func @transform_5(%arg0: i32) -> (i32, i32) {
    %c0_i32 = arith.constant 0 : i32
    %c0_i32_0 = arith.constant 0 : i32
    return %arg0, %c0_i32 : i32, i32
  }
}

</mosaic_0001>

<bundles_post_ra>
// kernel: conv_classifier_forward.6
= control target key start
LH: loop header
LB: loop body
LE: loop exit
PB: predicated region body
PF: predicated region fallthrough
CT: control target
= control target key end

     0   :  { %s326_s6 = smov 0   ;;  %s383_s0 = inlined_call_operand.vmem [shape: bf16[2,16,8,32], index: 0, kind: input, shape index: {}]   ;;  %s384_s1 = inlined_call_operand.vmem [shape: bf16[2,8,8,16], index: 1, kind: output, shape index: {}]  }
   0x1 LB: > { %s285_s7 = sadd.s32 4294967295, %s313_s6   ;;  %p289_p0 = scmp.ge.s32.totalorder %s313_s6, 1  ;;  %s313_s6 = sphi %s326_s6, %s11_s6  }
   0x2   : > { %p87_p1 = scmp.lt.s32.totalorder %s313_s6, 3 }
   0x4   : > { %p88_p2 = pnand %p289_p0, %p87_p1 }
   0x5   : > { %p107_p3 = scmp.lt.s32.totalorder (!%p88_p2), %s285_s7, 1  ;;  %s315_s12 = smov (!%p88_p2), 112  }
   0x6   : > { %91 = sbr.rel (%p88_p2) target bundleno = 163 (0xa3), region = 24 }
   0xb   : > { %s386_s7 = smov (!%p107_p3, %s285_s7), 1  ;;  %vm221_vm0 = vcmask 125952  }
   0xc   : > { %s296_s8 = sshll.u32 %s386_s7, 6  ;;  %s297_s13 = sshll.u32 %s386_s7, 5 }
   0xd   : > { %s340_s11 = scalar_lea.vmem %s383_s0, %s296_s8  ;;  %s362_s16 = scalar_lea.vmem %s384_s1, %s297_s13 }
   0xe   : > { %v119_v0 = vld [vmem:[%s340_s11 + $0x8] sm:$0xf]  ;;  %v117_v1 = vld [vmem:[%s340_s11] sm:$0xf]  ;;  %v120_v2 = vld [vmem:[%s340_s11 + $0xc] sm:$0xf] }
   0xf   : > { %153 = vrot.lane.b32.xlu1 %v119_v0, %s315_s12  ;;  %149 = vrot.lane.b32.xlu0 %v117_v1, %s315_s12  ;;  %v118_v3 = vld [vmem:[%s340_s11 + $0x4] sm:$0xf]  ;;  %v122_v4 = vld [vmem:[%s340_s11 + $0x14] sm:$0xf] }
  0x10   : > { %v121_v5 = vld [vmem:[%s340_s11 + $0x10] sm:$0xf]  ;;  %v124_v6 = vld [vmem:[%s340_s11 + $0x1c] sm:$0xf]  ;;  %v123_v7 = vld [vmem:[%s340_s11 + $0x18] sm:$0xf] }
  0x11   : > { %v126_v8 = vld [vmem:[%s340_s11 + $0x24] sm:$0xf]  ;;  %v125_v9 = vld [vmem:[%s340_s11 + $0x20] sm:$0xf]  ;;  %v128_v10 = vld [vmem:[%s340_s11 + $0x2c] sm:$0xf] }
  0x12   : > { %v127_v11 = vld [vmem:[%s340_s11 + $0x28] sm:$0xf]  ;;  %v130_v12 = vld [vmem:[%s340_s11 + $0x34] sm:$0xf]  ;;  %v129_v13 = vld [vmem:[%s340_s11 + $0x30] sm:$0xf] }
  0x13   : > { %155 = vrot.lane.b32.xlu1 %v120_v2, %s315_s12  ;;  %151 = vrot.lane.b32.xlu0 %v118_v3, %s315_s12  ;;  %v132_v14 = vld [vmem:[%s340_s11 + $0x3c] sm:$0xf]  ;;  %v131_v15 = vld [vmem:[%s340_s11 + $0x38] sm:$0xf] }
  0x17   : > { %159 = vrot.lane.b32.xlu1 %v122_v4, %s315_s12  ;;  %157 = vrot.lane.b32.xlu0 %v121_v5, %s315_s12 }
  0x1b   : > { %163 = vrot.lane.b32.xlu1 %v124_v6, %s315_s12  ;;  %161 = vrot.lane.b32.xlu0 %v123_v7, %s315_s12 }
  0x1f   : > { %167 = vrot.lane.b32.xlu1 %v126_v8, %s315_s12  ;;  %165 = vrot.lane.b32.xlu0 %v125_v9, %s315_s12 }
  0x23   : > { %171 = vrot.lane.b32.xlu1 %v128_v10, %s315_s12  ;;  %169 = vrot.lane.b32.xlu0 %v127_v11, %s315_s12 }
  0x27   : > { %175 = vrot.lane.b32.xlu1 %v130_v12, %s315_s12  ;;  %173 = vrot.lane.b32.xlu0 %v129_v13, %s315_s12 }
  0x2b   : > { %179 = vrot.lane.b32.xlu1 %v132_v14, %s315_s12  ;;  %177 = vrot.lane.b32.xlu0 %v131_v15, %s315_s12 }
  0x81   : > { %v154_v16 = vpop.permute.xlu1 %153  ;;  %v150_v17 = vpop.permute.xlu0 %149 }
  0x82   : > { %v199_v20 = vmax.bf16 %v154_v16, %v119_v0  ;;  %v197_v21 = vmax.bf16 %v150_v17, %v117_v1 }
  0x85   : > { %v156_v18 = vpop.permute.xlu1 %155  ;;  %v152_v19 = vpop.permute.xlu0 %151 }
  0x86   : > { %v200_v22 = vmax.bf16 %v156_v18, %v120_v2  ;;  %v198_v23 = vmax.bf16 %v152_v19, %v118_v3 }
  0x88   : > { %v214_v24 = vmax.bf16 %v200_v22, %v199_v20  ;;  %v213_v25 = vmax.bf16 %v198_v23, %v197_v21 }
  0x89   : > { %v160_v26 = vpop.permute.xlu1 %159  ;;  %v158_v27 = vpop.permute.xlu0 %157 }
  0x8a   : > { %223 = vst.msk [vmem:[%s362_s16 + $0x4] sm:$0xf] %vm221_vm0, %v214_v24  ;;  %222 = vst.msk [vmem:[%s362_s16] sm:$0xf] %vm221_vm0, %v213_v25  ;;  %v202_v28 = vmax.bf16 %v160_v26, %v122_v4  ;;  %v201_v29 = vmax.bf16 %v158_v27, %v121_v5 }
  0x8c   : > { %v215_v30 = vmax.bf16 %v202_v28, %v201_v29 }
  0x8d   : > { %v164_v31 = vpop.permute.xlu1 %163  ;;  %v162_v32 = vpop.permute.xlu0 %161 }
  0x8e   : > { %224 = vst.msk [vmem:[%s362_s16 + $0x8] sm:$0xf] %vm221_vm0, %v215_v30  ;;  %v204_v33 = vmax.bf16 %v164_v31, %v124_v6  ;;  %v203_v34 = vmax.bf16 %v162_v32, %v123_v7 }
  0x90   : > { %v216_v35 = vmax.bf16 %v204_v33, %v203_v34 }
  0x91   : > { %v168_v36 = vpop.permute.xlu1 %167  ;;  %v166_v37 = vpop.permute.xlu0 %165 }
  0x92   : > { %225 = vst.msk [vmem:[%s362_s16 + $0xc] sm:$0xf] %vm221_vm0, %v216_v35  ;;  %v206_v38 = vmax.bf16 %v168_v36, %v126_v8  ;;  %v205_v39 = vmax.bf16 %v166_v37, %v125_v9 }
  0x94   : > { %v217_v40 = vmax.bf16 %v206_v38, %v205_v39 }
  0x95   : > { %v172_v41 = vpop.permute.xlu1 %171  ;;  %v170_v42 = vpop.permute.xlu0 %169 }
  0x96   : > { %226 = vst.msk [vmem:[%s362_s16 + $0x10] sm:$0xf] %vm221_vm0, %v217_v40  ;;  %v208_v43 = vmax.bf16 %v172_v41, %v128_v10  ;;  %v207_v44 = vmax.bf16 %v170_v42, %v127_v11 }
  0x98   : > { %v218_v45 = vmax.bf16 %v208_v43, %v207_v44 }
  0x99   : > { %v176_v46 = vpop.permute.xlu1 %175  ;;  %v174_v47 = vpop.permute.xlu0 %173 }
  0x9a   : > { %227 = vst.msk [vmem:[%s362_s16 + $0x14] sm:$0xf] %vm221_vm0, %v218_v45  ;;  %v210_v48 = vmax.bf16 %v176_v46, %v130_v12  ;;  %v209_v49 = vmax.bf16 %v174_v47, %v129_v13 }
  0x9c   : > { %v219_v50 = vmax.bf16 %v210_v48, %v209_v49 }
  0x9d   : > { %v180_v51 = vpop.permute.xlu1 %179  ;;  %v178_v52 = vpop.permute.xlu0 %177 }
  0x9e   : > { %228 = vst.msk [vmem:[%s362_s16 + $0x18] sm:$0xf] %vm221_vm0, %v219_v50  ;;  %v212_v53 = vmax.bf16 %v180_v51, %v132_v14  ;;  %v211_v54 = vmax.bf16 %v178_v52, %v131_v15 }
  0xa0   : > { %v220_v55 = vmax.bf16 %v212_v53, %v211_v54 }
  0xa2   : > { %229 = vst.msk [vmem:[%s362_s16 + $0x1c] sm:$0xf] %vm221_vm0, %v220_v55 }
  0xa3 PF: > { %s11_s6 = sadd.s32 1, %s313_s6  }
  0xa4   : > { %p8_p4 = scmp.ge.s32.totalorder %s11_s6, 4  }
  0xa6   :  { %10 = sbr.rel (!%p8_p4) target bundleno = 1 (0x1), region = 54 }

// kernel: conv_classifier_forward.7
= control target key start
LH: loop header
LB: loop body
LE: loop exit
PB: predicated region body
PF: predicated region fallthrough
CT: control target
= control target key end

     0   :  { %v163_v28 = vlaneseq  ;;  %v1178_v36 = vmov 1966171168   ;;  %s1453_s0 = inlined_call_operand.vmem [shape: bf16[2,1024], index: 0, kind: input, shape index: {}]   ;;  %s1454_s1 = inlined_call_operand.vmem [shape: bf16[1024,128], index: 1, kind: input, shape index: {}]   ;;  %s1455_s2 = inlined_call_operand.vmem [shape: f32[1,128], index: 2, kind: input, shape index: {}]   ;;  %s1456_s3 = inlined_call_operand.vmem [shape: bf16[128,128], index: 3, kind: input, shape index: {}]   ;;  %s1457_s4 = inlined_call_operand.vmem [shape: f32[1,128], index: 4, kind: input, shape index: {}]   ;;  %s1458_s5 = inlined_call_operand.hbm [shape: f32[2,128], index: 5, kind: output, shape index: {}]  }
   0x1   :  { %v1083_v0 = vld [vmem:[%s1454_s1 + $0x78] sm:$0xff]   ;;  %v1087_v4 = vld [vmem:[%s1454_s1 + $0x70] sm:$0xff]   ;;  %v1091_v8 = vld [vmem:[%s1454_s1 + $0x68] sm:$0xff]   ;;  %v161_v37 = vunpack.c.l.s4 %v1178_v36 }
   0x2   :  { %v1084_v1 = vld [vmem:[%s1454_s1 + $0xf8] sm:$0xff]   ;;  %962 = vmatprep.subr.bf16.mxu0 %v1083_v0  ;;  %v1088_v5 = vld [vmem:[%s1454_s1 + $0xf0] sm:$0xff]   ;;  %v1092_v9 = vld [vmem:[%s1454_s1 + $0xe8] sm:$0xff]   ;;  %v164_v33 = vshrl.u32 %v163_v28, 7 }
   0x3   :  { %v1085_v2 = vld [vmem:[%s1454_s1 + $0x38] sm:$0xff]   ;;  %984 = vmatprep.subr.bf16.mxu1 %v1084_v1  ;;  %v1089_v6 = vld [vmem:[%s1454_s1 + $0x30] sm:$0xff]   ;;  %v1093_v10 = vld [vmem:[%s1454_s1 + $0x28] sm:$0xff]   ;;  %v162_v40 = vunpack.c.0.s8 %v161_v37 }
   0x4   :  { %v1086_v3 = vld [vmem:[%s1454_s1 + $0xb8] sm:$0xff]   ;;  %963 = vmatpush3.bf16.msra.mxu0 %v1085_v2  ;;  %v1090_v7 = vld [vmem:[%s1454_s1 + $0xb0] sm:$0xff]   ;;  %v1094_v11 = vld [vmem:[%s1454_s1 + $0xa8] sm:$0xff]  }
   0x5   :  { %985 = vmatpush3.bf16.msra.mxu1 %v1086_v3  ;;  %964 = vmatprep.subr.bf16.mxu0 %v1087_v4  ;;  %v1095_v12 = vld [vmem:[%s1454_s1 + $0x60] sm:$0xff]   ;;  %v1099_v16 = vld [vmem:[%s1454_s1 + $0x58] sm:$0xff]   ;;  %v1103_v20 = vld [vmem:[%s1454_s1 + $0x50] sm:$0xff]   ;;  %v1317_v41 = vsub.s32 %v162_v40, %v164_v33 }
   0x6   :  { %986 = vmatprep.subr.bf16.mxu1 %v1088_v5  ;;  %v1096_v13 = vld [vmem:[%s1454_s1 + $0xe0] sm:$0xff]   ;;  %v1100_v17 = vld [vmem:[%s1454_s1 + $0xd8] sm:$0xff]   ;;  %v1104_v21 = vld [vmem:[%s1454_s1 + $0xd0] sm:$0xff]  }
   0x7   :  { %v1097_v14 = vld [vmem:[%s1454_s1 + $0x20] sm:$0xff]   ;;  %v1101_v18 = vld [vmem:[%s1454_s1 + $0x18] sm:$0xff]   ;;  %v1105_v22 = vld [vmem:[%s1454_s1 + $0x10] sm:$0xff]  }
   0x8   :  { %965 = vmatpush3.bf16.msra.mxu0 %v1089_v6  ;;  %v1098_v15 = vld [vmem:[%s1454_s1 + $0xa0] sm:$0xff]   ;;  %v1102_v19 = vld [vmem:[%s1454_s1 + $0x98] sm:$0xff]   ;;  %v1106_v23 = vld [vmem:[%s1454_s1 + $0x90] sm:$0xff]  }
   0x9   :  { %987 = vmatpush3.bf16.msra.mxu1 %v1090_v7  ;;  %966 = vmatprep.subr.bf16.mxu0 %v1091_v8  ;;  %v1107_v24 = vld [vmem:[%s1454_s1 + $0x48] sm:$0xff]   ;;  %v1111_v29 = vld [vmem:[%s1454_s1 + $0x40] sm:$0xff]   ;;  %v1116_v35 = vld [vmem:[%s1454_s1 + $0x178] sm:$0xff]  }
   0xa   :  { %988 = vmatprep.subr.bf16.mxu1 %v1092_v9  ;;  %v1108_v25 = vld [vmem:[%s1454_s1 + $0xc8] sm:$0xff]   ;;  %v1112_v30 = vld [vmem:[%s1454_s1 + $0xc0] sm:$0xff]   ;;  %v1117_v38 = vld [vmem:[%s1454_s1 + $0x1f8] sm:$0xff]  }
   0xb   :  { %v1109_v26 = vld [vmem:[%s1454_s1 + $0x8] sm:$0xff]   ;;  %v1113_v31 = vld [vmem:[%s1454_s1] sm:$0xff]   ;;  %v1118_v47 = vld [vmem:[%s1454_s1 + $0x138] sm:$0xff]  }
   0xc   :  { %967 = vmatpush3.bf16.msra.mxu0 %v1093_v10  ;;  %v1110_v27 = vld [vmem:[%s1454_s1 + $0x88] sm:$0xff]   ;;  %v1114_v32 = vld [vmem:[%s1454_s1 + $0x80] sm:$0xff]   ;;  %v1119_v49 = vld [vmem:[%s1454_s1 + $0x1b8] sm:$0xff]  }
   0xd   :  { %989 = vmatpush3.bf16.msra.mxu1 %v1094_v11  ;;  %968 = vmatprep.subr.bf16.mxu0 %v1095_v12  ;;  %v22_v34 = vld [vmem:[%s1453_s0] sm:$0xff]  ;;  %v1120_v52 = vld [vmem:[%s1454_s1 + $0x170] sm:$0xff]   ;;  %v1124_v58 = vld [vmem:[%s1454_s1 + $0x168] sm:$0xff]  }
   0xe   :  { %990 = vmatprep.subr.bf16.mxu1 %v1096_v13  ;;  %v159_v39 = vcombine.high %v22_v34, %v22_v34  ;;  %v166_v42 = vrot.slane %v22_v34, %v1317_v41  ;;  %v1121_v54 = vld [vmem:[%s1454_s1 + $0x1f0] sm:$0xff]   ;;  %v1125_v59 = vld [vmem:[%s1454_s1 + $0x1e8] sm:$0xff]   ;;  %v1128_v62 = vld [vmem:[%s1454_s1 + $0x160] sm:$0xff]  }
   0xf   :  { %v1122_v55 = vld [vmem:[%s1454_s1 + $0x130] sm:$0xff]   ;;  %v1126_v60 = vld [vmem:[%s1454_s1 + $0x128] sm:$0xff]   ;;  %v1129_v63 = vld [vmem:[%s1454_s1 + $0x1e0] sm:$0xff]  }
  0x10   :  { %969 = vmatpush3.bf16.msra.mxu0 %v1097_v14  ;;  %v1321_v43 = vrot.slane %v159_v39, %v1317_v41  ;;  %v174_v44 = vcombine.high %v166_v42, %v166_v42  ;;  %v182_v45 = vrot.slane %v166_v42, %v1317_v41  ;;  %v1123_v57 = vld [vmem:[%s1454_s1 + $0x1b0] sm:$0xff]   ;;  %v1127_v61 = vld [vmem:[%s1454_s1 + $0x1a8] sm:$0xff]   ;;  %v1130_v0 = vld [vmem:[%s1454_s1 + $0x120] sm:$0xff]  }
  0x11   :  { %991 = vmatpush3.bf16.msra.mxu1 %v1098_v15  ;;  %970 = vmatprep.subr.bf16.mxu0 %v1099_v16  ;;  %v1131_v1 = vld [vmem:[%s1454_s1 + $0x1a0] sm:$0xff]   ;;  %v1132_v2 = vld [vmem:[%s1454_s1 + $0x158] sm:$0xff]   ;;  %v1136_v6 = vld [vmem:[%s1454_s1 + $0x150] sm:$0xff]  }
  0x12   :  { %992 = vmatprep.subr.bf16.mxu1 %v1100_v17  ;;  %v175_v46 = vcombine.high %v1321_v43, %v1321_v43  ;;  %v196_v48 = vrot.slane %v174_v44, %v1317_v41  ;;  %v204_v51 = vcombine.high %v182_v45, %v182_v45  ;;  %v1133_v3 = vld [vmem:[%s1454_s1 + $0x1d8] sm:$0xff]   ;;  %v1137_v7 = vld [vmem:[%s1454_s1 + $0x1d0] sm:$0xff]   ;;  %v1140_v10 = vld [vmem:[%s1454_s1 + $0x148] sm:$0xff]  }
  0x13   :  { %v1134_v4 = vld [vmem:[%s1454_s1 + $0x118] sm:$0xff]   ;;  %v1138_v8 = vld [vmem:[%s1454_s1 + $0x110] sm:$0xff]   ;;  %v1141_v11 = vld [vmem:[%s1454_s1 + $0x1c8] sm:$0xff]  }
  0x14   :  { %971 = vmatpush3.bf16.msra.mxu0 %v1101_v18  ;;  %v203_v50 = vrot.slane %v175_v46, %v1317_v41  ;;  %632 = vmatprep.mubr.bf16.mxu0 %v196_v48  ;;  %v206_v53 = vcombine.high %v196_v48, %v196_v48  ;;  %v1135_v5 = vld [vmem:[%s1454_s1 + $0x198] sm:$0xff]   ;;  %v1139_v9 = vld [vmem:[%s1454_s1 + $0x190] sm:$0xff]   ;;  %v1142_v12 = vld [vmem:[%s1454_s1 + $0x108] sm:$0xff]  }
  0x15   :  { %993 = vmatpush3.bf16.msra.mxu1 %v1102_v19  ;;  %972 = vmatprep.subr.bf16.mxu0 %v1103_v20  ;;  %v1144_v13 = vld [vmem:[%s1454_s1 + $0x140] sm:$0xff]   ;;  %v1143_v14 = vld [vmem:[%s1454_s1 + $0x188] sm:$0xff]  }
  0x16   :  { %994 = vmatprep.subr.bf16.mxu1 %v1104_v21  ;;  %v207_v56 = vcombine.high %v203_v50, %v203_v50  ;;  %672 = vmatprep.mubr.bf16.mxu1 %v206_v53 }
  0x18   :  { %973 = vmatpush3.bf16.msra.mxu0 %v1105_v22 }
  0x19   :  { %995 = vmatpush3.bf16.msra.mxu1 %v1106_v23  ;;  %974 = vmatprep.subr.bf16.mxu0 %v1107_v24 }
  0x1a   :  { %996 = vmatprep.subr.bf16.mxu1 %v1108_v25 }
  0x1c   :  { %975 = vmatpush3.bf16.msra.mxu0 %v1109_v26 }
  0x1d   :  { %997 = vmatpush3.bf16.msra.mxu1 %v1110_v27  ;;  %976 = vmatprep.subr.bf16.mxu0 %v1111_v29 }
  0x1e   :  { %998 = vmatprep.subr.bf16.mxu1 %v1112_v30 }
  0x20   :  { %977 = vmatpush3.bf16.msra.mxu0 %v1113_v31 }
  0x21   :  { %999 = vmatpush3.bf16.msra.mxu1 %v1114_v32  ;;  %1006 = vmatprep.subr.bf16.mxu0 %v1116_v35 }
  0x22   :  { %1028 = vmatprep.subr.bf16.mxu1 %v1117_v38 }
  0x23   :  { %633 = vmatmul.mubr.bf16.vlgmr.msra.gmra.mxu0 %v182_v45 }
  0x24   :  { %1007 = vmatpush3.bf16.msra.mxu0 %v1118_v47  ;;  %673 = vmatmul.mubr.bf16.vlgmr.msra.gmra.mxu1 %v204_v51 }
  0x25   :  { %1008 = vmatprep.subr.bf16.mxu0 %v1120_v52  ;;  %1029 = vmatpush3.bf16.msra.mxu1 %v1119_v49 }
  0x26   :  { %712 = vmatprep.mubr.bf16.mxu0 %v203_v50  ;;  %1030 = vmatprep.subr.bf16.mxu1 %v1121_v54 }
  0x27   :  { %752 = vmatprep.mubr.bf16.mxu1 %v207_v56 }
  0x28   :  { %1009 = vmatpush3.bf16.msra.mxu0 %v1122_v55 }
  0x29   :  { %1010 = vmatprep.subr.bf16.mxu0 %v1124_v58  ;;  %1031 = vmatpush3.bf16.msra.mxu1 %v1123_v57 }
  0x2a   :  { %1032 = vmatprep.subr.bf16.mxu1 %v1125_v59 }
  0x2c   :  { %1011 = vmatpush3.bf16.msra.mxu0 %v1126_v60 }
  0x2d   :  { %1012 = vmatprep.subr.bf16.mxu0 %v1128_v62  ;;  %1033 = vmatpush3.bf16.msra.mxu1 %v1127_v61 }
  0x2e   :  { %1034 = vmatprep.subr.bf16.mxu1 %v1129_v63 }
  0x30   :  { %1013 = vmatpush3.bf16.msra.mxu0 %v1130_v0 }
  0x31   :  { %1014 = vmatprep.subr.bf16.mxu0 %v1132_v2  ;;  %1035 = vmatpush3.bf16.msra.mxu1 %v1131_v1 }
  0x32   :  { %1036 = vmatprep.subr.bf16.mxu1 %v1133_v3 }
  0x34   :  { %1015 = vmatpush3.bf16.msra.mxu0 %v1134_v4 }
  0x35   :  { %1016 = vmatprep.subr.bf16.mxu0 %v1136_v6  ;;  %1037 = vmatpush3.bf16.msra.mxu1 %v1135_v5 }
  0x36   :  { %1038 = vmatprep.subr.bf16.mxu1 %v1137_v7 }
  0x38   :  { %1017 = vmatpush3.bf16.msra.mxu0 %v1138_v8 }
  0x39   :  { %1018 = vmatprep.subr.bf16.mxu0 %v1140_v10  ;;  %1039 = vmatpush3.bf16.msra.mxu1 %v1139_v9 }
  0x3a   :  { %10 = vsyncpa [#allocation3], 0  ;;  %1040 = vmatprep.subr.bf16.mxu1 %v1141_v11  ;;  %v1145_v15 = vld [vmem:[%s1454_s1 + $0x1c0] sm:$0xff]   ;;  %v189_v17 = vrot.slane %v1321_v43, %v1317_v41  ;;  %v1148_v20 = vld [vmem:[%s1456_s3 + $0x38] sm:$0xff]   ;;  %v1179_v21 = vmov 0.0   ;;  %vm1180_vm0 = vmmov 0  }
  0x3b   :  { %v1146_v16 = vld [vmem:[%s1454_s1 + $0x100] sm:$0xff]   ;;  %v1149_v22 = vld [vmem:[%s1456_s3 + $0x30] sm:$0xff]   ;;  %v1150_v23 = vld [vmem:[%s1456_s3 + $0x28] sm:$0xff]   ;;  %s1181_s12 = smov [#allocation2]  }
  0x3c   :  { %1019 = vmatpush3.bf16.msra.mxu0 %v1142_v12  ;;  %v1147_v18 = vld [vmem:[%s1454_s1 + $0x180] sm:$0xff]   ;;  %v205_v19 = vcombine.high %v189_v17, %v189_v17  ;;  %v1152_v25 = vld [vmem:[%s1456_s3 + $0x18] sm:$0xff]   ;;  %v1153_v26 = vld [vmem:[%s1456_s3 + $0x10] sm:$0xff]   ;;  %s880_s0 = sshll.u32 %s1181_s12, 4  ;;  %s881_s0 = int_to_ptr.vmem [resolvable:$true] %s880_s0 }
  0x3d   :  { %1020 = vmatprep.subr.bf16.mxu0 %v1144_v13  ;;  %1041 = vmatpush3.bf16.msra.mxu1 %v1143_v14  ;;  %v1151_v24 = vld [vmem:[%s1456_s3 + $0x20] sm:$0xff]   ;;  %v1154_v27 = vld [vmem:[%s1456_s3 + $0x8] sm:$0xff]   ;;  %s1156_s13 = scalar_lea.vmem %s881_s0, 32  ;;  %p1161_p1 = scmp.lt.s32.totalorder %s881_s0, %s881_s0 }
  0x3e   :  { %1042 = vmatprep.subr.bf16.mxu1 %v1145_v15  ;;  %v1155_v28 = vld [vmem:[%s1456_s3] sm:$0xff]   ;;  %p1157_p0 = scmp.ne.s32.totalorder %s881_s0, %s1156_s13  ;;  %p1162_p2 = scmp.lt.s32.totalorder %s1156_s13, %s1156_s13 }
  0x3f   :  { %v888_v38 = vld [vmem:[%s1455_s2] ss:$0 sm:$0xff] }
  0x40   :  { %1021 = vmatpush3.bf16.msra.mxu0 %v1146_v16  ;;  %v953_v56 = vld [vmem:[%s1457_s4] ss:$0 sm:$0xff]  ;;  %p1163_p3 = por %p1162_p2, %p1161_p1 }
  0x41   :  { %1043 = vmatpush3.bf16.msra.mxu1 %v1147_v18  ;;  %1059 = vmatprep.subr.bf16.mxu0 %v1179_v21 }
  0x42   :  { %p1164_p4 = pnand %p1163_p3, %p1157_p0 }
  0x43   :  { %713 = vmatmul.mubr.bf16.vlgmr.msra.gmra.mxu0 %v189_v17 }
  0x44   :  { %753 = vmatmul.mubr.bf16.vlgmr.msra.gmra.mxu1 %v205_v19  ;;  %1060 = vmatpush3.bf16.msra.mxu0 %v1148_v20 }
  0x45   :  { %1061 = vmatprep.subr.bf16.mxu0 %v1179_v21  ;;  %1075 = vmatprep.mubr.msk.bf16.mxu0 %vm1180_vm0, %v1179_v21 }
  0x48   :  { %1062 = vmatpush3.bf16.msra.mxu0 %v1149_v22 }
  0x49   :  { %1063 = vmatprep.subr.bf16.mxu0 %v1179_v21 }
  0x4c   :  { %1064 = vmatpush3.bf16.msra.mxu0 %v1150_v23 }
  0x4d   :  { %1065 = vmatprep.subr.bf16.mxu0 %v1179_v21 }
  0x50   :  { %1066 = vmatpush3.bf16.msra.mxu0 %v1151_v24 }
  0x51   :  { %1067 = vmatprep.subr.bf16.mxu0 %v1179_v21 }
  0x54   :  { %1068 = vmatpush3.bf16.msra.mxu0 %v1152_v25 }
  0x55   :  { %1069 = vmatprep.subr.bf16.mxu0 %v1179_v21 }
  0x58   :  { %1070 = vmatpush3.bf16.msra.mxu0 %v1153_v26 }
  0x59   :  { %1071 = vmatprep.subr.bf16.mxu0 %v1179_v21 }
  0x5c   :  { %1072 = vmatpush3.bf16.msra.mxu0 %v1154_v27 }
  0x5d   :  { %1073 = vmatprep.subr.bf16.mxu0 %v1179_v21 }
  0x60   :  { %1074 = vmatpush3.bf16.msra.mxu0 %v1155_v28 }
  0xe3   :  { %v978_v29 = vpop.f32.mrf.mxu0 }
  0xe4   :  { %v1000_v30 = vpop.f32.mrf.mxu1 }
  0xe5   :  { %v979_v31 = vpop.f32.mrf.mxu0 }
  0xe6   :  { %v1001_v32 = vpop.f32.mrf.mxu1  ;;  %v980_v37 = vadd.f32 %v979_v31, %v978_v29 }
  0xe7   :  { %v981_v33 = vpop.f32.mrf.mxu0  ;;  %v1002_v40 = vadd.f32 %v1001_v32, %v1000_v30 }
  0xe8   :  { %v1003_v34 = vpop.f32.mrf.mxu1  ;;  %v635_v39 = vadd.f32 %v980_v37, %v888_v38 }
  0xe9   :  { %v982_v35 = vpop.f32.mrf.mxu0 }
  0xea   :  { %v1004_v36 = vpop.f32.mrf.mxu1  ;;  %v675_v44 = vadd.f32 %v1002_v40, %v635_v39 }
 0x103   :  { %v1022_v41 = vpop.f32.mrf.mxu0 }
 0x104   :  { %v1044_v42 = vpop.f32.mrf.mxu1 }
 0x105   :  { %v1023_v43 = vpop.f32.mrf.mxu0 }
 0x106   :  { %v1024_v45 = vadd.f32 %v1023_v43, %v1022_v41  ;;  %v1045_v46 = vpop.f32.mrf.mxu1 }
 0x107   :  { %v1025_v47 = vpop.f32.mrf.mxu0  ;;  %v1046_v49 = vadd.f32 %v1045_v46, %v1044_v42 }
 0x108   :  { %v715_v48 = vadd.f32 %v1024_v45, %v675_v44  ;;  %v1047_v50 = vpop.f32.mrf.mxu1 }
 0x109   :  { %v1026_v51 = vpop.f32.mrf.mxu0 }
 0x10a   :  { %v755_v52 = vadd.f32 %v1046_v49, %v715_v48  ;;  %v1048_v53 = vpop.f32.mrf.mxu1 }
 0x10c   :  { %v760_v54 = vmax.f32 %v755_v52, 0.0 }
 0x10e   :  { %v778_v55 = vpack.c.bf16 %v760_v54, %v760_v54 }
 0x110   :  { %1076 = vmatmul.mubr.bf16.vlgmr.msra.gmra.mxu0 %v778_v55 }
 0x1d0   :  { %v867_v57 = vpop.f32.mrf.mxu0 }
 0x1d1   :  { %v868_v58 = vadd.f32 %v953_v56, %v867_v57 }
 0x1d2   :  { %v1077_v59 = vpop.f32.mrf.mxu0 }
 0x1d3   :  { %873 = vst [vmem:[#allocation2] sm:$0x3] %v868_v58 }
 0x1d4   :  { %v870_v60 = vpop.f32.mrf.mxu0 }
 0x1d5   :  { %1167 = shalt.err (!%p1164_p4)
}
 0x1d6   :  { %883 = dma.vmem_to_hbm [thread:$0]  %s881_s0, 32, %s1458_s5, [#allocation3]   ;;  %v1078_v61 = vpop.f32.mrf.mxu0 }
 0x1d7   :  { %1176 = dma.done.wait [#allocation3], 32  }
 0x1d8   :  { %1177 = vsyncadd [#allocation3], 4294967264 }
 0x1d9   :  { %887 = vsyncpa [#allocation3], 1 }

// kernel: conv_classifier_forward.4
= control target key start
LH: loop header
LB: loop body
LE: loop exit
PB: predicated region body
PF: predicated region fallthrough
CT: control target
= control target key end

     0   :  { %s5547_s12 = smov 0   ;;  %s5549_s13 = smov 0   ;;  %s7393_s0 = inlined_call_operand.vmem [shape: bf16[2,18,18,4], index: 0, kind: input, shape index: {}]   ;;  %s7394_s1 = inlined_call_operand.vmem [shape: bf16[9,4,128], index: 1, kind: input, shape index: {}]   ;;  %s7395_s2 = inlined_call_operand.vmem [shape: f32[1,128], index: 2, kind: input, shape index: {}]   ;;  %s7396_s3 = inlined_call_operand.vmem [shape: bf16[2,256,8], index: 3, kind: output, shape index: {}]  }
   0x1   :  { %s5551_s14 = smov 0  }
   0x2 LB: > { %s25_s15 = sadd.s32 1, %s5521_s13  ;;  %p4543_p0 = scmp.ge.s32.totalorder %s5525_s14, 1  ;;  %s5525_s14 = sphi %s5551_s14, %s13_s14   ;;  %s5521_s13 = sphi %s5549_s13, %s7546_s13   ;;  %s5517_s12 = sphi %s5547_s12, %s7545_s12  }
   0x3   : > { %p27_p1 = scmp.ge.s32.totalorder %s25_s15, 2  ;;  %p151_p2 = scmp.lt.s32.totalorder %s5525_s14, 3 }
   0x5   : > { %s7548_s15 = smov (%p27_p1, %s25_s15), 0  ;;  %p152_p3 = pnand %p4543_p0, %p151_p2 }
   0x7   : > { %155 = sbr.rel (%p152_p3) target bundleno = 511 (0x1ff), region = 32 }
   0xc   : > { %v311_v0 = vld [vmem:[%s7394_s1] sm:$0x3]  ;;  %vm361_vm0 = vcmask 1041408   ;;  %p179_p4 = scmp.lt.s32.totalorder %s5517_s12, 1  ;;  %v4579_v2 = vld [vmem:[%s7394_s1 + $0x2] sm:$0x3] }
   0xd   : > { %5373 = vmatprep.subr.msk.bf16.mxu1 %vm361_vm0, %v311_v0  ;;  %5372 = vmatprep.subr.msk.bf16.mxu0 %vm361_vm0, %v311_v0  ;;  %v363_v1 = vsel %vm361_vm0, %v311_v0, 0  ;;  %v4596_v3 = vld [vmem:[%s7394_s1 + $0x4] sm:$0x3]  ;;  %vm312_vm1 = vcmask 31744   ;;  %v4694_v9 = vld [vmem:[%s7394_s1 + $0x8] sm:$0x3] }
   0xe   : > { %5371 = vmatpush3.bf16.msra.mxu1 %v363_v1  ;;  %5065 = vmatpush3.bf16.msra.mxu0 %v363_v1  ;;  %s7550_s12 = smov (!%p179_p4, %s5517_s12), 1  ;;  %v1225_v8 = vsel %vm361_vm0, %v4596_v3, 0  ;;  %v786_v10 = vsel %vm361_vm0, %v4579_v2, 0  ;;  %v4677_v12 = vld [vmem:[%s7394_s1 + $0x6] sm:$0x3]  ;;  %vm606_vm2 = vcmask 1046528  }
   0xf   : > { %5374 = vmatprep.subr.msk.bf16.mxu1 %vm361_vm0, %v4579_v2  ;;  %5375 = vmatprep.subr.msk.bf16.mxu0 %vm361_vm0, %v4596_v3  ;;  %s5382_s22 = smul.u32 216, %s7550_s12  ;;  %vm1045_vm3 = vcmask 1045504   ;;  %v5688_v48 = vsel %vm361_vm0, %v4677_v12, 0  ;;  %v2137_v51 = vsel %vm361_vm0, %v4694_v9, 0  ;;  %s4878_s17 = sshll.u32 %s7550_s12, 7  ;;  %vm4415_vm4 = vcmask 60416  }
  0x10   : > { %s7214_s19 = scalar_lea.vmem %s7396_s3, %s4878_s17 }
  0x11   : > { %s5585_s25 = scalar_lea.vmem %s7393_s0, %s5382_s22 }
  0x12   : > { %v5588_v4 = vld [vmem:[%s5585_s25] sm:$0xff]   ;;  %v202_v6 = vld [vmem:[%s5585_s25 + $0xc] sm:$0xff]   ;;  %v5608_v11 = vld [vmem:[%s5585_s25 + $0x18] sm:$0xff]  }
  0x13   : > { %v5591_v5 = vld [vmem:[%s5585_s25 + $0x60] sm:$0xff]   ;;  %5066 = vmatprep.mubr.msk.bf16.mxu0 %vm312_vm1, %v5588_v4  ;;  %v5599_v7 = vld [vmem:[%s5585_s25 + $0x6c] sm:$0xff]   ;;  %v5616_v13 = vld [vmem:[%s5585_s25 + $0x78] sm:$0xff]   ;;  %v250_v20 = vunpack.c.l.bf16 %v202_v6  ;;  %v251_v21 = vunpack.c.h.bf16 %v202_v6  ;;  %v247_v24 = vunpack.c.l.bf16 %v5588_v4  ;;  %v248_v26 = vunpack.c.h.bf16 %v5588_v4 }
  0x14   : > { %5082 = vmatprep.mubr.msk.bf16.mxu1 %vm312_vm1, %v5591_v5  ;;  %5067 = vmatmul.mubr.msk.bf16.vlgmr.msra.gmra.mxu0 %vm312_vm1, %v202_v6  ;;  %v5620_v14 = vld [vmem:[%s5585_s25 + $0x24] sm:$0xff]   ;;  %v5629_v16 = vld [vmem:[%s5585_s25 + $0x30] sm:$0xff]   ;;  %v5642_v19 = vld [vmem:[%s5585_s25 + $0x3c] sm:$0xff]   ;;  %v253_v38 = vunpack.c.l.bf16 %v5608_v11  ;;  %v254_v39 = vunpack.c.h.bf16 %v5608_v11 }
  0x15   : > { %5133 = vmatpush3.bf16.msra.mxu0 %v1225_v8  ;;  %5083 = vmatmul.mubr.msk.bf16.vlgmr.msra.gmra.mxu1 %vm312_vm1, %v5599_v7  ;;  %v5626_v15 = vld [vmem:[%s5585_s25 + $0x84] sm:$0xff]   ;;  %v204_v17 = vld [vmem:[%s5585_s25 + $0x14] sm:$0x1]  ;;  %v5647_v23 = vld [vmem:[%s5585_s25 + $0x9c] sm:$0xff]   ;;  %v612_v27 = vrot.slane %v250_v20, 1  ;;  %v613_v28 = vrot.slane %v251_v21, 1  ;;  %v256_v45 = vunpack.c.l.bf16 %v5620_v14  ;;  %v257_v59 = vunpack.c.h.bf16 %v5620_v14 }
  0x16   : > { %5377 = vmatprep.subr.msk.bf16.mxu0 %vm361_vm0, %v4694_v9  ;;  %5099 = vmatpush3.bf16.msra.mxu1 %v786_v10  ;;  %v5637_v18 = vld [vmem:[%s5585_s25 + $0x90] sm:$0xff]   ;;  %v252_v22 = vunpack.c.l.bf16 %v204_v17  ;;  %v5653_v25 = vld [vmem:[%s5585_s25 + $0x48] sm:$0xff]   ;;  %v1051_v31 = vrot.slane %v250_v20, 2  ;;  %v1052_v32 = vrot.slane %v251_v21, 2  ;;  %v607_v34 = vrot.slane %v247_v24, 1 }
  0x17   : > { %5376 = vmatprep.subr.msk.bf16.mxu1 %vm361_vm0, %v4677_v12  ;;  %5070 = vmatprep.mubr.msk.bf16.mxu0 %vm312_vm1, %v5608_v11  ;;  %v5657_v30 = vld [vmem:[%s5585_s25 + $0xa8] sm:$0xff]   ;;  %v5664_v35 = vld [vmem:[%s5585_s25 + $0x54] sm:$0xff]   ;;  %v5667_v36 = vsel %vm606_vm2, %v612_v27, %v613_v28  ;;  %v608_v42 = vrot.slane %v248_v26, 1  ;;  %v1046_v46 = vrot.slane %v247_v24, 2  ;;  %v1047_v47 = vrot.slane %v248_v26, 2 }
  0x18   : > { %5086 = vmatprep.mubr.msk.bf16.mxu1 %vm312_vm1, %v5616_v13  ;;  %v615_v29 = vrot.slane %v252_v22, 1  ;;  %v1054_v33 = vrot.slane %v252_v22, 2  ;;  %v5677_v40 = vld [vmem:[%s5585_s25 + $0xb4] sm:$0xff]   ;;  %v201_v41 = vld [vmem:[%s5585_s25 + $0x8] sm:$0x1]  ;;  %v5681_v43 = vsel %vm1045_vm3, %v1051_v31, %v1052_v32  ;;  %v617_v54 = vrot.slane %v253_v38, 1 }
  0x19   : > { %v249_v50 = vunpack.c.l.bf16 %v201_v41  ;;  %v207_v52 = vld [vmem:[%s5585_s25 + $0x20] sm:$0x1]  ;;  %v618_v55 = vrot.slane %v254_v39, 1  ;;  %v1056_v56 = vrot.slane %v253_v38, 2  ;;  %v210_v57 = vld [vmem:[%s5585_s25 + $0x2c] sm:$0x1]  ;;  %v609_v61 = vsel %vm606_vm2, %v607_v34, %v608_v42 }
  0x1a   : > { %v5670_v37 = vsel %vm606_vm2, %v613_v28, %v615_v29  ;;  %v1055_v44 = vsel %vm1045_vm3, %v1052_v32, %v1054_v33  ;;  %v1057_v58 = vrot.slane %v254_v39, 2  ;;  %v622_v60 = vrot.slane %v256_v45, 1  ;;  %v213_v8 = vld [vmem:[%s5585_s25 + $0x38] sm:$0x1] }
  0x1b   : > { %v720_v49 = vpack.c.bf16 %v5670_v37, %v5667_v36  ;;  %v1159_v53 = vpack.c.bf16 %v1055_v44, %v5681_v43  ;;  %v610_v62 = vrot.slane %v249_v50, 1  ;;  %v1048_v63 = vsel %vm1045_vm3, %v1046_v46, %v1047_v47  ;;  %v216_v37 = vld [vmem:[%s5585_s25 + $0x44] sm:$0x1]  ;;  %v219_v43 = vld [vmem:[%s5585_s25 + $0x50] sm:$0x1] }
  0x1c   : > { %5071 = vmatmul.mubr.msk.bf16.gmra.mxu0 %vm312_vm1, %v5620_v14  ;;  %v1049_v0 = vrot.slane %v249_v50, 2  ;;  %v255_v1 = vunpack.c.l.bf16 %v207_v52  ;;  %v1061_v2 = vrot.slane %v256_v45, 2  ;;  %v259_v3 = vunpack.c.l.bf16 %v5629_v16 }
  0x1d   : > { %5087 = vmatmul.mubr.msk.bf16.gmra.mxu1 %vm312_vm1, %v5626_v15  ;;  %5074 = vmatprep.mubr.msk.bf16.mxu0 %vm312_vm1, %v5629_v16  ;;  %v260_v4 = vunpack.c.h.bf16 %v5629_v16  ;;  %v258_v6 = vunpack.c.l.bf16 %v210_v57  ;;  %v611_v9 = vsel %vm606_vm2, %v608_v42, %v610_v62  ;;  %v623_v14 = vrot.slane %v257_v59, 1 }
  0x1e   : > { %5090 = vmatprep.mubr.msk.bf16.mxu1 %vm312_vm1, %v5637_v18  ;;  %v1050_v10 = vsel %vm1045_vm3, %v1047_v47, %v1049_v0  ;;  %v620_v11 = vrot.slane %v255_v1, 1  ;;  %v1059_v12 = vrot.slane %v255_v1, 2  ;;  %v719_v17 = vpack.c.bf16 %v611_v9, %v609_v61  ;;  %v5724_v47 = vld [vmem:[%s7394_s1 + $0xa] sm:$0x3] }
  0x1f   : > { %v1158_v20 = vpack.c.bf16 %v1050_v10, %v1048_v63  ;;  %v619_v21 = vsel %vm606_vm2, %v617_v54, %v618_v55  ;;  %v1058_v16 = vsel %vm1045_vm3, %v1056_v56, %v1057_v58  ;;  %v261_v26 = vunpack.c.l.bf16 %v213_v8  ;;  %v222_v8 = vld [vmem:[%s5585_s25 + $0x5c] sm:$0x1] }
  0x20   : > { %v621_v22 = vsel %vm606_vm2, %v618_v55, %v620_v11  ;;  %v1060_v24 = vsel %vm1045_vm3, %v1057_v58, %v1059_v12  ;;  %v1062_v27 = vrot.slane %v257_v59, 2  ;;  %v627_v28 = vrot.slane %v259_v3, 1 }
  0x21   : > { %v628_v29 = vrot.slane %v260_v4, 1  ;;  %v1064_v31 = vrot.slane %v258_v6, 2  ;;  %v1066_v32 = vrot.slane %v259_v3, 2  ;;  %v1067_v33 = vrot.slane %v260_v4, 2 }
  0x22   : > { %v721_v34 = vpack.c.bf16 %v621_v22, %v619_v21  ;;  %v625_v36 = vrot.slane %v258_v6, 1  ;;  %v262_v38 = vunpack.c.l.bf16 %v5642_v19  ;;  %v1160_v39 = vpack.c.bf16 %v1060_v24, %v1058_v16 }
  0x23   : > { %v630_v41 = vrot.slane %v261_v26, 1  ;;  %v1069_v42 = vrot.slane %v261_v26, 2  ;;  %v263_v44 = vunpack.c.h.bf16 %v5642_v19  ;;  %v265_v45 = vunpack.c.l.bf16 %v5653_v25 }
  0x24   : > { %5075 = vmatmul.mubr.msk.bf16.gmra.mxu0 %vm312_vm1, %v5642_v19  ;;  %v266_v46 = vunpack.c.h.bf16 %v5653_v25  ;;  %v624_v50 = vsel %vm606_vm2, %v622_v60, %v623_v14  ;;  %v1063_v52 = vsel %vm1045_vm3, %v1061_v2, %v1062_v27  ;;  %v1065_v19 = vsel %vm1045_vm3, %v1062_v27, %v1064_v31 }
  0x25   : > { %5091 = vmatmul.mubr.msk.bf16.gmra.mxu1 %vm312_vm1, %v5647_v23  ;;  %5078 = vmatprep.mubr.msk.bf16.mxu0 %vm312_vm1, %v5653_v25  ;;  %v264_v54 = vunpack.c.l.bf16 %v216_v37  ;;  %v5733_v25 = vld [vmem:[%s7394_s1 + $0xc] sm:$0x3]  ;;  %v267_v55 = vunpack.c.l.bf16 %v219_v43  ;;  %v632_v56 = vrot.slane %v262_v38, 1  ;;  %v629_v57 = vsel %vm606_vm2, %v627_v28, %v628_v29 }
  0x26   : > { %5094 = vmatprep.mubr.msk.bf16.mxu1 %vm312_vm1, %v5657_v30  ;;  %v631_v58 = vsel %vm606_vm2, %v628_v29, %v630_v41  ;;  %v1071_v59 = vrot.slane %v262_v38, 2  ;;  %v1072_v60 = vrot.slane %v263_v44, 2  ;;  %v1161_v61 = vpack.c.bf16 %v1065_v19, %v1063_v52  ;;  %v228_v52 = vld [vmem:[%s5585_s25 + $0x74] sm:$0x1] }
  0x27   : > { %v1076_v62 = vrot.slane %v265_v45, 2  ;;  %v1074_v1 = vrot.slane %v264_v54, 2  ;;  %v1077_v2 = vrot.slane %v266_v46, 2  ;;  %v723_v3 = vpack.c.bf16 %v631_v58, %v629_v57 }
  0x28   : > { %v635_v4 = vrot.slane %v264_v54, 1  ;;  %v1079_v6 = vrot.slane %v267_v55, 2  ;;  %v271_v9 = vunpack.c.l.bf16 %v5591_v5  ;;  %v637_v10 = vrot.slane %v265_v45, 1 }
  0x29   : > { %v638_v11 = vrot.slane %v266_v46, 1  ;;  %v640_v12 = vrot.slane %v267_v55, 1  ;;  %v269_v21 = vunpack.c.h.bf16 %v5664_v35  ;;  %v1073_v16 = vsel %vm1045_vm3, %v1071_v59, %v1072_v60 }
  0x2a   : > { %v1075_v24 = vsel %vm1045_vm3, %v1072_v60, %v1074_v1  ;;  %v270_v26 = vunpack.c.l.bf16 %v222_v8  ;;  %v1078_v27 = vsel %vm1045_vm3, %v1076_v62, %v1077_v2  ;;  %v647_v29 = vrot.slane %v271_v9, 1 }
  0x2b   : > { %v1086_v31 = vrot.slane %v271_v9, 2  ;;  %v1163_v38 = vpack.c.bf16 %v1075_v24, %v1073_v16  ;;  %v274_v54 = vunpack.c.l.bf16 %v5599_v7  ;;  %v277_v55 = vunpack.c.l.bf16 %v5616_v13 }
  0x2c   : > { %5079 = vmatmul.mubr.msk.bf16.gmra.mxu0 %vm312_vm1, %v5664_v35  ;;  %v1084_v43 = vrot.slane %v270_v26, 2  ;;  %v645_v46 = vrot.slane %v270_v26, 1  ;;  %v276_v59 = vunpack.c.l.bf16 %v228_v52  ;;  %v280_v16 = vunpack.c.l.bf16 %v5626_v15 }
  0x2d   : > { %5095 = vmatmul.mubr.msk.bf16.gmra.mxu1 %vm312_vm1, %v5677_v40  ;;  %5134 = vmatprep.mubr.msk.bf16.mxu0 %vm312_vm1, %v1158_v20  ;;  %v268_v20 = vunpack.c.l.bf16 %v5664_v35  ;;  %v1080_v35 = vsel %vm1045_vm3, %v1077_v2, %v1079_v6  ;;  %v652_v62 = vrot.slane %v274_v54, 1  ;;  %v1091_v2 = vrot.slane %v274_v54, 2 }
  0x2e   : > { %5100 = vmatprep.mubr.msk.bf16.mxu1 %vm312_vm1, %v719_v17  ;;  %v272_v17 = vunpack.c.h.bf16 %v5591_v5  ;;  %v1096_v8 = vrot.slane %v277_v55, 2  ;;  %v281_v24 = vunpack.c.h.bf16 %v5626_v15 }
  0x2f   : > { %v1081_v37 = vrot.slane %v268_v20, 2 }
  0x30   : > { %v648_v19 = vrot.slane %v272_v17, 1 }
  0x34   : > { %5135 = vmatmul.mubr.msk.bf16.vlgmr.msra.gmra.mxu0 %vm312_vm1, %v1159_v53  ;;  %v626_v53 = vsel %vm606_vm2, %v623_v14, %v625_v36  ;;  %v225_v14 = vld [vmem:[%s5585_s25 + $0x68] sm:$0x1]  ;;  %v643_v36 = vrot.slane %v269_v21, 1 }
  0x35   : > { %5101 = vmatmul.mubr.msk.bf16.vlgmr.msra.gmra.mxu1 %vm312_vm1, %v720_v49  ;;  %5201 = vmatpush3.bf16.msra.mxu0 %v2137_v51  ;;  %v1068_v49 = vsel %vm1045_vm3, %v1066_v32, %v1067_v33  ;;  %v1070_v51 = vsel %vm1045_vm3, %v1067_v33, %v1069_v42  ;;  %v722_v63 = vpack.c.bf16 %v626_v53, %v624_v50  ;;  %v273_v28 = vunpack.c.l.bf16 %v225_v14 }
  0x36   : > { %5167 = vmatpush3.bf16.msra.mxu1 %v5688_v48  ;;  %5104 = vmatprep.mubr.msk.bf16.mxu1 %vm312_vm1, %v721_v34  ;;  %v633_v48 = vrot.slane %v263_v44, 1  ;;  %v1162_v0 = vpack.c.bf16 %v1070_v51, %v1068_v49  ;;  %v639_v32 = vsel %vm606_vm2, %v637_v10, %v638_v11  ;;  %v641_v33 = vsel %vm606_vm2, %v638_v11, %v640_v12  ;;  %v231_v51 = vld [vmem:[%s5585_s25 + $0x80] sm:$0x1] }
  0x37   : > { %5138 = vmatprep.mubr.msk.bf16.mxu0 %vm312_vm1, %v1160_v39  ;;  %5378 = vmatprep.subr.msk.bf16.mxu1 %vm361_vm0, %v5724_v47  ;;  %v642_v34 = vrot.slane %v268_v20, 1  ;;  %v1082_v39 = vrot.slane %v269_v21, 2  ;;  %v1164_v42 = vpack.c.bf16 %v1080_v35, %v1078_v27  ;;  %v1087_v44 = vrot.slane %v272_v17, 2  ;;  %v234_v21 = vld [vmem:[%s5585_s25 + $0x8c] sm:$0x1] }
  0x38   : > { %5379 = vmatprep.subr.msk.bf16.mxu0 %vm361_vm0, %v5733_v25  ;;  %v634_v22 = vsel %vm606_vm2, %v632_v56, %v633_v48  ;;  %v636_v5 = vsel %vm606_vm2, %v633_v48, %v635_v4  ;;  %v725_v45 = vpack.c.bf16 %v641_v33, %v639_v32  ;;  %v1089_v50 = vrot.slane %v273_v28, 2 }
  0x39   : > { %v724_v41 = vpack.c.bf16 %v636_v5, %v634_v22  ;;  %v275_v53 = vunpack.c.h.bf16 %v5599_v7  ;;  %v650_v49 = vrot.slane %v273_v28, 1  ;;  %v278_v56 = vunpack.c.h.bf16 %v5616_v13  ;;  %v237_v5 = vld [vmem:[%s5585_s25 + $0x98] sm:$0x1] }
  0x3a   : > { %v644_v57 = vsel %vm606_vm2, %v642_v34, %v643_v36  ;;  %v1083_v58 = vsel %vm1045_vm3, %v1081_v37, %v1082_v39  ;;  %v1085_v48 = vsel %vm1045_vm3, %v1082_v39, %v1084_v43  ;;  %v646_v7 = vsel %vm606_vm2, %v643_v36, %v645_v46 }
  0x3b   : > { %v1088_v60 = vsel %vm1045_vm3, %v1086_v31, %v1087_v44  ;;  %v1090_v13 = vsel %vm1045_vm3, %v1087_v44, %v1089_v50  ;;  %v651_v1 = vsel %vm606_vm2, %v648_v19, %v650_v49  ;;  %v657_v4 = vrot.slane %v277_v55, 1 }
  0x3c   : > { %5139 = vmatmul.mubr.msk.bf16.gmra.mxu0 %vm312_vm1, %v1161_v61  ;;  %v279_v61 = vunpack.c.l.bf16 %v231_v51  ;;  %v1165_v6 = vpack.c.bf16 %v1085_v48, %v1083_v58  ;;  %v726_v9 = vpack.c.bf16 %v646_v7, %v644_v57  ;;  %v1166_v10 = vpack.c.bf16 %v1090_v13, %v1088_v60  ;;  %v240_v51 = vld [vmem:[%s5585_s25 + $0xa4] sm:$0x1]  ;;  %v243_v48 = vld [vmem:[%s5585_s25 + $0xb0] sm:$0x1] }
  0x3d   : > { %5105 = vmatmul.mubr.msk.bf16.gmra.mxu1 %vm312_vm1, %v722_v63  ;;  %5142 = vmatprep.mubr.msk.bf16.mxu0 %vm312_vm1, %v1162_v0  ;;  %v653_v63 = vrot.slane %v275_v53, 1  ;;  %v649_v0 = vsel %vm606_vm2, %v647_v29, %v648_v19  ;;  %v1094_v11 = vrot.slane %v276_v59, 2  ;;  %v1097_v12 = vrot.slane %v278_v56, 2 }
  0x3e   : > { %5108 = vmatprep.mubr.msk.bf16.mxu1 %vm312_vm1, %v723_v3  ;;  %v1092_v3 = vrot.slane %v275_v53, 2  ;;  %v727_v14 = vpack.c.bf16 %v651_v1, %v649_v0  ;;  %v655_v17 = vrot.slane %v276_v59, 1  ;;  %v1099_v20 = vrot.slane %v279_v61, 2 }
  0x3f   : > { %v658_v22 = vrot.slane %v278_v56, 1  ;;  %v660_v26 = vrot.slane %v279_v61, 1  ;;  %v283_v27 = vunpack.c.l.bf16 %v5637_v18  ;;  %v284_v35 = vunpack.c.h.bf16 %v5637_v18 }
  0x40   : > { %v654_v28 = vsel %vm606_vm2, %v652_v62, %v653_v63  ;;  %v1093_v29 = vsel %vm1045_vm3, %v1091_v2, %v1092_v3  ;;  %v1095_v31 = vsel %vm1045_vm3, %v1092_v3, %v1094_v11  ;;  %v282_v32 = vunpack.c.l.bf16 %v234_v21 }
  0x41   : > { %v656_v15 = vsel %vm606_vm2, %v653_v63, %v655_v17  ;;  %v1098_v33 = vsel %vm1045_vm3, %v1096_v8, %v1097_v12  ;;  %v1100_v18 = vsel %vm1045_vm3, %v1097_v12, %v1099_v20  ;;  %v285_v34 = vunpack.c.l.bf16 %v237_v5 }
  0x42   : > { %v662_v36 = vrot.slane %v280_v16, 1  ;;  %v663_v37 = vrot.slane %v281_v24, 1  ;;  %v661_v39 = vsel %vm606_vm2, %v658_v22, %v660_v26  ;;  %v286_v43 = vunpack.c.l.bf16 %v5647_v23 }
  0x43   : > { %v1167_v44 = vpack.c.bf16 %v1095_v31, %v1093_v29  ;;  %v728_v46 = vpack.c.bf16 %v656_v15, %v654_v28  ;;  %v1168_v50 = vpack.c.bf16 %v1100_v18, %v1098_v33  ;;  %v1104_v52 = vrot.slane %v282_v32, 2  ;;  %v5825_v28 = vld [vmem:[%s5585_s25 + $0x14] sm:$0x1] }
  0x44   : > { %5143 = vmatmul.mubr.msk.bf16.gmra.mxu0 %vm312_vm1, %v1163_v38  ;;  %v659_v38 = vsel %vm606_vm2, %v657_v4, %v658_v22  ;;  %v1107_v19 = vrot.slane %v284_v35, 2  ;;  %v665_v53 = vrot.slane %v282_v32, 1  ;;  %v1109_v49 = vrot.slane %v285_v34, 2 }
  0x45   : > { %5109 = vmatmul.mubr.msk.bf16.gmra.mxu1 %vm312_vm1, %v724_v41  ;;  %5146 = vmatprep.mubr.msk.bf16.mxu0 %vm312_vm1, %v1164_v42  ;;  %v1101_v41 = vrot.slane %v280_v16, 2  ;;  %v1102_v42 = vrot.slane %v281_v24, 2  ;;  %v729_v54 = vpack.c.bf16 %v661_v39, %v659_v38  ;;  %v667_v55 = vrot.slane %v283_v27, 1  ;;  %v246_v16 = vld [vmem:[%s5585_s25 + $0xbc] sm:$0x1] }
  0x46   : > { %5112 = vmatprep.mubr.msk.bf16.mxu1 %vm312_vm1, %v725_v45  ;;  %v1106_v45 = vrot.slane %v283_v27, 2  ;;  %v668_v56 = vrot.slane %v284_v35, 1  ;;  %v287_v57 = vunpack.c.h.bf16 %v5647_v23  ;;  %v670_v58 = vrot.slane %v285_v34, 1  ;;  %v5822_v35 = vld [vmem:[%s5585_s25 + $0xc] sm:$0xff]  }
  0x47   : > { %v672_v59 = vrot.slane %v286_v43, 1  ;;  %v289_v7 = vunpack.c.l.bf16 %v5657_v30  ;;  %v290_v60 = vunpack.c.h.bf16 %v5657_v30  ;;  %v664_v13 = vsel %vm606_vm2, %v662_v36, %v663_v37 }
  0x48   : > { %v1103_v61 = vsel %vm1045_vm3, %v1101_v41, %v1102_v42  ;;  %v1105_v62 = vsel %vm1045_vm3, %v1102_v42, %v1104_v52  ;;  %v288_v23 = vunpack.c.l.bf16 %v240_v51  ;;  %v666_v63 = vsel %vm606_vm2, %v663_v37, %v665_v53  ;;  %v5844_v53 = vld [vmem:[%s5585_s25 + $0x18] sm:$0xff]  }
  0x49   : > { %v1108_v0 = vsel %vm1045_vm3, %v1106_v45, %v1107_v19  ;;  %v1110_v30 = vsel %vm1045_vm3, %v1107_v19, %v1109_v49  ;;  %v291_v1 = vunpack.c.l.bf16 %v243_v48  ;;  %v673_v2 = vrot.slane %v287_v57, 1 }
  0x4a   : > { %v1111_v3 = vrot.slane %v286_v43, 2  ;;  %v669_v4 = vsel %vm606_vm2, %v667_v55, %v668_v56  ;;  %v1112_v8 = vrot.slane %v287_v57, 2  ;;  %v1169_v11 = vpack.c.bf16 %v1105_v62, %v1103_v61  ;;  %v5849_v57 = vld [vmem:[%s5585_s25 + $0x20] sm:$0x1] }
  0x4b   : > { %v730_v12 = vpack.c.bf16 %v666_v63, %v664_v13  ;;  %v675_v17 = vrot.slane %v288_v23, 1  ;;  %v1114_v20 = vrot.slane %v288_v23, 2  ;;  %v1119_v22 = vrot.slane %v291_v1, 2 }
  0x4c   : > { %5147 = vmatmul.mubr.msk.bf16.gmra.mxu0 %vm312_vm1, %v1165_v6  ;;  %v671_v6 = vsel %vm606_vm2, %v668_v56, %v670_v58  ;;  %v677_v24 = vrot.slane %v289_v7, 1  ;;  %v678_v26 = vrot.slane %v290_v60, 1  ;;  %v292_v5 = vunpack.c.l.bf16 %v5677_v40 }
  0x4d   : > { %5113 = vmatmul.mubr.msk.bf16.gmra.mxu1 %vm312_vm1, %v726_v9  ;;  %5150 = vmatprep.mubr.msk.bf16.mxu0 %vm312_vm1, %v1166_v10  ;;  %v1116_v9 = vrot.slane %v289_v7, 2  ;;  %v1117_v10 = vrot.slane %v290_v60, 2  ;;  %v731_v21 = vpack.c.bf16 %v671_v6, %v669_v4  ;;  %v680_v27 = vrot.slane %v291_v1, 1  ;;  %v5858_v7 = vld [vmem:[%s5585_s25 + $0x2c] sm:$0x1] }
  0x4e   : > { %5116 = vmatprep.mubr.msk.bf16.mxu1 %vm312_vm1, %v727_v14  ;;  %v1170_v14 = vpack.c.bf16 %v1110_v30, %v1108_v0  ;;  %v293_v29 = vunpack.c.h.bf16 %v5677_v40  ;;  %v674_v31 = vsel %vm606_vm2, %v672_v59, %v673_v2  ;;  %v1113_v32 = vsel %vm1045_vm3, %v1111_v3, %v1112_v8  ;;  %v5855_v59 = vld [vmem:[%s5585_s25 + $0x24] sm:$0xff]   ;;  %v5874_v3 = vld [vmem:[%s5585_s25 + $0x30] sm:$0xff]  }
  0x4f   : > { %v676_v15 = vsel %vm606_vm2, %v673_v2, %v675_v17  ;;  %v1115_v33 = vsel %vm1045_vm3, %v1112_v8, %v1114_v20  ;;  %v1118_v18 = vsel %vm1045_vm3, %v1116_v9, %v1117_v10  ;;  %v294_v34 = vunpack.c.l.bf16 %v246_v16  ;;  %v5877_v9 = vld [vmem:[%s5585_s25 + $0x38] sm:$0x1]  ;;  %v5891_v16 = vld [vmem:[%s5585_s25 + $0x44] sm:$0x1] }
  0x50   : > { %v1120_v40 = vsel %vm1045_vm3, %v1117_v10, %v1119_v22  ;;  %v1536_v36 = vunpack.c.l.bf16 %v5822_v35  ;;  %v1537_v37 = vunpack.c.h.bf16 %v5822_v35  ;;  %v1538_v38 = vunpack.c.l.bf16 %v5825_v28  ;;  %v5888_v22 = vld [vmem:[%s5585_s25 + $0x3c] sm:$0xff]  }
  0x51   : > { %v682_v39 = vrot.slane %v292_v5, 1  ;;  %v679_v41 = vsel %vm606_vm2, %v677_v24, %v678_v26  ;;  %v681_v42 = vsel %vm606_vm2, %v678_v26, %v680_v27  ;;  %v683_v43 = vrot.slane %v293_v29, 1 }
  0x52   : > { %v1122_v45 = vrot.slane %v293_v29, 2  ;;  %v1172_v52 = vpack.c.bf16 %v1120_v40, %v1118_v18  ;;  %v685_v19 = vrot.slane %v294_v34, 1  ;;  %v733_v49 = vpack.c.bf16 %v681_v42, %v679_v41  ;;  %v5897_v29 = vld [vmem:[%s5585_s25 + $0x48] sm:$0xff]  }
  0x53   : > { %v1958_v51 = vrot.slane %v1536_v36, 1  ;;  %v1959_v55 = vrot.slane %v1537_v37, 1  ;;  %v1961_v56 = vrot.slane %v1538_v38, 1  ;;  %v1539_v58 = vunpack.c.l.bf16 %v5844_v53 }
  0x54   : > { %5151 = vmatmul.mubr.msk.bf16.gmra.mxu0 %vm312_vm1, %v1167_v44  ;;  %v1121_v44 = vrot.slane %v292_v5, 2  ;;  %v1540_v48 = vunpack.c.h.bf16 %v5844_v53  ;;  %v1541_v61 = vunpack.c.l.bf16 %v5849_v57  ;;  %v684_v62 = vsel %vm606_vm2, %v682_v39, %v683_v43 }
  0x55   : > { %5117 = vmatmul.mubr.msk.bf16.gmra.mxu1 %vm312_vm1, %v728_v46  ;;  %5154 = vmatprep.mubr.msk.bf16.mxu0 %vm312_vm1, %v1168_v50  ;;  %v1171_v46 = vpack.c.bf16 %v1115_v33, %v1113_v32  ;;  %v732_v50 = vpack.c.bf16 %v676_v15, %v674_v31  ;;  %v686_v23 = vsel %vm606_vm2, %v683_v43, %v685_v19  ;;  %v1542_v30 = vunpack.c.l.bf16 %v5855_v59  ;;  %v5906_v32 = vld [vmem:[%s5585_s25 + $0x50] sm:$0x1] }
  0x56   : > { %5120 = vmatprep.mubr.msk.bf16.mxu1 %vm312_vm1, %v729_v54  ;;  %v1124_v54 = vrot.slane %v294_v34, 2  ;;  %v1123_v60 = vsel %vm1045_vm3, %v1121_v44, %v1122_v45  ;;  %v1960_v63 = vsel %vm606_vm2, %v1958_v51, %v1959_v55  ;;  %v1962_v0 = vsel %vm606_vm2, %v1959_v55, %v1961_v56  ;;  %v5935_v51 = vld [vmem:[%s5585_s25 + $0x5c] sm:$0x1] }
  0x57   : > { %v1543_v1 = vunpack.c.h.bf16 %v5855_v59  ;;  %v1544_v2 = vunpack.c.l.bf16 %v5858_v7  ;;  %v1963_v6 = vrot.slane %v1539_v58, 1  ;;  %v1964_v8 = vrot.slane %v1540_v48, 1 }
  0x58   : > { %v1125_v13 = vsel %vm1045_vm3, %v1122_v45, %v1124_v54  ;;  %v734_v10 = vpack.c.bf16 %v686_v23, %v684_v62  ;;  %v3001_v17 = vsel %vm361_vm0, %v5733_v25, 0  ;;  %v1545_v20 = vunpack.c.l.bf16 %v5874_v3 }
  0x59   : > { %v1173_v4 = vpack.c.bf16 %v1125_v13, %v1123_v60  ;;  %v1968_v24 = vrot.slane %v1542_v30, 1  ;;  %v1969_v26 = vrot.slane %v1543_v1, 1  ;;  %v1971_v5 = vrot.slane %v1544_v2, 1 }
  0x5a   : > { %v1547_v27 = vunpack.c.l.bf16 %v5877_v9  ;;  %v5902_v25 = vrot.slane %v1537_v37, 2  ;;  %v1965_v31 = vsel %vm606_vm2, %v1963_v6, %v1964_v8  ;;  %v1548_v33 = vunpack.c.l.bf16 %v5888_v22  ;;  %v5955_v6 = vld [vmem:[%s7394_s1 + $0xe] sm:$0x3] }
  0x5b   : > { %v1549_v18 = vunpack.c.h.bf16 %v5888_v22  ;;  %v1550_v34 = vunpack.c.l.bf16 %v5891_v16  ;;  %v1973_v40 = vrot.slane %v1545_v20, 1  ;;  %v1551_v37 = vunpack.c.l.bf16 %v5897_v29 }
  0x5c   : > { %5155 = vmatmul.mubr.msk.bf16.gmra.mxu0 %vm312_vm1, %v1169_v11  ;;  %v2070_v11 = vpack.c.bf16 %v1962_v0, %v1960_v63  ;;  %v1552_v39 = vunpack.c.h.bf16 %v5897_v29  ;;  %v1970_v41 = vsel %vm606_vm2, %v1968_v24, %v1969_v26  ;;  %v1972_v42 = vsel %vm606_vm2, %v1969_v26, %v1971_v5 }
  0x5d   : > { %5121 = vmatmul.mubr.msk.bf16.gmra.mxu1 %vm312_vm1, %v730_v12  ;;  %5158 = vmatprep.mubr.msk.bf16.mxu0 %vm312_vm1, %v1170_v14  ;;  %v1966_v12 = vrot.slane %v1541_v61, 1  ;;  %v2575_v14 = vsel %vm361_vm0, %v5724_v47, 0  ;;  %v5900_v47 = vrot.slane %v1536_v36, 2  ;;  %v1976_v43 = vrot.slane %v1547_v27, 1 }
  0x5e   : > { %5124 = vmatprep.mubr.msk.bf16.mxu1 %vm312_vm1, %v731_v21  ;;  %v1546_v21 = vunpack.c.h.bf16 %v5874_v3  ;;  %v1553_v44 = vunpack.c.l.bf16 %v5906_v32  ;;  %v5923_v45 = vrot.slane %v1539_v58, 2  ;;  %v1978_v19 = vrot.slane %v1548_v33, 1 }
  0x5f   : > { %v1967_v15 = vsel %vm606_vm2, %v1964_v8, %v1966_v12  ;;  %v1979_v54 = vrot.slane %v1549_v18, 1  ;;  %v2072_v55 = vpack.c.bf16 %v1972_v42, %v1970_v41  ;;  %v1983_v58 = vrot.slane %v1551_v37, 1 }
  0x60   : > { %v1974_v36 = vrot.slane %v1546_v21, 1  ;;  %v1984_v60 = vrot.slane %v1552_v39, 1  ;;  %v1986_v13 = vrot.slane %v1553_v44, 1  ;;  %v5944_v63 = vrot.slane %v1543_v1, 2 }
  0x61   : > { %v5946_v0 = vrot.slane %v1545_v20, 2  ;;  %v5959_v8 = vrot.slane %v1546_v21, 2  ;;  %v1980_v1 = vsel %vm606_vm2, %v1978_v19, %v1979_v54  ;;  %v5970_v20 = vrot.slane %v1548_v33, 2  ;;  %v5978_v21 = vld [vmem:[%s5585_s25 + $0x68] sm:$0x1] }
  0x62   : > { %v1975_v56 = vsel %vm606_vm2, %v1973_v40, %v1974_v36  ;;  %v1987_v24 = vsel %vm606_vm2, %v1984_v60, %v1986_v13  ;;  %v5990_v33 = vrot.slane %v1551_v37, 2  ;;  %v1559_v40 = vunpack.c.l.bf16 %v5978_v21  ;;  %v6007_v37 = vld [vmem:[%s5585_s25 + $0x74] sm:$0x1] }
  0x63   : > { %v1562_v28 = vunpack.c.l.bf16 %v6007_v37 }
  0x64   : > { %5159 = vmatmul.mubr.msk.bf16.gmra.mxu0 %vm312_vm1, %v1171_v46  ;;  %v5925_v46 = vrot.slane %v1540_v48, 2  ;;  %v1977_v48 = vsel %vm606_vm2, %v1974_v36, %v1976_v43  ;;  %v5996_v36 = vld [vmem:[%s5585_s25 + $0x6c] sm:$0xff]   ;;  %v1996_v13 = vrot.slane %v1559_v40, 1 }
  0x65   : > { %5125 = vmatmul.mubr.msk.bf16.gmra.mxu1 %vm312_vm1, %v732_v50  ;;  %5162 = vmatprep.mubr.msk.bf16.mxu0 %vm312_vm1, %v1172_v52  ;;  %v5928_v50 = vld [vmem:[%s5585_s25 + $0x54] sm:$0xff]   ;;  %v5930_v52 = vrot.slane %v1542_v30, 2  ;;  %v1556_v30 = vunpack.c.l.bf16 %v5935_v51  ;;  %v2073_v12 = vpack.c.bf16 %v1977_v48, %v1975_v56  ;;  %v2399_v48 = vrot.slane %v1538_v38, 2 }
  0x66   : > { %5128 = vmatprep.mubr.msk.bf16.mxu1 %vm312_vm1, %v733_v49  ;;  %v1981_v49 = vrot.slane %v1550_v34, 1  ;;  %v1554_v62 = vunpack.c.l.bf16 %v5928_v50  ;;  %v1555_v23 = vunpack.c.h.bf16 %v5928_v50 }
  0x68   : > { %v1988_v26 = vrot.slane %v1554_v62, 1  ;;  %v5999_v42 = vrot.slane %v1554_v62, 2  ;;  %v6001_v43 = vrot.slane %v1555_v23, 2  ;;  %v1561_v62 = vunpack.c.h.bf16 %v5996_v36 }
  0x6c   : > { %5163 = vmatmul.mubr.msk.bf16.gmra.mxu0 %vm312_vm1, %v1173_v4  ;;  %v5950_v4 = vld [vmem:[%s5585_s25 + $0x60] sm:$0xff]  }
  0x6d   : > { %5129 = vmatmul.mubr.msk.bf16.gmra.mxu1 %vm312_vm1, %v734_v10  ;;  %5202 = vmatprep.mubr.msk.bf16.mxu0 %vm312_vm1, %v2070_v11  ;;  %v1982_v10 = vsel %vm606_vm2, %v1979_v54, %v1981_v49  ;;  %v5966_v11 = vld [vmem:[%s7394_s1 + $0x10] sm:$0x3]  ;;  %v1557_v5 = vunpack.c.l.bf16 %v5950_v4  ;;  %v6015_v49 = vsel %vm1045_vm3, %v5900_v47, %v5902_v25 }
  0x6e   : > { %5168 = vmatprep.mubr.msk.bf16.mxu1 %vm312_vm1, %v5822_v35  ;;  %v2071_v35 = vpack.c.bf16 %v1967_v15, %v1965_v31  ;;  %v1991_v31 = vrot.slane %v1556_v30, 1  ;;  %v1558_v15 = vunpack.c.h.bf16 %v5950_v4 }
  0x6f   : > { %v1993_v19 = vrot.slane %v1557_v5, 1  ;;  %v6004_v54 = vrot.slane %v1557_v5, 2  ;;  %v1999_v5 = vrot.slane %v1561_v62, 1 }
  0x70   : > { %v1994_v56 = vrot.slane %v1558_v15, 1  ;;  %v6028_v47 = vrot.slane %v1558_v15, 2  ;;  %v2001_v15 = vrot.slane %v1562_v28, 1 }
  0x74   : > { %5203 = vmatmul.mubr.msk.bf16.vlgmr.msra.gmra.mxu0 %vm312_vm1, %v2071_v35 }
  0x75   : > { %5169 = vmatmul.mubr.msk.bf16.vlgmr.msra.gmra.mxu1 %vm312_vm1, %v5844_v53  ;;  %5269 = vmatpush3.bf16.msra.mxu0 %v3001_v17  ;;  %v5972_v53 = vrot.slane %v1549_v18, 2  ;;  %v5975_v17 = vsel %vm606_vm2, %v1983_v58, %v1984_v60  ;;  %v5992_v18 = vrot.slane %v1552_v39, 2  ;;  %v6010_v39 = vld [vmem:[%s5585_s25 + $0x78] sm:$0xff]   ;;  %v1560_v58 = vunpack.c.l.bf16 %v5996_v36  ;;  %v6021_v60 = vld [vmem:[%s5585_s25 + $0x80] sm:$0x1] }
  0x76   : > { %5235 = vmatpush3.bf16.msra.mxu1 %v2575_v14  ;;  %5172 = vmatprep.mubr.msk.bf16.mxu1 %vm312_vm1, %v5855_v59  ;;  %v1989_v14 = vrot.slane %v1555_v23, 1  ;;  %v2074_v59 = vpack.c.bf16 %v1982_v10, %v1980_v1  ;;  %v2075_v41 = vpack.c.bf16 %v1987_v24, %v5975_v17  ;;  %v6036_v23 = vsel %vm1045_vm3, %v5923_v45, %v5925_v46 }
  0x77   : > { %5206 = vmatprep.mubr.msk.bf16.mxu0 %vm312_vm1, %v2072_v55  ;;  %5380 = vmatprep.subr.msk.bf16.mxu1 %vm361_vm0, %v5955_v6  ;;  %v1563_v38 = vunpack.c.l.bf16 %v6010_v39  ;;  %v6045_v1 = vsel %vm1045_vm3, %v5902_v25, %v2399_v48  ;;  %v1995_v17 = vsel %vm606_vm2, %v1993_v19, %v1994_v56  ;;  %v6051_v24 = vrot.slane %v1560_v58, 2 }
  0x78   : > { %5381 = vmatprep.subr.msk.bf16.mxu0 %vm361_vm0, %v5966_v11  ;;  %v1990_v35 = vsel %vm606_vm2, %v1988_v26, %v1989_v14  ;;  %v1992_v55 = vsel %vm606_vm2, %v1989_v14, %v1991_v31  ;;  %v2508_v45 = vpack.c.bf16 %v6045_v1, %v6015_v49  ;;  %v6054_v26 = vld [vmem:[%s5585_s25 + $0x84] sm:$0xff]   ;;  %v2404_v14 = vrot.slane %v1541_v61, 2  ;;  %v6364_v49 = vld [vmem:[%s5585_s25 + $0x3c] sm:$0xff]   ;;  %v6384_v1 = vld [vmem:[%s5585_s25 + $0x54] sm:$0xff]  }
  0x79   : > { %v2076_v10 = vpack.c.bf16 %v1992_v55, %v1990_v35  ;;  %v1997_v25 = vsel %vm606_vm2, %v1994_v56, %v1996_v13  ;;  %v2409_v31 = vrot.slane %v1544_v2, 2  ;;  %v2003_v35 = vrot.slane %v1563_v38, 1  ;;  %v6069_v55 = vld [vmem:[%s5585_s25 + $0x8c] sm:$0x1]  ;;  %v6100_v13 = vld [vmem:[%s5585_s25 + $0x90] sm:$0xff]  }
  0x7a   : > { %v6073_v57 = vsel %vm1045_vm3, %v5925_v46, %v2404_v14  ;;  %v6085_v56 = vrot.slane %v1561_v62, 2  ;;  %v6093_v48 = vsel %vm1045_vm3, %v5946_v0, %v5959_v8  ;;  %v2414_v62 = vrot.slane %v1547_v27, 2 }
  0x7b   : > { %v2509_v7 = vpack.c.bf16 %v6073_v57, %v6036_v23  ;;  %v6082_v2 = vsel %vm1045_vm3, %v5944_v63, %v2409_v31  ;;  %v2002_v14 = vsel %vm606_vm2, %v1999_v5, %v2001_v15  ;;  %v6108_v31 = vrot.slane %v1563_v38, 2 }
  0x7c   : > { %5207 = vmatmul.mubr.msk.bf16.gmra.mxu0 %vm312_vm1, %v2073_v12  ;;  %v1565_v12 = vunpack.c.l.bf16 %v6021_v60  ;;  %v6114_v9 = vsel %vm1045_vm3, %v5959_v8, %v2414_v62  ;;  %v6119_v27 = vsel %vm1045_vm3, %v5970_v20, %v5972_v53  ;;  %v1569_v38 = vunpack.c.l.bf16 %v6100_v13 }
  0x7d   : > { %5173 = vmatmul.mubr.msk.bf16.gmra.mxu1 %vm312_vm1, %v5874_v3  ;;  %5210 = vmatprep.mubr.msk.bf16.mxu0 %vm312_vm1, %v2074_v59  ;;  %v1564_v3 = vunpack.c.h.bf16 %v6010_v39  ;;  %v6062_v59 = vsel %vm1045_vm3, %v5930_v52, %v5944_v63  ;;  %v1566_v52 = vunpack.c.l.bf16 %v6054_v26  ;;  %v2077_v63 = vpack.c.bf16 %v1997_v25, %v1995_v17 }
  0x7e   : > { %5176 = vmatprep.mubr.msk.bf16.mxu1 %vm312_vm1, %v5888_v22  ;;  %v1998_v22 = vrot.slane %v1560_v58, 1  ;;  %v2006_v61 = vrot.slane %v1565_v12, 1  ;;  %v1567_v58 = vunpack.c.h.bf16 %v6054_v26  ;;  %v2419_v25 = vrot.slane %v1550_v34, 2 }
  0x7f   : > { %v2004_v19 = vrot.slane %v1564_v3, 1  ;;  %v2008_v17 = vrot.slane %v1566_v52, 1  ;;  %v6126_v15 = vrot.slane %v1564_v3, 2  ;;  %v6136_v20 = vsel %vm1045_vm3, %v5990_v33, %v5992_v18 }
  0x80   : > { %v2000_v0 = vsel %vm606_vm2, %v1998_v22, %v1999_v5  ;;  %v6144_v16 = vsel %vm1045_vm3, %v5972_v53, %v2419_v25  ;;  %v2424_v34 = vrot.slane %v1553_v44, 2  ;;  %v6148_v62 = vrot.slane %v1566_v52, 2 }
  0x81   : > { %v2078_v5 = vpack.c.bf16 %v2002_v14, %v2000_v0  ;;  %v6150_v0 = vrot.slane %v1567_v58, 2  ;;  %v6153_v14 = vld [vmem:[%s5585_s25 + $0xa4] sm:$0x1]  ;;  %v2013_v46 = vrot.slane %v1569_v38, 1  ;;  %v6233_v33 = vsel %vm1045_vm3, %v6108_v31, %v6126_v15 }
  0x82   : > { %v6162_v32 = vsel %vm1045_vm3, %v5992_v18, %v2424_v34  ;;  %v6199_v34 = vld [vmem:[%s5585_s25 + $0xb0] sm:$0x1]  ;;  %v7402_v23 = vpack.c.bf16 %v6114_v9, %v6093_v48  ;;  %v6409_v48 = vld [vmem:[%s5585_s25 + $0x78] sm:$0xff]  }
  0x83   : > { %v7404_v57 = vpack.c.bf16 %v6162_v32, %v6136_v20 }
  0x84   : > { %5211 = vmatmul.mubr.msk.bf16.gmra.mxu0 %vm312_vm1, %v2075_v41  ;;  %v1568_v41 = vunpack.c.l.bf16 %v6069_v55 }
  0x85   : > { %5177 = vmatmul.mubr.msk.bf16.gmra.mxu1 %vm312_vm1, %v5897_v29  ;;  %5214 = vmatprep.mubr.msk.bf16.mxu0 %vm312_vm1, %v2076_v10  ;;  %v2005_v29 = vsel %vm606_vm2, %v2003_v35, %v2004_v19  ;;  %v2007_v10 = vsel %vm606_vm2, %v2004_v19, %v2006_v61  ;;  %v6131_v35 = vld [vmem:[%s5585_s25 + $0x98] sm:$0x1]  ;;  %v1570_v19 = vunpack.c.h.bf16 %v6100_v13  ;;  %v6140_v61 = vld [vmem:[%s5585_s25 + $0x9c] sm:$0xff]  }
  0x86   : > { %5180 = vmatprep.mubr.msk.bf16.mxu1 %vm312_vm1, %v5928_v50  ;;  %v2009_v50 = vrot.slane %v1567_v58, 1  ;;  %v2011_v8 = vrot.slane %v1568_v41, 1  ;;  %v2079_v3 = vpack.c.bf16 %v2007_v10, %v2005_v29  ;;  %v1571_v53 = vunpack.c.l.bf16 %v6131_v35 }
  0x87   : > { %v1572_v52 = vunpack.c.l.bf16 %v6140_v61  ;;  %v1573_v58 = vunpack.c.h.bf16 %v6140_v61  ;;  %v2014_v18 = vrot.slane %v1570_v19, 1  ;;  %v1574_v29 = vunpack.c.l.bf16 %v6153_v14 }
  0x88   : > { %v2010_v22 = vsel %vm606_vm2, %v2008_v17, %v2009_v50  ;;  %v2012_v44 = vsel %vm606_vm2, %v2009_v50, %v2011_v8  ;;  %v2429_v10 = vrot.slane %v1556_v30, 2  ;;  %v2451_v17 = vrot.slane %v1569_v38, 2  ;;  %v6192_v8 = vld [vmem:[%s5585_s25 + $0xa8] sm:$0xff]  }
  0x89   : > { %v6185_v50 = vsel %vm1045_vm3, %v6004_v54, %v6028_v47  ;;  %v2080_v25 = vpack.c.bf16 %v2012_v44, %v2010_v22  ;;  %v2018_v30 = vrot.slane %v1572_v52, 1  ;;  %v2019_v38 = vrot.slane %v1573_v58, 1 }
  0x8a   : > { %v6196_v51 = vsel %vm1045_vm3, %v6001_v43, %v2429_v10  ;;  %v2015_v54 = vsel %vm606_vm2, %v2013_v46, %v2014_v18  ;;  %v2021_v22 = vrot.slane %v1574_v29, 1  ;;  %v1575_v44 = vunpack.c.l.bf16 %v6192_v8 }
  0x8b   : > { %v1576_v10 = vunpack.c.h.bf16 %v6192_v8  ;;  %v2439_v46 = vrot.slane %v1562_v28, 2  ;;  %v2456_v21 = vrot.slane %v1572_v52, 2  ;;  %v2020_v37 = vsel %vm606_vm2, %v2018_v30, %v2019_v38 }
  0x8c   : > { %5215 = vmatmul.mubr.msk.bf16.gmra.mxu0 %vm312_vm1, %v2077_v63  ;;  %v6218_v63 = vld [vmem:[%s5585_s25 + $0xbc] sm:$0x1]  ;;  %v2022_v31 = vsel %vm606_vm2, %v2019_v38, %v2021_v22  ;;  %v2461_v30 = vrot.slane %v1575_v44, 2 }
  0x8d   : > { %5181 = vmatmul.mubr.msk.bf16.gmra.mxu1 %vm312_vm1, %v5950_v4  ;;  %5218 = vmatprep.mubr.msk.bf16.mxu0 %vm312_vm1, %v2078_v5  ;;  %v6178_v4 = vsel %vm1045_vm3, %v5999_v42, %v6001_v43  ;;  %v2452_v5 = vrot.slane %v1570_v19, 2  ;;  %v2016_v42 = vrot.slane %v1571_v53, 1  ;;  %v6211_v19 = vld [vmem:[%s5585_s25 + $0xb4] sm:$0xff]   ;;  %v1577_v43 = vunpack.c.l.bf16 %v6199_v34  ;;  %v4658_v34 = vld [vmem:[%s5585_s25 + $0xc0] sm:$0xff]  }
  0x8e   : > { %5184 = vmatprep.mubr.msk.bf16.mxu1 %vm312_vm1, %v5996_v36  ;;  %v2434_v36 = vrot.slane %v1559_v40, 2  ;;  %v1578_v28 = vunpack.c.l.bf16 %v6211_v19  ;;  %v1580_v52 = vunpack.c.l.bf16 %v6218_v63  ;;  %v2082_v22 = vpack.c.bf16 %v2022_v31, %v2020_v37 }
  0x8f   : > { %v1581_v31 = vunpack.c.l.bf16 %v4658_v34 }
  0x90   : > { %v6205_v40 = vsel %vm1045_vm3, %v6028_v47, %v2434_v36  ;;  %v6223_v47 = vsel %vm1045_vm3, %v6051_v24, %v6085_v56  ;;  %v2017_v36 = vsel %vm606_vm2, %v2014_v18, %v2016_v42  ;;  %v6242_v24 = vsel %vm1045_vm3, %v6085_v56, %v2439_v46 }
  0x91   : > { %v2023_v42 = vrot.slane %v1575_v44, 1  ;;  %v2024_v56 = vrot.slane %v1576_v10, 1  ;;  %v2028_v63 = vrot.slane %v1578_v28, 1  ;;  %v6263_v46 = vsel %vm1045_vm3, %v6148_v62, %v6150_v0 }
  0x92   : > { %v2454_v44 = vrot.slane %v1571_v53, 2  ;;  %v2466_v35 = vrot.slane %v1578_v28, 2  ;;  %v2033_v28 = vrot.slane %v1581_v31, 1  ;;  %v7406_v9 = vpack.c.bf16 %v6205_v40, %v6185_v50  ;;  %v6444_v40 = vld [vmem:[%s5585_s25 + $0x9c] sm:$0xff]  }
  0x93   : > { %v2025_v37 = vsel %vm606_vm2, %v2023_v42, %v2024_v56  ;;  %v7407_v20 = vpack.c.bf16 %v6242_v24, %v6223_v47  ;;  %v6451_v47 = vld [vmem:[%s5585_s25 + $0xa8] sm:$0xff]  }
  0x94   : > { %5219 = vmatmul.mubr.msk.bf16.gmra.mxu0 %vm312_vm1, %v2079_v3  ;;  %v2444_v3 = vrot.slane %v1565_v12, 2  ;;  %v2081_v12 = vpack.c.bf16 %v2017_v36, %v2015_v54  ;;  %v6269_v54 = vsel %vm1045_vm3, %v2451_v17, %v2452_v5  ;;  %v2462_v36 = vrot.slane %v1576_v10, 2 }
  0x95   : > { %5185 = vmatmul.mubr.msk.bf16.gmra.mxu1 %vm312_vm1, %v6010_v39  ;;  %5222 = vmatprep.mubr.msk.bf16.mxu0 %vm312_vm1, %v2080_v25  ;;  %v1579_v39 = vunpack.c.h.bf16 %v6211_v19  ;;  %v2457_v25 = vrot.slane %v1573_v58, 2  ;;  %v2449_v58 = vrot.slane %v1568_v41, 2  ;;  %v1582_v41 = vunpack.c.h.bf16 %v4658_v34 }
  0x96   : > { %5188 = vmatprep.mubr.msk.bf16.mxu1 %vm312_vm1, %v6054_v26  ;;  %v6255_v60 = vsel %vm1045_vm3, %v6126_v15, %v2444_v3  ;;  %v2026_v26 = vrot.slane %v1577_v43, 1  ;;  %v2031_v15 = vrot.slane %v1580_v52, 1  ;;  %v4660_v3 = vld [vmem:[%s5585_s25 + $0xc8] sm:$0x1]  ;;  %v6283_v38 = vsel %vm1045_vm3, %v2452_v5, %v2454_v44 }
  0x97   : > { %v2029_v18 = vrot.slane %v1579_v39, 1  ;;  %v6276_v62 = vsel %vm1045_vm3, %v6150_v0, %v2449_v58  ;;  %v1583_v53 = vunpack.c.l.bf16 %v4660_v3  ;;  %v2519_v0 = vpack.c.bf16 %v6283_v38, %v6269_v54 }
  0x98   : > { %v2027_v55 = vsel %vm606_vm2, %v2024_v56, %v2026_v26  ;;  %v2518_v17 = vpack.c.bf16 %v6276_v62, %v6263_v46  ;;  %v6295_v5 = vsel %vm1045_vm3, %v2456_v21, %v2457_v25  ;;  %v6300_v26 = vsel %vm1045_vm3, %v2461_v30, %v2462_v36 }
  0x99   : > { %v2030_v10 = vsel %vm606_vm2, %v2028_v63, %v2029_v18  ;;  %v2032_v42 = vsel %vm606_vm2, %v2029_v18, %v2031_v15  ;;  %v2083_v56 = vpack.c.bf16 %v2027_v55, %v2025_v37  ;;  %v2471_v58 = vrot.slane %v1581_v31, 2  ;;  %v6327_v37 = vld [vmem:[%s5585_s25 + $0x18] sm:$0xff]  }
  0x9a   : > { %v2464_v63 = vrot.slane %v1577_v43, 2  ;;  %v2084_v3 = vpack.c.bf16 %v2032_v42, %v2030_v10  ;;  %v2472_v18 = vrot.slane %v1582_v41, 2  ;;  %v2036_v21 = vrot.slane %v1583_v53, 1 }
  0x9b   : > { %v7409_v50 = vpack.c.bf16 %v6255_v60, %v6233_v33  ;;  %v2886_v60 = vunpack.c.l.bf16 %v6327_v37 }
  0x9c   : > { %5223 = vmatmul.mubr.msk.bf16.gmra.mxu0 %vm312_vm1, %v2081_v12  ;;  %v2467_v12 = vrot.slane %v1579_v39, 2  ;;  %v6322_v44 = vsel %vm1045_vm3, %v2471_v58, %v2472_v18 }
  0x9d   : > { %5189 = vmatmul.mubr.msk.bf16.gmra.mxu1 %vm312_vm1, %v6100_v13  ;;  %5226 = vmatprep.mubr.msk.bf16.mxu0 %vm312_vm1, %v2082_v22  ;;  %v2459_v13 = vrot.slane %v1574_v29, 2  ;;  %v2034_v22 = vrot.slane %v1582_v41, 1  ;;  %v6308_v29 = vsel %vm1045_vm3, %v2462_v36, %v2464_v63  ;;  %v2474_v36 = vrot.slane %v1583_v53, 2  ;;  %v6482_v63 = vld [vmem:[%s5585_s25 + $0xb4] sm:$0xff]  }
  0x9e   : > { %5192 = vmatprep.mubr.msk.bf16.mxu1 %vm312_vm1, %v6140_v61  ;;  %v2521_v39 = vpack.c.bf16 %v6308_v29, %v6300_v26  ;;  %v6314_v30 = vsel %vm1045_vm3, %v2466_v35, %v2467_v12  ;;  %v6351_v35 = vld [vmem:[%s5585_s25 + $0x30] sm:$0xff]   ;;  %v3925_v53 = vsel %vm361_vm0, %v5966_v11, 0  ;;  %v7401_v11 = vpack.c.bf16 %v6082_v2, %v6062_v59  ;;  %v6391_v59 = vld [vmem:[%s5585_s25 + $0x60] sm:$0xff]  }
  0x9f   : > { %v6303_v61 = vsel %vm1045_vm3, %v2457_v25, %v2459_v13  ;;  %v2469_v25 = vrot.slane %v1580_v52, 2  ;;  %v2035_v43 = vsel %vm606_vm2, %v2033_v28, %v2034_v22  ;;  %v2037_v15 = vsel %vm606_vm2, %v2034_v22, %v2036_v21 }
  0xa0   : > { %v2520_v14 = vpack.c.bf16 %v6303_v61, %v6295_v5  ;;  %v6335_v31 = vsel %vm1045_vm3, %v2472_v18, %v2474_v36  ;;  %v2085_v55 = vpack.c.bf16 %v2037_v15, %v2035_v43  ;;  %v7405_v2 = vpack.c.bf16 %v6196_v51, %v6178_v4  ;;  %v6492_v43 = vld [vmem:[%s5585_s25 + $0xc0] sm:$0xff]  }
  0xa1   : > { %v6330_v52 = vsel %vm1045_vm3, %v2467_v12, %v2469_v25  ;;  %v2887_v13 = vunpack.c.h.bf16 %v6327_v37  ;;  %v3308_v28 = vrot.slane %v2886_v60, 1  ;;  %v2892_v22 = vunpack.c.l.bf16 %v6351_v35  ;;  %7414 = vst [vmem:[#allocation8_spill] sm:$0xff] %v6492_v43 }
  0xa2   : > { %v3746_v18 = vrot.slane %v2886_v60, 2  ;;  %v2893_v21 = vunpack.c.h.bf16 %v6351_v35  ;;  %v2895_v36 = vunpack.c.l.bf16 %v6364_v49 }
  0xa3   : > { %v3747_v54 = vrot.slane %v2887_v13, 2 }
  0xa4   : > { %5227 = vmatmul.mubr.msk.bf16.gmra.mxu0 %vm312_vm1, %v2083_v56 }
  0xa5   : > { %5193 = vmatmul.mubr.msk.bf16.gmra.mxu1 %vm312_vm1, %v6192_v8  ;;  %5230 = vmatprep.mubr.msk.bf16.mxu0 %vm312_vm1, %v2084_v3  ;;  %v3309_v3 = vrot.slane %v2887_v13, 1  ;;  %v4736_v13 = vld [vmem:[%s5585_s25 + $0x38] sm:$0x1] }
  0xa6   : > { %5196 = vmatprep.mubr.msk.bf16.mxu1 %vm312_vm1, %v6211_v19  ;;  %v6344_v19 = vld [vmem:[%s5585_s25 + $0x24] sm:$0xff]   ;;  %v2894_v29 = vunpack.c.l.bf16 %v4736_v13 }
  0xa7   : > { %v2889_v56 = vunpack.c.l.bf16 %v6344_v19  ;;  %v2890_v46 = vunpack.c.h.bf16 %v6344_v19 }
  0xa9   : > { %v6496_v15 = vrot.slane %v2890_v46, 1 }
  0xac   : > { %5231 = vmatmul.mubr.msk.bf16.gmra.mxu0 %vm312_vm1, %v2085_v55  ;;  %v6501_v55 = vrot.slane %v2889_v56, 2 }
  0xad   : > { %5197 = vmatmul.mubr.msk.bf16.gmra.mxu1 %vm312_vm1, %v4658_v34  ;;  %5270 = vmatprep.mubr.msk.bf16.mxu0 %vm312_vm1, %v6327_v37  ;;  %v3487_v34 = vsel %vm361_vm0, %v5955_v6, 0  ;;  %v6371_v6 = vld [vmem:[%s5585_s25 + $0x48] sm:$0xff]  }
  0xae   : > { %5236 = vmatprep.mubr.msk.bf16.mxu1 %vm312_vm1, %v2508_v45  ;;  %v7403_v45 = vpack.c.bf16 %v6144_v16, %v6119_v27  ;;  %v6420_v27 = vld [vmem:[%s5585_s25 + $0x84] sm:$0xff]   ;;  %v6427_v16 = vld [vmem:[%s5585_s25 + $0x90] sm:$0xff]   ;;  %v2898_v5 = vunpack.c.l.bf16 %v6371_v6 }
  0xb0   : > { %v6544_v41 = vrot.slane %v2898_v5, 2 }
  0xb4   : > { %5271 = vmatmul.mubr.msk.bf16.vlgmr.msra.gmra.mxu0 %vm312_vm1, %v6344_v19  ;;  %v2896_v19 = vunpack.c.h.bf16 %v6364_v49 }
  0xb5   : > { %5237 = vmatmul.mubr.msk.bf16.vlgmr.msra.gmra.mxu1 %vm312_vm1, %v2509_v7  ;;  %5337 = vmatpush3.bf16.msra.mxu0 %v3925_v53  ;;  %v6402_v7 = vld [vmem:[%s5585_s25 + $0x6c] sm:$0xff]   ;;  %v2899_v53 = vunpack.c.h.bf16 %v6371_v6 }
  0xb6   : > { %5303 = vmatpush3.bf16.msra.mxu1 %v3487_v34  ;;  %5240 = vmatprep.mubr.msk.bf16.mxu1 %vm312_vm1, %v7401_v11  ;;  %v6514_v11 = vrot.slane %v2893_v21, 1 }
  0xb7   : > { %5274 = vmatprep.mubr.msk.bf16.mxu0 %vm312_vm1, %v6351_v35  ;;  %v6509_v35 = vrot.slane %v2892_v22, 1 }
  0xbc   : > { %5275 = vmatmul.mubr.msk.bf16.gmra.mxu0 %vm312_vm1, %v6364_v49 }
  0xbd   : > { %5241 = vmatmul.mubr.msk.bf16.gmra.mxu1 %vm312_vm1, %v7402_v23  ;;  %5278 = vmatprep.mubr.msk.bf16.mxu0 %vm312_vm1, %v6371_v6  ;;  %v6516_v23 = vrot.slane %v2892_v22, 2  ;;  %v2902_v22 = vunpack.c.h.bf16 %v6384_v1 }
  0xbe   : > { %5244 = vmatprep.mubr.msk.bf16.mxu1 %vm312_vm1, %v7403_v45  ;;  %v6518_v45 = vrot.slane %v2893_v21, 2 }
  0xc4   : > { %5279 = vmatmul.mubr.msk.bf16.gmra.mxu0 %vm312_vm1, %v6384_v1 }
  0xc5   : > { %5245 = vmatmul.mubr.msk.bf16.gmra.mxu1 %vm312_vm1, %v7404_v57  ;;  %5282 = vmatprep.mubr.msk.bf16.mxu0 %vm312_vm1, %v6391_v59 }
  0xc6   : > { %5248 = vmatprep.mubr.msk.bf16.mxu1 %vm312_vm1, %v7405_v2  ;;  %v4733_v2 = vld [vmem:[%s5585_s25 + $0x2c] sm:$0x1] }
  0xcc   : > { %5283 = vmatmul.mubr.msk.bf16.gmra.mxu0 %vm312_vm1, %v6402_v7 }
  0xcd   : > { %5249 = vmatmul.mubr.msk.bf16.gmra.mxu1 %vm312_vm1, %v7406_v9  ;;  %5286 = vmatprep.mubr.msk.bf16.mxu0 %vm312_vm1, %v6409_v48  ;;  %v6523_v9 = vrot.slane %v2895_v36, 1 }
  0xce   : > { %5252 = vmatprep.mubr.msk.bf16.mxu1 %vm312_vm1, %v7407_v20  ;;  %v6525_v20 = vrot.slane %v2895_v36, 2  ;;  %v6542_v36 = vrot.slane %v2899_v53, 1 }
  0xd4   : > { %v6429_v32 = vpop.f32.mrf.mxu0  ;;  %5287 = vmatmul.mubr.msk.bf16.gmra.mxu0 %vm312_vm1, %v6420_v27 }
  0xd5   : > { %v6433_v4 = vpop.f32.mrf.mxu1  ;;  %5253 = vmatmul.mubr.msk.bf16.gmra.mxu1 %vm312_vm1, %v7409_v50  ;;  %5290 = vmatprep.mubr.msk.bf16.mxu0 %vm312_vm1, %v6427_v16  ;;  %v2901_v50 = vunpack.c.l.bf16 %v6384_v1  ;;  %v6556_v1 = vld [vmem:[%s5585_s25 + $0xcc] sm:$0xff]  }
  0xd6   : > { %7408 = vst [vmem:[#allocation3_spill] sm:$0xff] %v6433_v4  ;;  %v6439_v51 = vpop.f32.mrf.mxu0  ;;  %5256 = vmatprep.mubr.msk.bf16.mxu1 %vm312_vm1, %v2518_v17  ;;  %v4730_v17 = vld [vmem:[%s5585_s25 + $0x20] sm:$0x1]  ;;  %7419 = vst [vmem:[#allocation13_spill] sm:$0xff] %v6556_v1 }
  0xd7   : > { %v6453_v24 = vpop.f32.mrf.mxu1  ;;  %v2888_v38 = vunpack.c.l.bf16 %v4730_v17  ;;  %v6535_v17 = vrot.slane %v2898_v5, 1  ;;  %v7420_v5 = vpack.c.bf16 %v6330_v52, %v6314_v30  ;;  %v6577_v30 = vrot.slane %v2901_v50, 2 }
  0xd8   : > { %7410 = vst [vmem:[#allocation4_spill] sm:$0xff] %v6453_v24  ;;  %v6455_v33 = vpop.f32.mrf.mxu0  ;;  %v2907_v52 = vunpack.c.l.bf16 %v6402_v7 }
  0xd9   : > { %v6458_v10 = vpop.f32.mrf.mxu1  ;;  %v3749_v57 = vrot.slane %v2888_v38, 2  ;;  %v3311_v60 = vrot.slane %v2888_v38, 1  ;;  %v2904_v38 = vunpack.c.l.bf16 %v6391_v59 }
  0xda   : > { %7411 = vst [vmem:[#allocation5_spill] sm:$0xff] %v6458_v10  ;;  %v6460_v42 = vpop.f32.mrf.mxu0  ;;  %v4739_v10 = vld [vmem:[%s5585_s25 + $0x44] sm:$0x1] }
  0xdb   : > { %v6465_v62 = vpop.f32.mrf.mxu1  ;;  %v3750_v26 = vsel %vm1045_vm3, %v3747_v54, %v3749_v57  ;;  %v6593_v24 = vrot.slane %v2904_v38, 2 }
  0xdc   : > { %7412 = vst [vmem:[#allocation6_spill] sm:$0xff] %v6465_v62  ;;  %v6468_v12 = vpop.f32.mrf.mxu0  ;;  %5291 = vmatmul.mubr.msk.bf16.gmra.mxu0 %vm312_vm1, %v6444_v40  ;;  %v6575_v62 = vrot.slane %v2902_v22, 1 }
  0xdd   : > { %v6473_v58 = vpop.f32.mrf.mxu1  ;;  %5257 = vmatmul.mubr.msk.bf16.gmra.mxu1 %vm312_vm1, %v2519_v0  ;;  %5294 = vmatprep.mubr.msk.bf16.mxu0 %vm312_vm1, %v6451_v47  ;;  %v6494_v0 = vrot.slane %v2889_v56, 1  ;;  %v6531_v56 = vrot.slane %v2896_v19, 1 }
  0xde   : > { %7413 = vst [vmem:[#allocation7_spill] sm:$0xff] %v6473_v58  ;;  %v6485_v25 = vpop.f32.mrf.mxu0  ;;  %5260 = vmatprep.mubr.msk.bf16.mxu1 %vm312_vm1, %v2520_v14  ;;  %v6507_v14 = vrot.slane %v2890_v46, 2  ;;  %v6533_v46 = vrot.slane %v2896_v19, 2  ;;  %v2891_v19 = vunpack.c.l.bf16 %v4733_v2  ;;  %v3312_v2 = vsel %vm606_vm2, %v3309_v3, %v3311_v60 }
  0xdf   : > { %v6499_v37 = vpop.f32.mrf.mxu1 }
  0xe0   : > { %7415 = vst [vmem:[#allocation9_spill] sm:$0xff] %v6499_v37  ;;  %v6505_v61 = vpop.f32.mrf.mxu0  ;;  %v6569_v37 = vrot.slane %v2901_v50, 1  ;;  %v3316_v50 = vrot.slane %v2891_v19, 1 }
  0xe1   : > { %v6512_v34 = vpop.f32.mrf.mxu1 }
  0xe2   : > { %7416 = vst [vmem:[#allocation10_spill] sm:$0xff] %v6512_v34  ;;  %v6520_v49 = vpop.f32.mrf.mxu0 }
  0xe3   : > { %v6528_v6 = vpop.f32.mrf.mxu1 }
  0xe4   : > { %7417 = vst [vmem:[#allocation11_spill] sm:$0xff] %v6528_v6  ;;  %v6538_v21 = vpop.f32.mrf.mxu0  ;;  %5295 = vmatmul.mubr.msk.bf16.gmra.mxu0 %vm312_vm1, %v6482_v63  ;;  %v2905_v6 = vunpack.c.h.bf16 %v6391_v59  ;;  %v3310_v59 = vsel %vm606_vm2, %v3308_v28, %v3309_v3  ;;  %v3754_v28 = vrot.slane %v2891_v19, 2  ;;  %v2911_v19 = vunpack.c.h.bf16 %v6409_v48 }
  0xe5   : > { %v6547_v8 = vpop.f32.mrf.mxu1  ;;  %5261 = vmatmul.mubr.msk.bf16.gmra.mxu1 %vm312_vm1, %v2521_v39  ;;  %5298 = vmatprep.mubr.msk.bf16.mxu0 %vm312_vm1, %v6492_v43  ;;  %v6567_v39 = vrot.slane %v2899_v53, 2  ;;  %v6584_v53 = vrot.slane %v2904_v38, 1  ;;  %v3420_v60 = vpack.c.bf16 %v3312_v2, %v3310_v59  ;;  %v3315_v38 = vsel %vm606_vm2, %v6494_v0, %v6496_v15 }
  0xe6   : > { %7418 = vst [vmem:[#allocation12_spill] sm:$0xff] %v6547_v8  ;;  %v6559_v34 = vpop.f32.mrf.mxu0  ;;  %5264 = vmatprep.mubr.msk.bf16.mxu1 %vm312_vm1, %v7420_v5  ;;  %v3748_v8 = vsel %vm1045_vm3, %v3746_v18, %v3747_v54  ;;  %v6582_v54 = vrot.slane %v2902_v22, 2  ;;  %v6588_v5 = vrot.slane %v2905_v6, 1  ;;  %v6595_v4 = vrot.slane %v2905_v6, 2 }
  0xe7   : > { %v6571_v58 = vpop.f32.mrf.mxu1  ;;  %v3858_v13 = vpack.c.bf16 %v3750_v26, %v3748_v8  ;;  %v2908_v22 = vunpack.c.h.bf16 %v6402_v7  ;;  %v6601_v8 = vrot.slane %v2907_v52, 1  ;;  %v6603_v26 = vrot.slane %v2907_v52, 2 }
  0xe8   : > { %7421 = vst [vmem:[#allocation14_spill] sm:$0xff] %v6571_v58  ;;  %v6580_v18 = vpop.f32.mrf.mxu0  ;;  %v3759_v58 = vrot.slane %v2894_v29, 2  ;;  %v7428_v7 = vpack.c.bf16 %v6335_v31, %v6322_v44  ;;  %v2897_v2 = vunpack.c.l.bf16 %v4739_v10  ;;  %v3317_v44 = vsel %vm606_vm2, %v6496_v15, %v3316_v50 }
  0xe9   : > { %7422 = vst [vmem:[#allocation15_spill] sm:$0xff] %v6580_v18  ;;  %v6586_v57 = vpop.f32.mrf.mxu1  ;;  %v3321_v18 = vrot.slane %v2894_v29, 1  ;;  %v3755_v29 = vsel %vm1045_vm3, %v6507_v14, %v3754_v28  ;;  %v3758_v31 = vsel %vm1045_vm3, %v6516_v23, %v6518_v45  ;;  %v3320_v28 = vsel %vm606_vm2, %v6509_v35, %v6514_v11 }
  0xea   : > { %7423 = vst [vmem:[#allocation16_spill] sm:$0xff] %v6586_v57  ;;  %v6590_v3 = vpop.f32.mrf.mxu0  ;;  %v4742_v57 = vld [vmem:[%s5585_s25 + $0x50] sm:$0x1]  ;;  %v3760_v0 = vsel %vm1045_vm3, %v6518_v45, %v3759_v58  ;;  %v6647_v23 = vrot.slane %v2908_v22, 2  ;;  %v3421_v50 = vpack.c.bf16 %v3317_v44, %v3315_v38  ;;  %v3764_v35 = vrot.slane %v2897_v2, 2 }
  0xeb   : > { %7424 = vst [vmem:[#allocation17_spill] sm:$0xff] %v6590_v3  ;;  %v6598_v43 = vpop.f32.mrf.mxu1  ;;  %v2910_v3 = vunpack.c.l.bf16 %v6409_v48  ;;  %v3753_v48 = vsel %vm1045_vm3, %v6501_v55, %v6507_v14  ;;  %v2913_v55 = vunpack.c.l.bf16 %v6420_v27  ;;  %v2914_v14 = vunpack.c.h.bf16 %v6420_v27  ;;  %v4748_v44 = vld [vmem:[%s5585_s25 + $0x68] sm:$0x1] }
  0xec   : > { %7425 = vst [vmem:[#allocation18_spill] sm:$0xff] %v6598_v43  ;;  %v6607_v59 = vpop.f32.mrf.mxu0  ;;  %5299 = vmatmul.mubr.msk.bf16.gmra.mxu0 %vm312_vm1, %v6556_v1  ;;  %v3322_v15 = vsel %vm606_vm2, %v6514_v11, %v3321_v18  ;;  %v4745_v1 = vld [vmem:[%s5585_s25 + $0x5c] sm:$0x1] }
  0xed   : > { %7426 = vst [vmem:[#allocation19_spill] sm:$0xff] %v6607_v59  ;;  %v6611_v6 = vpop.f32.mrf.mxu1  ;;  %5265 = vmatmul.mubr.msk.bf16.gmra.mxu1 %vm312_vm1, %v7428_v7  ;;  %5338 = vmatprep.mubr.msk.bf16.mxu0 %vm312_vm1, %v3858_v13  ;;  %v2900_v13 = vunpack.c.l.bf16 %v4742_v57  ;;  %v6649_v58 = vrot.slane %v2910_v3, 1  ;;  %v3859_v57 = vpack.c.bf16 %v3755_v29, %v3753_v48  ;;  %v3860_v7 = vpack.c.bf16 %v3760_v0, %v3758_v31 }
  0xee   : > { %7427 = vst [vmem:[#allocation20_spill] sm:$0xff] %v6611_v6  ;;  %v6626_v52 = vpop.f32.mrf.mxu0  ;;  %5304 = vmatprep.mubr.msk.bf16.mxu1 %vm312_vm1, %v3420_v60  ;;  %v6645_v60 = vrot.slane %v2908_v22, 1  ;;  %v6655_v6 = vrot.slane %v2911_v19, 1  ;;  %v6657_v11 = vrot.slane %v2910_v3, 2  ;;  %v3422_v22 = vpack.c.bf16 %v3322_v15, %v3320_v28 }
  0xef   : > { %7429 = vst [vmem:[#allocation21_spill] sm:$0xff] %v6626_v52  ;;  %v6638_v10 = vpop.f32.mrf.mxu1  ;;  %v3769_v43 = vrot.slane %v2900_v13, 2  ;;  %v6662_v52 = vrot.slane %v2911_v19, 2  ;;  %v6666_v48 = vrot.slane %v2914_v14, 1  ;;  %v3331_v38 = vrot.slane %v2900_v13, 1 }
  0xf0   : > { %7430 = vst [vmem:[#allocation22_spill] sm:$0xff] %v6638_v10  ;;  %v6651_v45 = vpop.f32.mrf.mxu0  ;;  %v3326_v10 = vrot.slane %v2897_v2, 1  ;;  %v6671_v2 = vrot.slane %v2913_v55, 2  ;;  %v6673_v31 = vrot.slane %v2914_v14, 2  ;;  %v2916_v3 = vunpack.c.l.bf16 %v6427_v16 }
  0xf1   : > { %7431 = vst [vmem:[#allocation23_spill] sm:$0xff] %v6651_v45  ;;  %v6653_v27 = vpop.f32.mrf.mxu1  ;;  %v6664_v45 = vrot.slane %v2913_v55, 1  ;;  %v3325_v19 = vsel %vm606_vm2, %v6523_v9, %v6531_v56  ;;  %v3763_v55 = vsel %vm1045_vm3, %v6525_v20, %v6533_v46  ;;  %v3765_v14 = vsel %vm1045_vm3, %v6533_v46, %v3764_v35 }
  0xf2   : > { %7432 = vst [vmem:[#allocation24_spill] sm:$0xff] %v6653_v27  ;;  %v6659_v18 = vpop.f32.mrf.mxu0  ;;  %v3327_v13 = vsel %vm606_vm2, %v6531_v56, %v3326_v10  ;;  %v2903_v15 = vunpack.c.l.bf16 %v4745_v1  ;;  %v3768_v9 = vsel %vm1045_vm3, %v6544_v41, %v6567_v39  ;;  %v3770_v56 = vsel %vm1045_vm3, %v6567_v39, %v3769_v43 }
  0xf3   : > { %7433 = vst [vmem:[#allocation25_spill] sm:$0xff] %v6659_v18  ;;  %v6668_v29 = vpop.f32.mrf.mxu1  ;;  %v2906_v10 = vunpack.c.l.bf16 %v4748_v44  ;;  %v2919_v20 = vunpack.c.l.bf16 %v6444_v40  ;;  %v3332_v46 = vsel %vm606_vm2, %v6542_v36, %v3331_v38  ;;  %v6703_v1 = vrot.slane %v2916_v3, 1 }
  0xf4   : > { %7434 = vst [vmem:[#allocation26_spill] sm:$0xff] %v6668_v29  ;;  %v5136_v0 = vpop.f32.mrf.mxu0  ;;  %5339 = vmatmul.mubr.msk.bf16.vlgmr.msra.gmra.mxu0 %vm312_vm1, %v3859_v57  ;;  %v3861_v35 = vpack.c.bf16 %v3765_v14, %v3763_v55  ;;  %v3862_v44 = vpack.c.bf16 %v3770_v56, %v3768_v9  ;;  %v3774_v27 = vrot.slane %v2903_v15, 2 }
  0xf5   : > { %v5102_v28 = vpop.f32.mrf.mxu1  ;;  %5305 = vmatmul.mubr.msk.bf16.vlgmr.msra.gmra.mxu1 %vm312_vm1, %v3421_v50  ;;  %5342 = vmatprep.mubr.msk.bf16.mxu0 %vm312_vm1, %v3860_v7  ;;  %v2917_v50 = vunpack.c.h.bf16 %v6427_v16  ;;  %7435 = vst [vmem:[#allocation27_spill] sm:$0xff] %v6703_v1  ;;  %v3779_v59 = vrot.slane %v2906_v10, 2  ;;  %v4751_v1 = vld [vmem:[%s5585_s25 + $0x74] sm:$0x1]  ;;  %v3341_v14 = vrot.slane %v2906_v10, 1  ;;  %v3778_v10 = vsel %vm1045_vm3, %v6593_v24, %v6595_v4 }
  0xf6   : > { %v983_v57 = vadd.f32 %v5102_v28, %v6429_v32  ;;  %v1261_v29 = vpop.f32.mrf.mxu0  ;;  %5308 = vmatprep.mubr.msk.bf16.mxu1 %vm312_vm1, %v3422_v22  ;;  %v3330_v32 = vsel %vm606_vm2, %v6535_v17, %v6542_v36  ;;  %v3423_v22 = vpack.c.bf16 %v3327_v13, %v3325_v19  ;;  %v3336_v28 = vrot.slane %v2903_v15, 1  ;;  %v4754_v19 = vld [vmem:[%s5585_s25 + $0x80] sm:$0x1] }
  0xf7   : > { %v822_v7 = vpop.f32.mrf.mxu1  ;;  %v3424_v38 = vpack.c.bf16 %v3332_v46, %v3330_v32  ;;  %v3780_v32 = vsel %vm1045_vm3, %v6595_v4, %v3779_v59  ;;  %v2912_v46 = vunpack.c.l.bf16 %v4754_v19  ;;  %v3340_v24 = vsel %vm606_vm2, %v6584_v53, %v6588_v5 }
  0xf8   : > { %v6705_v41 = vadd.f32 %v5136_v0, %v983_v57  ;;  %v981_v43 = vadd.f32 %v822_v7, %v6439_v51  ;;  %v5137_v39 = vpop.f32.mrf.mxu0  ;;  %v6712_v0 = vrot.slane %v2917_v50, 1  ;;  %v6714_v57 = vrot.slane %v2916_v3, 2 }
  0xf9   : > { %v5103_v16 = vpop.f32.mrf.mxu1  ;;  %v6716_v51 = vrot.slane %v2917_v50, 2  ;;  %v3773_v3 = vsel %vm1045_vm3, %v6577_v30, %v6582_v54  ;;  %v3337_v56 = vsel %vm606_vm2, %v6575_v62, %v3336_v28  ;;  %v3351_v19 = vrot.slane %v2912_v46, 1 }
  0xfa   : > { %v6708_v18 = vadd.f32 %v1261_v29, %v981_v43  ;;  %v984_v17 = vadd.f32 %v5103_v16, %v6455_v33  ;;  %v1264_v36 = vpop.f32.mrf.mxu0  ;;  %v3335_v33 = vsel %vm606_vm2, %v6569_v37, %v6575_v62  ;;  %v2909_v37 = vunpack.c.l.bf16 %v4751_v1 }
  0xfb   : > { %v825_v55 = vpop.f32.mrf.mxu1  ;;  %v2920_v62 = vunpack.c.h.bf16 %v6444_v40  ;;  %v6745_v43 = vrot.slane %v2919_v20, 1  ;;  %v3864_v16 = vpack.c.bf16 %v3780_v32, %v3778_v10  ;;  %v3788_v10 = vsel %vm1045_vm3, %v6657_v11, %v6662_v52 }
  0xfc   : > { %v6719_v13 = vadd.f32 %v5137_v39, %v984_v17  ;;  %v982_v29 = vadd.f32 %v825_v55, %v6460_v42  ;;  %v5140_v15 = vpop.f32.mrf.mxu0  ;;  %5343 = vmatmul.mubr.msk.bf16.gmra.mxu0 %vm312_vm1, %v3861_v35  ;;  %v3775_v42 = vsel %vm1045_vm3, %v6582_v54, %v3774_v27  ;;  %v3342_v27 = vsel %vm606_vm2, %v6588_v5, %v3341_v14 }
  0xfd   : > { %v5106_v9 = vpop.f32.mrf.mxu1  ;;  %5309 = vmatmul.mubr.msk.bf16.gmra.mxu1 %vm312_vm1, %v3423_v22  ;;  %5346 = vmatprep.mubr.msk.bf16.mxu0 %vm312_vm1, %v3862_v44  ;;  %v3863_v39 = vpack.c.bf16 %v3775_v42, %v3773_v3  ;;  %v3425_v35 = vpack.c.bf16 %v3337_v56, %v3335_v33  ;;  %v3346_v22 = vrot.slane %v2909_v37, 1  ;;  %v3784_v44 = vrot.slane %v2909_v37, 2 }
  0xfe   : > { %v6738_v50 = vadd.f32 %v1264_v36, %v982_v29  ;;  %v987_v30 = vadd.f32 %v5106_v9, %v6468_v12  ;;  %v1277_v7 = vpop.f32.mrf.mxu0  ;;  %5312 = vmatprep.mubr.msk.bf16.mxu1 %vm312_vm1, %v3424_v38  ;;  %v6752_v12 = vrot.slane %v2919_v20, 2  ;;  %v3426_v17 = vpack.c.bf16 %v3342_v27, %v3340_v24  ;;  %v4757_v36 = vld [vmem:[%s5585_s25 + $0x8c] sm:$0x1]  ;;  %v4760_v29 = vld [vmem:[%s5585_s25 + $0x98] sm:$0x1] }
  0xff   : > { %v838_v54 = vpop.f32.mrf.mxu1  ;;  %v3789_v20 = vrot.slane %v2912_v46, 2  ;;  %v6761_v38 = vrot.slane %v2920_v62, 1  ;;  %v6763_v55 = vrot.slane %v2920_v62, 2  ;;  %v3783_v9 = vsel %vm1045_vm3, %v6603_v26, %v6647_v23 }
 0x100   : > { %v6754_v1 = vadd.f32 %v5140_v15, %v987_v30  ;;  %v985_v4 = vadd.f32 %v838_v54, %v6485_v25  ;;  %v5141_v59 = vpop.f32.mrf.mxu0  ;;  %v2922_v25 = vunpack.c.l.bf16 %v6451_v47  ;;  %v3347_v42 = vsel %vm606_vm2, %v6645_v60, %v3346_v22 }
 0x101   : > { %v5107_v40 = vpop.f32.mrf.mxu1  ;;  %v2918_v32 = vunpack.c.l.bf16 %v4760_v29  ;;  %v3350_v11 = vsel %vm606_vm2, %v6649_v58, %v6655_v6  ;;  %v3352_v62 = vsel %vm606_vm2, %v6655_v6, %v3351_v19  ;;  %v7436_v58 = vld [vmem:[#allocation15_spill] sm:$0xff]  ;;  %v7437_v29 = vld [vmem:[#allocation17_spill] sm:$0xff] }
 0x102   : > { %v6757_v28 = vadd.f32 %v1277_v7, %v985_v4  ;;  %v988_v53 = vadd.f32 %v5107_v40, %v6505_v61  ;;  %v1280_v5 = vpop.f32.mrf.mxu0  ;;  %v3345_v61 = vsel %vm606_vm2, %v6601_v8, %v6645_v60  ;;  %v2915_v8 = vunpack.c.l.bf16 %v4757_v36 }
 0x103   : > { %v841_v14 = vpop.f32.mrf.mxu1  ;;  %v3790_v7 = vsel %vm1045_vm3, %v6662_v52, %v3789_v20  ;;  %v2923_v60 = vunpack.c.h.bf16 %v6451_v47  ;;  %v3427_v4 = vpack.c.bf16 %v3347_v42, %v3345_v61  ;;  %v3428_v22 = vpack.c.bf16 %v3352_v62, %v3350_v11 }
 0x104   : > { %v6767_v15 = vadd.f32 %v5141_v59, %v988_v53  ;;  %v986_v33 = vadd.f32 %v841_v14, %v6520_v49  ;;  %v5144_v3 = vpop.f32.mrf.mxu0  ;;  %5347 = vmatmul.mubr.msk.bf16.gmra.mxu0 %vm312_vm1, %v3863_v39  ;;  %v3785_v49 = vsel %vm1045_vm3, %v6647_v23, %v3784_v44  ;;  %v2925_v23 = vunpack.c.l.bf16 %v6482_v63  ;;  %v4763_v53 = vld [vmem:[%s5585_s25 + $0xa4] sm:$0x1]  ;;  %v4766_v14 = vld [vmem:[%s5585_s25 + $0xb0] sm:$0x1] }
 0x105   : > { %v5110_v56 = vpop.f32.mrf.mxu1  ;;  %5313 = vmatmul.mubr.msk.bf16.gmra.mxu1 %vm312_vm1, %v3425_v35  ;;  %5350 = vmatprep.mubr.msk.bf16.mxu0 %vm312_vm1, %v3864_v16  ;;  %v3865_v27 = vpack.c.bf16 %v3785_v49, %v3783_v9  ;;  %v3866_v59 = vpack.c.bf16 %v3790_v7, %v3788_v10  ;;  %v3356_v39 = vrot.slane %v2915_v8, 1  ;;  %v3794_v40 = vrot.slane %v2915_v8, 2  ;;  %v7438_v8 = vld [vmem:[#allocation19_spill] sm:$0xff] }
 0x106   : > { %v6786_v37 = vadd.f32 %v1280_v5, %v986_v33  ;;  %v991_v26 = vadd.f32 %v5110_v56, %v6538_v21  ;;  %v1293_v30 = vpop.f32.mrf.mxu0  ;;  %5316 = vmatprep.mubr.msk.bf16.mxu1 %vm312_vm1, %v3426_v17  ;;  %v2926_v21 = vunpack.c.h.bf16 %v6482_v63  ;;  %v3799_v44 = vrot.slane %v2918_v32, 2 }
 0x107   : > { %v854_v46 = vpop.f32.mrf.mxu1  ;;  %v6807_v5 = vrot.slane %v2922_v25, 1  ;;  %v6809_v17 = vrot.slane %v2923_v60, 1  ;;  %v3361_v36 = vrot.slane %v2918_v32, 1  ;;  %v3355_v61 = vsel %vm606_vm2, %v6664_v45, %v6666_v48 }
 0x108   : > { %v6800_v54 = vadd.f32 %v5144_v3, %v991_v26  ;;  %v989_v52 = vadd.f32 %v854_v46, %v6559_v34  ;;  %v5145_v24 = vpop.f32.mrf.mxu0  ;;  %v3806_v34 = vrot.slane %v2922_v25, 2  ;;  %v3793_v9 = vsel %vm1045_vm3, %v6671_v2, %v6673_v31 }
 0x109   : > { %v5111_v47 = vpop.f32.mrf.mxu1  ;;  %v3357_v25 = vsel %vm606_vm2, %v6666_v48, %v3356_v39  ;;  %v3795_v42 = vsel %vm1045_vm3, %v6673_v31, %v3794_v40  ;;  %v3798_v49 = vsel %vm1045_vm3, %v6714_v57, %v6716_v51  ;;  %v2921_v45 = vunpack.c.l.bf16 %v4763_v53  ;;  %v7439_v57 = vld [vmem:[#allocation27_spill] sm:$0xff]  ;;  %v4769_v53 = vld [vmem:[%s5585_s25 + $0xbc] sm:$0x1] }
 0x10a   : > { %v6803_v35 = vadd.f32 %v1293_v30, %v989_v52  ;;  %v992_v16 = vadd.f32 %v5111_v47, %v7436_v58  ;;  %v1296_v6 = vpop.f32.mrf.mxu0  ;;  %v3800_v30 = vsel %vm1045_vm3, %v6716_v51, %v3799_v44  ;;  %v2924_v7 = vunpack.c.l.bf16 %v4766_v14 }
 0x10b   : > { %v857_v20 = vpop.f32.mrf.mxu1  ;;  %v3807_v48 = vrot.slane %v2923_v60, 2  ;;  %v6839_v31 = vrot.slane %v2925_v23, 1  ;;  %v3360_v46 = vsel %vm606_vm2, %v7439_v57, %v6712_v0  ;;  %v3362_v11 = vsel %vm606_vm2, %v6712_v0, %v3361_v36  ;;  %v7440_v60 = vld [vmem:[#allocation21_spill] sm:$0xff]  ;;  %v7441_v0 = vld [vmem:[#allocation23_spill] sm:$0xff]  ;;  %v7442_v36 = vld [vmem:[#allocation8_spill] sm:$0xff] }
 0x10c   : > { %v6812_v19 = vadd.f32 %v5145_v24, %v992_v16  ;;  %v990_v33 = vadd.f32 %v857_v20, %v7437_v29  ;;  %v5148_v3 = vpop.f32.mrf.mxu0  ;;  %5351 = vmatmul.mubr.msk.bf16.gmra.mxu0 %vm312_vm1, %v3865_v27  ;;  %v6848_v62 = vrot.slane %v2926_v21, 1  ;;  %v3867_v27 = vpack.c.bf16 %v3795_v42, %v3793_v9 }
 0x10d   : > { %v5114_v56 = vpop.f32.mrf.mxu1  ;;  %5317 = vmatmul.mubr.msk.bf16.gmra.mxu1 %vm312_vm1, %v3427_v4  ;;  %5354 = vmatprep.mubr.msk.bf16.mxu0 %vm312_vm1, %v3866_v59  ;;  %v3429_v4 = vpack.c.bf16 %v3357_v25, %v3355_v61  ;;  %v3868_v59 = vpack.c.bf16 %v3800_v30, %v3798_v49  ;;  %v3366_v39 = vrot.slane %v2921_v45, 1  ;;  %v3804_v40 = vrot.slane %v2921_v45, 2  ;;  %v4772_v61 = vld [vmem:[%s5585_s25 + $0xc8] sm:$0x1] }
 0x10e   : > { %v6831_v10 = vadd.f32 %v1296_v6, %v990_v33  ;;  %v995_v2 = vadd.f32 %v5114_v56, %v7438_v8  ;;  %v1309_v26 = vpop.f32.mrf.mxu0  ;;  %5320 = vmatprep.mubr.msk.bf16.mxu1 %vm312_vm1, %v3428_v22  ;;  %v3430_v22 = vpack.c.bf16 %v3362_v11, %v3360_v46  ;;  %v3809_v44 = vrot.slane %v2924_v7, 2  ;;  %v7443_v56 = vld [vmem:[#allocation25_spill] sm:$0xff] }
 0x10f   : > { %v870_v32 = vpop.f32.mrf.mxu1  ;;  %v3811_v20 = vrot.slane %v2925_v23, 2  ;;  %v2928_v14 = vunpack.c.l.bf16 %v7442_v36  ;;  %v2929_v29 = vunpack.c.h.bf16 %v7442_v36  ;;  %v3365_v49 = vsel %vm606_vm2, %v6745_v43, %v6761_v38  ;;  %v7444_v43 = vld [vmem:[#allocation3_spill] sm:$0xff] }
 0x110   : > { %v6850_v51 = vadd.f32 %v5148_v3, %v995_v2  ;;  %v993_v52 = vadd.f32 %v870_v32, %v7440_v60  ;;  %v5149_v24 = vpop.f32.mrf.mxu0  ;;  %v3371_v3 = vrot.slane %v2924_v7, 1  ;;  %v3803_v23 = vsel %vm1045_vm3, %v6752_v12, %v6763_v55 }
 0x111   : > { %v5115_v47 = vpop.f32.mrf.mxu1  ;;  %v3367_v8 = vsel %vm606_vm2, %v6761_v38, %v3366_v39  ;;  %v3805_v2 = vsel %vm1045_vm3, %v6763_v55, %v3804_v40  ;;  %v2927_v30 = vunpack.c.l.bf16 %v4769_v53  ;;  %v3810_v12 = vsel %vm1045_vm3, %v3807_v48, %v3809_v44  ;;  %v4775_v44 = vld [vmem:[%s5585_s25 + $0xd4] sm:$0x1] }
 0x112   : > { %v6853_v58 = vadd.f32 %v1309_v26, %v993_v52  ;;  %v996_v16 = vadd.f32 %v5115_v47, %v7441_v0  ;;  %v1312_v6 = vpop.f32.mrf.mxu0  ;;  %v3808_v26 = vsel %vm1045_vm3, %v3806_v34, %v3807_v48  ;;  %v2930_v46 = vunpack.c.l.bf16 %v4772_v61 }
 0x113   : > { %v873_v33 = vpop.f32.mrf.mxu1  ;;  %v3812_v11 = vrot.slane %v2926_v21, 2  ;;  %v3816_v38 = vrot.slane %v2928_v14, 2  ;;  %v3370_v55 = vsel %vm606_vm2, %v6807_v5, %v6809_v17  ;;  %v3372_v34 = vsel %vm606_vm2, %v6809_v17, %v3371_v3 }
 0x114   : > { %v6862_v9 = vadd.f32 %v5149_v24, %v996_v16  ;;  %v994_v25 = vadd.f32 %v873_v33, %v7443_v56  ;;  %v5152_v42 = vpop.f32.mrf.mxu0  ;;  %5355 = vmatmul.mubr.msk.bf16.gmra.mxu0 %vm312_vm1, %v3867_v27  ;;  %v3817_v52 = vrot.slane %v2929_v29, 2  ;;  %v7445_v27 = vld [vmem:[#allocation4_spill] sm:$0xff]  ;;  %v3431_v63 = vpack.c.bf16 %v3367_v8, %v3365_v49  ;;  %v7446_v16 = vld [vmem:[#allocation5_spill] sm:$0xff]  ;;  %v7448_v49 = vld [vmem:[#allocation6_spill] sm:$0xff] }
 0x115   : > { %v5118_v45 = vpop.f32.mrf.mxu1  ;;  %5321 = vmatmul.mubr.msk.bf16.gmra.mxu1 %vm312_vm1, %v3429_v4  ;;  %5358 = vmatprep.mubr.msk.bf16.mxu0 %vm312_vm1, %v3868_v59  ;;  %v3869_v4 = vpack.c.bf16 %v3805_v2, %v3803_v23  ;;  %v3870_v21 = vpack.c.bf16 %v3810_v12, %v3808_v26  ;;  %v3376_v39 = vrot.slane %v2927_v30, 1  ;;  %v3814_v40 = vrot.slane %v2927_v30, 2  ;;  %v7447_v33 = vld [vmem:[#allocation13_spill] sm:$0xff] }
 0x116   : > { %v6879_v7 = vadd.f32 %v1312_v6, %v994_v25  ;;  %v999_v32 = vadd.f32 %v5118_v45, %v7444_v43  ;;  %v1325_v57 = vpop.f32.mrf.mxu0  ;;  %5324 = vmatprep.mubr.msk.bf16.mxu1 %vm312_vm1, %v3430_v22  ;;  %v3432_v22 = vpack.c.bf16 %v3372_v34, %v3370_v55  ;;  %v3819_v17 = vrot.slane %v2930_v46, 2 }
 0x117   : > { %v886_v60 = vpop.f32.mrf.mxu1  ;;  %v3378_v53 = vrot.slane %v2928_v14, 1  ;;  %v3379_v36 = vrot.slane %v2929_v29, 1  ;;  %v2931_v3 = vunpack.c.l.bf16 %v7447_v33  ;;  %v3381_v56 = vrot.slane %v2930_v46, 1 }
 0x118   : > { %v6891_v24 = vadd.f32 %v5152_v42, %v999_v32  ;;  %v997_v47 = vadd.f32 %v886_v60, %v7445_v27  ;;  %v5153_v48 = vpop.f32.mrf.mxu0  ;;  %v2932_v25 = vunpack.c.h.bf16 %v7447_v33  ;;  %v3375_v8 = vsel %vm606_vm2, %v6839_v31, %v6848_v62  ;;  %v7449_v32 = vld [vmem:[#allocation7_spill] sm:$0xff] }
 0x119   : > { %v5119_v59 = vpop.f32.mrf.mxu1  ;;  %v3377_v14 = vsel %vm606_vm2, %v6848_v62, %v3376_v39  ;;  %v3813_v29 = vsel %vm1045_vm3, %v3811_v20, %v3812_v11  ;;  %v3815_v26 = vsel %vm1045_vm3, %v3812_v11, %v3814_v40  ;;  %v2933_v30 = vunpack.c.l.bf16 %v4775_v44 }
 0x11a   : > { %v6894_v0 = vadd.f32 %v1325_v57, %v997_v47  ;;  %v1000_v5 = vadd.f32 %v5119_v59, %v7446_v16  ;;  %v1328_v6 = vpop.f32.mrf.mxu0  ;;  %v3818_v31 = vsel %vm1045_vm3, %v3816_v38, %v3817_v52  ;;  %v3820_v46 = vsel %vm1045_vm3, %v3817_v52, %v3819_v17  ;;  %v7450_v47 = vld [vmem:[#allocation9_spill] sm:$0xff]  ;;  %v7451_v16 = vld [vmem:[#allocation10_spill] sm:$0xff] }
 0x11b   : > { %v889_v61 = vpop.f32.mrf.mxu1  ;;  %v3383_v60 = vrot.slane %v2931_v3, 1  ;;  %v3821_v55 = vrot.slane %v2931_v3, 2  ;;  %v3380_v62 = vsel %vm606_vm2, %v3378_v53, %v3379_v36  ;;  %v3382_v20 = vsel %vm606_vm2, %v3379_v36, %v3381_v56  ;;  %v7452_v36 = vld [vmem:[#allocation11_spill] sm:$0xff] }
 0x11c   : > { %v6900_v42 = vadd.f32 %v5153_v48, %v1000_v5  ;;  %v998_v23 = vadd.f32 %v889_v61, %v7448_v49  ;;  %v5156_v45 = vpop.f32.mrf.mxu0  ;;  %5359 = vmatmul.mubr.msk.bf16.gmra.mxu0 %vm312_vm1, %v3869_v4  ;;  %v3384_v11 = vrot.slane %v2932_v25, 1  ;;  %v3871_v59 = vpack.c.bf16 %v3815_v26, %v3813_v29 }
 0x11d   : > { %v5122_v2 = vpop.f32.mrf.mxu1  ;;  %5325 = vmatmul.mubr.msk.bf16.gmra.mxu1 %vm312_vm1, %v3431_v63  ;;  %5362 = vmatprep.mubr.msk.bf16.mxu0 %vm312_vm1, %v3870_v21  ;;  %v3822_v63 = vrot.slane %v2932_v25, 2  ;;  %v3433_v39 = vpack.c.bf16 %v3377_v14, %v3375_v8  ;;  %v3872_v38 = vpack.c.bf16 %v3820_v46, %v3818_v31  ;;  %v3824_v40 = vrot.slane %v2933_v30, 2 }
 0x11e   : > { %v6913_v43 = vadd.f32 %v1328_v6, %v998_v23  ;;  %v1003_v57 = vadd.f32 %v5122_v2, %v7449_v32  ;;  %v1341_v12 = vpop.f32.mrf.mxu0  ;;  %5328 = vmatprep.mubr.msk.bf16.mxu1 %vm312_vm1, %v3432_v22  ;;  %v3434_v22 = vpack.c.bf16 %v3382_v20, %v3380_v62  ;;  %v3386_v17 = vrot.slane %v2933_v30, 1  ;;  %v7453_v23 = vld [vmem:[#allocation12_spill] sm:$0xff]  ;;  %v7454_v30 = vld [vmem:[#allocation14_spill] sm:$0xff] }
 0x11f   : > { %v902_v34 = vpop.f32.mrf.mxu1  ;;  %v3823_v56 = vsel %vm1045_vm3, %v3821_v55, %v3822_v63  ;;  %v3825_v25 = vsel %vm1045_vm3, %v3822_v63, %v3824_v40  ;;  %v3385_v2 = vsel %vm606_vm2, %v3383_v60, %v3384_v11  ;;  %v7456_v60 = vld [vmem:[#allocation18_spill] sm:$0xff] }
 0x120   : > { %v6921_v27 = vadd.f32 %v5156_v45, %v1003_v57  ;;  %v1001_v48 = vadd.f32 %v902_v34, %v7450_v47  ;;  %v5157_v4 = vpop.f32.mrf.mxu0  ;;  %v3387_v14 = vsel %vm606_vm2, %v3384_v11, %v3386_v17  ;;  %v7455_v34 = vld [vmem:[#allocation16_spill] sm:$0xff] }
 0x121   : > { %v5123_v21 = vpop.f32.mrf.mxu1  ;;  %v3435_v46 = vpack.c.bf16 %v3387_v14, %v3385_v2 }
 0x122   : > { %v6924_v52 = vadd.f32 %v1341_v12, %v1001_v48  ;;  %v1004_v5 = vadd.f32 %v5123_v21, %v7451_v16  ;;  %v1344_v6 = vpop.f32.mrf.mxu0  ;;  %v3873_v12 = vpack.c.bf16 %v3825_v25, %v3823_v56  ;;  %v7457_v21 = vld [vmem:[#allocation20_spill] sm:$0xff]  ;;  %v7460_v25 = vld [vmem:[#allocation26_spill] sm:$0xff] }
 0x123   : > { %v905_v44 = vpop.f32.mrf.mxu1 }
 0x124   : > { %v6927_v53 = vadd.f32 %v5157_v4, %v1004_v5  ;;  %v1002_v33 = vadd.f32 %v905_v44, %v7452_v36  ;;  %v5160_v3 = vpop.f32.mrf.mxu0  ;;  %5363 = vmatmul.mubr.msk.bf16.gmra.mxu0 %vm312_vm1, %v3871_v59  ;;  %v7458_v5 = vld [vmem:[#allocation22_spill] sm:$0xff]  ;;  %v7459_v36 = vld [vmem:[#allocation24_spill] sm:$0xff] }
 0x125   : > { %v5126_v61 = vpop.f32.mrf.mxu1  ;;  %5329 = vmatmul.mubr.msk.bf16.gmra.mxu1 %vm312_vm1, %v3433_v39  ;;  %5366 = vmatprep.mubr.msk.bf16.mxu0 %vm312_vm1, %v3872_v38 }
 0x126   : > { %v6935_v49 = vadd.f32 %v1344_v6, %v1002_v33  ;;  %v1007_v45 = vadd.f32 %v5126_v61, %v7453_v23  ;;  %v1357_v8 = vpop.f32.mrf.mxu0  ;;  %5332 = vmatprep.mubr.msk.bf16.mxu1 %vm312_vm1, %v3434_v22 }
 0x127   : > { %v918_v29 = vpop.f32.mrf.mxu1 }
 0x128   : > { %v6941_v26 = vadd.f32 %v5160_v3, %v1007_v45  ;;  %v1005_v32 = vadd.f32 %v918_v29, %v7454_v30  ;;  %v5161_v57 = vpop.f32.mrf.mxu0 }
 0x129   : > { %v5127_v31 = vpop.f32.mrf.mxu1 }
 0x12a   : > { %v6944_v55 = vadd.f32 %v1357_v8, %v1005_v32  ;;  %v1008_v62 = vadd.f32 %v5127_v31, %v7455_v34  ;;  %v1360_v20 = vpop.f32.mrf.mxu0 }
 0x12b   : > { %v921_v47 = vpop.f32.mrf.mxu1 }
 0x12c   : > { %v6947_v48 = vadd.f32 %v5161_v57, %v1008_v62  ;;  %v1006_v4 = vadd.f32 %v921_v47, %v7456_v60  ;;  %v5164_v11 = vpop.f32.mrf.mxu0  ;;  %5367 = vmatmul.mubr.msk.bf16.gmra.mxu0 %vm312_vm1, %v3873_v12 }
 0x12d   : > { %v5130_v59 = vpop.f32.mrf.mxu1  ;;  %5333 = vmatmul.mubr.msk.bf16.gmra.mxu1 %vm312_vm1, %v3435_v46 }
 0x12e   : > { %v6952_v63 = vadd.f32 %v1360_v20, %v1006_v4  ;;  %v1011_v39 = vadd.f32 %v5130_v59, %v7457_v21  ;;  %v1373_v38 = vpop.f32.mrf.mxu0 }
 0x12f   : > { %v934_v40 = vpop.f32.mrf.mxu1 }
 0x130   : > { %v6955_v16 = vadd.f32 %v5164_v11, %v1011_v39  ;;  %v1009_v6 = vadd.f32 %v934_v40, %v7458_v5  ;;  %v5165_v22 = vpop.f32.mrf.mxu0 }
 0x131   : > { %v5131_v17 = vpop.f32.mrf.mxu1 }
 0x132   : > { %v6958_v44 = vadd.f32 %v1373_v38, %v1009_v6  ;;  %v1012_v33 = vadd.f32 %v5131_v17, %v7459_v36  ;;  %v1376_v3 = vpop.f32.mrf.mxu0 }
 0x133   : > { %v937_v61 = vpop.f32.mrf.mxu1 }
 0x134   : > { %v6961_v56 = vadd.f32 %v5165_v22, %v1012_v33  ;;  %v1010_v23 = vadd.f32 %v937_v61, %v7460_v25  ;;  %v5204_v45 = vpop.f32.mrf.mxu0 }
 0x135   : > { %v5170_v8 = vpop.f32.mrf.mxu1 }
 0x136   : > { %v6964_v2 = vadd.f32 %v1376_v3, %v1010_v23  ;;  %v1848_v14 = vadd.f32 %v5170_v8, %v6705_v41  ;;  %v2173_v29 = vpop.f32.mrf.mxu0 }
 0x137   : > { %v1687_v30 = vpop.f32.mrf.mxu1 }
 0x138   : > { %v6967_v32 = vadd.f32 %v5204_v45, %v1848_v14  ;;  %v1846_v57 = vadd.f32 %v1687_v30, %v6708_v18  ;;  %v5205_v12 = vpop.f32.mrf.mxu0 }
 0x139   : > { %v5171_v31 = vpop.f32.mrf.mxu1 }
 0x13a   : > { %v6970_v46 = vadd.f32 %v2173_v29, %v1846_v57  ;;  %v1849_v34 = vadd.f32 %v5171_v31, %v6719_v13  ;;  %v2176_v62 = vpop.f32.mrf.mxu0 }
 0x13b   : > { %v1690_v20 = vpop.f32.mrf.mxu1 }
 0x13c   : > { %v6973_v47 = vadd.f32 %v5205_v12, %v1849_v34  ;;  %v1847_v60 = vadd.f32 %v1690_v20, %v6738_v50  ;;  %v5208_v4 = vpop.f32.mrf.mxu0 }
 0x13d   : > { %v5174_v41 = vpop.f32.mrf.mxu1 }
 0x13e   : > { %v6976_v11 = vadd.f32 %v2176_v62, %v1847_v60  ;;  %v1852_v59 = vadd.f32 %v5174_v41, %v6754_v1  ;;  %v2189_v21 = vpop.f32.mrf.mxu0 }
 0x13f   : > { %v1703_v18 = vpop.f32.mrf.mxu1 }
 0x140   : > { %v6979_v39 = vadd.f32 %v5208_v4, %v1852_v59  ;;  %v1850_v38 = vadd.f32 %v1703_v18, %v6757_v28  ;;  %v5209_v40 = vpop.f32.mrf.mxu0 }
 0x141   : > { %v5175_v13 = vpop.f32.mrf.mxu1 }
 0x142   : > { %v6982_v5 = vadd.f32 %v2189_v21, %v1850_v38  ;;  %v1853_v6 = vadd.f32 %v5175_v13, %v6767_v15  ;;  %v2192_v22 = vpop.f32.mrf.mxu0 }
 0x143   : > { %v1706_v50 = vpop.f32.mrf.mxu1 }
 0x144   : > { %v6985_v17 = vadd.f32 %v5209_v40, %v1853_v6  ;;  %v1851_v36 = vadd.f32 %v1706_v50, %v6786_v37  ;;  %v5212_v33 = vpop.f32.mrf.mxu0 }
 0x145   : > { %v5178_v1 = vpop.f32.mrf.mxu1 }
 0x146   : > { %v6988_v3 = vadd.f32 %v2192_v22, %v1851_v36  ;;  %v1856_v61 = vadd.f32 %v5178_v1, %v6800_v54  ;;  %v2205_v25 = vpop.f32.mrf.mxu0 }
 0x147   : > { %v1719_v28 = vpop.f32.mrf.mxu1 }
 0x148   : > { %v6991_v23 = vadd.f32 %v5212_v33, %v1856_v61  ;;  %v1854_v45 = vadd.f32 %v1719_v28, %v6803_v35  ;;  %v5213_v8 = vpop.f32.mrf.mxu0 }
 0x149   : > { %v5179_v15 = vpop.f32.mrf.mxu1 }
 0x14a   : > { %v6994_v14 = vadd.f32 %v2205_v25, %v1854_v45  ;;  %v1857_v29 = vadd.f32 %v5179_v15, %v6812_v19  ;;  %v2208_v30 = vpop.f32.mrf.mxu0 }
 0x14b   : > { %v1722_v37 = vpop.f32.mrf.mxu1 }
 0x14c   : > { %v6997_v57 = vadd.f32 %v5213_v8, %v1857_v29  ;;  %v1855_v12 = vadd.f32 %v1722_v37, %v6831_v10  ;;  %v5216_v31 = vpop.f32.mrf.mxu0 }
 0x14d   : > { %v5182_v54 = vpop.f32.mrf.mxu1 }
 0x14e   : > { %v7000_v34 = vadd.f32 %v2208_v30, %v1855_v12  ;;  %v1860_v62 = vadd.f32 %v5182_v54, %v6850_v51  ;;  %v2221_v20 = vpop.f32.mrf.mxu0 }
 0x14f   : > { %v1735_v35 = vpop.f32.mrf.mxu1 }
 0x150   : > { %v7003_v60 = vadd.f32 %v5216_v31, %v1860_v62  ;;  %v1858_v4 = vadd.f32 %v1735_v35, %v6853_v58  ;;  %v5217_v41 = vpop.f32.mrf.mxu0 }
 0x151   : > { %v5183_v19 = vpop.f32.mrf.mxu1 }
 0x152   : > { %v7006_v59 = vadd.f32 %v2221_v20, %v1858_v4  ;;  %v1861_v21 = vadd.f32 %v5183_v19, %v6862_v9  ;;  %v2224_v18 = vpop.f32.mrf.mxu0 }
 0x153   : > { %v1738_v10 = vpop.f32.mrf.mxu1 }
 0x154   : > { %v7009_v38 = vadd.f32 %v5217_v41, %v1861_v21  ;;  %v1859_v40 = vadd.f32 %v1738_v10, %v6879_v7  ;;  %v5220_v13 = vpop.f32.mrf.mxu0 }
 0x155   : > { %v5186_v51 = vpop.f32.mrf.mxu1 }
 0x156   : > { %v7012_v6 = vadd.f32 %v2224_v18, %v1859_v40  ;;  %v1864_v22 = vadd.f32 %v5186_v51, %v6891_v24  ;;  %v2237_v50 = vpop.f32.mrf.mxu0 }
 0x157   : > { %v1751_v58 = vpop.f32.mrf.mxu1 }
 0x158   : > { %v7015_v36 = vadd.f32 %v5220_v13, %v1864_v22  ;;  %v1862_v33 = vadd.f32 %v1751_v58, %v6894_v0  ;;  %v5221_v1 = vpop.f32.mrf.mxu0 }
 0x159   : > { %v5187_v9 = vpop.f32.mrf.mxu1 }
 0x15a   : > { %v7018_v61 = vadd.f32 %v2237_v50, %v1862_v33  ;;  %v1865_v25 = vadd.f32 %v5187_v9, %v6900_v42  ;;  %v2240_v28 = vpop.f32.mrf.mxu0 }
 0x15b   : > { %v1754_v7 = vpop.f32.mrf.mxu1 }
 0x15c   : > { %v7021_v45 = vadd.f32 %v5221_v1, %v1865_v25  ;;  %v1863_v8 = vadd.f32 %v1754_v7, %v6913_v43  ;;  %v5224_v15 = vpop.f32.mrf.mxu0 }
 0x15d   : > { %v5190_v24 = vpop.f32.mrf.mxu1 }
 0x15e   : > { %7461 = vst [vmem:[#allocation15_spill] sm:$0xff] %v7021_v45  ;;  %v7024_v29 = vadd.f32 %v2240_v28, %v1863_v8  ;;  %v1868_v30 = vadd.f32 %v5190_v24, %v6921_v27  ;;  %v2253_v37 = vpop.f32.mrf.mxu0 }
 0x15f   : > { %v1767_v0 = vpop.f32.mrf.mxu1 }
 0x160   : > { %7462 = vst [vmem:[#allocation17_spill] sm:$0xff] %v7024_v29  ;;  %v7027_v12 = vadd.f32 %v5224_v15, %v1868_v30  ;;  %v1866_v31 = vadd.f32 %v1767_v0, %v6924_v52  ;;  %v5225_v54 = vpop.f32.mrf.mxu0 }
 0x161   : > { %v5191_v42 = vpop.f32.mrf.mxu1 }
 0x162   : > { %7463 = vst [vmem:[#allocation19_spill] sm:$0xff] %v7027_v12  ;;  %v7030_v62 = vadd.f32 %v2253_v37, %v1866_v31  ;;  %v1869_v20 = vadd.f32 %v5191_v42, %v6927_v53  ;;  %v2256_v35 = vpop.f32.mrf.mxu0 }
 0x163   : > { %v1770_v43 = vpop.f32.mrf.mxu1 }
 0x164   : > { %7464 = vst [vmem:[#allocation27_spill] sm:$0xff] %v7030_v62  ;;  %v7033_v4 = vadd.f32 %v5225_v54, %v1869_v20  ;;  %v1867_v41 = vadd.f32 %v1770_v43, %v6935_v49  ;;  %v5228_v19 = vpop.f32.mrf.mxu0 }
 0x165   : > { %v5194_v27 = vpop.f32.mrf.mxu1 }
 0x166   : > { %7465 = vst [vmem:[#allocation21_spill] sm:$0xff] %v7033_v4  ;;  %v7036_v21 = vadd.f32 %v2256_v35, %v1867_v41  ;;  %v1872_v18 = vadd.f32 %v5194_v27, %v6941_v26  ;;  %v2269_v10 = vpop.f32.mrf.mxu0 }
 0x167   : > { %v1783_v52 = vpop.f32.mrf.mxu1 }
 0x168   : > { %7466 = vst [vmem:[#allocation23_spill] sm:$0xff] %v7036_v21  ;;  %v7039_v40 = vadd.f32 %v5228_v19, %v1872_v18  ;;  %v1870_v13 = vadd.f32 %v1783_v52, %v6944_v55  ;;  %v5229_v51 = vpop.f32.mrf.mxu0 }
 0x169   : > { %v5195_v53 = vpop.f32.mrf.mxu1 }
 0x16a   : > { %7467 = vst [vmem:[#allocation8_spill] sm:$0xff] %v7039_v40  ;;  %v7042_v22 = vadd.f32 %v2269_v10, %v1870_v13  ;;  %v1873_v50 = vadd.f32 %v5195_v53, %v6947_v48  ;;  %v2272_v58 = vpop.f32.mrf.mxu0 }
 0x16b   : > { %v1786_v49 = vpop.f32.mrf.mxu1 }
 0x16c   : > { %7468 = vst [vmem:[#allocation25_spill] sm:$0xff] %v7042_v22  ;;  %v7045_v33 = vadd.f32 %v5229_v51, %v1873_v50  ;;  %v1871_v1 = vadd.f32 %v1786_v49, %v6952_v63  ;;  %v5232_v9 = vpop.f32.mrf.mxu0 }
 0x16d   : > { %v5198_v26 = vpop.f32.mrf.mxu1 }
 0x16e   : > { %7469 = vst [vmem:[#allocation3_spill] sm:$0xff] %v7045_v33  ;;  %v7048_v25 = vadd.f32 %v2272_v58, %v1871_v1  ;;  %v1876_v28 = vadd.f32 %v5198_v26, %v6955_v16  ;;  %v2285_v7 = vpop.f32.mrf.mxu0 }
 0x16f   : > { %v1799_v55 = vpop.f32.mrf.mxu1 }
 0x170   : > { %7470 = vst [vmem:[#allocation4_spill] sm:$0xff] %v7048_v25  ;;  %v7051_v8 = vadd.f32 %v5232_v9, %v1876_v28  ;;  %v1874_v15 = vadd.f32 %v1799_v55, %v6958_v44  ;;  %v5233_v24 = vpop.f32.mrf.mxu0 }
 0x171   : > { %v5199_v48 = vpop.f32.mrf.mxu1 }
 0x172   : > { %7471 = vst [vmem:[#allocation5_spill] sm:$0xff] %v7051_v8  ;;  %v7054_v30 = vadd.f32 %v2285_v7, %v1874_v15  ;;  %v1877_v37 = vadd.f32 %v5199_v48, %v6961_v56  ;;  %v2288_v0 = vpop.f32.mrf.mxu0 }
 0x173   : > { %v1802_v63 = vpop.f32.mrf.mxu1 }
 0x174   : > { %7472 = vst [vmem:[#allocation13_spill] sm:$0xff] %v7054_v30  ;;  %v7057_v31 = vadd.f32 %v5233_v24, %v1877_v37  ;;  %v1875_v54 = vadd.f32 %v1802_v63, %v6964_v2  ;;  %v7060_v42 = vpop.f32.mrf.mxu0 }
 0x175   : > { %v5238_v16 = vpop.f32.mrf.mxu1 }
 0x176   : > { %7473 = vst [vmem:[#allocation6_spill] sm:$0xff] %v7057_v31  ;;  %v7062_v20 = vadd.f32 %v2288_v0, %v1875_v54  ;;  %v7064_v35 = vpop.f32.mrf.mxu0 }
 0x177   : > { %v2611_v44 = vpop.f32.mrf.mxu1 }
 0x178   : > { %7474 = vst [vmem:[#allocation7_spill] sm:$0xff] %v7062_v20  ;;  %v7066_v43 = vpop.f32.mrf.mxu0 }
 0x179   : > { %v5239_v41 = vpop.f32.mrf.mxu1 }
 0x17a   : > { %v7068_v19 = vpop.f32.mrf.mxu0 }
 0x17b   : > { %v7070_v56 = vpop.f32.mrf.mxu1 }
 0x17c   : > { %v7072_v27 = vpop.f32.mrf.mxu0 }
 0x17d   : > { %v7074_v18 = vpop.f32.mrf.mxu1 }
 0x17e   : > { %v7076_v2 = vpop.f32.mrf.mxu0 }
 0x17f   : > { %v7078_v10 = vpop.f32.mrf.mxu1 }
 0x180   : > { %v7080_v52 = vpop.f32.mrf.mxu0 }
 0x181   : > { %v7082_v13 = vpop.f32.mrf.mxu1 }
 0x182   : > { %v7084_v51 = vpop.f32.mrf.mxu0 }
 0x183   : > { %v7086_v53 = vpop.f32.mrf.mxu1 }
 0x184   : > { %v7088_v50 = vpop.f32.mrf.mxu0 }
 0x185   : > { %v7090_v58 = vpop.f32.mrf.mxu1 }
 0x186   : > { %v7092_v49 = vpop.f32.mrf.mxu0 }
 0x187   : > { %v7094_v1 = vpop.f32.mrf.mxu1 }
 0x188   : > { %v7096_v9 = vpop.f32.mrf.mxu0 }
 0x189   : > { %v7098_v26 = vpop.f32.mrf.mxu1 }
 0x18a   : > { %v7100_v28 = vpop.f32.mrf.mxu0 }
 0x18b   : > { %v7102_v7 = vpop.f32.mrf.mxu1 }
 0x18c   : > { %v7104_v55 = vpop.f32.mrf.mxu0 }
 0x18d   : > { %v7106_v15 = vpop.f32.mrf.mxu1 }
 0x18e   : > { %v7108_v24 = vpop.f32.mrf.mxu0 }
 0x18f   : > { %v7110_v48 = vpop.f32.mrf.mxu1 }
 0x190   : > { %v7112_v37 = vpop.f32.mrf.mxu0 }
 0x191   : > { %v7114_v0 = vpop.f32.mrf.mxu1 }
 0x192   : > { %v7116_v63 = vpop.f32.mrf.mxu0 }
 0x193   : > { %v7118_v54 = vpop.f32.mrf.mxu1 }
 0x194   : > { %v7120_v20 = vpop.f32.mrf.mxu0 }
 0x195   : > { %v7122_v31 = vpop.f32.mrf.mxu1 }
 0x196   : > { %v7124_v30 = vpop.f32.mrf.mxu0 }
 0x197   : > { %7475 = vst [vmem:[#allocation9_spill] sm:$0xff] %v7124_v30  ;;  %v7126_v8 = vpop.f32.mrf.mxu1 }
 0x198   : > { %v7128_v25 = vpop.f32.mrf.mxu0 }
 0x199   : > { %7476 = vst [vmem:[#allocation10_spill] sm:$0xff] %v7128_v25  ;;  %v7130_v33 = vpop.f32.mrf.mxu1 }
 0x19a   : > { %7477 = vst [vmem:[#allocation11_spill] sm:$0xff] %v7130_v33  ;;  %v7132_v22 = vpop.f32.mrf.mxu0 }
 0x19b   : > { %7478 = vst [vmem:[#allocation12_spill] sm:$0xff] %v7132_v22  ;;  %v7134_v40 = vpop.f32.mrf.mxu1 }
 0x19c   : > { %7479 = vst [vmem:[#allocation14_spill] sm:$0xff] %v7134_v40  ;;  %v7136_v21 = vpop.f32.mrf.mxu0 }
 0x19d   : > { %7480 = vst [vmem:[#allocation16_spill] sm:$0xff] %v7136_v21  ;;  %v7138_v4 = vpop.f32.mrf.mxu1 }
 0x19e   : > { %7481 = vst [vmem:[#allocation18_spill] sm:$0xff] %v7138_v4  ;;  %v7140_v62 = vpop.f32.mrf.mxu0 }
 0x19f   : > { %7482 = vst [vmem:[#allocation20_spill] sm:$0xff] %v7140_v62  ;;  %v7142_v12 = vpop.f32.mrf.mxu1 }
 0x1a0   : > { %7483 = vst [vmem:[#allocation22_spill] sm:$0xff] %v7142_v12  ;;  %v7144_v29 = vpop.f32.mrf.mxu0 }
 0x1a1   : > { %7484 = vst [vmem:[#allocation24_spill] sm:$0xff] %v7144_v29  ;;  %v7146_v30 = vpop.f32.mrf.mxu1 }
 0x1a2   : > { %7485 = vst [vmem:[#allocation26_spill] sm:$0xff] %v7146_v30  ;;  %v7148_v45 = vpop.f32.mrf.mxu0 }
 0x1a3   : > { %7486 = vst [vmem:[#allocation28_spill] sm:$0xff] %v7148_v45  ;;  %v7150_v25 = vpop.f32.mrf.mxu1 }
 0x1a4   : > { %7487 = vst [vmem:[#allocation29_spill] sm:$0xff] %v7150_v25  ;;  %v7152_v33 = vpop.f32.mrf.mxu0 }
 0x1a5   : > { %7488 = vst [vmem:[#allocation30_spill] sm:$0xff] %v7152_v33  ;;  %v7154_v22 = vpop.f32.mrf.mxu1 }
 0x1a6   : > { %7489 = vst [vmem:[#allocation31_spill] sm:$0xff] %v7154_v22  ;;  %v7156_v40 = vpop.f32.mrf.mxu0 }
 0x1a7   : > { %7490 = vst [vmem:[#allocation32_spill] sm:$0xff] %v7156_v40  ;;  %v7158_v21 = vpop.f32.mrf.mxu1  ;;  %v2772_v40 = vadd.f32 %v5238_v16, %v6967_v32  ;;  %v2771_v32 = vadd.f32 %v7070_v56, %v6976_v11 }
 0x1a8   : > { %7491 = vst [vmem:[#allocation33_spill] sm:$0xff] %v7158_v21  ;;  %v7160_v4 = vpop.f32.mrf.mxu0 }
 0x1a9   : > { %7492 = vst [vmem:[#allocation34_spill] sm:$0xff] %v7160_v4  ;;  %v7162_v62 = vpop.f32.mrf.mxu1  ;;  %v2770_v4 = vadd.f32 %v2611_v44, %v6970_v46  ;;  %v7194_v46 = vld [vmem:[%s7395_s2] ss:$0 sm:$0xff] }
 0x1aa   : > { %7493 = vst [vmem:[#allocation35_spill] sm:$0xff] %v7162_v62  ;;  %v7164_v12 = vpop.f32.mrf.mxu0 }
 0x1ab   : > { %7494 = vst [vmem:[#allocation36_spill] sm:$0xff] %v7164_v12  ;;  %v7166_v29 = vpop.f32.mrf.mxu1 }
 0x1ac   : > { %7495 = vst [vmem:[#allocation37_spill] sm:$0xff] %v7166_v29  ;;  %v7168_v30 = vpop.f32.mrf.mxu0 }
 0x1ad   : > { %7496 = vst [vmem:[#allocation38_spill] sm:$0xff] %v7168_v30  ;;  %v7170_v45 = vpop.f32.mrf.mxu1  ;;  %v3198_v30 = vadd.f32 %v7060_v42, %v2772_v40 }
 0x1ae   : > { %7497 = vst [vmem:[#allocation39_spill] sm:$0xff] %v7170_v45  ;;  %v7172_v25 = vpop.f32.mrf.mxu0  ;;  %v2773_v45 = vadd.f32 %v5239_v41, %v6973_v47 }
 0x1af   : > { %7498 = vst [vmem:[#allocation40_spill] sm:$0xff] %v7172_v25  ;;  %v7174_v33 = vpop.f32.mrf.mxu1 }
 0x1b0   : > { %7499 = vst [vmem:[#allocation41_spill] sm:$0xff] %v7174_v33  ;;  %v7177_v22 = vpop.f32.mrf.mxu0  ;;  %v3196_v33 = vadd.f32 %v7064_v35, %v2770_v4  ;;  %v3199_v40 = vadd.f32 %v7066_v43, %v2773_v45  ;;  %v2774_v4 = vadd.f32 %v7078_v10, %v6982_v5  ;;  %v2777_v45 = vadd.f32 %v7082_v13, %v6985_v17 }
 0x1b1   : > { %7500 = vst [vmem:[#allocation42_spill] sm:$0xff] %v7177_v22  ;;  %v7179_v21 = vpop.f32.mrf.mxu1  ;;  %v2775_v10 = vadd.f32 %v7086_v53, %v6988_v3  ;;  %v2780_v3 = vadd.f32 %v7090_v58, %v6991_v23 }
 0x1b2   : > { %v7182_v62 = vpop.f32.mrf.mxu0 }
 0x1b3   : > { %7501 = vst [vmem:[#allocation43_spill] sm:$0xff] %v7182_v62  ;;  %v7184_v12 = vpop.f32.mrf.mxu1  ;;  %v2776_v62 = vadd.f32 %v7074_v18, %v6979_v39 }
 0x1b4   : > { %7502 = vst [vmem:[#allocation44_spill] sm:$0xff] %v7184_v12  ;;  %v5340_v29 = vpop.f32.mrf.mxu0 }
 0x1b5   : > { %v5306_v25 = vpop.f32.mrf.mxu1  ;;  %v3202_v5 = vadd.f32 %v7072_v27, %v2776_v62  ;;  %v3203_v27 = vadd.f32 %v7080_v52, %v2777_v45  ;;  %v2778_v45 = vadd.f32 %v7094_v1, %v6994_v14 }
 0x1b6   : > { %v3684_v16 = vadd.f32 %v5306_v25, %v3198_v30  ;;  %v3961_v22 = vpop.f32.mrf.mxu0  ;;  %v3197_v25 = vadd.f32 %v7068_v19, %v2771_v32  ;;  %v3200_v19 = vadd.f32 %v7076_v2, %v2774_v4 }
 0x1b7   : > { %v3523_v44 = vpop.f32.mrf.mxu1 }
 0x1b8   : > { %v4122_v42 = vadd.f32 %v5340_v29, %v3684_v16  ;;  %v3682_v47 = vadd.f32 %v3523_v44, %v3196_v33  ;;  %v5341_v41 = vpop.f32.mrf.mxu0 }
 0x1b9   : > { %v5307_v11 = vpop.f32.mrf.mxu1 }
 0x1ba   : > { %v4225_v30 = vadd.f32 %v7194_v46, %v4122_v42  ;;  %v4120_v35 = vadd.f32 %v3961_v22, %v3682_v47  ;;  %v3685_v56 = vadd.f32 %v5307_v11, %v3199_v40  ;;  %v3964_v12 = vpop.f32.mrf.mxu0  ;;  %v3201_v11 = vadd.f32 %v7084_v51, %v2775_v10 }
 0x1bb   : > { %v3526_v29 = vpop.f32.mrf.mxu1 }
 0x1bc   : > { %v4257_v33 = vmax.f32 %v4225_v30, 0.0  ;;  %v4223_v43 = vadd.f32 %v7194_v46, %v4120_v35  ;;  %v4123_v39 = vadd.f32 %v5341_v41, %v3685_v56  ;;  %v3683_v18 = vadd.f32 %v3526_v29, %v3197_v25  ;;  %v5344_v16 = vpop.f32.mrf.mxu0 }
 0x1bd   : > { %v5310_v17 = vpop.f32.mrf.mxu1  ;;  %v3206_v56 = vadd.f32 %v7088_v50, %v2780_v3  ;;  %v2781_v29 = vadd.f32 %v7098_v26, %v6997_v57  ;;  %v2779_v50 = vadd.f32 %v7102_v7, %v7000_v34 }
 0x1be   : > { %v4881_v22 = vpack.c.bf16 %v4257_v33, %v4257_v33  ;;  %v4255_v13 = vmax.f32 %v4223_v43, 0.0  ;;  %v4226_v32 = vadd.f32 %v7194_v46, %v4123_v39  ;;  %v4121_v44 = vadd.f32 %v3964_v12, %v3683_v18  ;;  %v3977_v62 = vpop.f32.mrf.mxu0 }
 0x1bf   : > { %v3688_v2 = vadd.f32 %v5310_v17, %v3202_v5  ;;  %v3539_v53 = vpop.f32.mrf.mxu1 }
 0x1c0   : > { %4418 = vst.msk [vmem:[%s7214_s19 + $0x8] sm:$0xf] %vm4415_vm4, %v4881_v22  ;;  %v4879_v40 = vpack.c.bf16 %v4255_v13, %v4255_v13  ;;  %v4258_v42 = vmax.f32 %v4226_v32, 0.0  ;;  %v4224_v47 = vadd.f32 %v7194_v46, %v4121_v44  ;;  %v3686_v41 = vadd.f32 %v3539_v53, %v3200_v19  ;;  %v5345_v4 = vpop.f32.mrf.mxu0 }
 0x1c1   : > { %v4126_v12 = vadd.f32 %v5344_v16, %v3688_v2  ;;  %v5311_v25 = vpop.f32.mrf.mxu1  ;;  %v3204_v22 = vadd.f32 %v7092_v49, %v2778_v45  ;;  %v3207_v13 = vadd.f32 %v7096_v9, %v2781_v29  ;;  %v2784_v32 = vadd.f32 %v7106_v15, %v7003_v60 }
 0x1c2   : > { %4416 = vst.msk [vmem:[%s7214_s19] sm:$0xf] %vm4415_vm4, %v4879_v40  ;;  %v4882_v52 = vpack.c.bf16 %v4258_v42, %v4258_v42  ;;  %v4256_v30 = vmax.f32 %v4224_v47, 0.0  ;;  %v4124_v23 = vadd.f32 %v3977_v62, %v3686_v41  ;;  %v3689_v58 = vadd.f32 %v5311_v25, %v3203_v27  ;;  %v3980_v35 = vpop.f32.mrf.mxu0 }
 0x1c3   : > { %v4229_v51 = vadd.f32 %v7194_v46, %v4126_v12  ;;  %v3542_v33 = vpop.f32.mrf.mxu1  ;;  %v3205_v53 = vadd.f32 %v7100_v28, %v2779_v50  ;;  %v2782_v40 = vadd.f32 %v7110_v48, %v7006_v59  ;;  %v2786_v50 = vadd.f32 %v7126_v8, %v7018_v61 }
 0x1c4   : > { %4419 = vst.msk [vmem:[%s7214_s19 + $0xc] sm:$0xf] %vm4415_vm4, %v4882_v52  ;;  %v4880_v43 = vpack.c.bf16 %v4256_v30, %v4256_v30  ;;  %v4227_v39 = vadd.f32 %v7194_v46, %v4124_v23  ;;  %v4127_v18 = vadd.f32 %v5345_v4, %v3689_v58  ;;  %v3687_v16 = vadd.f32 %v3542_v33, %v3201_v11  ;;  %v5348_v5 = vpop.f32.mrf.mxu0 }
 0x1c5   : > { %v4261_v19 = vmax.f32 %v4229_v51, 0.0  ;;  %v5314_v10 = vpop.f32.mrf.mxu1  ;;  %v3210_v4 = vadd.f32 %v7104_v55, %v2784_v32  ;;  %v3208_v30 = vadd.f32 %v7108_v24, %v2782_v40  ;;  %v2785_v23 = vadd.f32 %v7114_v0, %v7009_v38 }
 0x1c6   : > { %4417 = vst.msk [vmem:[%s7214_s19 + $0x4] sm:$0xf] %vm4415_vm4, %v4880_v43  ;;  %v4259_v14 = vmax.f32 %v4227_v39, 0.0  ;;  %v4230_v57 = vadd.f32 %v7194_v46, %v4127_v18  ;;  %v4125_v1 = vadd.f32 %v3980_v35, %v3687_v16  ;;  %v3692_v26 = vadd.f32 %v5314_v10, %v3206_v56  ;;  %v3993_v17 = vpop.f32.mrf.mxu0 }
 0x1c7   : > { %v4885_v34 = vpack.c.bf16 %v4261_v19, %v4261_v19  ;;  %v3555_v7 = vpop.f32.mrf.mxu1  ;;  %v2783_v58 = vadd.f32 %v7118_v54, %v7012_v6  ;;  %v2788_v24 = vadd.f32 %v7122_v31, %v7015_v36  ;;  %v3211_v16 = vadd.f32 %v7112_v37, %v2785_v23  ;;  %v7511_v23 = vld [vmem:[#allocation27_spill] sm:$0xff] }
 0x1c8   : > { %v4883_v44 = vpack.c.bf16 %v4259_v14, %v4259_v14  ;;  %v4262_v62 = vmax.f32 %v4230_v57, 0.0  ;;  %v4228_v27 = vadd.f32 %v7194_v46, %v4125_v1  ;;  %v4130_v3 = vadd.f32 %v5348_v5, %v3692_v26  ;;  %v5349_v2 = vpop.f32.mrf.mxu0 }
 0x1c9   : > { %4422 = vst.msk [vmem:[%s7214_s19 + $0x18] sm:$0xf] %vm4415_vm4, %v4885_v34  ;;  %v3690_v49 = vadd.f32 %v3555_v7, %v3204_v22  ;;  %v5315_v9 = vpop.f32.mrf.mxu1  ;;  %v3209_v5 = vadd.f32 %v7116_v63, %v2783_v58  ;;  %v3214_v26 = vadd.f32 %v7120_v20, %v2788_v24  ;;  %v7504_v22 = vld [vmem:[#allocation11_spill] sm:$0xff]  ;;  %v7512_v58 = vld [vmem:[#allocation22_spill] sm:$0xff] }
 0x1ca   : > { %4420 = vst.msk [vmem:[%s7214_s19 + $0x10] sm:$0xf] %vm4415_vm4, %v4883_v44  ;;  %v4886_v60 = vpack.c.bf16 %v4262_v62, %v4262_v62  ;;  %v4260_v15 = vmax.f32 %v4228_v27, 0.0  ;;  %v4233_v42 = vadd.f32 %v7194_v46, %v4130_v3  ;;  %v3693_v47 = vadd.f32 %v5315_v9, %v3207_v13  ;;  %v3996_v41 = vpop.f32.mrf.mxu0  ;;  %v7505_v44 = vld [vmem:[#allocation9_spill] sm:$0xff]  ;;  %v7506_v9 = vld [vmem:[#allocation10_spill] sm:$0xff] }
 0x1cb   : > { %v4128_v11 = vadd.f32 %v3993_v17, %v3690_v49  ;;  %v3558_v28 = vpop.f32.mrf.mxu1  ;;  %v7503_v17 = vld [vmem:[#allocation15_spill] sm:$0xff]  ;;  %v3212_v62 = vadd.f32 %v7505_v44, %v2786_v50 }
 0x1cc   : > { %4423 = vst.msk [vmem:[%s7214_s19 + $0x1c] sm:$0xf] %vm4415_vm4, %v4886_v60  ;;  %v4884_v59 = vpack.c.bf16 %v4260_v15, %v4260_v15  ;;  %v4265_v48 = vmax.f32 %v4233_v42, 0.0  ;;  %v4131_v12 = vadd.f32 %v5349_v2, %v3693_v47  ;;  %v3691_v25 = vadd.f32 %v3558_v28, %v3205_v53  ;;  %v5352_v52 = vpop.f32.mrf.mxu0  ;;  %v7507_v15 = vld [vmem:[#allocation17_spill] sm:$0xff]  ;;  %v7508_v42 = vld [vmem:[#allocation14_spill] sm:$0xff] }
 0x1cd   : > { %v4231_v55 = vadd.f32 %v7194_v46, %v4128_v11  ;;  %v5318_v35 = vpop.f32.mrf.mxu1  ;;  %v2789_v13 = vadd.f32 %v7504_v22, %v7503_v17  ;;  %v2787_v47 = vadd.f32 %v7508_v42, %v7507_v15  ;;  %v7524_v42 = vld [vmem:[#allocation25_spill] sm:$0xff] }
 0x1ce   : > { %4421 = vst.msk [vmem:[%s7214_s19 + $0x14] sm:$0xf] %vm4415_vm4, %v4884_v59  ;;  %v4889_v56 = vpack.c.bf16 %v4265_v48, %v4265_v48  ;;  %v4234_v45 = vadd.f32 %v7194_v46, %v4131_v12  ;;  %v4129_v29 = vadd.f32 %v3996_v41, %v3691_v25  ;;  %v3696_v51 = vadd.f32 %v5318_v35, %v3210_v4  ;;  %v4009_v33 = vpop.f32.mrf.mxu0  ;;  %v7509_v41 = vld [vmem:[#allocation19_spill] sm:$0xff]  ;;  %v7510_v4 = vld [vmem:[#allocation18_spill] sm:$0xff] }
 0x1cf   : > { %v4263_v43 = vmax.f32 %v4231_v55, 0.0  ;;  %v3571_v39 = vpop.f32.mrf.mxu1  ;;  %v3215_v60 = vadd.f32 %v7506_v9, %v2789_v13  ;;  %v2792_v11 = vadd.f32 %v7510_v4, %v7509_v41  ;;  %v2790_v55 = vadd.f32 %v7512_v58, %v7511_v23  ;;  %v7522_v9 = vld [vmem:[#allocation8_spill] sm:$0xff] }
 0x1d0   : > { %4426 = vst.msk [vmem:[%s7214_s19 + $0x28] sm:$0xf] %vm4415_vm4, %v4889_v56  ;;  %v4266_v38 = vmax.f32 %v4234_v45, 0.0  ;;  %v4232_v6 = vadd.f32 %v7194_v46, %v4129_v29  ;;  %v4134_v0 = vadd.f32 %v5352_v52, %v3696_v51  ;;  %v3694_v54 = vadd.f32 %v3571_v39, %v3208_v30  ;;  %v5353_v18 = vpop.f32.mrf.mxu0 }
 0x1d1   : > { %v4887_v36 = vpack.c.bf16 %v4263_v43, %v4263_v43  ;;  %v5319_v31 = vpop.f32.mrf.mxu1  ;;  %v7513_v43 = vld [vmem:[#allocation12_spill] sm:$0xff] }
 0x1d2   : > { %v4890_v19 = vpack.c.bf16 %v4266_v38, %v4266_v38  ;;  %v4264_v10 = vmax.f32 %v4232_v6, 0.0  ;;  %v4237_v14 = vadd.f32 %v7194_v46, %v4134_v0  ;;  %v4132_v57 = vadd.f32 %v4009_v33, %v3694_v54  ;;  %v4012_v1 = vpop.f32.mrf.mxu0  ;;  %v7514_v38 = vld [vmem:[#allocation16_spill] sm:$0xff]  ;;  %v7515_v0 = vld [vmem:[#allocation21_spill] sm:$0xff]  ;;  %v7516_v54 = vld [vmem:[#allocation26_spill] sm:$0xff] }
 0x1d3   : > { %4424 = vst.msk [vmem:[%s7214_s19 + $0x20] sm:$0xf] %vm4415_vm4, %v4887_v36  ;;  %v3697_v37 = vadd.f32 %v5319_v31, %v3211_v16  ;;  %v3574_v63 = vpop.f32.mrf.mxu1  ;;  %v3213_v39 = vadd.f32 %v7513_v43, %v2787_v47  ;;  %v3218_v6 = vadd.f32 %v7514_v38, %v2792_v11  ;;  %v7525_v47 = vld [vmem:[#allocation33_spill] sm:$0xff]  ;;  %v7529_v43 = vld [vmem:[#allocation32_spill] sm:$0xff] }
 0x1d4   : > { %4427 = vst.msk [vmem:[%s7214_s19 + $0x2c] sm:$0xf] %vm4415_vm4, %v4890_v19  ;;  %v4888_v61 = vpack.c.bf16 %v4264_v10, %v4264_v10  ;;  %v4269_v8 = vmax.f32 %v4237_v14, 0.0  ;;  %v4235_v32 = vadd.f32 %v7194_v46, %v4132_v57  ;;  %v3695_v34 = vadd.f32 %v3574_v63, %v3209_v5  ;;  %v5356_v7 = vpop.f32.mrf.mxu0  ;;  %v7517_v14 = vld [vmem:[#allocation20_spill] sm:$0xff] }
 0x1d5   : > { %v4135_v27 = vadd.f32 %v5353_v18, %v3697_v37  ;;  %v5322_v20 = vpop.f32.mrf.mxu1  ;;  %v2793_v18 = vadd.f32 %v7516_v54, %v7515_v0  ;;  %v3216_v57 = vadd.f32 %v7517_v14, %v2790_v55  ;;  %v2794_v41 = vadd.f32 %v7525_v47, %v7524_v42  ;;  %v7530_v38 = vld [vmem:[#allocation4_spill] sm:$0xff]  ;;  %v7533_v14 = vld [vmem:[#allocation5_spill] sm:$0xff] }
 0x1d6   : > { %4425 = vst.msk [vmem:[%s7214_s19 + $0x24] sm:$0xf] %vm4415_vm4, %v4888_v61  ;;  %v4893_v3 = vpack.c.bf16 %v4269_v8, %v4269_v8  ;;  %v4267_v2 = vmax.f32 %v4235_v32, 0.0  ;;  %v4133_v53 = vadd.f32 %v4012_v1, %v3695_v34  ;;  %v3700_v40 = vadd.f32 %v5322_v20, %v3214_v26  ;;  %v4025_v49 = vpop.f32.mrf.mxu0  ;;  %v7518_v1 = vld [vmem:[#allocation23_spill] sm:$0xff]  ;;  %v7519_v26 = vld [vmem:[#allocation29_spill] sm:$0xff]  ;;  %v7520_v34 = vld [vmem:[#allocation24_spill] sm:$0xff] }
 0x1d7   : > { %v4238_v28 = vadd.f32 %v7194_v46, %v4135_v27  ;;  %v3587_v59 = vpop.f32.mrf.mxu1  ;;  %v2791_v17 = vadd.f32 %v7519_v26, %v7518_v1 }
 0x1d8   : > { %4430 = vst.msk [vmem:[%s7214_s19 + $0x38] sm:$0xf] %vm4415_vm4, %v4893_v3  ;;  %v4891_v48 = vpack.c.bf16 %v4267_v2, %v4267_v2  ;;  %v4236_v12 = vadd.f32 %v7194_v46, %v4133_v53  ;;  %v4138_v25 = vadd.f32 %v5356_v7, %v3700_v40  ;;  %v3698_v52 = vadd.f32 %v3587_v59, %v3212_v62  ;;  %v5357_v30 = vpop.f32.mrf.mxu0  ;;  %v7521_v40 = vld [vmem:[#allocation28_spill] sm:$0xff] }
 0x1d9   : > { %v4270_v35 = vmax.f32 %v4238_v28, 0.0  ;;  %v5323_v56 = vpop.f32.mrf.mxu1  ;;  %v3219_v7 = vadd.f32 %v7520_v34, %v2793_v18 }
 0x1da   : > { %4428 = vst.msk [vmem:[%s7214_s19 + $0x30] sm:$0xf] %vm4415_vm4, %v4891_v48  ;;  %v4268_v45 = vmax.f32 %v4236_v12, 0.0  ;;  %v4241_v29 = vadd.f32 %v7194_v46, %v4138_v25  ;;  %v4136_v51 = vadd.f32 %v4025_v49, %v3698_v52  ;;  %v3701_v33 = vadd.f32 %v5323_v56, %v3215_v60  ;;  %v4028_v24 = vpop.f32.mrf.mxu0  ;;  %v7523_v60 = vld [vmem:[#allocation31_spill] sm:$0xff] }
 0x1db   : > { %v4894_v16 = vpack.c.bf16 %v4270_v35, %v4270_v35  ;;  %v3590_v5 = vpop.f32.mrf.mxu1  ;;  %v3217_v49 = vadd.f32 %v7521_v40, %v2791_v17  ;;  %v2796_v15 = vadd.f32 %v7523_v60, %v7522_v9  ;;  %v7526_v52 = vld [vmem:[#allocation3_spill] sm:$0xff]  ;;  %v7537_v40 = vld [vmem:[#allocation13_spill] sm:$0xff]  ;;  %v7539_v60 = vld [vmem:[#allocation6_spill] sm:$0xff] }
 0x1dc   : > { %v4892_v50 = vpack.c.bf16 %v4268_v45, %v4268_v45  ;;  %v4273_v36 = vmax.f32 %v4241_v29, 0.0  ;;  %v4239_v31 = vadd.f32 %v7194_v46, %v4136_v51  ;;  %v4139_v19 = vadd.f32 %v5357_v30, %v3701_v33  ;;  %v5360_v10 = vpop.f32.mrf.mxu0  ;;  %v7527_v30 = vld [vmem:[#allocation35_spill] sm:$0xff]  ;;  %v7528_v33 = vld [vmem:[#allocation30_spill] sm:$0xff] }
 0x1dd   : > { %4431 = vst.msk [vmem:[%s7214_s19 + $0x3c] sm:$0xf] %vm4415_vm4, %v4894_v16  ;;  %v3699_v22 = vadd.f32 %v3590_v5, %v3213_v39  ;;  %v5326_v13 = vpop.f32.mrf.mxu1  ;;  %v2797_v23 = vadd.f32 %v7527_v30, %v7526_v52  ;;  %v3220_v39 = vadd.f32 %v7529_v43, %v2794_v41 }
 0x1de   : > { %4429 = vst.msk [vmem:[%s7214_s19 + $0x34] sm:$0xf] %vm4415_vm4, %v4892_v50  ;;  %v4897_v37 = vpack.c.bf16 %v4273_v36, %v4273_v36  ;;  %v4271_v63 = vmax.f32 %v4239_v31, 0.0  ;;  %v4242_v61 = vadd.f32 %v7194_v46, %v4139_v19  ;;  %v3704_v8 = vadd.f32 %v5326_v13, %v3218_v6  ;;  %v4041_v32 = vpop.f32.mrf.mxu0  ;;  %v7531_v6 = vld [vmem:[#allocation37_spill] sm:$0xff]  ;;  %v7532_v19 = vld [vmem:[#allocation34_spill] sm:$0xff] }
 0x1df   : > { %v4137_v44 = vadd.f32 %v4028_v24, %v3699_v22  ;;  %v3603_v62 = vpop.f32.mrf.mxu1  ;;  %v3222_v24 = vadd.f32 %v7528_v33, %v2796_v15  ;;  %v2795_v0 = vadd.f32 %v7531_v6, %v7530_v38  ;;  %v2801_v15 = vadd.f32 %v7179_v21, %v7539_v60 }
 0x1e0   : > { %4434 = vst.msk [vmem:[%s7214_s19 + $0x48] sm:$0xf] %vm4415_vm4, %v4897_v37  ;;  %v4895_v27 = vpack.c.bf16 %v4271_v63, %v4271_v63  ;;  %v4274_v20 = vmax.f32 %v4242_v61, 0.0  ;;  %v4142_v3 = vadd.f32 %v5360_v10, %v3704_v8  ;;  %v3702_v2 = vadd.f32 %v3603_v62, %v3216_v57  ;;  %v5361_v53 = vpop.f32.mrf.mxu0  ;;  %v7534_v57 = vld [vmem:[#allocation39_spill] sm:$0xff]  ;;  %v7535_v8 = vld [vmem:[#allocation36_spill] sm:$0xff] }
 0x1e1   : > { %v4240_v4 = vadd.f32 %v7194_v46, %v4137_v44  ;;  %v5327_v11 = vpop.f32.mrf.mxu1  ;;  %v3223_v10 = vadd.f32 %v7532_v19, %v2797_v23  ;;  %v2800_v1 = vadd.f32 %v7534_v57, %v7533_v14 }
 0x1e2   : > { %4432 = vst.msk [vmem:[%s7214_s19 + $0x40] sm:$0xf] %vm4415_vm4, %v4895_v27  ;;  %v4898_v28 = vpack.c.bf16 %v4274_v20, %v4274_v20  ;;  %v4245_v59 = vadd.f32 %v7194_v46, %v4142_v3  ;;  %v4140_v48 = vadd.f32 %v4041_v32, %v3702_v2  ;;  %v3705_v12 = vadd.f32 %v5327_v11, %v3219_v7  ;;  %v4044_v25 = vpop.f32.mrf.mxu0  ;;  %v7536_v2 = vld [vmem:[#allocation38_spill] sm:$0xff] }
 0x1e3   : > { %v4272_v58 = vmax.f32 %v4240_v4, 0.0  ;;  %v3606_v55 = vpop.f32.mrf.mxu1  ;;  %v3221_v32 = vadd.f32 %v7535_v8, %v2795_v0  ;;  %v7544_v0 = vld [vmem:[#allocation43_spill] sm:$0xff] }
 0x1e4   : > { %4435 = vst.msk [vmem:[%s7214_s19 + $0x4c] sm:$0xf] %vm4415_vm4, %v4898_v28  ;;  %v4277_v35 = vmax.f32 %v4245_v59, 0.0  ;;  %v4243_v56 = vadd.f32 %v7194_v46, %v4140_v48  ;;  %v4143_v45 = vadd.f32 %v5361_v53, %v3705_v12  ;;  %v3703_v29 = vadd.f32 %v3606_v55, %v3217_v49  ;;  %v5364_v51 = vpop.f32.mrf.mxu0  ;;  %v7538_v49 = vld [vmem:[#allocation41_spill] sm:$0xff]  ;;  %v7540_v48 = vld [vmem:[#allocation7_spill] sm:$0xff]  ;;  %v7541_v12 = vld [vmem:[#allocation44_spill] sm:$0xff] }
 0x1e5   : > { %v4896_v54 = vpack.c.bf16 %v4272_v58, %v4272_v58  ;;  %v5330_v18 = vpop.f32.mrf.mxu1  ;;  %v3226_v53 = vadd.f32 %v7536_v2, %v2800_v1  ;;  %v2798_v9 = vadd.f32 %v7538_v49, %v7537_v40 }
 0x1e6   : > { %v4901_v16 = vpack.c.bf16 %v4277_v35, %v4277_v35  ;;  %v4275_v5 = vmax.f32 %v4243_v56, 0.0  ;;  %v4246_v50 = vadd.f32 %v7194_v46, %v4143_v45  ;;  %v4141_v36 = vadd.f32 %v4044_v25, %v3703_v29  ;;  %v4057_v31 = vpop.f32.mrf.mxu0  ;;  %v7542_v56 = vld [vmem:[#allocation40_spill] sm:$0xff]  ;;  %v7543_v29 = vld [vmem:[#allocation42_spill] sm:$0xff] }
 0x1e7   : > { %4433 = vst.msk [vmem:[%s7214_s19 + $0x44] sm:$0xf] %vm4415_vm4, %v4896_v54  ;;  %v3708_v26 = vadd.f32 %v5330_v18, %v3222_v24  ;;  %v3619_v17 = vpop.f32.mrf.mxu1  ;;  %v2799_v25 = vadd.f32 %v7541_v12, %v7540_v48  ;;  %v3224_v45 = vadd.f32 %v7542_v56, %v2798_v9 }
 0x1e8   : > { %4438 = vst.msk [vmem:[%s7214_s19 + $0x58] sm:$0xf] %vm4415_vm4, %v4901_v16  ;;  %v4899_v22 = vpack.c.bf16 %v4275_v5, %v4275_v5  ;;  %v4278_v13 = vmax.f32 %v4246_v50, 0.0  ;;  %v4244_v37 = vadd.f32 %v7194_v46, %v4141_v36  ;;  %v3706_v63 = vadd.f32 %v3619_v17, %v3220_v39  ;;  %v5365_v61 = vpop.f32.mrf.mxu0 }
 0x1e9   : > { %v4146_v34 = vadd.f32 %v5364_v51, %v3708_v26  ;;  %v5331_v7 = vpop.f32.mrf.mxu1  ;;  %v3227_v51 = vadd.f32 %v7543_v29, %v2801_v15  ;;  %v3225_v54 = vadd.f32 %v7544_v0, %v2799_v25 }
 0x1ea   : > { %4436 = vst.msk [vmem:[%s7214_s19 + $0x50] sm:$0xf] %vm4415_vm4, %v4899_v22  ;;  %v4902_v44 = vpack.c.bf16 %v4278_v13, %v4278_v13  ;;  %v4276_v62 = vmax.f32 %v4244_v37, 0.0  ;;  %v4144_v27 = vadd.f32 %v4057_v31, %v3706_v63  ;;  %v3709_v20 = vadd.f32 %v5331_v7, %v3223_v10  ;;  %v4060_v3 = vpop.f32.mrf.mxu0 }
 0x1eb   : > { %v4249_v42 = vadd.f32 %v7194_v46, %v4146_v34  ;;  %v3622_v47 = vpop.f32.mrf.mxu1 }
 0x1ec   : > { %4439 = vst.msk [vmem:[%s7214_s19 + $0x5c] sm:$0xf] %vm4415_vm4, %v4902_v44  ;;  %v4900_v41 = vpack.c.bf16 %v4276_v62, %v4276_v62  ;;  %v4247_v4 = vadd.f32 %v7194_v46, %v4144_v27  ;;  %v4147_v11 = vadd.f32 %v5365_v61, %v3709_v20  ;;  %v3707_v28 = vadd.f32 %v3622_v47, %v3221_v32  ;;  %v5368_v59 = vpop.f32.mrf.mxu0 }
 0x1ed   : > { %v4281_v52 = vmax.f32 %v4249_v42, 0.0  ;;  %v5334_v30 = vpop.f32.mrf.mxu1 }
 0x1ee   : > { %4437 = vst.msk [vmem:[%s7214_s19 + $0x54] sm:$0xf] %vm4415_vm4, %v4900_v41  ;;  %v4279_v21 = vmax.f32 %v4247_v4, 0.0  ;;  %v4250_v23 = vadd.f32 %v7194_v46, %v4147_v11  ;;  %v4145_v58 = vadd.f32 %v4060_v3, %v3707_v28  ;;  %v3712_v55 = vadd.f32 %v5334_v30, %v3226_v53  ;;  %v4073_v35 = vpop.f32.mrf.mxu0 }
 0x1ef   : > { %v4905_v33 = vpack.c.bf16 %v4281_v52, %v4281_v52  ;;  %v3635_v24 = vpop.f32.mrf.mxu1 }
 0x1f0   : > { %v4903_v43 = vpack.c.bf16 %v4279_v21, %v4279_v21  ;;  %v4282_v39 = vmax.f32 %v4250_v23, 0.0  ;;  %v4248_v38 = vadd.f32 %v7194_v46, %v4145_v58  ;;  %v4150_v6 = vadd.f32 %v5368_v59, %v3712_v55  ;;  %v5369_v5 = vpop.f32.mrf.mxu0 }
 0x1f1   : > { %4442 = vst.msk [vmem:[%s7214_s19 + $0x68] sm:$0xf] %vm4415_vm4, %v4905_v33  ;;  %v3710_v18 = vadd.f32 %v3635_v24, %v3224_v45  ;;  %v5335_v16 = vpop.f32.mrf.mxu1 }
 0x1f2   : > { %4440 = vst.msk [vmem:[%s7214_s19 + $0x60] sm:$0xf] %vm4415_vm4, %v4903_v43  ;;  %v4906_v50 = vpack.c.bf16 %v4282_v39, %v4282_v39  ;;  %v4280_v36 = vmax.f32 %v4248_v38, 0.0  ;;  %v4253_v31 = vadd.f32 %v7194_v46, %v4150_v6  ;;  %v3713_v19 = vadd.f32 %v5335_v16, %v3227_v51  ;;  %v4076_v13 = vpop.f32.mrf.mxu0 }
 0x1f3   : > { %v4148_v10 = vadd.f32 %v4073_v35, %v3710_v18  ;;  %v3638_v14 = vpop.f32.mrf.mxu1 }
 0x1f4   : > { %4443 = vst.msk [vmem:[%s7214_s19 + $0x6c] sm:$0xf] %vm4415_vm4, %v4906_v50  ;;  %v4904_v57 = vpack.c.bf16 %v4280_v36, %v4280_v36  ;;  %v4285_v1 = vmax.f32 %v4253_v31, 0.0  ;;  %v4151_v26 = vadd.f32 %v5369_v5, %v3713_v19  ;;  %v3711_v17 = vadd.f32 %v3638_v14, %v3225_v54 }
 0x1f5   : > { %v4251_v22 = vadd.f32 %v7194_v46, %v4148_v10 }
 0x1f6   : > { %4441 = vst.msk [vmem:[%s7214_s19 + $0x64] sm:$0xf] %vm4415_vm4, %v4904_v57  ;;  %v4909_v37 = vpack.c.bf16 %v4285_v1, %v4285_v1  ;;  %v4254_v63 = vadd.f32 %v7194_v46, %v4151_v26  ;;  %v4149_v61 = vadd.f32 %v4076_v13, %v3711_v17 }
 0x1f7   : > { %v4283_v8 = vmax.f32 %v4251_v22, 0.0 }
 0x1f8   : > { %4446 = vst.msk [vmem:[%s7214_s19 + $0x78] sm:$0xf] %vm4415_vm4, %v4909_v37  ;;  %v4286_v32 = vmax.f32 %v4254_v63, 0.0  ;;  %v4252_v34 = vadd.f32 %v7194_v46, %v4149_v61 }
 0x1f9   : > { %v4907_v7 = vpack.c.bf16 %v4283_v8, %v4283_v8 }
 0x1fa   : > { %v4910_v44 = vpack.c.bf16 %v4286_v32, %v4286_v32  ;;  %v4284_v62 = vmax.f32 %v4252_v34, 0.0 }
 0x1fb   : > { %4444 = vst.msk [vmem:[%s7214_s19 + $0x70] sm:$0xf] %vm4415_vm4, %v4907_v7 }
 0x1fc   : > { %4447 = vst.msk [vmem:[%s7214_s19 + $0x7c] sm:$0xf] %vm4415_vm4, %v4910_v44  ;;  %v4908_v27 = vpack.c.bf16 %v4284_v62, %v4284_v62 }
 0x1fe   : > { %4445 = vst.msk [vmem:[%s7214_s19 + $0x74] sm:$0xf] %vm4415_vm4, %v4908_v27 }
 0x1ff PF: > { %s13_s14 = sadd.s32 1, %s5525_s14   ;;  %s7545_s12 = smov %s5521_s13 }
 0x200   : > { %p10_p5 = scmp.ge.s32.totalorder %s13_s14, 4   ;;  %s7546_s13 = smov %s7548_s15 }
 0x202   :  { %12 = sbr.rel (!%p10_p5) target bundleno = 2 (0x2), region = 73 }

// kernel: conv_classifier_forward.5
= control target key start
LH: loop header
LB: loop body
LE: loop exit
PB: predicated region body
PF: predicated region fallthrough
CT: control target
= control target key end

     0   :  { %s5547_s12 = smov 0   ;;  %s5549_s13 = smov 0   ;;  %s7393_s0 = inlined_call_operand.vmem [shape: bf16[2,18,18,8], index: 0, kind: input, shape index: {}]   ;;  %s7394_s1 = inlined_call_operand.vmem [shape: bf16[9,8,128], index: 1, kind: input, shape index: {}]   ;;  %s7395_s2 = inlined_call_operand.vmem [shape: f32[1,128], index: 2, kind: input, shape index: {}]   ;;  %s7396_s3 = inlined_call_operand.vmem [shape: bf16[2,256,16], index: 3, kind: output, shape index: {}]  }
   0x1   :  { %s5551_s14 = smov 0  }
   0x2 LB: > { %s25_s15 = sadd.s32 1, %s5521_s13  ;;  %p4543_p0 = scmp.ge.s32.totalorder %s5525_s14, 1  ;;  %s5525_s14 = sphi %s5551_s14, %s13_s14   ;;  %s5521_s13 = sphi %s5549_s13, %s7546_s13   ;;  %s5517_s12 = sphi %s5547_s12, %s7545_s12  }
   0x3   : > { %p27_p1 = scmp.ge.s32.totalorder %s25_s15, 2  ;;  %p151_p2 = scmp.lt.s32.totalorder %s5525_s14, 3 }
   0x5   : > { %s7548_s15 = smov (%p27_p1, %s25_s15), 0  ;;  %p152_p3 = pnand %p4543_p0, %p151_p2 }
   0x7   : > { %155 = sbr.rel (%p152_p3) target bundleno = 511 (0x1ff), region = 32 }
   0xc   : > { %v311_v0 = vld [vmem:[%s7394_s1] sm:$0xf]  ;;  %vm361_vm0 = vcmask 1043456   ;;  %p179_p4 = scmp.lt.s32.totalorder %s5517_s12, 1  ;;  %v4579_v2 = vld [vmem:[%s7394_s1 + $0x4] sm:$0xf] }
   0xd   : > { %5373 = vmatprep.subr.msk.bf16.mxu1 %vm361_vm0, %v311_v0  ;;  %5372 = vmatprep.subr.msk.bf16.mxu0 %vm361_vm0, %v311_v0  ;;  %v363_v1 = vsel %vm361_vm0, %v311_v0, 0  ;;  %v4596_v3 = vld [vmem:[%s7394_s1 + $0x8] sm:$0xf]  ;;  %vm312_vm1 = vcmask 64512   ;;  %v4694_v9 = vld [vmem:[%s7394_s1 + $0x10] sm:$0xf] }
   0xe   : > { %5371 = vmatpush3.bf16.msra.mxu1 %v363_v1  ;;  %5065 = vmatpush3.bf16.msra.mxu0 %v363_v1  ;;  %s7550_s12 = smov (!%p179_p4, %s5517_s12), 1  ;;  %v1225_v8 = vsel %vm361_vm0, %v4596_v3, 0  ;;  %v786_v10 = vsel %vm361_vm0, %v4579_v2, 0  ;;  %v4677_v12 = vld [vmem:[%s7394_s1 + $0xc] sm:$0xf]  ;;  %vm606_vm2 = vcmask 1046528  }
   0xf   : > { %5374 = vmatprep.subr.msk.bf16.mxu1 %vm361_vm0, %v4579_v2  ;;  %5375 = vmatprep.subr.msk.bf16.mxu0 %vm361_vm0, %v4596_v3  ;;  %s5382_s22 = smul.u32 216, %s7550_s12  ;;  %vm1045_vm3 = vcmask 1045504   ;;  %v5688_v48 = vsel %vm361_vm0, %v4677_v12, 0  ;;  %v2137_v51 = vsel %vm361_vm0, %v4694_v9, 0  ;;  %s4878_s17 = sshll.u32 %s7550_s12, 7  ;;  %vm4415_vm4 = vcmask 125952  }
  0x10   : > { %s7214_s19 = scalar_lea.vmem %s7396_s3, %s4878_s17 }
  0x11   : > { %s5585_s25 = scalar_lea.vmem %s7393_s0, %s5382_s22 }
  0x12   : > { %v5588_v4 = vld [vmem:[%s5585_s25] sm:$0xff]   ;;  %v202_v6 = vld [vmem:[%s5585_s25 + $0xc] sm:$0xff]   ;;  %v5608_v11 = vld [vmem:[%s5585_s25 + $0x18] sm:$0xff]  }
  0x13   : > { %v5591_v5 = vld [vmem:[%s5585_s25 + $0x60] sm:$0xff]   ;;  %5066 = vmatprep.mubr.msk.bf16.mxu0 %vm312_vm1, %v5588_v4  ;;  %v5599_v7 = vld [vmem:[%s5585_s25 + $0x6c] sm:$0xff]   ;;  %v5616_v13 = vld [vmem:[%s5585_s25 + $0x78] sm:$0xff]   ;;  %v250_v20 = vunpack.c.l.bf16 %v202_v6  ;;  %v251_v21 = vunpack.c.h.bf16 %v202_v6  ;;  %v247_v24 = vunpack.c.l.bf16 %v5588_v4  ;;  %v248_v26 = vunpack.c.h.bf16 %v5588_v4 }
  0x14   : > { %5082 = vmatprep.mubr.msk.bf16.mxu1 %vm312_vm1, %v5591_v5  ;;  %5067 = vmatmul.mubr.msk.bf16.vlgmr.msra.gmra.mxu0 %vm312_vm1, %v202_v6  ;;  %v5620_v14 = vld [vmem:[%s5585_s25 + $0x24] sm:$0xff]   ;;  %v5629_v16 = vld [vmem:[%s5585_s25 + $0x30] sm:$0xff]   ;;  %v5642_v19 = vld [vmem:[%s5585_s25 + $0x3c] sm:$0xff]   ;;  %v253_v38 = vunpack.c.l.bf16 %v5608_v11  ;;  %v254_v39 = vunpack.c.h.bf16 %v5608_v11 }
  0x15   : > { %5133 = vmatpush3.bf16.msra.mxu0 %v1225_v8  ;;  %5083 = vmatmul.mubr.msk.bf16.vlgmr.msra.gmra.mxu1 %vm312_vm1, %v5599_v7  ;;  %v5626_v15 = vld [vmem:[%s5585_s25 + $0x84] sm:$0xff]   ;;  %v204_v17 = vld [vmem:[%s5585_s25 + $0x14] sm:$0x1]  ;;  %v5647_v23 = vld [vmem:[%s5585_s25 + $0x9c] sm:$0xff]   ;;  %v612_v27 = vrot.slane %v250_v20, 1  ;;  %v613_v28 = vrot.slane %v251_v21, 1  ;;  %v256_v45 = vunpack.c.l.bf16 %v5620_v14  ;;  %v257_v59 = vunpack.c.h.bf16 %v5620_v14 }
  0x16   : > { %5377 = vmatprep.subr.msk.bf16.mxu0 %vm361_vm0, %v4694_v9  ;;  %5099 = vmatpush3.bf16.msra.mxu1 %v786_v10  ;;  %v5637_v18 = vld [vmem:[%s5585_s25 + $0x90] sm:$0xff]   ;;  %v252_v22 = vunpack.c.l.bf16 %v204_v17  ;;  %v5653_v25 = vld [vmem:[%s5585_s25 + $0x48] sm:$0xff]   ;;  %v1051_v31 = vrot.slane %v250_v20, 2  ;;  %v1052_v32 = vrot.slane %v251_v21, 2  ;;  %v607_v34 = vrot.slane %v247_v24, 1 }
  0x17   : > { %5376 = vmatprep.subr.msk.bf16.mxu1 %vm361_vm0, %v4677_v12  ;;  %5070 = vmatprep.mubr.msk.bf16.mxu0 %vm312_vm1, %v5608_v11  ;;  %v5657_v30 = vld [vmem:[%s5585_s25 + $0xa8] sm:$0xff]   ;;  %v5664_v35 = vld [vmem:[%s5585_s25 + $0x54] sm:$0xff]   ;;  %v5667_v36 = vsel %vm606_vm2, %v612_v27, %v613_v28  ;;  %v608_v42 = vrot.slane %v248_v26, 1  ;;  %v1046_v46 = vrot.slane %v247_v24, 2  ;;  %v1047_v47 = vrot.slane %v248_v26, 2 }
  0x18   : > { %5086 = vmatprep.mubr.msk.bf16.mxu1 %vm312_vm1, %v5616_v13  ;;  %v615_v29 = vrot.slane %v252_v22, 1  ;;  %v1054_v33 = vrot.slane %v252_v22, 2  ;;  %v5677_v40 = vld [vmem:[%s5585_s25 + $0xb4] sm:$0xff]   ;;  %v201_v41 = vld [vmem:[%s5585_s25 + $0x8] sm:$0x1]  ;;  %v5681_v43 = vsel %vm1045_vm3, %v1051_v31, %v1052_v32  ;;  %v617_v54 = vrot.slane %v253_v38, 1 }
  0x19   : > { %v249_v50 = vunpack.c.l.bf16 %v201_v41  ;;  %v207_v52 = vld [vmem:[%s5585_s25 + $0x20] sm:$0x1]  ;;  %v618_v55 = vrot.slane %v254_v39, 1  ;;  %v1056_v56 = vrot.slane %v253_v38, 2  ;;  %v210_v57 = vld [vmem:[%s5585_s25 + $0x2c] sm:$0x1]  ;;  %v609_v61 = vsel %vm606_vm2, %v607_v34, %v608_v42 }
  0x1a   : > { %v5670_v37 = vsel %vm606_vm2, %v613_v28, %v615_v29  ;;  %v1055_v44 = vsel %vm1045_vm3, %v1052_v32, %v1054_v33  ;;  %v1057_v58 = vrot.slane %v254_v39, 2  ;;  %v622_v60 = vrot.slane %v256_v45, 1  ;;  %v213_v8 = vld [vmem:[%s5585_s25 + $0x38] sm:$0x1] }
  0x1b   : > { %v720_v49 = vpack.c.bf16 %v5670_v37, %v5667_v36  ;;  %v1159_v53 = vpack.c.bf16 %v1055_v44, %v5681_v43  ;;  %v610_v62 = vrot.slane %v249_v50, 1  ;;  %v1048_v63 = vsel %vm1045_vm3, %v1046_v46, %v1047_v47  ;;  %v216_v37 = vld [vmem:[%s5585_s25 + $0x44] sm:$0x1]  ;;  %v219_v43 = vld [vmem:[%s5585_s25 + $0x50] sm:$0x1] }
  0x1c   : > { %5071 = vmatmul.mubr.msk.bf16.gmra.mxu0 %vm312_vm1, %v5620_v14  ;;  %v1049_v0 = vrot.slane %v249_v50, 2  ;;  %v255_v1 = vunpack.c.l.bf16 %v207_v52  ;;  %v1061_v2 = vrot.slane %v256_v45, 2  ;;  %v259_v3 = vunpack.c.l.bf16 %v5629_v16 }
  0x1d   : > { %5087 = vmatmul.mubr.msk.bf16.gmra.mxu1 %vm312_vm1, %v5626_v15  ;;  %5074 = vmatprep.mubr.msk.bf16.mxu0 %vm312_vm1, %v5629_v16  ;;  %v260_v4 = vunpack.c.h.bf16 %v5629_v16  ;;  %v258_v6 = vunpack.c.l.bf16 %v210_v57  ;;  %v611_v9 = vsel %vm606_vm2, %v608_v42, %v610_v62  ;;  %v623_v14 = vrot.slane %v257_v59, 1 }
  0x1e   : > { %5090 = vmatprep.mubr.msk.bf16.mxu1 %vm312_vm1, %v5637_v18  ;;  %v1050_v10 = vsel %vm1045_vm3, %v1047_v47, %v1049_v0  ;;  %v620_v11 = vrot.slane %v255_v1, 1  ;;  %v1059_v12 = vrot.slane %v255_v1, 2  ;;  %v719_v17 = vpack.c.bf16 %v611_v9, %v609_v61  ;;  %v5724_v47 = vld [vmem:[%s7394_s1 + $0x14] sm:$0xf] }
  0x1f   : > { %v1158_v20 = vpack.c.bf16 %v1050_v10, %v1048_v63  ;;  %v619_v21 = vsel %vm606_vm2, %v617_v54, %v618_v55  ;;  %v1058_v16 = vsel %vm1045_vm3, %v1056_v56, %v1057_v58  ;;  %v261_v26 = vunpack.c.l.bf16 %v213_v8  ;;  %v222_v8 = vld [vmem:[%s5585_s25 + $0x5c] sm:$0x1] }
  0x20   : > { %v621_v22 = vsel %vm606_vm2, %v618_v55, %v620_v11  ;;  %v1060_v24 = vsel %vm1045_vm3, %v1057_v58, %v1059_v12  ;;  %v1062_v27 = vrot.slane %v257_v59, 2  ;;  %v627_v28 = vrot.slane %v259_v3, 1 }
  0x21   : > { %v628_v29 = vrot.slane %v260_v4, 1  ;;  %v1064_v31 = vrot.slane %v258_v6, 2  ;;  %v1066_v32 = vrot.slane %v259_v3, 2  ;;  %v1067_v33 = vrot.slane %v260_v4, 2 }
  0x22   : > { %v721_v34 = vpack.c.bf16 %v621_v22, %v619_v21  ;;  %v625_v36 = vrot.slane %v258_v6, 1  ;;  %v262_v38 = vunpack.c.l.bf16 %v5642_v19  ;;  %v1160_v39 = vpack.c.bf16 %v1060_v24, %v1058_v16 }
  0x23   : > { %v630_v41 = vrot.slane %v261_v26, 1  ;;  %v1069_v42 = vrot.slane %v261_v26, 2  ;;  %v263_v44 = vunpack.c.h.bf16 %v5642_v19  ;;  %v265_v45 = vunpack.c.l.bf16 %v5653_v25 }
  0x24   : > { %5075 = vmatmul.mubr.msk.bf16.gmra.mxu0 %vm312_vm1, %v5642_v19  ;;  %v266_v46 = vunpack.c.h.bf16 %v5653_v25  ;;  %v624_v50 = vsel %vm606_vm2, %v622_v60, %v623_v14  ;;  %v1063_v52 = vsel %vm1045_vm3, %v1061_v2, %v1062_v27  ;;  %v1065_v19 = vsel %vm1045_vm3, %v1062_v27, %v1064_v31 }
  0x25   : > { %5091 = vmatmul.mubr.msk.bf16.gmra.mxu1 %vm312_vm1, %v5647_v23  ;;  %5078 = vmatprep.mubr.msk.bf16.mxu0 %vm312_vm1, %v5653_v25  ;;  %v264_v54 = vunpack.c.l.bf16 %v216_v37  ;;  %v5733_v25 = vld [vmem:[%s7394_s1 + $0x18] sm:$0xf]  ;;  %v267_v55 = vunpack.c.l.bf16 %v219_v43  ;;  %v632_v56 = vrot.slane %v262_v38, 1  ;;  %v629_v57 = vsel %vm606_vm2, %v627_v28, %v628_v29 }
  0x26   : > { %5094 = vmatprep.mubr.msk.bf16.mxu1 %vm312_vm1, %v5657_v30  ;;  %v631_v58 = vsel %vm606_vm2, %v628_v29, %v630_v41  ;;  %v1071_v59 = vrot.slane %v262_v38, 2  ;;  %v1072_v60 = vrot.slane %v263_v44, 2  ;;  %v1161_v61 = vpack.c.bf16 %v1065_v19, %v1063_v52  ;;  %v228_v52 = vld [vmem:[%s5585_s25 + $0x74] sm:$0x1] }
  0x27   : > { %v1076_v62 = vrot.slane %v265_v45, 2  ;;  %v1074_v1 = vrot.slane %v264_v54, 2  ;;  %v1077_v2 = vrot.slane %v266_v46, 2  ;;  %v723_v3 = vpack.c.bf16 %v631_v58, %v629_v57 }
  0x28   : > { %v635_v4 = vrot.slane %v264_v54, 1  ;;  %v1079_v6 = vrot.slane %v267_v55, 2  ;;  %v271_v9 = vunpack.c.l.bf16 %v5591_v5  ;;  %v637_v10 = vrot.slane %v265_v45, 1 }
  0x29   : > { %v638_v11 = vrot.slane %v266_v46, 1  ;;  %v640_v12 = vrot.slane %v267_v55, 1  ;;  %v269_v21 = vunpack.c.h.bf16 %v5664_v35  ;;  %v1073_v16 = vsel %vm1045_vm3, %v1071_v59, %v1072_v60 }
  0x2a   : > { %v1075_v24 = vsel %vm1045_vm3, %v1072_v60, %v1074_v1  ;;  %v270_v26 = vunpack.c.l.bf16 %v222_v8  ;;  %v1078_v27 = vsel %vm1045_vm3, %v1076_v62, %v1077_v2  ;;  %v647_v29 = vrot.slane %v271_v9, 1 }
  0x2b   : > { %v1086_v31 = vrot.slane %v271_v9, 2  ;;  %v1163_v38 = vpack.c.bf16 %v1075_v24, %v1073_v16  ;;  %v274_v54 = vunpack.c.l.bf16 %v5599_v7  ;;  %v277_v55 = vunpack.c.l.bf16 %v5616_v13 }
  0x2c   : > { %5079 = vmatmul.mubr.msk.bf16.gmra.mxu0 %vm312_vm1, %v5664_v35  ;;  %v1084_v43 = vrot.slane %v270_v26, 2  ;;  %v645_v46 = vrot.slane %v270_v26, 1  ;;  %v276_v59 = vunpack.c.l.bf16 %v228_v52  ;;  %v280_v16 = vunpack.c.l.bf16 %v5626_v15 }
  0x2d   : > { %5095 = vmatmul.mubr.msk.bf16.gmra.mxu1 %vm312_vm1, %v5677_v40  ;;  %5134 = vmatprep.mubr.msk.bf16.mxu0 %vm312_vm1, %v1158_v20  ;;  %v268_v20 = vunpack.c.l.bf16 %v5664_v35  ;;  %v1080_v35 = vsel %vm1045_vm3, %v1077_v2, %v1079_v6  ;;  %v652_v62 = vrot.slane %v274_v54, 1  ;;  %v1091_v2 = vrot.slane %v274_v54, 2 }
  0x2e   : > { %5100 = vmatprep.mubr.msk.bf16.mxu1 %vm312_vm1, %v719_v17  ;;  %v272_v17 = vunpack.c.h.bf16 %v5591_v5  ;;  %v1096_v8 = vrot.slane %v277_v55, 2  ;;  %v281_v24 = vunpack.c.h.bf16 %v5626_v15 }
  0x2f   : > { %v1081_v37 = vrot.slane %v268_v20, 2 }
  0x30   : > { %v648_v19 = vrot.slane %v272_v17, 1 }
  0x34   : > { %5135 = vmatmul.mubr.msk.bf16.vlgmr.msra.gmra.mxu0 %vm312_vm1, %v1159_v53  ;;  %v626_v53 = vsel %vm606_vm2, %v623_v14, %v625_v36  ;;  %v225_v14 = vld [vmem:[%s5585_s25 + $0x68] sm:$0x1]  ;;  %v643_v36 = vrot.slane %v269_v21, 1 }
  0x35   : > { %5101 = vmatmul.mubr.msk.bf16.vlgmr.msra.gmra.mxu1 %vm312_vm1, %v720_v49  ;;  %5201 = vmatpush3.bf16.msra.mxu0 %v2137_v51  ;;  %v1068_v49 = vsel %vm1045_vm3, %v1066_v32, %v1067_v33  ;;  %v1070_v51 = vsel %vm1045_vm3, %v1067_v33, %v1069_v42  ;;  %v722_v63 = vpack.c.bf16 %v626_v53, %v624_v50  ;;  %v273_v28 = vunpack.c.l.bf16 %v225_v14 }
  0x36   : > { %5167 = vmatpush3.bf16.msra.mxu1 %v5688_v48  ;;  %5104 = vmatprep.mubr.msk.bf16.mxu1 %vm312_vm1, %v721_v34  ;;  %v633_v48 = vrot.slane %v263_v44, 1  ;;  %v1162_v0 = vpack.c.bf16 %v1070_v51, %v1068_v49  ;;  %v639_v32 = vsel %vm606_vm2, %v637_v10, %v638_v11  ;;  %v641_v33 = vsel %vm606_vm2, %v638_v11, %v640_v12  ;;  %v231_v51 = vld [vmem:[%s5585_s25 + $0x80] sm:$0x1] }
  0x37   : > { %5138 = vmatprep.mubr.msk.bf16.mxu0 %vm312_vm1, %v1160_v39  ;;  %5378 = vmatprep.subr.msk.bf16.mxu1 %vm361_vm0, %v5724_v47  ;;  %v642_v34 = vrot.slane %v268_v20, 1  ;;  %v1082_v39 = vrot.slane %v269_v21, 2  ;;  %v1164_v42 = vpack.c.bf16 %v1080_v35, %v1078_v27  ;;  %v1087_v44 = vrot.slane %v272_v17, 2  ;;  %v234_v21 = vld [vmem:[%s5585_s25 + $0x8c] sm:$0x1] }
  0x38   : > { %5379 = vmatprep.subr.msk.bf16.mxu0 %vm361_vm0, %v5733_v25  ;;  %v634_v22 = vsel %vm606_vm2, %v632_v56, %v633_v48  ;;  %v636_v5 = vsel %vm606_vm2, %v633_v48, %v635_v4  ;;  %v725_v45 = vpack.c.bf16 %v641_v33, %v639_v32  ;;  %v1089_v50 = vrot.slane %v273_v28, 2 }
  0x39   : > { %v724_v41 = vpack.c.bf16 %v636_v5, %v634_v22  ;;  %v275_v53 = vunpack.c.h.bf16 %v5599_v7  ;;  %v650_v49 = vrot.slane %v273_v28, 1  ;;  %v278_v56 = vunpack.c.h.bf16 %v5616_v13  ;;  %v237_v5 = vld [vmem:[%s5585_s25 + $0x98] sm:$0x1] }
  0x3a   : > { %v644_v57 = vsel %vm606_vm2, %v642_v34, %v643_v36  ;;  %v1083_v58 = vsel %vm1045_vm3, %v1081_v37, %v1082_v39  ;;  %v1085_v48 = vsel %vm1045_vm3, %v1082_v39, %v1084_v43  ;;  %v646_v7 = vsel %vm606_vm2, %v643_v36, %v645_v46 }
  0x3b   : > { %v1088_v60 = vsel %vm1045_vm3, %v1086_v31, %v1087_v44  ;;  %v1090_v13 = vsel %vm1045_vm3, %v1087_v44, %v1089_v50  ;;  %v651_v1 = vsel %vm606_vm2, %v648_v19, %v650_v49  ;;  %v657_v4 = vrot.slane %v277_v55, 1 }
  0x3c   : > { %5139 = vmatmul.mubr.msk.bf16.gmra.mxu0 %vm312_vm1, %v1161_v61  ;;  %v279_v61 = vunpack.c.l.bf16 %v231_v51  ;;  %v1165_v6 = vpack.c.bf16 %v1085_v48, %v1083_v58  ;;  %v726_v9 = vpack.c.bf16 %v646_v7, %v644_v57  ;;  %v1166_v10 = vpack.c.bf16 %v1090_v13, %v1088_v60  ;;  %v240_v51 = vld [vmem:[%s5585_s25 + $0xa4] sm:$0x1]  ;;  %v243_v48 = vld [vmem:[%s5585_s25 + $0xb0] sm:$0x1] }
  0x3d   : > { %5105 = vmatmul.mubr.msk.bf16.gmra.mxu1 %vm312_vm1, %v722_v63  ;;  %5142 = vmatprep.mubr.msk.bf16.mxu0 %vm312_vm1, %v1162_v0  ;;  %v653_v63 = vrot.slane %v275_v53, 1  ;;  %v649_v0 = vsel %vm606_vm2, %v647_v29, %v648_v19  ;;  %v1094_v11 = vrot.slane %v276_v59, 2  ;;  %v1097_v12 = vrot.slane %v278_v56, 2 }
  0x3e   : > { %5108 = vmatprep.mubr.msk.bf16.mxu1 %vm312_vm1, %v723_v3  ;;  %v1092_v3 = vrot.slane %v275_v53, 2  ;;  %v727_v14 = vpack.c.bf16 %v651_v1, %v649_v0  ;;  %v655_v17 = vrot.slane %v276_v59, 1  ;;  %v1099_v20 = vrot.slane %v279_v61, 2 }
  0x3f   : > { %v658_v22 = vrot.slane %v278_v56, 1  ;;  %v660_v26 = vrot.slane %v279_v61, 1  ;;  %v283_v27 = vunpack.c.l.bf16 %v5637_v18  ;;  %v284_v35 = vunpack.c.h.bf16 %v5637_v18 }
  0x40   : > { %v654_v28 = vsel %vm606_vm2, %v652_v62, %v653_v63  ;;  %v1093_v29 = vsel %vm1045_vm3, %v1091_v2, %v1092_v3  ;;  %v1095_v31 = vsel %vm1045_vm3, %v1092_v3, %v1094_v11  ;;  %v282_v32 = vunpack.c.l.bf16 %v234_v21 }
  0x41   : > { %v656_v15 = vsel %vm606_vm2, %v653_v63, %v655_v17  ;;  %v1098_v33 = vsel %vm1045_vm3, %v1096_v8, %v1097_v12  ;;  %v1100_v18 = vsel %vm1045_vm3, %v1097_v12, %v1099_v20  ;;  %v285_v34 = vunpack.c.l.bf16 %v237_v5 }
  0x42   : > { %v662_v36 = vrot.slane %v280_v16, 1  ;;  %v663_v37 = vrot.slane %v281_v24, 1  ;;  %v661_v39 = vsel %vm606_vm2, %v658_v22, %v660_v26  ;;  %v286_v43 = vunpack.c.l.bf16 %v5647_v23 }
  0x43   : > { %v1167_v44 = vpack.c.bf16 %v1095_v31, %v1093_v29  ;;  %v728_v46 = vpack.c.bf16 %v656_v15, %v654_v28  ;;  %v1168_v50 = vpack.c.bf16 %v1100_v18, %v1098_v33  ;;  %v1104_v52 = vrot.slane %v282_v32, 2  ;;  %v5825_v28 = vld [vmem:[%s5585_s25 + $0x14] sm:$0x1] }
  0x44   : > { %5143 = vmatmul.mubr.msk.bf16.gmra.mxu0 %vm312_vm1, %v1163_v38  ;;  %v659_v38 = vsel %vm606_vm2, %v657_v4, %v658_v22  ;;  %v1107_v19 = vrot.slane %v284_v35, 2  ;;  %v665_v53 = vrot.slane %v282_v32, 1  ;;  %v1109_v49 = vrot.slane %v285_v34, 2 }
  0x45   : > { %5109 = vmatmul.mubr.msk.bf16.gmra.mxu1 %vm312_vm1, %v724_v41  ;;  %5146 = vmatprep.mubr.msk.bf16.mxu0 %vm312_vm1, %v1164_v42  ;;  %v1101_v41 = vrot.slane %v280_v16, 2  ;;  %v1102_v42 = vrot.slane %v281_v24, 2  ;;  %v729_v54 = vpack.c.bf16 %v661_v39, %v659_v38  ;;  %v667_v55 = vrot.slane %v283_v27, 1  ;;  %v246_v16 = vld [vmem:[%s5585_s25 + $0xbc] sm:$0x1] }
  0x46   : > { %5112 = vmatprep.mubr.msk.bf16.mxu1 %vm312_vm1, %v725_v45  ;;  %v1106_v45 = vrot.slane %v283_v27, 2  ;;  %v668_v56 = vrot.slane %v284_v35, 1  ;;  %v287_v57 = vunpack.c.h.bf16 %v5647_v23  ;;  %v670_v58 = vrot.slane %v285_v34, 1  ;;  %v5822_v35 = vld [vmem:[%s5585_s25 + $0xc] sm:$0xff]  }
  0x47   : > { %v672_v59 = vrot.slane %v286_v43, 1  ;;  %v289_v7 = vunpack.c.l.bf16 %v5657_v30  ;;  %v290_v60 = vunpack.c.h.bf16 %v5657_v30  ;;  %v664_v13 = vsel %vm606_vm2, %v662_v36, %v663_v37 }
  0x48   : > { %v1103_v61 = vsel %vm1045_vm3, %v1101_v41, %v1102_v42  ;;  %v1105_v62 = vsel %vm1045_vm3, %v1102_v42, %v1104_v52  ;;  %v288_v23 = vunpack.c.l.bf16 %v240_v51  ;;  %v666_v63 = vsel %vm606_vm2, %v663_v37, %v665_v53  ;;  %v5844_v53 = vld [vmem:[%s5585_s25 + $0x18] sm:$0xff]  }
  0x49   : > { %v1108_v0 = vsel %vm1045_vm3, %v1106_v45, %v1107_v19  ;;  %v1110_v30 = vsel %vm1045_vm3, %v1107_v19, %v1109_v49  ;;  %v291_v1 = vunpack.c.l.bf16 %v243_v48  ;;  %v673_v2 = vrot.slane %v287_v57, 1 }
  0x4a   : > { %v1111_v3 = vrot.slane %v286_v43, 2  ;;  %v669_v4 = vsel %vm606_vm2, %v667_v55, %v668_v56  ;;  %v1112_v8 = vrot.slane %v287_v57, 2  ;;  %v1169_v11 = vpack.c.bf16 %v1105_v62, %v1103_v61  ;;  %v5849_v57 = vld [vmem:[%s5585_s25 + $0x20] sm:$0x1] }
  0x4b   : > { %v730_v12 = vpack.c.bf16 %v666_v63, %v664_v13  ;;  %v675_v17 = vrot.slane %v288_v23, 1  ;;  %v1114_v20 = vrot.slane %v288_v23, 2  ;;  %v1119_v22 = vrot.slane %v291_v1, 2 }
  0x4c   : > { %5147 = vmatmul.mubr.msk.bf16.gmra.mxu0 %vm312_vm1, %v1165_v6  ;;  %v671_v6 = vsel %vm606_vm2, %v668_v56, %v670_v58  ;;  %v677_v24 = vrot.slane %v289_v7, 1  ;;  %v678_v26 = vrot.slane %v290_v60, 1  ;;  %v292_v5 = vunpack.c.l.bf16 %v5677_v40 }
  0x4d   : > { %5113 = vmatmul.mubr.msk.bf16.gmra.mxu1 %vm312_vm1, %v726_v9  ;;  %5150 = vmatprep.mubr.msk.bf16.mxu0 %vm312_vm1, %v1166_v10  ;;  %v1116_v9 = vrot.slane %v289_v7, 2  ;;  %v1117_v10 = vrot.slane %v290_v60, 2  ;;  %v731_v21 = vpack.c.bf16 %v671_v6, %v669_v4  ;;  %v680_v27 = vrot.slane %v291_v1, 1  ;;  %v5858_v7 = vld [vmem:[%s5585_s25 + $0x2c] sm:$0x1] }
  0x4e   : > { %5116 = vmatprep.mubr.msk.bf16.mxu1 %vm312_vm1, %v727_v14  ;;  %v1170_v14 = vpack.c.bf16 %v1110_v30, %v1108_v0  ;;  %v293_v29 = vunpack.c.h.bf16 %v5677_v40  ;;  %v674_v31 = vsel %vm606_vm2, %v672_v59, %v673_v2  ;;  %v1113_v32 = vsel %vm1045_vm3, %v1111_v3, %v1112_v8  ;;  %v5855_v59 = vld [vmem:[%s5585_s25 + $0x24] sm:$0xff]   ;;  %v5874_v3 = vld [vmem:[%s5585_s25 + $0x30] sm:$0xff]  }
  0x4f   : > { %v676_v15 = vsel %vm606_vm2, %v673_v2, %v675_v17  ;;  %v1115_v33 = vsel %vm1045_vm3, %v1112_v8, %v1114_v20  ;;  %v1118_v18 = vsel %vm1045_vm3, %v1116_v9, %v1117_v10  ;;  %v294_v34 = vunpack.c.l.bf16 %v246_v16  ;;  %v5877_v9 = vld [vmem:[%s5585_s25 + $0x38] sm:$0x1]  ;;  %v5891_v16 = vld [vmem:[%s5585_s25 + $0x44] sm:$0x1] }
  0x50   : > { %v1120_v40 = vsel %vm1045_vm3, %v1117_v10, %v1119_v22  ;;  %v1536_v36 = vunpack.c.l.bf16 %v5822_v35  ;;  %v1537_v37 = vunpack.c.h.bf16 %v5822_v35  ;;  %v1538_v38 = vunpack.c.l.bf16 %v5825_v28  ;;  %v5888_v22 = vld [vmem:[%s5585_s25 + $0x3c] sm:$0xff]  }
  0x51   : > { %v682_v39 = vrot.slane %v292_v5, 1  ;;  %v679_v41 = vsel %vm606_vm2, %v677_v24, %v678_v26  ;;  %v681_v42 = vsel %vm606_vm2, %v678_v26, %v680_v27  ;;  %v683_v43 = vrot.slane %v293_v29, 1 }
  0x52   : > { %v1122_v45 = vrot.slane %v293_v29, 2  ;;  %v1172_v52 = vpack.c.bf16 %v1120_v40, %v1118_v18  ;;  %v685_v19 = vrot.slane %v294_v34, 1  ;;  %v733_v49 = vpack.c.bf16 %v681_v42, %v679_v41  ;;  %v5897_v29 = vld [vmem:[%s5585_s25 + $0x48] sm:$0xff]  }
  0x53   : > { %v1958_v51 = vrot.slane %v1536_v36, 1  ;;  %v1959_v55 = vrot.slane %v1537_v37, 1  ;;  %v1961_v56 = vrot.slane %v1538_v38, 1  ;;  %v1539_v58 = vunpack.c.l.bf16 %v5844_v53 }
  0x54   : > { %5151 = vmatmul.mubr.msk.bf16.gmra.mxu0 %vm312_vm1, %v1167_v44  ;;  %v1121_v44 = vrot.slane %v292_v5, 2  ;;  %v1540_v48 = vunpack.c.h.bf16 %v5844_v53  ;;  %v1541_v61 = vunpack.c.l.bf16 %v5849_v57  ;;  %v684_v62 = vsel %vm606_vm2, %v682_v39, %v683_v43 }
  0x55   : > { %5117 = vmatmul.mubr.msk.bf16.gmra.mxu1 %vm312_vm1, %v728_v46  ;;  %5154 = vmatprep.mubr.msk.bf16.mxu0 %vm312_vm1, %v1168_v50  ;;  %v1171_v46 = vpack.c.bf16 %v1115_v33, %v1113_v32  ;;  %v732_v50 = vpack.c.bf16 %v676_v15, %v674_v31  ;;  %v686_v23 = vsel %vm606_vm2, %v683_v43, %v685_v19  ;;  %v1542_v30 = vunpack.c.l.bf16 %v5855_v59  ;;  %v5906_v32 = vld [vmem:[%s5585_s25 + $0x50] sm:$0x1] }
  0x56   : > { %5120 = vmatprep.mubr.msk.bf16.mxu1 %vm312_vm1, %v729_v54  ;;  %v1124_v54 = vrot.slane %v294_v34, 2  ;;  %v1123_v60 = vsel %vm1045_vm3, %v1121_v44, %v1122_v45  ;;  %v1960_v63 = vsel %vm606_vm2, %v1958_v51, %v1959_v55  ;;  %v1962_v0 = vsel %vm606_vm2, %v1959_v55, %v1961_v56  ;;  %v5935_v51 = vld [vmem:[%s5585_s25 + $0x5c] sm:$0x1] }
  0x57   : > { %v1543_v1 = vunpack.c.h.bf16 %v5855_v59  ;;  %v1544_v2 = vunpack.c.l.bf16 %v5858_v7  ;;  %v1963_v6 = vrot.slane %v1539_v58, 1  ;;  %v1964_v8 = vrot.slane %v1540_v48, 1 }
  0x58   : > { %v1125_v13 = vsel %vm1045_vm3, %v1122_v45, %v1124_v54  ;;  %v734_v10 = vpack.c.bf16 %v686_v23, %v684_v62  ;;  %v3001_v17 = vsel %vm361_vm0, %v5733_v25, 0  ;;  %v1545_v20 = vunpack.c.l.bf16 %v5874_v3 }
  0x59   : > { %v1173_v4 = vpack.c.bf16 %v1125_v13, %v1123_v60  ;;  %v1968_v24 = vrot.slane %v1542_v30, 1  ;;  %v1969_v26 = vrot.slane %v1543_v1, 1  ;;  %v1971_v5 = vrot.slane %v1544_v2, 1 }
  0x5a   : > { %v1547_v27 = vunpack.c.l.bf16 %v5877_v9  ;;  %v5902_v25 = vrot.slane %v1537_v37, 2  ;;  %v1965_v31 = vsel %vm606_vm2, %v1963_v6, %v1964_v8  ;;  %v1548_v33 = vunpack.c.l.bf16 %v5888_v22  ;;  %v5955_v6 = vld [vmem:[%s7394_s1 + $0x1c] sm:$0xf] }
  0x5b   : > { %v1549_v18 = vunpack.c.h.bf16 %v5888_v22  ;;  %v1550_v34 = vunpack.c.l.bf16 %v5891_v16  ;;  %v1973_v40 = vrot.slane %v1545_v20, 1  ;;  %v1551_v37 = vunpack.c.l.bf16 %v5897_v29 }
  0x5c   : > { %5155 = vmatmul.mubr.msk.bf16.gmra.mxu0 %vm312_vm1, %v1169_v11  ;;  %v2070_v11 = vpack.c.bf16 %v1962_v0, %v1960_v63  ;;  %v1552_v39 = vunpack.c.h.bf16 %v5897_v29  ;;  %v1970_v41 = vsel %vm606_vm2, %v1968_v24, %v1969_v26  ;;  %v1972_v42 = vsel %vm606_vm2, %v1969_v26, %v1971_v5 }
  0x5d   : > { %5121 = vmatmul.mubr.msk.bf16.gmra.mxu1 %vm312_vm1, %v730_v12  ;;  %5158 = vmatprep.mubr.msk.bf16.mxu0 %vm312_vm1, %v1170_v14  ;;  %v1966_v12 = vrot.slane %v1541_v61, 1  ;;  %v2575_v14 = vsel %vm361_vm0, %v5724_v47, 0  ;;  %v5900_v47 = vrot.slane %v1536_v36, 2  ;;  %v1976_v43 = vrot.slane %v1547_v27, 1 }
  0x5e   : > { %5124 = vmatprep.mubr.msk.bf16.mxu1 %vm312_vm1, %v731_v21  ;;  %v1546_v21 = vunpack.c.h.bf16 %v5874_v3  ;;  %v1553_v44 = vunpack.c.l.bf16 %v5906_v32  ;;  %v5923_v45 = vrot.slane %v1539_v58, 2  ;;  %v1978_v19 = vrot.slane %v1548_v33, 1 }
  0x5f   : > { %v1967_v15 = vsel %vm606_vm2, %v1964_v8, %v1966_v12  ;;  %v1979_v54 = vrot.slane %v1549_v18, 1  ;;  %v2072_v55 = vpack.c.bf16 %v1972_v42, %v1970_v41  ;;  %v1983_v58 = vrot.slane %v1551_v37, 1 }
  0x60   : > { %v1974_v36 = vrot.slane %v1546_v21, 1  ;;  %v1984_v60 = vrot.slane %v1552_v39, 1  ;;  %v1986_v13 = vrot.slane %v1553_v44, 1  ;;  %v5944_v63 = vrot.slane %v1543_v1, 2 }
  0x61   : > { %v5946_v0 = vrot.slane %v1545_v20, 2  ;;  %v5959_v8 = vrot.slane %v1546_v21, 2  ;;  %v1980_v1 = vsel %vm606_vm2, %v1978_v19, %v1979_v54  ;;  %v5970_v20 = vrot.slane %v1548_v33, 2  ;;  %v5978_v21 = vld [vmem:[%s5585_s25 + $0x68] sm:$0x1] }
  0x62   : > { %v1975_v56 = vsel %vm606_vm2, %v1973_v40, %v1974_v36  ;;  %v1987_v24 = vsel %vm606_vm2, %v1984_v60, %v1986_v13  ;;  %v5990_v33 = vrot.slane %v1551_v37, 2  ;;  %v1559_v40 = vunpack.c.l.bf16 %v5978_v21  ;;  %v6007_v37 = vld [vmem:[%s5585_s25 + $0x74] sm:$0x1] }
  0x63   : > { %v1562_v28 = vunpack.c.l.bf16 %v6007_v37 }
  0x64   : > { %5159 = vmatmul.mubr.msk.bf16.gmra.mxu0 %vm312_vm1, %v1171_v46  ;;  %v5925_v46 = vrot.slane %v1540_v48, 2  ;;  %v1977_v48 = vsel %vm606_vm2, %v1974_v36, %v1976_v43  ;;  %v5996_v36 = vld [vmem:[%s5585_s25 + $0x6c] sm:$0xff]   ;;  %v1996_v13 = vrot.slane %v1559_v40, 1 }
  0x65   : > { %5125 = vmatmul.mubr.msk.bf16.gmra.mxu1 %vm312_vm1, %v732_v50  ;;  %5162 = vmatprep.mubr.msk.bf16.mxu0 %vm312_vm1, %v1172_v52  ;;  %v5928_v50 = vld [vmem:[%s5585_s25 + $0x54] sm:$0xff]   ;;  %v5930_v52 = vrot.slane %v1542_v30, 2  ;;  %v1556_v30 = vunpack.c.l.bf16 %v5935_v51  ;;  %v2073_v12 = vpack.c.bf16 %v1977_v48, %v1975_v56  ;;  %v2399_v48 = vrot.slane %v1538_v38, 2 }
  0x66   : > { %5128 = vmatprep.mubr.msk.bf16.mxu1 %vm312_vm1, %v733_v49  ;;  %v1981_v49 = vrot.slane %v1550_v34, 1  ;;  %v1554_v62 = vunpack.c.l.bf16 %v5928_v50  ;;  %v1555_v23 = vunpack.c.h.bf16 %v5928_v50 }
  0x68   : > { %v1988_v26 = vrot.slane %v1554_v62, 1  ;;  %v5999_v42 = vrot.slane %v1554_v62, 2  ;;  %v6001_v43 = vrot.slane %v1555_v23, 2  ;;  %v1561_v62 = vunpack.c.h.bf16 %v5996_v36 }
  0x6c   : > { %5163 = vmatmul.mubr.msk.bf16.gmra.mxu0 %vm312_vm1, %v1173_v4  ;;  %v5950_v4 = vld [vmem:[%s5585_s25 + $0x60] sm:$0xff]  }
  0x6d   : > { %5129 = vmatmul.mubr.msk.bf16.gmra.mxu1 %vm312_vm1, %v734_v10  ;;  %5202 = vmatprep.mubr.msk.bf16.mxu0 %vm312_vm1, %v2070_v11  ;;  %v1982_v10 = vsel %vm606_vm2, %v1979_v54, %v1981_v49  ;;  %v5966_v11 = vld [vmem:[%s7394_s1 + $0x20] sm:$0xf]  ;;  %v1557_v5 = vunpack.c.l.bf16 %v5950_v4  ;;  %v6015_v49 = vsel %vm1045_vm3, %v5900_v47, %v5902_v25 }
  0x6e   : > { %5168 = vmatprep.mubr.msk.bf16.mxu1 %vm312_vm1, %v5822_v35  ;;  %v2071_v35 = vpack.c.bf16 %v1967_v15, %v1965_v31  ;;  %v1991_v31 = vrot.slane %v1556_v30, 1  ;;  %v1558_v15 = vunpack.c.h.bf16 %v5950_v4 }
  0x6f   : > { %v1993_v19 = vrot.slane %v1557_v5, 1  ;;  %v6004_v54 = vrot.slane %v1557_v5, 2  ;;  %v1999_v5 = vrot.slane %v1561_v62, 1 }
  0x70   : > { %v1994_v56 = vrot.slane %v1558_v15, 1  ;;  %v6028_v47 = vrot.slane %v1558_v15, 2  ;;  %v2001_v15 = vrot.slane %v1562_v28, 1 }
  0x74   : > { %5203 = vmatmul.mubr.msk.bf16.vlgmr.msra.gmra.mxu0 %vm312_vm1, %v2071_v35 }
  0x75   : > { %5169 = vmatmul.mubr.msk.bf16.vlgmr.msra.gmra.mxu1 %vm312_vm1, %v5844_v53  ;;  %5269 = vmatpush3.bf16.msra.mxu0 %v3001_v17  ;;  %v5972_v53 = vrot.slane %v1549_v18, 2  ;;  %v5975_v17 = vsel %vm606_vm2, %v1983_v58, %v1984_v60  ;;  %v5992_v18 = vrot.slane %v1552_v39, 2  ;;  %v6010_v39 = vld [vmem:[%s5585_s25 + $0x78] sm:$0xff]   ;;  %v1560_v58 = vunpack.c.l.bf16 %v5996_v36  ;;  %v6021_v60 = vld [vmem:[%s5585_s25 + $0x80] sm:$0x1] }
  0x76   : > { %5235 = vmatpush3.bf16.msra.mxu1 %v2575_v14  ;;  %5172 = vmatprep.mubr.msk.bf16.mxu1 %vm312_vm1, %v5855_v59  ;;  %v1989_v14 = vrot.slane %v1555_v23, 1  ;;  %v2074_v59 = vpack.c.bf16 %v1982_v10, %v1980_v1  ;;  %v2075_v41 = vpack.c.bf16 %v1987_v24, %v5975_v17  ;;  %v6036_v23 = vsel %vm1045_vm3, %v5923_v45, %v5925_v46 }
  0x77   : > { %5206 = vmatprep.mubr.msk.bf16.mxu0 %vm312_vm1, %v2072_v55  ;;  %5380 = vmatprep.subr.msk.bf16.mxu1 %vm361_vm0, %v5955_v6  ;;  %v1563_v38 = vunpack.c.l.bf16 %v6010_v39  ;;  %v6045_v1 = vsel %vm1045_vm3, %v5902_v25, %v2399_v48  ;;  %v1995_v17 = vsel %vm606_vm2, %v1993_v19, %v1994_v56  ;;  %v6051_v24 = vrot.slane %v1560_v58, 2 }
  0x78   : > { %5381 = vmatprep.subr.msk.bf16.mxu0 %vm361_vm0, %v5966_v11  ;;  %v1990_v35 = vsel %vm606_vm2, %v1988_v26, %v1989_v14  ;;  %v1992_v55 = vsel %vm606_vm2, %v1989_v14, %v1991_v31  ;;  %v2508_v45 = vpack.c.bf16 %v6045_v1, %v6015_v49  ;;  %v6054_v26 = vld [vmem:[%s5585_s25 + $0x84] sm:$0xff]   ;;  %v2404_v14 = vrot.slane %v1541_v61, 2  ;;  %v6364_v49 = vld [vmem:[%s5585_s25 + $0x3c] sm:$0xff]   ;;  %v6384_v1 = vld [vmem:[%s5585_s25 + $0x54] sm:$0xff]  }
  0x79   : > { %v2076_v10 = vpack.c.bf16 %v1992_v55, %v1990_v35  ;;  %v1997_v25 = vsel %vm606_vm2, %v1994_v56, %v1996_v13  ;;  %v2409_v31 = vrot.slane %v1544_v2, 2  ;;  %v2003_v35 = vrot.slane %v1563_v38, 1  ;;  %v6069_v55 = vld [vmem:[%s5585_s25 + $0x8c] sm:$0x1]  ;;  %v6100_v13 = vld [vmem:[%s5585_s25 + $0x90] sm:$0xff]  }
  0x7a   : > { %v6073_v57 = vsel %vm1045_vm3, %v5925_v46, %v2404_v14  ;;  %v6085_v56 = vrot.slane %v1561_v62, 2  ;;  %v6093_v48 = vsel %vm1045_vm3, %v5946_v0, %v5959_v8  ;;  %v2414_v62 = vrot.slane %v1547_v27, 2 }
  0x7b   : > { %v2509_v7 = vpack.c.bf16 %v6073_v57, %v6036_v23  ;;  %v6082_v2 = vsel %vm1045_vm3, %v5944_v63, %v2409_v31  ;;  %v2002_v14 = vsel %vm606_vm2, %v1999_v5, %v2001_v15  ;;  %v6108_v31 = vrot.slane %v1563_v38, 2 }
  0x7c   : > { %5207 = vmatmul.mubr.msk.bf16.gmra.mxu0 %vm312_vm1, %v2073_v12  ;;  %v1565_v12 = vunpack.c.l.bf16 %v6021_v60  ;;  %v6114_v9 = vsel %vm1045_vm3, %v5959_v8, %v2414_v62  ;;  %v6119_v27 = vsel %vm1045_vm3, %v5970_v20, %v5972_v53  ;;  %v1569_v38 = vunpack.c.l.bf16 %v6100_v13 }
  0x7d   : > { %5173 = vmatmul.mubr.msk.bf16.gmra.mxu1 %vm312_vm1, %v5874_v3  ;;  %5210 = vmatprep.mubr.msk.bf16.mxu0 %vm312_vm1, %v2074_v59  ;;  %v1564_v3 = vunpack.c.h.bf16 %v6010_v39  ;;  %v6062_v59 = vsel %vm1045_vm3, %v5930_v52, %v5944_v63  ;;  %v1566_v52 = vunpack.c.l.bf16 %v6054_v26  ;;  %v2077_v63 = vpack.c.bf16 %v1997_v25, %v1995_v17 }
  0x7e   : > { %5176 = vmatprep.mubr.msk.bf16.mxu1 %vm312_vm1, %v5888_v22  ;;  %v1998_v22 = vrot.slane %v1560_v58, 1  ;;  %v2006_v61 = vrot.slane %v1565_v12, 1  ;;  %v1567_v58 = vunpack.c.h.bf16 %v6054_v26  ;;  %v2419_v25 = vrot.slane %v1550_v34, 2 }
  0x7f   : > { %v2004_v19 = vrot.slane %v1564_v3, 1  ;;  %v2008_v17 = vrot.slane %v1566_v52, 1  ;;  %v6126_v15 = vrot.slane %v1564_v3, 2  ;;  %v6136_v20 = vsel %vm1045_vm3, %v5990_v33, %v5992_v18 }
  0x80   : > { %v2000_v0 = vsel %vm606_vm2, %v1998_v22, %v1999_v5  ;;  %v6144_v16 = vsel %vm1045_vm3, %v5972_v53, %v2419_v25  ;;  %v2424_v34 = vrot.slane %v1553_v44, 2  ;;  %v6148_v62 = vrot.slane %v1566_v52, 2 }
  0x81   : > { %v2078_v5 = vpack.c.bf16 %v2002_v14, %v2000_v0  ;;  %v6150_v0 = vrot.slane %v1567_v58, 2  ;;  %v6153_v14 = vld [vmem:[%s5585_s25 + $0xa4] sm:$0x1]  ;;  %v2013_v46 = vrot.slane %v1569_v38, 1  ;;  %v6233_v33 = vsel %vm1045_vm3, %v6108_v31, %v6126_v15 }
  0x82   : > { %v6162_v32 = vsel %vm1045_vm3, %v5992_v18, %v2424_v34  ;;  %v6199_v34 = vld [vmem:[%s5585_s25 + $0xb0] sm:$0x1]  ;;  %v7402_v23 = vpack.c.bf16 %v6114_v9, %v6093_v48  ;;  %v6409_v48 = vld [vmem:[%s5585_s25 + $0x78] sm:$0xff]  }
  0x83   : > { %v7404_v57 = vpack.c.bf16 %v6162_v32, %v6136_v20 }
  0x84   : > { %5211 = vmatmul.mubr.msk.bf16.gmra.mxu0 %vm312_vm1, %v2075_v41  ;;  %v1568_v41 = vunpack.c.l.bf16 %v6069_v55 }
  0x85   : > { %5177 = vmatmul.mubr.msk.bf16.gmra.mxu1 %vm312_vm1, %v5897_v29  ;;  %5214 = vmatprep.mubr.msk.bf16.mxu0 %vm312_vm1, %v2076_v10  ;;  %v2005_v29 = vsel %vm606_vm2, %v2003_v35, %v2004_v19  ;;  %v2007_v10 = vsel %vm606_vm2, %v2004_v19, %v2006_v61  ;;  %v6131_v35 = vld [vmem:[%s5585_s25 + $0x98] sm:$0x1]  ;;  %v1570_v19 = vunpack.c.h.bf16 %v6100_v13  ;;  %v6140_v61 = vld [vmem:[%s5585_s25 + $0x9c] sm:$0xff]  }
  0x86   : > { %5180 = vmatprep.mubr.msk.bf16.mxu1 %vm312_vm1, %v5928_v50  ;;  %v2009_v50 = vrot.slane %v1567_v58, 1  ;;  %v2011_v8 = vrot.slane %v1568_v41, 1  ;;  %v2079_v3 = vpack.c.bf16 %v2007_v10, %v2005_v29  ;;  %v1571_v53 = vunpack.c.l.bf16 %v6131_v35 }
  0x87   : > { %v1572_v52 = vunpack.c.l.bf16 %v6140_v61  ;;  %v1573_v58 = vunpack.c.h.bf16 %v6140_v61  ;;  %v2014_v18 = vrot.slane %v1570_v19, 1  ;;  %v1574_v29 = vunpack.c.l.bf16 %v6153_v14 }
  0x88   : > { %v2010_v22 = vsel %vm606_vm2, %v2008_v17, %v2009_v50  ;;  %v2012_v44 = vsel %vm606_vm2, %v2009_v50, %v2011_v8  ;;  %v2429_v10 = vrot.slane %v1556_v30, 2  ;;  %v2451_v17 = vrot.slane %v1569_v38, 2  ;;  %v6192_v8 = vld [vmem:[%s5585_s25 + $0xa8] sm:$0xff]  }
  0x89   : > { %v6185_v50 = vsel %vm1045_vm3, %v6004_v54, %v6028_v47  ;;  %v2080_v25 = vpack.c.bf16 %v2012_v44, %v2010_v22  ;;  %v2018_v30 = vrot.slane %v1572_v52, 1  ;;  %v2019_v38 = vrot.slane %v1573_v58, 1 }
  0x8a   : > { %v6196_v51 = vsel %vm1045_vm3, %v6001_v43, %v2429_v10  ;;  %v2015_v54 = vsel %vm606_vm2, %v2013_v46, %v2014_v18  ;;  %v2021_v22 = vrot.slane %v1574_v29, 1  ;;  %v1575_v44 = vunpack.c.l.bf16 %v6192_v8 }
  0x8b   : > { %v1576_v10 = vunpack.c.h.bf16 %v6192_v8  ;;  %v2439_v46 = vrot.slane %v1562_v28, 2  ;;  %v2456_v21 = vrot.slane %v1572_v52, 2  ;;  %v2020_v37 = vsel %vm606_vm2, %v2018_v30, %v2019_v38 }
  0x8c   : > { %5215 = vmatmul.mubr.msk.bf16.gmra.mxu0 %vm312_vm1, %v2077_v63  ;;  %v6218_v63 = vld [vmem:[%s5585_s25 + $0xbc] sm:$0x1]  ;;  %v2022_v31 = vsel %vm606_vm2, %v2019_v38, %v2021_v22  ;;  %v2461_v30 = vrot.slane %v1575_v44, 2 }
  0x8d   : > { %5181 = vmatmul.mubr.msk.bf16.gmra.mxu1 %vm312_vm1, %v5950_v4  ;;  %5218 = vmatprep.mubr.msk.bf16.mxu0 %vm312_vm1, %v2078_v5  ;;  %v6178_v4 = vsel %vm1045_vm3, %v5999_v42, %v6001_v43  ;;  %v2452_v5 = vrot.slane %v1570_v19, 2  ;;  %v2016_v42 = vrot.slane %v1571_v53, 1  ;;  %v6211_v19 = vld [vmem:[%s5585_s25 + $0xb4] sm:$0xff]   ;;  %v1577_v43 = vunpack.c.l.bf16 %v6199_v34  ;;  %v4658_v34 = vld [vmem:[%s5585_s25 + $0xc0] sm:$0xff]  }
  0x8e   : > { %5184 = vmatprep.mubr.msk.bf16.mxu1 %vm312_vm1, %v5996_v36  ;;  %v2434_v36 = vrot.slane %v1559_v40, 2  ;;  %v1578_v28 = vunpack.c.l.bf16 %v6211_v19  ;;  %v1580_v52 = vunpack.c.l.bf16 %v6218_v63  ;;  %v2082_v22 = vpack.c.bf16 %v2022_v31, %v2020_v37 }
  0x8f   : > { %v1581_v31 = vunpack.c.l.bf16 %v4658_v34 }
  0x90   : > { %v6205_v40 = vsel %vm1045_vm3, %v6028_v47, %v2434_v36  ;;  %v6223_v47 = vsel %vm1045_vm3, %v6051_v24, %v6085_v56  ;;  %v2017_v36 = vsel %vm606_vm2, %v2014_v18, %v2016_v42  ;;  %v6242_v24 = vsel %vm1045_vm3, %v6085_v56, %v2439_v46 }
  0x91   : > { %v2023_v42 = vrot.slane %v1575_v44, 1  ;;  %v2024_v56 = vrot.slane %v1576_v10, 1  ;;  %v2028_v63 = vrot.slane %v1578_v28, 1  ;;  %v6263_v46 = vsel %vm1045_vm3, %v6148_v62, %v6150_v0 }
  0x92   : > { %v2454_v44 = vrot.slane %v1571_v53, 2  ;;  %v2466_v35 = vrot.slane %v1578_v28, 2  ;;  %v2033_v28 = vrot.slane %v1581_v31, 1  ;;  %v7406_v9 = vpack.c.bf16 %v6205_v40, %v6185_v50  ;;  %v6444_v40 = vld [vmem:[%s5585_s25 + $0x9c] sm:$0xff]  }
  0x93   : > { %v2025_v37 = vsel %vm606_vm2, %v2023_v42, %v2024_v56  ;;  %v7407_v20 = vpack.c.bf16 %v6242_v24, %v6223_v47  ;;  %v6451_v47 = vld [vmem:[%s5585_s25 + $0xa8] sm:$0xff]  }
  0x94   : > { %5219 = vmatmul.mubr.msk.bf16.gmra.mxu0 %vm312_vm1, %v2079_v3  ;;  %v2444_v3 = vrot.slane %v1565_v12, 2  ;;  %v2081_v12 = vpack.c.bf16 %v2017_v36, %v2015_v54  ;;  %v6269_v54 = vsel %vm1045_vm3, %v2451_v17, %v2452_v5  ;;  %v2462_v36 = vrot.slane %v1576_v10, 2 }
  0x95   : > { %5185 = vmatmul.mubr.msk.bf16.gmra.mxu1 %vm312_vm1, %v6010_v39  ;;  %5222 = vmatprep.mubr.msk.bf16.mxu0 %vm312_vm1, %v2080_v25  ;;  %v1579_v39 = vunpack.c.h.bf16 %v6211_v19  ;;  %v2457_v25 = vrot.slane %v1573_v58, 2  ;;  %v2449_v58 = vrot.slane %v1568_v41, 2  ;;  %v1582_v41 = vunpack.c.h.bf16 %v4658_v34 }
  0x96   : > { %5188 = vmatprep.mubr.msk.bf16.mxu1 %vm312_vm1, %v6054_v26  ;;  %v6255_v60 = vsel %vm1045_vm3, %v6126_v15, %v2444_v3  ;;  %v2026_v26 = vrot.slane %v1577_v43, 1  ;;  %v2031_v15 = vrot.slane %v1580_v52, 1  ;;  %v4660_v3 = vld [vmem:[%s5585_s25 + $0xc8] sm:$0x1]  ;;  %v6283_v38 = vsel %vm1045_vm3, %v2452_v5, %v2454_v44 }
  0x97   : > { %v2029_v18 = vrot.slane %v1579_v39, 1  ;;  %v6276_v62 = vsel %vm1045_vm3, %v6150_v0, %v2449_v58  ;;  %v1583_v53 = vunpack.c.l.bf16 %v4660_v3  ;;  %v2519_v0 = vpack.c.bf16 %v6283_v38, %v6269_v54 }
  0x98   : > { %v2027_v55 = vsel %vm606_vm2, %v2024_v56, %v2026_v26  ;;  %v2518_v17 = vpack.c.bf16 %v6276_v62, %v6263_v46  ;;  %v6295_v5 = vsel %vm1045_vm3, %v2456_v21, %v2457_v25  ;;  %v6300_v26 = vsel %vm1045_vm3, %v2461_v30, %v2462_v36 }
  0x99   : > { %v2030_v10 = vsel %vm606_vm2, %v2028_v63, %v2029_v18  ;;  %v2032_v42 = vsel %vm606_vm2, %v2029_v18, %v2031_v15  ;;  %v2083_v56 = vpack.c.bf16 %v2027_v55, %v2025_v37  ;;  %v2471_v58 = vrot.slane %v1581_v31, 2  ;;  %v6327_v37 = vld [vmem:[%s5585_s25 + $0x18] sm:$0xff]  }
  0x9a   : > { %v2464_v63 = vrot.slane %v1577_v43, 2  ;;  %v2084_v3 = vpack.c.bf16 %v2032_v42, %v2030_v10  ;;  %v2472_v18 = vrot.slane %v1582_v41, 2  ;;  %v2036_v21 = vrot.slane %v1583_v53, 1 }
  0x9b   : > { %v7409_v50 = vpack.c.bf16 %v6255_v60, %v6233_v33  ;;  %v2886_v60 = vunpack.c.l.bf16 %v6327_v37 }
  0x9c   : > { %5223 = vmatmul.mubr.msk.bf16.gmra.mxu0 %vm312_vm1, %v2081_v12  ;;  %v2467_v12 = vrot.slane %v1579_v39, 2  ;;  %v6322_v44 = vsel %vm1045_vm3, %v2471_v58, %v2472_v18 }
  0x9d   : > { %5189 = vmatmul.mubr.msk.bf16.gmra.mxu1 %vm312_vm1, %v6100_v13  ;;  %5226 = vmatprep.mubr.msk.bf16.mxu0 %vm312_vm1, %v2082_v22  ;;  %v2459_v13 = vrot.slane %v1574_v29, 2  ;;  %v2034_v22 = vrot.slane %v1582_v41, 1  ;;  %v6308_v29 = vsel %vm1045_vm3, %v2462_v36, %v2464_v63  ;;  %v2474_v36 = vrot.slane %v1583_v53, 2  ;;  %v6482_v63 = vld [vmem:[%s5585_s25 + $0xb4] sm:$0xff]  }
  0x9e   : > { %5192 = vmatprep.mubr.msk.bf16.mxu1 %vm312_vm1, %v6140_v61  ;;  %v2521_v39 = vpack.c.bf16 %v6308_v29, %v6300_v26  ;;  %v6314_v30 = vsel %vm1045_vm3, %v2466_v35, %v2467_v12  ;;  %v6351_v35 = vld [vmem:[%s5585_s25 + $0x30] sm:$0xff]   ;;  %v3925_v53 = vsel %vm361_vm0, %v5966_v11, 0  ;;  %v7401_v11 = vpack.c.bf16 %v6082_v2, %v6062_v59  ;;  %v6391_v59 = vld [vmem:[%s5585_s25 + $0x60] sm:$0xff]  }
  0x9f   : > { %v6303_v61 = vsel %vm1045_vm3, %v2457_v25, %v2459_v13  ;;  %v2469_v25 = vrot.slane %v1580_v52, 2  ;;  %v2035_v43 = vsel %vm606_vm2, %v2033_v28, %v2034_v22  ;;  %v2037_v15 = vsel %vm606_vm2, %v2034_v22, %v2036_v21 }
  0xa0   : > { %v2520_v14 = vpack.c.bf16 %v6303_v61, %v6295_v5  ;;  %v6335_v31 = vsel %vm1045_vm3, %v2472_v18, %v2474_v36  ;;  %v2085_v55 = vpack.c.bf16 %v2037_v15, %v2035_v43  ;;  %v7405_v2 = vpack.c.bf16 %v6196_v51, %v6178_v4  ;;  %v6492_v43 = vld [vmem:[%s5585_s25 + $0xc0] sm:$0xff]  }
  0xa1   : > { %v6330_v52 = vsel %vm1045_vm3, %v2467_v12, %v2469_v25  ;;  %v2887_v13 = vunpack.c.h.bf16 %v6327_v37  ;;  %v3308_v28 = vrot.slane %v2886_v60, 1  ;;  %v2892_v22 = vunpack.c.l.bf16 %v6351_v35  ;;  %7414 = vst [vmem:[#allocation8_spill] sm:$0xff] %v6492_v43 }
  0xa2   : > { %v3746_v18 = vrot.slane %v2886_v60, 2  ;;  %v2893_v21 = vunpack.c.h.bf16 %v6351_v35  ;;  %v2895_v36 = vunpack.c.l.bf16 %v6364_v49 }
  0xa3   : > { %v3747_v54 = vrot.slane %v2887_v13, 2 }
  0xa4   : > { %5227 = vmatmul.mubr.msk.bf16.gmra.mxu0 %vm312_vm1, %v2083_v56 }
  0xa5   : > { %5193 = vmatmul.mubr.msk.bf16.gmra.mxu1 %vm312_vm1, %v6192_v8  ;;  %5230 = vmatprep.mubr.msk.bf16.mxu0 %vm312_vm1, %v2084_v3  ;;  %v3309_v3 = vrot.slane %v2887_v13, 1  ;;  %v4736_v13 = vld [vmem:[%s5585_s25 + $0x38] sm:$0x1] }
  0xa6   : > { %5196 = vmatprep.mubr.msk.bf16.mxu1 %vm312_vm1, %v6211_v19  ;;  %v6344_v19 = vld [vmem:[%s5585_s25 + $0x24] sm:$0xff]   ;;  %v2894_v29 = vunpack.c.l.bf16 %v4736_v13 }
  0xa7   : > { %v2889_v56 = vunpack.c.l.bf16 %v6344_v19  ;;  %v2890_v46 = vunpack.c.h.bf16 %v6344_v19 }
  0xa9   : > { %v6496_v15 = vrot.slane %v2890_v46, 1 }
  0xac   : > { %5231 = vmatmul.mubr.msk.bf16.gmra.mxu0 %vm312_vm1, %v2085_v55  ;;  %v6501_v55 = vrot.slane %v2889_v56, 2 }
  0xad   : > { %5197 = vmatmul.mubr.msk.bf16.gmra.mxu1 %vm312_vm1, %v4658_v34  ;;  %5270 = vmatprep.mubr.msk.bf16.mxu0 %vm312_vm1, %v6327_v37  ;;  %v3487_v34 = vsel %vm361_vm0, %v5955_v6, 0  ;;  %v6371_v6 = vld [vmem:[%s5585_s25 + $0x48] sm:$0xff]  }
  0xae   : > { %5236 = vmatprep.mubr.msk.bf16.mxu1 %vm312_vm1, %v2508_v45  ;;  %v7403_v45 = vpack.c.bf16 %v6144_v16, %v6119_v27  ;;  %v6420_v27 = vld [vmem:[%s5585_s25 + $0x84] sm:$0xff]   ;;  %v6427_v16 = vld [vmem:[%s5585_s25 + $0x90] sm:$0xff]   ;;  %v2898_v5 = vunpack.c.l.bf16 %v6371_v6 }
  0xb0   : > { %v6544_v41 = vrot.slane %v2898_v5, 2 }
  0xb4   : > { %5271 = vmatmul.mubr.msk.bf16.vlgmr.msra.gmra.mxu0 %vm312_vm1, %v6344_v19  ;;  %v2896_v19 = vunpack.c.h.bf16 %v6364_v49 }
  0xb5   : > { %5237 = vmatmul.mubr.msk.bf16.vlgmr.msra.gmra.mxu1 %vm312_vm1, %v2509_v7  ;;  %5337 = vmatpush3.bf16.msra.mxu0 %v3925_v53  ;;  %v6402_v7 = vld [vmem:[%s5585_s25 + $0x6c] sm:$0xff]   ;;  %v2899_v53 = vunpack.c.h.bf16 %v6371_v6 }
  0xb6   : > { %5303 = vmatpush3.bf16.msra.mxu1 %v3487_v34  ;;  %5240 = vmatprep.mubr.msk.bf16.mxu1 %vm312_vm1, %v7401_v11  ;;  %v6514_v11 = vrot.slane %v2893_v21, 1 }
  0xb7   : > { %5274 = vmatprep.mubr.msk.bf16.mxu0 %vm312_vm1, %v6351_v35  ;;  %v6509_v35 = vrot.slane %v2892_v22, 1 }
  0xbc   : > { %5275 = vmatmul.mubr.msk.bf16.gmra.mxu0 %vm312_vm1, %v6364_v49 }
  0xbd   : > { %5241 = vmatmul.mubr.msk.bf16.gmra.mxu1 %vm312_vm1, %v7402_v23  ;;  %5278 = vmatprep.mubr.msk.bf16.mxu0 %vm312_vm1, %v6371_v6  ;;  %v6516_v23 = vrot.slane %v2892_v22, 2  ;;  %v2902_v22 = vunpack.c.h.bf16 %v6384_v1 }
  0xbe   : > { %5244 = vmatprep.mubr.msk.bf16.mxu1 %vm312_vm1, %v7403_v45  ;;  %v6518_v45 = vrot.slane %v2893_v21, 2 }
  0xc4   : > { %5279 = vmatmul.mubr.msk.bf16.gmra.mxu0 %vm312_vm1, %v6384_v1 }
  0xc5   : > { %5245 = vmatmul.mubr.msk.bf16.gmra.mxu1 %vm312_vm1, %v7404_v57  ;;  %5282 = vmatprep.mubr.msk.bf16.mxu0 %vm312_vm1, %v6391_v59 }
  0xc6   : > { %5248 = vmatprep.mubr.msk.bf16.mxu1 %vm312_vm1, %v7405_v2  ;;  %v4733_v2 = vld [vmem:[%s5585_s25 + $0x2c] sm:$0x1] }
  0xcc   : > { %5283 = vmatmul.mubr.msk.bf16.gmra.mxu0 %vm312_vm1, %v6402_v7 }
  0xcd   : > { %5249 = vmatmul.mubr.msk.bf16.gmra.mxu1 %vm312_vm1, %v7406_v9  ;;  %5286 = vmatprep.mubr.msk.bf16.mxu0 %vm312_vm1, %v6409_v48  ;;  %v6523_v9 = vrot.slane %v2895_v36, 1 }
  0xce   : > { %5252 = vmatprep.mubr.msk.bf16.mxu1 %vm312_vm1, %v7407_v20  ;;  %v6525_v20 = vrot.slane %v2895_v36, 2  ;;  %v6542_v36 = vrot.slane %v2899_v53, 1 }
  0xd4   : > { %v6429_v32 = vpop.f32.mrf.mxu0  ;;  %5287 = vmatmul.mubr.msk.bf16.gmra.mxu0 %vm312_vm1, %v6420_v27 }
  0xd5   : > { %v6433_v4 = vpop.f32.mrf.mxu1  ;;  %5253 = vmatmul.mubr.msk.bf16.gmra.mxu1 %vm312_vm1, %v7409_v50  ;;  %5290 = vmatprep.mubr.msk.bf16.mxu0 %vm312_vm1, %v6427_v16  ;;  %v2901_v50 = vunpack.c.l.bf16 %v6384_v1  ;;  %v6556_v1 = vld [vmem:[%s5585_s25 + $0xcc] sm:$0xff]  }
  0xd6   : > { %7408 = vst [vmem:[#allocation3_spill] sm:$0xff] %v6433_v4  ;;  %v6439_v51 = vpop.f32.mrf.mxu0  ;;  %5256 = vmatprep.mubr.msk.bf16.mxu1 %vm312_vm1, %v2518_v17  ;;  %v4730_v17 = vld [vmem:[%s5585_s25 + $0x20] sm:$0x1]  ;;  %7419 = vst [vmem:[#allocation13_spill] sm:$0xff] %v6556_v1 }
  0xd7   : > { %v6453_v24 = vpop.f32.mrf.mxu1  ;;  %v2888_v38 = vunpack.c.l.bf16 %v4730_v17  ;;  %v6535_v17 = vrot.slane %v2898_v5, 1  ;;  %v7420_v5 = vpack.c.bf16 %v6330_v52, %v6314_v30  ;;  %v6577_v30 = vrot.slane %v2901_v50, 2 }
  0xd8   : > { %7410 = vst [vmem:[#allocation4_spill] sm:$0xff] %v6453_v24  ;;  %v6455_v33 = vpop.f32.mrf.mxu0  ;;  %v2907_v52 = vunpack.c.l.bf16 %v6402_v7 }
  0xd9   : > { %v6458_v10 = vpop.f32.mrf.mxu1  ;;  %v3749_v57 = vrot.slane %v2888_v38, 2  ;;  %v3311_v60 = vrot.slane %v2888_v38, 1  ;;  %v2904_v38 = vunpack.c.l.bf16 %v6391_v59 }
  0xda   : > { %7411 = vst [vmem:[#allocation5_spill] sm:$0xff] %v6458_v10  ;;  %v6460_v42 = vpop.f32.mrf.mxu0  ;;  %v4739_v10 = vld [vmem:[%s5585_s25 + $0x44] sm:$0x1] }
  0xdb   : > { %v6465_v62 = vpop.f32.mrf.mxu1  ;;  %v3750_v26 = vsel %vm1045_vm3, %v3747_v54, %v3749_v57  ;;  %v6593_v24 = vrot.slane %v2904_v38, 2 }
  0xdc   : > { %7412 = vst [vmem:[#allocation6_spill] sm:$0xff] %v6465_v62  ;;  %v6468_v12 = vpop.f32.mrf.mxu0  ;;  %5291 = vmatmul.mubr.msk.bf16.gmra.mxu0 %vm312_vm1, %v6444_v40  ;;  %v6575_v62 = vrot.slane %v2902_v22, 1 }
  0xdd   : > { %v6473_v58 = vpop.f32.mrf.mxu1  ;;  %5257 = vmatmul.mubr.msk.bf16.gmra.mxu1 %vm312_vm1, %v2519_v0  ;;  %5294 = vmatprep.mubr.msk.bf16.mxu0 %vm312_vm1, %v6451_v47  ;;  %v6494_v0 = vrot.slane %v2889_v56, 1  ;;  %v6531_v56 = vrot.slane %v2896_v19, 1 }
  0xde   : > { %7413 = vst [vmem:[#allocation7_spill] sm:$0xff] %v6473_v58  ;;  %v6485_v25 = vpop.f32.mrf.mxu0  ;;  %5260 = vmatprep.mubr.msk.bf16.mxu1 %vm312_vm1, %v2520_v14  ;;  %v6507_v14 = vrot.slane %v2890_v46, 2  ;;  %v6533_v46 = vrot.slane %v2896_v19, 2  ;;  %v2891_v19 = vunpack.c.l.bf16 %v4733_v2  ;;  %v3312_v2 = vsel %vm606_vm2, %v3309_v3, %v3311_v60 }
  0xdf   : > { %v6499_v37 = vpop.f32.mrf.mxu1 }
  0xe0   : > { %7415 = vst [vmem:[#allocation9_spill] sm:$0xff] %v6499_v37  ;;  %v6505_v61 = vpop.f32.mrf.mxu0  ;;  %v6569_v37 = vrot.slane %v2901_v50, 1  ;;  %v3316_v50 = vrot.slane %v2891_v19, 1 }
  0xe1   : > { %v6512_v34 = vpop.f32.mrf.mxu1 }
  0xe2   : > { %7416 = vst [vmem:[#allocation10_spill] sm:$0xff] %v6512_v34  ;;  %v6520_v49 = vpop.f32.mrf.mxu0 }
  0xe3   : > { %v6528_v6 = vpop.f32.mrf.mxu1 }
  0xe4   : > { %7417 = vst [vmem:[#allocation11_spill] sm:$0xff] %v6528_v6  ;;  %v6538_v21 = vpop.f32.mrf.mxu0  ;;  %5295 = vmatmul.mubr.msk.bf16.gmra.mxu0 %vm312_vm1, %v6482_v63  ;;  %v2905_v6 = vunpack.c.h.bf16 %v6391_v59  ;;  %v3310_v59 = vsel %vm606_vm2, %v3308_v28, %v3309_v3  ;;  %v3754_v28 = vrot.slane %v2891_v19, 2  ;;  %v2911_v19 = vunpack.c.h.bf16 %v6409_v48 }
  0xe5   : > { %v6547_v8 = vpop.f32.mrf.mxu1  ;;  %5261 = vmatmul.mubr.msk.bf16.gmra.mxu1 %vm312_vm1, %v2521_v39  ;;  %5298 = vmatprep.mubr.msk.bf16.mxu0 %vm312_vm1, %v6492_v43  ;;  %v6567_v39 = vrot.slane %v2899_v53, 2  ;;  %v6584_v53 = vrot.slane %v2904_v38, 1  ;;  %v3420_v60 = vpack.c.bf16 %v3312_v2, %v3310_v59  ;;  %v3315_v38 = vsel %vm606_vm2, %v6494_v0, %v6496_v15 }
  0xe6   : > { %7418 = vst [vmem:[#allocation12_spill] sm:$0xff] %v6547_v8  ;;  %v6559_v34 = vpop.f32.mrf.mxu0  ;;  %5264 = vmatprep.mubr.msk.bf16.mxu1 %vm312_vm1, %v7420_v5  ;;  %v3748_v8 = vsel %vm1045_vm3, %v3746_v18, %v3747_v54  ;;  %v6582_v54 = vrot.slane %v2902_v22, 2  ;;  %v6588_v5 = vrot.slane %v2905_v6, 1  ;;  %v6595_v4 = vrot.slane %v2905_v6, 2 }
  0xe7   : > { %v6571_v58 = vpop.f32.mrf.mxu1  ;;  %v3858_v13 = vpack.c.bf16 %v3750_v26, %v3748_v8  ;;  %v2908_v22 = vunpack.c.h.bf16 %v6402_v7  ;;  %v6601_v8 = vrot.slane %v2907_v52, 1  ;;  %v6603_v26 = vrot.slane %v2907_v52, 2 }
  0xe8   : > { %7421 = vst [vmem:[#allocation14_spill] sm:$0xff] %v6571_v58  ;;  %v6580_v18 = vpop.f32.mrf.mxu0  ;;  %v3759_v58 = vrot.slane %v2894_v29, 2  ;;  %v7428_v7 = vpack.c.bf16 %v6335_v31, %v6322_v44  ;;  %v2897_v2 = vunpack.c.l.bf16 %v4739_v10  ;;  %v3317_v44 = vsel %vm606_vm2, %v6496_v15, %v3316_v50 }
  0xe9   : > { %7422 = vst [vmem:[#allocation15_spill] sm:$0xff] %v6580_v18  ;;  %v6586_v57 = vpop.f32.mrf.mxu1  ;;  %v3321_v18 = vrot.slane %v2894_v29, 1  ;;  %v3755_v29 = vsel %vm1045_vm3, %v6507_v14, %v3754_v28  ;;  %v3758_v31 = vsel %vm1045_vm3, %v6516_v23, %v6518_v45  ;;  %v3320_v28 = vsel %vm606_vm2, %v6509_v35, %v6514_v11 }
  0xea   : > { %7423 = vst [vmem:[#allocation16_spill] sm:$0xff] %v6586_v57  ;;  %v6590_v3 = vpop.f32.mrf.mxu0  ;;  %v4742_v57 = vld [vmem:[%s5585_s25 + $0x50] sm:$0x1]  ;;  %v3760_v0 = vsel %vm1045_vm3, %v6518_v45, %v3759_v58  ;;  %v6647_v23 = vrot.slane %v2908_v22, 2  ;;  %v3421_v50 = vpack.c.bf16 %v3317_v44, %v3315_v38  ;;  %v3764_v35 = vrot.slane %v2897_v2, 2 }
  0xeb   : > { %7424 = vst [vmem:[#allocation17_spill] sm:$0xff] %v6590_v3  ;;  %v6598_v43 = vpop.f32.mrf.mxu1  ;;  %v2910_v3 = vunpack.c.l.bf16 %v6409_v48  ;;  %v3753_v48 = vsel %vm1045_vm3, %v6501_v55, %v6507_v14  ;;  %v2913_v55 = vunpack.c.l.bf16 %v6420_v27  ;;  %v2914_v14 = vunpack.c.h.bf16 %v6420_v27  ;;  %v4748_v44 = vld [vmem:[%s5585_s25 + $0x68] sm:$0x1] }
  0xec   : > { %7425 = vst [vmem:[#allocation18_spill] sm:$0xff] %v6598_v43  ;;  %v6607_v59 = vpop.f32.mrf.mxu0  ;;  %5299 = vmatmul.mubr.msk.bf16.gmra.mxu0 %vm312_vm1, %v6556_v1  ;;  %v3322_v15 = vsel %vm606_vm2, %v6514_v11, %v3321_v18  ;;  %v4745_v1 = vld [vmem:[%s5585_s25 + $0x5c] sm:$0x1] }
  0xed   : > { %7426 = vst [vmem:[#allocation19_spill] sm:$0xff] %v6607_v59  ;;  %v6611_v6 = vpop.f32.mrf.mxu1  ;;  %5265 = vmatmul.mubr.msk.bf16.gmra.mxu1 %vm312_vm1, %v7428_v7  ;;  %5338 = vmatprep.mubr.msk.bf16.mxu0 %vm312_vm1, %v3858_v13  ;;  %v2900_v13 = vunpack.c.l.bf16 %v4742_v57  ;;  %v6649_v58 = vrot.slane %v2910_v3, 1  ;;  %v3859_v57 = vpack.c.bf16 %v3755_v29, %v3753_v48  ;;  %v3860_v7 = vpack.c.bf16 %v3760_v0, %v3758_v31 }
  0xee   : > { %7427 = vst [vmem:[#allocation20_spill] sm:$0xff] %v6611_v6  ;;  %v6626_v52 = vpop.f32.mrf.mxu0  ;;  %5304 = vmatprep.mubr.msk.bf16.mxu1 %vm312_vm1, %v3420_v60  ;;  %v6645_v60 = vrot.slane %v2908_v22, 1  ;;  %v6655_v6 = vrot.slane %v2911_v19, 1  ;;  %v6657_v11 = vrot.slane %v2910_v3, 2  ;;  %v3422_v22 = vpack.c.bf16 %v3322_v15, %v3320_v28 }
  0xef   : > { %7429 = vst [vmem:[#allocation21_spill] sm:$0xff] %v6626_v52  ;;  %v6638_v10 = vpop.f32.mrf.mxu1  ;;  %v3769_v43 = vrot.slane %v2900_v13, 2  ;;  %v6662_v52 = vrot.slane %v2911_v19, 2  ;;  %v6666_v48 = vrot.slane %v2914_v14, 1  ;;  %v3331_v38 = vrot.slane %v2900_v13, 1 }
  0xf0   : > { %7430 = vst [vmem:[#allocation22_spill] sm:$0xff] %v6638_v10  ;;  %v6651_v45 = vpop.f32.mrf.mxu0  ;;  %v3326_v10 = vrot.slane %v2897_v2, 1  ;;  %v6671_v2 = vrot.slane %v2913_v55, 2  ;;  %v6673_v31 = vrot.slane %v2914_v14, 2  ;;  %v2916_v3 = vunpack.c.l.bf16 %v6427_v16 }
  0xf1   : > { %7431 = vst [vmem:[#allocation23_spill] sm:$0xff] %v6651_v45  ;;  %v6653_v27 = vpop.f32.mrf.mxu1  ;;  %v6664_v45 = vrot.slane %v2913_v55, 1  ;;  %v3325_v19 = vsel %vm606_vm2, %v6523_v9, %v6531_v56  ;;  %v3763_v55 = vsel %vm1045_vm3, %v6525_v20, %v6533_v46  ;;  %v3765_v14 = vsel %vm1045_vm3, %v6533_v46, %v3764_v35 }
  0xf2   : > { %7432 = vst [vmem:[#allocation24_spill] sm:$0xff] %v6653_v27  ;;  %v6659_v18 = vpop.f32.mrf.mxu0  ;;  %v3327_v13 = vsel %vm606_vm2, %v6531_v56, %v3326_v10  ;;  %v2903_v15 = vunpack.c.l.bf16 %v4745_v1  ;;  %v3768_v9 = vsel %vm1045_vm3, %v6544_v41, %v6567_v39  ;;  %v3770_v56 = vsel %vm1045_vm3, %v6567_v39, %v3769_v43 }
  0xf3   : > { %7433 = vst [vmem:[#allocation25_spill] sm:$0xff] %v6659_v18  ;;  %v6668_v29 = vpop.f32.mrf.mxu1  ;;  %v2906_v10 = vunpack.c.l.bf16 %v4748_v44  ;;  %v2919_v20 = vunpack.c.l.bf16 %v6444_v40  ;;  %v3332_v46 = vsel %vm606_vm2, %v6542_v36, %v3331_v38  ;;  %v6703_v1 = vrot.slane %v2916_v3, 1 }
  0xf4   : > { %7434 = vst [vmem:[#allocation26_spill] sm:$0xff] %v6668_v29  ;;  %v5136_v0 = vpop.f32.mrf.mxu0  ;;  %5339 = vmatmul.mubr.msk.bf16.vlgmr.msra.gmra.mxu0 %vm312_vm1, %v3859_v57  ;;  %v3861_v35 = vpack.c.bf16 %v3765_v14, %v3763_v55  ;;  %v3862_v44 = vpack.c.bf16 %v3770_v56, %v3768_v9  ;;  %v3774_v27 = vrot.slane %v2903_v15, 2 }
  0xf5   : > { %v5102_v28 = vpop.f32.mrf.mxu1  ;;  %5305 = vmatmul.mubr.msk.bf16.vlgmr.msra.gmra.mxu1 %vm312_vm1, %v3421_v50  ;;  %5342 = vmatprep.mubr.msk.bf16.mxu0 %vm312_vm1, %v3860_v7  ;;  %v2917_v50 = vunpack.c.h.bf16 %v6427_v16  ;;  %7435 = vst [vmem:[#allocation27_spill] sm:$0xff] %v6703_v1  ;;  %v3779_v59 = vrot.slane %v2906_v10, 2  ;;  %v4751_v1 = vld [vmem:[%s5585_s25 + $0x74] sm:$0x1]  ;;  %v3341_v14 = vrot.slane %v2906_v10, 1  ;;  %v3778_v10 = vsel %vm1045_vm3, %v6593_v24, %v6595_v4 }
  0xf6   : > { %v983_v57 = vadd.f32 %v5102_v28, %v6429_v32  ;;  %v1261_v29 = vpop.f32.mrf.mxu0  ;;  %5308 = vmatprep.mubr.msk.bf16.mxu1 %vm312_vm1, %v3422_v22  ;;  %v3330_v32 = vsel %vm606_vm2, %v6535_v17, %v6542_v36  ;;  %v3423_v22 = vpack.c.bf16 %v3327_v13, %v3325_v19  ;;  %v3336_v28 = vrot.slane %v2903_v15, 1  ;;  %v4754_v19 = vld [vmem:[%s5585_s25 + $0x80] sm:$0x1] }
  0xf7   : > { %v822_v7 = vpop.f32.mrf.mxu1  ;;  %v3424_v38 = vpack.c.bf16 %v3332_v46, %v3330_v32  ;;  %v3780_v32 = vsel %vm1045_vm3, %v6595_v4, %v3779_v59  ;;  %v2912_v46 = vunpack.c.l.bf16 %v4754_v19  ;;  %v3340_v24 = vsel %vm606_vm2, %v6584_v53, %v6588_v5 }
  0xf8   : > { %v6705_v41 = vadd.f32 %v5136_v0, %v983_v57  ;;  %v981_v43 = vadd.f32 %v822_v7, %v6439_v51  ;;  %v5137_v39 = vpop.f32.mrf.mxu0  ;;  %v6712_v0 = vrot.slane %v2917_v50, 1  ;;  %v6714_v57 = vrot.slane %v2916_v3, 2 }
  0xf9   : > { %v5103_v16 = vpop.f32.mrf.mxu1  ;;  %v6716_v51 = vrot.slane %v2917_v50, 2  ;;  %v3773_v3 = vsel %vm1045_vm3, %v6577_v30, %v6582_v54  ;;  %v3337_v56 = vsel %vm606_vm2, %v6575_v62, %v3336_v28  ;;  %v3351_v19 = vrot.slane %v2912_v46, 1 }
  0xfa   : > { %v6708_v18 = vadd.f32 %v1261_v29, %v981_v43  ;;  %v984_v17 = vadd.f32 %v5103_v16, %v6455_v33  ;;  %v1264_v36 = vpop.f32.mrf.mxu0  ;;  %v3335_v33 = vsel %vm606_vm2, %v6569_v37, %v6575_v62  ;;  %v2909_v37 = vunpack.c.l.bf16 %v4751_v1 }
  0xfb   : > { %v825_v55 = vpop.f32.mrf.mxu1  ;;  %v2920_v62 = vunpack.c.h.bf16 %v6444_v40  ;;  %v6745_v43 = vrot.slane %v2919_v20, 1  ;;  %v3864_v16 = vpack.c.bf16 %v3780_v32, %v3778_v10  ;;  %v3788_v10 = vsel %vm1045_vm3, %v6657_v11, %v6662_v52 }
  0xfc   : > { %v6719_v13 = vadd.f32 %v5137_v39, %v984_v17  ;;  %v982_v29 = vadd.f32 %v825_v55, %v6460_v42  ;;  %v5140_v15 = vpop.f32.mrf.mxu0  ;;  %5343 = vmatmul.mubr.msk.bf16.gmra.mxu0 %vm312_vm1, %v3861_v35  ;;  %v3775_v42 = vsel %vm1045_vm3, %v6582_v54, %v3774_v27  ;;  %v3342_v27 = vsel %vm606_vm2, %v6588_v5, %v3341_v14 }
  0xfd   : > { %v5106_v9 = vpop.f32.mrf.mxu1  ;;  %5309 = vmatmul.mubr.msk.bf16.gmra.mxu1 %vm312_vm1, %v3423_v22  ;;  %5346 = vmatprep.mubr.msk.bf16.mxu0 %vm312_vm1, %v3862_v44  ;;  %v3863_v39 = vpack.c.bf16 %v3775_v42, %v3773_v3  ;;  %v3425_v35 = vpack.c.bf16 %v3337_v56, %v3335_v33  ;;  %v3346_v22 = vrot.slane %v2909_v37, 1  ;;  %v3784_v44 = vrot.slane %v2909_v37, 2 }
  0xfe   : > { %v6738_v50 = vadd.f32 %v1264_v36, %v982_v29  ;;  %v987_v30 = vadd.f32 %v5106_v9, %v6468_v12  ;;  %v1277_v7 = vpop.f32.mrf.mxu0  ;;  %5312 = vmatprep.mubr.msk.bf16.mxu1 %vm312_vm1, %v3424_v38  ;;  %v6752_v12 = vrot.slane %v2919_v20, 2  ;;  %v3426_v17 = vpack.c.bf16 %v3342_v27, %v3340_v24  ;;  %v4757_v36 = vld [vmem:[%s5585_s25 + $0x8c] sm:$0x1]  ;;  %v4760_v29 = vld [vmem:[%s5585_s25 + $0x98] sm:$0x1] }
  0xff   : > { %v838_v54 = vpop.f32.mrf.mxu1  ;;  %v3789_v20 = vrot.slane %v2912_v46, 2  ;;  %v6761_v38 = vrot.slane %v2920_v62, 1  ;;  %v6763_v55 = vrot.slane %v2920_v62, 2  ;;  %v3783_v9 = vsel %vm1045_vm3, %v6603_v26, %v6647_v23 }
 0x100   : > { %v6754_v1 = vadd.f32 %v5140_v15, %v987_v30  ;;  %v985_v4 = vadd.f32 %v838_v54, %v6485_v25  ;;  %v5141_v59 = vpop.f32.mrf.mxu0  ;;  %v2922_v25 = vunpack.c.l.bf16 %v6451_v47  ;;  %v3347_v42 = vsel %vm606_vm2, %v6645_v60, %v3346_v22 }
 0x101   : > { %v5107_v40 = vpop.f32.mrf.mxu1  ;;  %v2918_v32 = vunpack.c.l.bf16 %v4760_v29  ;;  %v3350_v11 = vsel %vm606_vm2, %v6649_v58, %v6655_v6  ;;  %v3352_v62 = vsel %vm606_vm2, %v6655_v6, %v3351_v19  ;;  %v7436_v58 = vld [vmem:[#allocation15_spill] sm:$0xff]  ;;  %v7437_v29 = vld [vmem:[#allocation17_spill] sm:$0xff] }
 0x102   : > { %v6757_v28 = vadd.f32 %v1277_v7, %v985_v4  ;;  %v988_v53 = vadd.f32 %v5107_v40, %v6505_v61  ;;  %v1280_v5 = vpop.f32.mrf.mxu0  ;;  %v3345_v61 = vsel %vm606_vm2, %v6601_v8, %v6645_v60  ;;  %v2915_v8 = vunpack.c.l.bf16 %v4757_v36 }
 0x103   : > { %v841_v14 = vpop.f32.mrf.mxu1  ;;  %v3790_v7 = vsel %vm1045_vm3, %v6662_v52, %v3789_v20  ;;  %v2923_v60 = vunpack.c.h.bf16 %v6451_v47  ;;  %v3427_v4 = vpack.c.bf16 %v3347_v42, %v3345_v61  ;;  %v3428_v22 = vpack.c.bf16 %v3352_v62, %v3350_v11 }
 0x104   : > { %v6767_v15 = vadd.f32 %v5141_v59, %v988_v53  ;;  %v986_v33 = vadd.f32 %v841_v14, %v6520_v49  ;;  %v5144_v3 = vpop.f32.mrf.mxu0  ;;  %5347 = vmatmul.mubr.msk.bf16.gmra.mxu0 %vm312_vm1, %v3863_v39  ;;  %v3785_v49 = vsel %vm1045_vm3, %v6647_v23, %v3784_v44  ;;  %v2925_v23 = vunpack.c.l.bf16 %v6482_v63  ;;  %v4763_v53 = vld [vmem:[%s5585_s25 + $0xa4] sm:$0x1]  ;;  %v4766_v14 = vld [vmem:[%s5585_s25 + $0xb0] sm:$0x1] }
 0x105   : > { %v5110_v56 = vpop.f32.mrf.mxu1  ;;  %5313 = vmatmul.mubr.msk.bf16.gmra.mxu1 %vm312_vm1, %v3425_v35  ;;  %5350 = vmatprep.mubr.msk.bf16.mxu0 %vm312_vm1, %v3864_v16  ;;  %v3865_v27 = vpack.c.bf16 %v3785_v49, %v3783_v9  ;;  %v3866_v59 = vpack.c.bf16 %v3790_v7, %v3788_v10  ;;  %v3356_v39 = vrot.slane %v2915_v8, 1  ;;  %v3794_v40 = vrot.slane %v2915_v8, 2  ;;  %v7438_v8 = vld [vmem:[#allocation19_spill] sm:$0xff] }
 0x106   : > { %v6786_v37 = vadd.f32 %v1280_v5, %v986_v33  ;;  %v991_v26 = vadd.f32 %v5110_v56, %v6538_v21  ;;  %v1293_v30 = vpop.f32.mrf.mxu0  ;;  %5316 = vmatprep.mubr.msk.bf16.mxu1 %vm312_vm1, %v3426_v17  ;;  %v2926_v21 = vunpack.c.h.bf16 %v6482_v63  ;;  %v3799_v44 = vrot.slane %v2918_v32, 2 }
 0x107   : > { %v854_v46 = vpop.f32.mrf.mxu1  ;;  %v6807_v5 = vrot.slane %v2922_v25, 1  ;;  %v6809_v17 = vrot.slane %v2923_v60, 1  ;;  %v3361_v36 = vrot.slane %v2918_v32, 1  ;;  %v3355_v61 = vsel %vm606_vm2, %v6664_v45, %v6666_v48 }
 0x108   : > { %v6800_v54 = vadd.f32 %v5144_v3, %v991_v26  ;;  %v989_v52 = vadd.f32 %v854_v46, %v6559_v34  ;;  %v5145_v24 = vpop.f32.mrf.mxu0  ;;  %v3806_v34 = vrot.slane %v2922_v25, 2  ;;  %v3793_v9 = vsel %vm1045_vm3, %v6671_v2, %v6673_v31 }
 0x109   : > { %v5111_v47 = vpop.f32.mrf.mxu1  ;;  %v3357_v25 = vsel %vm606_vm2, %v6666_v48, %v3356_v39  ;;  %v3795_v42 = vsel %vm1045_vm3, %v6673_v31, %v3794_v40  ;;  %v3798_v49 = vsel %vm1045_vm3, %v6714_v57, %v6716_v51  ;;  %v2921_v45 = vunpack.c.l.bf16 %v4763_v53  ;;  %v7439_v57 = vld [vmem:[#allocation27_spill] sm:$0xff]  ;;  %v4769_v53 = vld [vmem:[%s5585_s25 + $0xbc] sm:$0x1] }
 0x10a   : > { %v6803_v35 = vadd.f32 %v1293_v30, %v989_v52  ;;  %v992_v16 = vadd.f32 %v5111_v47, %v7436_v58  ;;  %v1296_v6 = vpop.f32.mrf.mxu0  ;;  %v3800_v30 = vsel %vm1045_vm3, %v6716_v51, %v3799_v44  ;;  %v2924_v7 = vunpack.c.l.bf16 %v4766_v14 }
 0x10b   : > { %v857_v20 = vpop.f32.mrf.mxu1  ;;  %v3807_v48 = vrot.slane %v2923_v60, 2  ;;  %v6839_v31 = vrot.slane %v2925_v23, 1  ;;  %v3360_v46 = vsel %vm606_vm2, %v7439_v57, %v6712_v0  ;;  %v3362_v11 = vsel %vm606_vm2, %v6712_v0, %v3361_v36  ;;  %v7440_v60 = vld [vmem:[#allocation21_spill] sm:$0xff]  ;;  %v7441_v0 = vld [vmem:[#allocation23_spill] sm:$0xff]  ;;  %v7442_v36 = vld [vmem:[#allocation8_spill] sm:$0xff] }
 0x10c   : > { %v6812_v19 = vadd.f32 %v5145_v24, %v992_v16  ;;  %v990_v33 = vadd.f32 %v857_v20, %v7437_v29  ;;  %v5148_v3 = vpop.f32.mrf.mxu0  ;;  %5351 = vmatmul.mubr.msk.bf16.gmra.mxu0 %vm312_vm1, %v3865_v27  ;;  %v6848_v62 = vrot.slane %v2926_v21, 1  ;;  %v3867_v27 = vpack.c.bf16 %v3795_v42, %v3793_v9 }
 0x10d   : > { %v5114_v56 = vpop.f32.mrf.mxu1  ;;  %5317 = vmatmul.mubr.msk.bf16.gmra.mxu1 %vm312_vm1, %v3427_v4  ;;  %5354 = vmatprep.mubr.msk.bf16.mxu0 %vm312_vm1, %v3866_v59  ;;  %v3429_v4 = vpack.c.bf16 %v3357_v25, %v3355_v61  ;;  %v3868_v59 = vpack.c.bf16 %v3800_v30, %v3798_v49  ;;  %v3366_v39 = vrot.slane %v2921_v45, 1  ;;  %v3804_v40 = vrot.slane %v2921_v45, 2  ;;  %v4772_v61 = vld [vmem:[%s5585_s25 + $0xc8] sm:$0x1] }
 0x10e   : > { %v6831_v10 = vadd.f32 %v1296_v6, %v990_v33  ;;  %v995_v2 = vadd.f32 %v5114_v56, %v7438_v8  ;;  %v1309_v26 = vpop.f32.mrf.mxu0  ;;  %5320 = vmatprep.mubr.msk.bf16.mxu1 %vm312_vm1, %v3428_v22  ;;  %v3430_v22 = vpack.c.bf16 %v3362_v11, %v3360_v46  ;;  %v3809_v44 = vrot.slane %v2924_v7, 2  ;;  %v7443_v56 = vld [vmem:[#allocation25_spill] sm:$0xff] }
 0x10f   : > { %v870_v32 = vpop.f32.mrf.mxu1  ;;  %v3811_v20 = vrot.slane %v2925_v23, 2  ;;  %v2928_v14 = vunpack.c.l.bf16 %v7442_v36  ;;  %v2929_v29 = vunpack.c.h.bf16 %v7442_v36  ;;  %v3365_v49 = vsel %vm606_vm2, %v6745_v43, %v6761_v38  ;;  %v7444_v43 = vld [vmem:[#allocation3_spill] sm:$0xff] }
 0x110   : > { %v6850_v51 = vadd.f32 %v5148_v3, %v995_v2  ;;  %v993_v52 = vadd.f32 %v870_v32, %v7440_v60  ;;  %v5149_v24 = vpop.f32.mrf.mxu0  ;;  %v3371_v3 = vrot.slane %v2924_v7, 1  ;;  %v3803_v23 = vsel %vm1045_vm3, %v6752_v12, %v6763_v55 }
 0x111   : > { %v5115_v47 = vpop.f32.mrf.mxu1  ;;  %v3367_v8 = vsel %vm606_vm2, %v6761_v38, %v3366_v39  ;;  %v3805_v2 = vsel %vm1045_vm3, %v6763_v55, %v3804_v40  ;;  %v2927_v30 = vunpack.c.l.bf16 %v4769_v53  ;;  %v3810_v12 = vsel %vm1045_vm3, %v3807_v48, %v3809_v44  ;;  %v4775_v44 = vld [vmem:[%s5585_s25 + $0xd4] sm:$0x1] }
 0x112   : > { %v6853_v58 = vadd.f32 %v1309_v26, %v993_v52  ;;  %v996_v16 = vadd.f32 %v5115_v47, %v7441_v0  ;;  %v1312_v6 = vpop.f32.mrf.mxu0  ;;  %v3808_v26 = vsel %vm1045_vm3, %v3806_v34, %v3807_v48  ;;  %v2930_v46 = vunpack.c.l.bf16 %v4772_v61 }
 0x113   : > { %v873_v33 = vpop.f32.mrf.mxu1  ;;  %v3812_v11 = vrot.slane %v2926_v21, 2  ;;  %v3816_v38 = vrot.slane %v2928_v14, 2  ;;  %v3370_v55 = vsel %vm606_vm2, %v6807_v5, %v6809_v17  ;;  %v3372_v34 = vsel %vm606_vm2, %v6809_v17, %v3371_v3 }
 0x114   : > { %v6862_v9 = vadd.f32 %v5149_v24, %v996_v16  ;;  %v994_v25 = vadd.f32 %v873_v33, %v7443_v56  ;;  %v5152_v42 = vpop.f32.mrf.mxu0  ;;  %5355 = vmatmul.mubr.msk.bf16.gmra.mxu0 %vm312_vm1, %v3867_v27  ;;  %v3817_v52 = vrot.slane %v2929_v29, 2  ;;  %v7445_v27 = vld [vmem:[#allocation4_spill] sm:$0xff]  ;;  %v3431_v63 = vpack.c.bf16 %v3367_v8, %v3365_v49  ;;  %v7446_v16 = vld [vmem:[#allocation5_spill] sm:$0xff]  ;;  %v7448_v49 = vld [vmem:[#allocation6_spill] sm:$0xff] }
 0x115   : > { %v5118_v45 = vpop.f32.mrf.mxu1  ;;  %5321 = vmatmul.mubr.msk.bf16.gmra.mxu1 %vm312_vm1, %v3429_v4  ;;  %5358 = vmatprep.mubr.msk.bf16.mxu0 %vm312_vm1, %v3868_v59  ;;  %v3869_v4 = vpack.c.bf16 %v3805_v2, %v3803_v23  ;;  %v3870_v21 = vpack.c.bf16 %v3810_v12, %v3808_v26  ;;  %v3376_v39 = vrot.slane %v2927_v30, 1  ;;  %v3814_v40 = vrot.slane %v2927_v30, 2  ;;  %v7447_v33 = vld [vmem:[#allocation13_spill] sm:$0xff] }
 0x116   : > { %v6879_v7 = vadd.f32 %v1312_v6, %v994_v25  ;;  %v999_v32 = vadd.f32 %v5118_v45, %v7444_v43  ;;  %v1325_v57 = vpop.f32.mrf.mxu0  ;;  %5324 = vmatprep.mubr.msk.bf16.mxu1 %vm312_vm1, %v3430_v22  ;;  %v3432_v22 = vpack.c.bf16 %v3372_v34, %v3370_v55  ;;  %v3819_v17 = vrot.slane %v2930_v46, 2 }
 0x117   : > { %v886_v60 = vpop.f32.mrf.mxu1  ;;  %v3378_v53 = vrot.slane %v2928_v14, 1  ;;  %v3379_v36 = vrot.slane %v2929_v29, 1  ;;  %v2931_v3 = vunpack.c.l.bf16 %v7447_v33  ;;  %v3381_v56 = vrot.slane %v2930_v46, 1 }
 0x118   : > { %v6891_v24 = vadd.f32 %v5152_v42, %v999_v32  ;;  %v997_v47 = vadd.f32 %v886_v60, %v7445_v27  ;;  %v5153_v48 = vpop.f32.mrf.mxu0  ;;  %v2932_v25 = vunpack.c.h.bf16 %v7447_v33  ;;  %v3375_v8 = vsel %vm606_vm2, %v6839_v31, %v6848_v62  ;;  %v7449_v32 = vld [vmem:[#allocation7_spill] sm:$0xff] }
 0x119   : > { %v5119_v59 = vpop.f32.mrf.mxu1  ;;  %v3377_v14 = vsel %vm606_vm2, %v6848_v62, %v3376_v39  ;;  %v3813_v29 = vsel %vm1045_vm3, %v3811_v20, %v3812_v11  ;;  %v3815_v26 = vsel %vm1045_vm3, %v3812_v11, %v3814_v40  ;;  %v2933_v30 = vunpack.c.l.bf16 %v4775_v44 }
 0x11a   : > { %v6894_v0 = vadd.f32 %v1325_v57, %v997_v47  ;;  %v1000_v5 = vadd.f32 %v5119_v59, %v7446_v16  ;;  %v1328_v6 = vpop.f32.mrf.mxu0  ;;  %v3818_v31 = vsel %vm1045_vm3, %v3816_v38, %v3817_v52  ;;  %v3820_v46 = vsel %vm1045_vm3, %v3817_v52, %v3819_v17  ;;  %v7450_v47 = vld [vmem:[#allocation9_spill] sm:$0xff]  ;;  %v7451_v16 = vld [vmem:[#allocation10_spill] sm:$0xff] }
 0x11b   : > { %v889_v61 = vpop.f32.mrf.mxu1  ;;  %v3383_v60 = vrot.slane %v2931_v3, 1  ;;  %v3821_v55 = vrot.slane %v2931_v3, 2  ;;  %v3380_v62 = vsel %vm606_vm2, %v3378_v53, %v3379_v36  ;;  %v3382_v20 = vsel %vm606_vm2, %v3379_v36, %v3381_v56  ;;  %v7452_v36 = vld [vmem:[#allocation11_spill] sm:$0xff] }
 0x11c   : > { %v6900_v42 = vadd.f32 %v5153_v48, %v1000_v5  ;;  %v998_v23 = vadd.f32 %v889_v61, %v7448_v49  ;;  %v5156_v45 = vpop.f32.mrf.mxu0  ;;  %5359 = vmatmul.mubr.msk.bf16.gmra.mxu0 %vm312_vm1, %v3869_v4  ;;  %v3384_v11 = vrot.slane %v2932_v25, 1  ;;  %v3871_v59 = vpack.c.bf16 %v3815_v26, %v3813_v29 }
 0x11d   : > { %v5122_v2 = vpop.f32.mrf.mxu1  ;;  %5325 = vmatmul.mubr.msk.bf16.gmra.mxu1 %vm312_vm1, %v3431_v63  ;;  %5362 = vmatprep.mubr.msk.bf16.mxu0 %vm312_vm1, %v3870_v21  ;;  %v3822_v63 = vrot.slane %v2932_v25, 2  ;;  %v3433_v39 = vpack.c.bf16 %v3377_v14, %v3375_v8  ;;  %v3872_v38 = vpack.c.bf16 %v3820_v46, %v3818_v31  ;;  %v3824_v40 = vrot.slane %v2933_v30, 2 }
 0x11e   : > { %v6913_v43 = vadd.f32 %v1328_v6, %v998_v23  ;;  %v1003_v57 = vadd.f32 %v5122_v2, %v7449_v32  ;;  %v1341_v12 = vpop.f32.mrf.mxu0  ;;  %5328 = vmatprep.mubr.msk.bf16.mxu1 %vm312_vm1, %v3432_v22  ;;  %v3434_v22 = vpack.c.bf16 %v3382_v20, %v3380_v62  ;;  %v3386_v17 = vrot.slane %v2933_v30, 1  ;;  %v7453_v23 = vld [vmem:[#allocation12_spill] sm:$0xff]  ;;  %v7454_v30 = vld [vmem:[#allocation14_spill] sm:$0xff] }
 0x11f   : > { %v902_v34 = vpop.f32.mrf.mxu1  ;;  %v3823_v56 = vsel %vm1045_vm3, %v3821_v55, %v3822_v63  ;;  %v3825_v25 = vsel %vm1045_vm3, %v3822_v63, %v3824_v40  ;;  %v3385_v2 = vsel %vm606_vm2, %v3383_v60, %v3384_v11  ;;  %v7456_v60 = vld [vmem:[#allocation18_spill] sm:$0xff] }
 0x120   : > { %v6921_v27 = vadd.f32 %v5156_v45, %v1003_v57  ;;  %v1001_v48 = vadd.f32 %v902_v34, %v7450_v47  ;;  %v5157_v4 = vpop.f32.mrf.mxu0  ;;  %v3387_v14 = vsel %vm606_vm2, %v3384_v11, %v3386_v17  ;;  %v7455_v34 = vld [vmem:[#allocation16_spill] sm:$0xff] }
 0x121   : > { %v5123_v21 = vpop.f32.mrf.mxu1  ;;  %v3435_v46 = vpack.c.bf16 %v3387_v14, %v3385_v2 }
 0x122   : > { %v6924_v52 = vadd.f32 %v1341_v12, %v1001_v48  ;;  %v1004_v5 = vadd.f32 %v5123_v21, %v7451_v16  ;;  %v1344_v6 = vpop.f32.mrf.mxu0  ;;  %v3873_v12 = vpack.c.bf16 %v3825_v25, %v3823_v56  ;;  %v7457_v21 = vld [vmem:[#allocation20_spill] sm:$0xff]  ;;  %v7460_v25 = vld [vmem:[#allocation26_spill] sm:$0xff] }
 0x123   : > { %v905_v44 = vpop.f32.mrf.mxu1 }
 0x124   : > { %v6927_v53 = vadd.f32 %v5157_v4, %v1004_v5  ;;  %v1002_v33 = vadd.f32 %v905_v44, %v7452_v36  ;;  %v5160_v3 = vpop.f32.mrf.mxu0  ;;  %5363 = vmatmul.mubr.msk.bf16.gmra.mxu0 %vm312_vm1, %v3871_v59  ;;  %v7458_v5 = vld [vmem:[#allocation22_spill] sm:$0xff]  ;;  %v7459_v36 = vld [vmem:[#allocation24_spill] sm:$0xff] }
 0x125   : > { %v5126_v61 = vpop.f32.mrf.mxu1  ;;  %5329 = vmatmul.mubr.msk.bf16.gmra.mxu1 %vm312_vm1, %v3433_v39  ;;  %5366 = vmatprep.mubr.msk.bf16.mxu0 %vm312_vm1, %v3872_v38 }
 0x126   : > { %v6935_v49 = vadd.f32 %v1344_v6, %v1002_v33  ;;  %v1007_v45 = vadd.f32 %v5126_v61, %v7453_v23  ;;  %v1357_v8 = vpop.f32.mrf.mxu0  ;;  %5332 = vmatprep.mubr.msk.bf16.mxu1 %vm312_vm1, %v3434_v22 }
 0x127   : > { %v918_v29 = vpop.f32.mrf.mxu1 }
 0x128   : > { %v6941_v26 = vadd.f32 %v5160_v3, %v1007_v45  ;;  %v1005_v32 = vadd.f32 %v918_v29, %v7454_v30  ;;  %v5161_v57 = vpop.f32.mrf.mxu0 }
 0x129   : > { %v5127_v31 = vpop.f32.mrf.mxu1 }
 0x12a   : > { %v6944_v55 = vadd.f32 %v1357_v8, %v1005_v32  ;;  %v1008_v62 = vadd.f32 %v5127_v31, %v7455_v34  ;;  %v1360_v20 = vpop.f32.mrf.mxu0 }
 0x12b   : > { %v921_v47 = vpop.f32.mrf.mxu1 }
 0x12c   : > { %v6947_v48 = vadd.f32 %v5161_v57, %v1008_v62  ;;  %v1006_v4 = vadd.f32 %v921_v47, %v7456_v60  ;;  %v5164_v11 = vpop.f32.mrf.mxu0  ;;  %5367 = vmatmul.mubr.msk.bf16.gmra.mxu0 %vm312_vm1, %v3873_v12 }
 0x12d   : > { %v5130_v59 = vpop.f32.mrf.mxu1  ;;  %5333 = vmatmul.mubr.msk.bf16.gmra.mxu1 %vm312_vm1, %v3435_v46 }
 0x12e   : > { %v6952_v63 = vadd.f32 %v1360_v20, %v1006_v4  ;;  %v1011_v39 = vadd.f32 %v5130_v59, %v7457_v21  ;;  %v1373_v38 = vpop.f32.mrf.mxu0 }
 0x12f   : > { %v934_v40 = vpop.f32.mrf.mxu1 }
 0x130   : > { %v6955_v16 = vadd.f32 %v5164_v11, %v1011_v39  ;;  %v1009_v6 = vadd.f32 %v934_v40, %v7458_v5  ;;  %v5165_v22 = vpop.f32.mrf.mxu0 }
 0x131   : > { %v5131_v17 = vpop.f32.mrf.mxu1 }
 0x132   : > { %v6958_v44 = vadd.f32 %v1373_v38, %v1009_v6  ;;  %v1012_v33 = vadd.f32 %v5131_v17, %v7459_v36  ;;  %v1376_v3 = vpop.f32.mrf.mxu0 }
 0x133   : > { %v937_v61 = vpop.f32.mrf.mxu1 }
 0x134   : > { %v6961_v56 = vadd.f32 %v5165_v22, %v1012_v33  ;;  %v1010_v23 = vadd.f32 %v937_v61, %v7460_v25  ;;  %v5204_v45 = vpop.f32.mrf.mxu0 }
 0x135   : > { %v5170_v8 = vpop.f32.mrf.mxu1 }
 0x136   : > { %v6964_v2 = vadd.f32 %v1376_v3, %v1010_v23  ;;  %v1848_v14 = vadd.f32 %v5170_v8, %v6705_v41  ;;  %v2173_v29 = vpop.f32.mrf.mxu0 }
 0x137   : > { %v1687_v30 = vpop.f32.mrf.mxu1 }
 0x138   : > { %v6967_v32 = vadd.f32 %v5204_v45, %v1848_v14  ;;  %v1846_v57 = vadd.f32 %v1687_v30, %v6708_v18  ;;  %v5205_v12 = vpop.f32.mrf.mxu0 }
 0x139   : > { %v5171_v31 = vpop.f32.mrf.mxu1 }
 0x13a   : > { %v6970_v46 = vadd.f32 %v2173_v29, %v1846_v57  ;;  %v1849_v34 = vadd.f32 %v5171_v31, %v6719_v13  ;;  %v2176_v62 = vpop.f32.mrf.mxu0 }
 0x13b   : > { %v1690_v20 = vpop.f32.mrf.mxu1 }
 0x13c   : > { %v6973_v47 = vadd.f32 %v5205_v12, %v1849_v34  ;;  %v1847_v60 = vadd.f32 %v1690_v20, %v6738_v50  ;;  %v5208_v4 = vpop.f32.mrf.mxu0 }
 0x13d   : > { %v5174_v41 = vpop.f32.mrf.mxu1 }
 0x13e   : > { %v6976_v11 = vadd.f32 %v2176_v62, %v1847_v60  ;;  %v1852_v59 = vadd.f32 %v5174_v41, %v6754_v1  ;;  %v2189_v21 = vpop.f32.mrf.mxu0 }
 0x13f   : > { %v1703_v18 = vpop.f32.mrf.mxu1 }
 0x140   : > { %v6979_v39 = vadd.f32 %v5208_v4, %v1852_v59  ;;  %v1850_v38 = vadd.f32 %v1703_v18, %v6757_v28  ;;  %v5209_v40 = vpop.f32.mrf.mxu0 }
 0x141   : > { %v5175_v13 = vpop.f32.mrf.mxu1 }
 0x142   : > { %v6982_v5 = vadd.f32 %v2189_v21, %v1850_v38  ;;  %v1853_v6 = vadd.f32 %v5175_v13, %v6767_v15  ;;  %v2192_v22 = vpop.f32.mrf.mxu0 }
 0x143   : > { %v1706_v50 = vpop.f32.mrf.mxu1 }
 0x144   : > { %v6985_v17 = vadd.f32 %v5209_v40, %v1853_v6  ;;  %v1851_v36 = vadd.f32 %v1706_v50, %v6786_v37  ;;  %v5212_v33 = vpop.f32.mrf.mxu0 }
 0x145   : > { %v5178_v1 = vpop.f32.mrf.mxu1 }
 0x146   : > { %v6988_v3 = vadd.f32 %v2192_v22, %v1851_v36  ;;  %v1856_v61 = vadd.f32 %v5178_v1, %v6800_v54  ;;  %v2205_v25 = vpop.f32.mrf.mxu0 }
 0x147   : > { %v1719_v28 = vpop.f32.mrf.mxu1 }
 0x148   : > { %v6991_v23 = vadd.f32 %v5212_v33, %v1856_v61  ;;  %v1854_v45 = vadd.f32 %v1719_v28, %v6803_v35  ;;  %v5213_v8 = vpop.f32.mrf.mxu0 }
 0x149   : > { %v5179_v15 = vpop.f32.mrf.mxu1 }
 0x14a   : > { %v6994_v14 = vadd.f32 %v2205_v25, %v1854_v45  ;;  %v1857_v29 = vadd.f32 %v5179_v15, %v6812_v19  ;;  %v2208_v30 = vpop.f32.mrf.mxu0 }
 0x14b   : > { %v1722_v37 = vpop.f32.mrf.mxu1 }
 0x14c   : > { %v6997_v57 = vadd.f32 %v5213_v8, %v1857_v29  ;;  %v1855_v12 = vadd.f32 %v1722_v37, %v6831_v10  ;;  %v5216_v31 = vpop.f32.mrf.mxu0 }
 0x14d   : > { %v5182_v54 = vpop.f32.mrf.mxu1 }
 0x14e   : > { %v7000_v34 = vadd.f32 %v2208_v30, %v1855_v12  ;;  %v1860_v62 = vadd.f32 %v5182_v54, %v6850_v51  ;;  %v2221_v20 = vpop.f32.mrf.mxu0 }
 0x14f   : > { %v1735_v35 = vpop.f32.mrf.mxu1 }
 0x150   : > { %v7003_v60 = vadd.f32 %v5216_v31, %v1860_v62  ;;  %v1858_v4 = vadd.f32 %v1735_v35, %v6853_v58  ;;  %v5217_v41 = vpop.f32.mrf.mxu0 }
 0x151   : > { %v5183_v19 = vpop.f32.mrf.mxu1 }
 0x152   : > { %v7006_v59 = vadd.f32 %v2221_v20, %v1858_v4  ;;  %v1861_v21 = vadd.f32 %v5183_v19, %v6862_v9  ;;  %v2224_v18 = vpop.f32.mrf.mxu0 }
 0x153   : > { %v1738_v10 = vpop.f32.mrf.mxu1 }
 0x154   : > { %v7009_v38 = vadd.f32 %v5217_v41, %v1861_v21  ;;  %v1859_v40 = vadd.f32 %v1738_v10, %v6879_v7  ;;  %v5220_v13 = vpop.f32.mrf.mxu0 }
 0x155   : > { %v5186_v51 = vpop.f32.mrf.mxu1 }
 0x156   : > { %v7012_v6 = vadd.f32 %v2224_v18, %v1859_v40  ;;  %v1864_v22 = vadd.f32 %v5186_v51, %v6891_v24  ;;  %v2237_v50 = vpop.f32.mrf.mxu0 }
 0x157   : > { %v1751_v58 = vpop.f32.mrf.mxu1 }
 0x158   : > { %v7015_v36 = vadd.f32 %v5220_v13, %v1864_v22  ;;  %v1862_v33 = vadd.f32 %v1751_v58, %v6894_v0  ;;  %v5221_v1 = vpop.f32.mrf.mxu0 }
 0x159   : > { %v5187_v9 = vpop.f32.mrf.mxu1 }
 0x15a   : > { %v7018_v61 = vadd.f32 %v2237_v50, %v1862_v33  ;;  %v1865_v25 = vadd.f32 %v5187_v9, %v6900_v42  ;;  %v2240_v28 = vpop.f32.mrf.mxu0 }
 0x15b   : > { %v1754_v7 = vpop.f32.mrf.mxu1 }
 0x15c   : > { %v7021_v45 = vadd.f32 %v5221_v1, %v1865_v25  ;;  %v1863_v8 = vadd.f32 %v1754_v7, %v6913_v43  ;;  %v5224_v15 = vpop.f32.mrf.mxu0 }
 0x15d   : > { %v5190_v24 = vpop.f32.mrf.mxu1 }
 0x15e   : > { %7461 = vst [vmem:[#allocation15_spill] sm:$0xff] %v7021_v45  ;;  %v7024_v29 = vadd.f32 %v2240_v28, %v1863_v8  ;;  %v1868_v30 = vadd.f32 %v5190_v24, %v6921_v27  ;;  %v2253_v37 = vpop.f32.mrf.mxu0 }
 0x15f   : > { %v1767_v0 = vpop.f32.mrf.mxu1 }
 0x160   : > { %7462 = vst [vmem:[#allocation17_spill] sm:$0xff] %v7024_v29  ;;  %v7027_v12 = vadd.f32 %v5224_v15, %v1868_v30  ;;  %v1866_v31 = vadd.f32 %v1767_v0, %v6924_v52  ;;  %v5225_v54 = vpop.f32.mrf.mxu0 }
 0x161   : > { %v5191_v42 = vpop.f32.mrf.mxu1 }
 0x162   : > { %7463 = vst [vmem:[#allocation19_spill] sm:$0xff] %v7027_v12  ;;  %v7030_v62 = vadd.f32 %v2253_v37, %v1866_v31  ;;  %v1869_v20 = vadd.f32 %v5191_v42, %v6927_v53  ;;  %v2256_v35 = vpop.f32.mrf.mxu0 }
 0x163   : > { %v1770_v43 = vpop.f32.mrf.mxu1 }
 0x164   : > { %7464 = vst [vmem:[#allocation27_spill] sm:$0xff] %v7030_v62  ;;  %v7033_v4 = vadd.f32 %v5225_v54, %v1869_v20  ;;  %v1867_v41 = vadd.f32 %v1770_v43, %v6935_v49  ;;  %v5228_v19 = vpop.f32.mrf.mxu0 }
 0x165   : > { %v5194_v27 = vpop.f32.mrf.mxu1 }
 0x166   : > { %7465 = vst [vmem:[#allocation21_spill] sm:$0xff] %v7033_v4  ;;  %v7036_v21 = vadd.f32 %v2256_v35, %v1867_v41  ;;  %v1872_v18 = vadd.f32 %v5194_v27, %v6941_v26  ;;  %v2269_v10 = vpop.f32.mrf.mxu0 }
 0x167   : > { %v1783_v52 = vpop.f32.mrf.mxu1 }
 0x168   : > { %7466 = vst [vmem:[#allocation23_spill] sm:$0xff] %v7036_v21  ;;  %v7039_v40 = vadd.f32 %v5228_v19, %v1872_v18  ;;  %v1870_v13 = vadd.f32 %v1783_v52, %v6944_v55  ;;  %v5229_v51 = vpop.f32.mrf.mxu0 }
 0x169   : > { %v5195_v53 = vpop.f32.mrf.mxu1 }
 0x16a   : > { %7467 = vst [vmem:[#allocation8_spill] sm:$0xff] %v7039_v40  ;;  %v7042_v22 = vadd.f32 %v2269_v10, %v1870_v13  ;;  %v1873_v50 = vadd.f32 %v5195_v53, %v6947_v48  ;;  %v2272_v58 = vpop.f32.mrf.mxu0 }
 0x16b   : > { %v1786_v49 = vpop.f32.mrf.mxu1 }
 0x16c   : > { %7468 = vst [vmem:[#allocation25_spill] sm:$0xff] %v7042_v22  ;;  %v7045_v33 = vadd.f32 %v5229_v51, %v1873_v50  ;;  %v1871_v1 = vadd.f32 %v1786_v49, %v6952_v63  ;;  %v5232_v9 = vpop.f32.mrf.mxu0 }
 0x16d   : > { %v5198_v26 = vpop.f32.mrf.mxu1 }
 0x16e   : > { %7469 = vst [vmem:[#allocation3_spill] sm:$0xff] %v7045_v33  ;;  %v7048_v25 = vadd.f32 %v2272_v58, %v1871_v1  ;;  %v1876_v28 = vadd.f32 %v5198_v26, %v6955_v16  ;;  %v2285_v7 = vpop.f32.mrf.mxu0 }
 0x16f   : > { %v1799_v55 = vpop.f32.mrf.mxu1 }
 0x170   : > { %7470 = vst [vmem:[#allocation4_spill] sm:$0xff] %v7048_v25  ;;  %v7051_v8 = vadd.f32 %v5232_v9, %v1876_v28  ;;  %v1874_v15 = vadd.f32 %v1799_v55, %v6958_v44  ;;  %v5233_v24 = vpop.f32.mrf.mxu0 }
 0x171   : > { %v5199_v48 = vpop.f32.mrf.mxu1 }
 0x172   : > { %7471 = vst [vmem:[#allocation5_spill] sm:$0xff] %v7051_v8  ;;  %v7054_v30 = vadd.f32 %v2285_v7, %v1874_v15  ;;  %v1877_v37 = vadd.f32 %v5199_v48, %v6961_v56  ;;  %v2288_v0 = vpop.f32.mrf.mxu0 }
 0x173   : > { %v1802_v63 = vpop.f32.mrf.mxu1 }
 0x174   : > { %7472 = vst [vmem:[#allocation13_spill] sm:$0xff] %v7054_v30  ;;  %v7057_v31 = vadd.f32 %v5233_v24, %v1877_v37  ;;  %v1875_v54 = vadd.f32 %v1802_v63, %v6964_v2  ;;  %v7060_v42 = vpop.f32.mrf.mxu0 }
 0x175   : > { %v5238_v16 = vpop.f32.mrf.mxu1 }
 0x176   : > { %7473 = vst [vmem:[#allocation6_spill] sm:$0xff] %v7057_v31  ;;  %v7062_v20 = vadd.f32 %v2288_v0, %v1875_v54  ;;  %v7064_v35 = vpop.f32.mrf.mxu0 }
 0x177   : > { %v2611_v44 = vpop.f32.mrf.mxu1 }
 0x178   : > { %7474 = vst [vmem:[#allocation7_spill] sm:$0xff] %v7062_v20  ;;  %v7066_v43 = vpop.f32.mrf.mxu0 }
 0x179   : > { %v5239_v41 = vpop.f32.mrf.mxu1 }
 0x17a   : > { %v7068_v19 = vpop.f32.mrf.mxu0 }
 0x17b   : > { %v7070_v56 = vpop.f32.mrf.mxu1 }
 0x17c   : > { %v7072_v27 = vpop.f32.mrf.mxu0 }
 0x17d   : > { %v7074_v18 = vpop.f32.mrf.mxu1 }
 0x17e   : > { %v7076_v2 = vpop.f32.mrf.mxu0 }
 0x17f   : > { %v7078_v10 = vpop.f32.mrf.mxu1 }
 0x180   : > { %v7080_v52 = vpop.f32.mrf.mxu0 }
 0x181   : > { %v7082_v13 = vpop.f32.mrf.mxu1 }
 0x182   : > { %v7084_v51 = vpop.f32.mrf.mxu0 }
 0x183   : > { %v7086_v53 = vpop.f32.mrf.mxu1 }
 0x184   : > { %v7088_v50 = vpop.f32.mrf.mxu0 }
 0x185   : > { %v7090_v58 = vpop.f32.mrf.mxu1 }
 0x186   : > { %v7092_v49 = vpop.f32.mrf.mxu0 }
 0x187   : > { %v7094_v1 = vpop.f32.mrf.mxu1 }
 0x188   : > { %v7096_v9 = vpop.f32.mrf.mxu0 }
 0x189   : > { %v7098_v26 = vpop.f32.mrf.mxu1 }
 0x18a   : > { %v7100_v28 = vpop.f32.mrf.mxu0 }
 0x18b   : > { %v7102_v7 = vpop.f32.mrf.mxu1 }
 0x18c   : > { %v7104_v55 = vpop.f32.mrf.mxu0 }
 0x18d   : > { %v7106_v15 = vpop.f32.mrf.mxu1 }
 0x18e   : > { %v7108_v24 = vpop.f32.mrf.mxu0 }
 0x18f   : > { %v7110_v48 = vpop.f32.mrf.mxu1 }
 0x190   : > { %v7112_v37 = vpop.f32.mrf.mxu0 }
 0x191   : > { %v7114_v0 = vpop.f32.mrf.mxu1 }
 0x192   : > { %v7116_v63 = vpop.f32.mrf.mxu0 }
 0x193   : > { %v7118_v54 = vpop.f32.mrf.mxu1 }
 0x194   : > { %v7120_v20 = vpop.f32.mrf.mxu0 }
 0x195   : > { %v7122_v31 = vpop.f32.mrf.mxu1 }
 0x196   : > { %v7124_v30 = vpop.f32.mrf.mxu0 }
 0x197   : > { %7475 = vst [vmem:[#allocation9_spill] sm:$0xff] %v7124_v30  ;;  %v7126_v8 = vpop.f32.mrf.mxu1 }
 0x198   : > { %v7128_v25 = vpop.f32.mrf.mxu0 }
 0x199   : > { %7476 = vst [vmem:[#allocation10_spill] sm:$0xff] %v7128_v25  ;;  %v7130_v33 = vpop.f32.mrf.mxu1 }
 0x19a   : > { %7477 = vst [vmem:[#allocation11_spill] sm:$0xff] %v7130_v33  ;;  %v7132_v22 = vpop.f32.mrf.mxu0 }
 0x19b   : > { %7478 = vst [vmem:[#allocation12_spill] sm:$0xff] %v7132_v22  ;;  %v7134_v40 = vpop.f32.mrf.mxu1 }
 0x19c   : > { %7479 = vst [vmem:[#allocation14_spill] sm:$0xff] %v7134_v40  ;;  %v7136_v21 = vpop.f32.mrf.mxu0 }
 0x19d   : > { %7480 = vst [vmem:[#allocation16_spill] sm:$0xff] %v7136_v21  ;;  %v7138_v4 = vpop.f32.mrf.mxu1 }
 0x19e   : > { %7481 = vst [vmem:[#allocation18_spill] sm:$0xff] %v7138_v4  ;;  %v7140_v62 = vpop.f32.mrf.mxu0 }
 0x19f   : > { %7482 = vst [vmem:[#allocation20_spill] sm:$0xff] %v7140_v62  ;;  %v7142_v12 = vpop.f32.mrf.mxu1 }
 0x1a0   : > { %7483 = vst [vmem:[#allocation22_spill] sm:$0xff] %v7142_v12  ;;  %v7144_v29 = vpop.f32.mrf.mxu0 }
 0x1a1   : > { %7484 = vst [vmem:[#allocation24_spill] sm:$0xff] %v7144_v29  ;;  %v7146_v30 = vpop.f32.mrf.mxu1 }
 0x1a2   : > { %7485 = vst [vmem:[#allocation26_spill] sm:$0xff] %v7146_v30  ;;  %v7148_v45 = vpop.f32.mrf.mxu0 }
 0x1a3   : > { %7486 = vst [vmem:[#allocation28_spill] sm:$0xff] %v7148_v45  ;;  %v7150_v25 = vpop.f32.mrf.mxu1 }
 0x1a4   : > { %7487 = vst [vmem:[#allocation29_spill] sm:$0xff] %v7150_v25  ;;  %v7152_v33 = vpop.f32.mrf.mxu0 }
 0x1a5   : > { %7488 = vst [vmem:[#allocation30_spill] sm:$0xff] %v7152_v33  ;;  %v7154_v22 = vpop.f32.mrf.mxu1 }
 0x1a6   : > { %7489 = vst [vmem:[#allocation31_spill] sm:$0xff] %v7154_v22  ;;  %v7156_v40 = vpop.f32.mrf.mxu0 }
 0x1a7   : > { %7490 = vst [vmem:[#allocation32_spill] sm:$0xff] %v7156_v40  ;;  %v7158_v21 = vpop.f32.mrf.mxu1  ;;  %v2772_v40 = vadd.f32 %v5238_v16, %v6967_v32  ;;  %v2771_v32 = vadd.f32 %v7070_v56, %v6976_v11 }
 0x1a8   : > { %7491 = vst [vmem:[#allocation33_spill] sm:$0xff] %v7158_v21  ;;  %v7160_v4 = vpop.f32.mrf.mxu0 }
 0x1a9   : > { %7492 = vst [vmem:[#allocation34_spill] sm:$0xff] %v7160_v4  ;;  %v7162_v62 = vpop.f32.mrf.mxu1  ;;  %v2770_v4 = vadd.f32 %v2611_v44, %v6970_v46  ;;  %v7194_v46 = vld [vmem:[%s7395_s2] ss:$0 sm:$0xff] }
 0x1aa   : > { %7493 = vst [vmem:[#allocation35_spill] sm:$0xff] %v7162_v62  ;;  %v7164_v12 = vpop.f32.mrf.mxu0 }
 0x1ab   : > { %7494 = vst [vmem:[#allocation36_spill] sm:$0xff] %v7164_v12  ;;  %v7166_v29 = vpop.f32.mrf.mxu1 }
 0x1ac   : > { %7495 = vst [vmem:[#allocation37_spill] sm:$0xff] %v7166_v29  ;;  %v7168_v30 = vpop.f32.mrf.mxu0 }
 0x1ad   : > { %7496 = vst [vmem:[#allocation38_spill] sm:$0xff] %v7168_v30  ;;  %v7170_v45 = vpop.f32.mrf.mxu1  ;;  %v3198_v30 = vadd.f32 %v7060_v42, %v2772_v40 }
 0x1ae   : > { %7497 = vst [vmem:[#allocation39_spill] sm:$0xff] %v7170_v45  ;;  %v7172_v25 = vpop.f32.mrf.mxu0  ;;  %v2773_v45 = vadd.f32 %v5239_v41, %v6973_v47 }
 0x1af   : > { %7498 = vst [vmem:[#allocation40_spill] sm:$0xff] %v7172_v25  ;;  %v7174_v33 = vpop.f32.mrf.mxu1 }
 0x1b0   : > { %7499 = vst [vmem:[#allocation41_spill] sm:$0xff] %v7174_v33  ;;  %v7177_v22 = vpop.f32.mrf.mxu0  ;;  %v3196_v33 = vadd.f32 %v7064_v35, %v2770_v4  ;;  %v3199_v40 = vadd.f32 %v7066_v43, %v2773_v45  ;;  %v2774_v4 = vadd.f32 %v7078_v10, %v6982_v5  ;;  %v2777_v45 = vadd.f32 %v7082_v13, %v6985_v17 }
 0x1b1   : > { %7500 = vst [vmem:[#allocation42_spill] sm:$0xff] %v7177_v22  ;;  %v7179_v21 = vpop.f32.mrf.mxu1  ;;  %v2775_v10 = vadd.f32 %v7086_v53, %v6988_v3  ;;  %v2780_v3 = vadd.f32 %v7090_v58, %v6991_v23 }
 0x1b2   : > { %v7182_v62 = vpop.f32.mrf.mxu0 }
 0x1b3   : > { %7501 = vst [vmem:[#allocation43_spill] sm:$0xff] %v7182_v62  ;;  %v7184_v12 = vpop.f32.mrf.mxu1  ;;  %v2776_v62 = vadd.f32 %v7074_v18, %v6979_v39 }
 0x1b4   : > { %7502 = vst [vmem:[#allocation44_spill] sm:$0xff] %v7184_v12  ;;  %v5340_v29 = vpop.f32.mrf.mxu0 }
 0x1b5   : > { %v5306_v25 = vpop.f32.mrf.mxu1  ;;  %v3202_v5 = vadd.f32 %v7072_v27, %v2776_v62  ;;  %v3203_v27 = vadd.f32 %v7080_v52, %v2777_v45  ;;  %v2778_v45 = vadd.f32 %v7094_v1, %v6994_v14 }
 0x1b6   : > { %v3684_v16 = vadd.f32 %v5306_v25, %v3198_v30  ;;  %v3961_v22 = vpop.f32.mrf.mxu0  ;;  %v3197_v25 = vadd.f32 %v7068_v19, %v2771_v32  ;;  %v3200_v19 = vadd.f32 %v7076_v2, %v2774_v4 }
 0x1b7   : > { %v3523_v44 = vpop.f32.mrf.mxu1 }
 0x1b8   : > { %v4122_v42 = vadd.f32 %v5340_v29, %v3684_v16  ;;  %v3682_v47 = vadd.f32 %v3523_v44, %v3196_v33  ;;  %v5341_v41 = vpop.f32.mrf.mxu0 }
 0x1b9   : > { %v5307_v11 = vpop.f32.mrf.mxu1 }
 0x1ba   : > { %v4225_v30 = vadd.f32 %v7194_v46, %v4122_v42  ;;  %v4120_v35 = vadd.f32 %v3961_v22, %v3682_v47  ;;  %v3685_v56 = vadd.f32 %v5307_v11, %v3199_v40  ;;  %v3964_v12 = vpop.f32.mrf.mxu0  ;;  %v3201_v11 = vadd.f32 %v7084_v51, %v2775_v10 }
 0x1bb   : > { %v3526_v29 = vpop.f32.mrf.mxu1 }
 0x1bc   : > { %v4257_v33 = vmax.f32 %v4225_v30, 0.0  ;;  %v4223_v43 = vadd.f32 %v7194_v46, %v4120_v35  ;;  %v4123_v39 = vadd.f32 %v5341_v41, %v3685_v56  ;;  %v3683_v18 = vadd.f32 %v3526_v29, %v3197_v25  ;;  %v5344_v16 = vpop.f32.mrf.mxu0 }
 0x1bd   : > { %v5310_v17 = vpop.f32.mrf.mxu1  ;;  %v3206_v56 = vadd.f32 %v7088_v50, %v2780_v3  ;;  %v2781_v29 = vadd.f32 %v7098_v26, %v6997_v57  ;;  %v2779_v50 = vadd.f32 %v7102_v7, %v7000_v34 }
 0x1be   : > { %v4881_v22 = vpack.c.bf16 %v4257_v33, %v4257_v33  ;;  %v4255_v13 = vmax.f32 %v4223_v43, 0.0  ;;  %v4226_v32 = vadd.f32 %v7194_v46, %v4123_v39  ;;  %v4121_v44 = vadd.f32 %v3964_v12, %v3683_v18  ;;  %v3977_v62 = vpop.f32.mrf.mxu0 }
 0x1bf   : > { %v3688_v2 = vadd.f32 %v5310_v17, %v3202_v5  ;;  %v3539_v53 = vpop.f32.mrf.mxu1 }
 0x1c0   : > { %4418 = vst.msk [vmem:[%s7214_s19 + $0x8] sm:$0xf] %vm4415_vm4, %v4881_v22  ;;  %v4879_v40 = vpack.c.bf16 %v4255_v13, %v4255_v13  ;;  %v4258_v42 = vmax.f32 %v4226_v32, 0.0  ;;  %v4224_v47 = vadd.f32 %v7194_v46, %v4121_v44  ;;  %v3686_v41 = vadd.f32 %v3539_v53, %v3200_v19  ;;  %v5345_v4 = vpop.f32.mrf.mxu0 }
 0x1c1   : > { %v4126_v12 = vadd.f32 %v5344_v16, %v3688_v2  ;;  %v5311_v25 = vpop.f32.mrf.mxu1  ;;  %v3204_v22 = vadd.f32 %v7092_v49, %v2778_v45  ;;  %v3207_v13 = vadd.f32 %v7096_v9, %v2781_v29  ;;  %v2784_v32 = vadd.f32 %v7106_v15, %v7003_v60 }
 0x1c2   : > { %4416 = vst.msk [vmem:[%s7214_s19] sm:$0xf] %vm4415_vm4, %v4879_v40  ;;  %v4882_v52 = vpack.c.bf16 %v4258_v42, %v4258_v42  ;;  %v4256_v30 = vmax.f32 %v4224_v47, 0.0  ;;  %v4124_v23 = vadd.f32 %v3977_v62, %v3686_v41  ;;  %v3689_v58 = vadd.f32 %v5311_v25, %v3203_v27  ;;  %v3980_v35 = vpop.f32.mrf.mxu0 }
 0x1c3   : > { %v4229_v51 = vadd.f32 %v7194_v46, %v4126_v12  ;;  %v3542_v33 = vpop.f32.mrf.mxu1  ;;  %v3205_v53 = vadd.f32 %v7100_v28, %v2779_v50  ;;  %v2782_v40 = vadd.f32 %v7110_v48, %v7006_v59  ;;  %v2786_v50 = vadd.f32 %v7126_v8, %v7018_v61 }
 0x1c4   : > { %4419 = vst.msk [vmem:[%s7214_s19 + $0xc] sm:$0xf] %vm4415_vm4, %v4882_v52  ;;  %v4880_v43 = vpack.c.bf16 %v4256_v30, %v4256_v30  ;;  %v4227_v39 = vadd.f32 %v7194_v46, %v4124_v23  ;;  %v4127_v18 = vadd.f32 %v5345_v4, %v3689_v58  ;;  %v3687_v16 = vadd.f32 %v3542_v33, %v3201_v11  ;;  %v5348_v5 = vpop.f32.mrf.mxu0 }
 0x1c5   : > { %v4261_v19 = vmax.f32 %v4229_v51, 0.0  ;;  %v5314_v10 = vpop.f32.mrf.mxu1  ;;  %v3210_v4 = vadd.f32 %v7104_v55, %v2784_v32  ;;  %v3208_v30 = vadd.f32 %v7108_v24, %v2782_v40  ;;  %v2785_v23 = vadd.f32 %v7114_v0, %v7009_v38 }
 0x1c6   : > { %4417 = vst.msk [vmem:[%s7214_s19 + $0x4] sm:$0xf] %vm4415_vm4, %v4880_v43  ;;  %v4259_v14 = vmax.f32 %v4227_v39, 0.0  ;;  %v4230_v57 = vadd.f32 %v7194_v46, %v4127_v18  ;;  %v4125_v1 = vadd.f32 %v3980_v35, %v3687_v16  ;;  %v3692_v26 = vadd.f32 %v5314_v10, %v3206_v56  ;;  %v3993_v17 = vpop.f32.mrf.mxu0 }
 0x1c7   : > { %v4885_v34 = vpack.c.bf16 %v4261_v19, %v4261_v19  ;;  %v3555_v7 = vpop.f32.mrf.mxu1  ;;  %v2783_v58 = vadd.f32 %v7118_v54, %v7012_v6  ;;  %v2788_v24 = vadd.f32 %v7122_v31, %v7015_v36  ;;  %v3211_v16 = vadd.f32 %v7112_v37, %v2785_v23  ;;  %v7511_v23 = vld [vmem:[#allocation27_spill] sm:$0xff] }
 0x1c8   : > { %v4883_v44 = vpack.c.bf16 %v4259_v14, %v4259_v14  ;;  %v4262_v62 = vmax.f32 %v4230_v57, 0.0  ;;  %v4228_v27 = vadd.f32 %v7194_v46, %v4125_v1  ;;  %v4130_v3 = vadd.f32 %v5348_v5, %v3692_v26  ;;  %v5349_v2 = vpop.f32.mrf.mxu0 }
 0x1c9   : > { %4422 = vst.msk [vmem:[%s7214_s19 + $0x18] sm:$0xf] %vm4415_vm4, %v4885_v34  ;;  %v3690_v49 = vadd.f32 %v3555_v7, %v3204_v22  ;;  %v5315_v9 = vpop.f32.mrf.mxu1  ;;  %v3209_v5 = vadd.f32 %v7116_v63, %v2783_v58  ;;  %v3214_v26 = vadd.f32 %v7120_v20, %v2788_v24  ;;  %v7504_v22 = vld [vmem:[#allocation11_spill] sm:$0xff]  ;;  %v7512_v58 = vld [vmem:[#allocation22_spill] sm:$0xff] }
 0x1ca   : > { %4420 = vst.msk [vmem:[%s7214_s19 + $0x10] sm:$0xf] %vm4415_vm4, %v4883_v44  ;;  %v4886_v60 = vpack.c.bf16 %v4262_v62, %v4262_v62  ;;  %v4260_v15 = vmax.f32 %v4228_v27, 0.0  ;;  %v4233_v42 = vadd.f32 %v7194_v46, %v4130_v3  ;;  %v3693_v47 = vadd.f32 %v5315_v9, %v3207_v13  ;;  %v3996_v41 = vpop.f32.mrf.mxu0  ;;  %v7505_v44 = vld [vmem:[#allocation9_spill] sm:$0xff]  ;;  %v7506_v9 = vld [vmem:[#allocation10_spill] sm:$0xff] }
 0x1cb   : > { %v4128_v11 = vadd.f32 %v3993_v17, %v3690_v49  ;;  %v3558_v28 = vpop.f32.mrf.mxu1  ;;  %v7503_v17 = vld [vmem:[#allocation15_spill] sm:$0xff]  ;;  %v3212_v62 = vadd.f32 %v7505_v44, %v2786_v50 }
 0x1cc   : > { %4423 = vst.msk [vmem:[%s7214_s19 + $0x1c] sm:$0xf] %vm4415_vm4, %v4886_v60  ;;  %v4884_v59 = vpack.c.bf16 %v4260_v15, %v4260_v15  ;;  %v4265_v48 = vmax.f32 %v4233_v42, 0.0  ;;  %v4131_v12 = vadd.f32 %v5349_v2, %v3693_v47  ;;  %v3691_v25 = vadd.f32 %v3558_v28, %v3205_v53  ;;  %v5352_v52 = vpop.f32.mrf.mxu0  ;;  %v7507_v15 = vld [vmem:[#allocation17_spill] sm:$0xff]  ;;  %v7508_v42 = vld [vmem:[#allocation14_spill] sm:$0xff] }
 0x1cd   : > { %v4231_v55 = vadd.f32 %v7194_v46, %v4128_v11  ;;  %v5318_v35 = vpop.f32.mrf.mxu1  ;;  %v2789_v13 = vadd.f32 %v7504_v22, %v7503_v17  ;;  %v2787_v47 = vadd.f32 %v7508_v42, %v7507_v15  ;;  %v7524_v42 = vld [vmem:[#allocation25_spill] sm:$0xff] }
 0x1ce   : > { %4421 = vst.msk [vmem:[%s7214_s19 + $0x14] sm:$0xf] %vm4415_vm4, %v4884_v59  ;;  %v4889_v56 = vpack.c.bf16 %v4265_v48, %v4265_v48  ;;  %v4234_v45 = vadd.f32 %v7194_v46, %v4131_v12  ;;  %v4129_v29 = vadd.f32 %v3996_v41, %v3691_v25  ;;  %v3696_v51 = vadd.f32 %v5318_v35, %v3210_v4  ;;  %v4009_v33 = vpop.f32.mrf.mxu0  ;;  %v7509_v41 = vld [vmem:[#allocation19_spill] sm:$0xff]  ;;  %v7510_v4 = vld [vmem:[#allocation18_spill] sm:$0xff] }
 0x1cf   : > { %v4263_v43 = vmax.f32 %v4231_v55, 0.0  ;;  %v3571_v39 = vpop.f32.mrf.mxu1  ;;  %v3215_v60 = vadd.f32 %v7506_v9, %v2789_v13  ;;  %v2792_v11 = vadd.f32 %v7510_v4, %v7509_v41  ;;  %v2790_v55 = vadd.f32 %v7512_v58, %v7511_v23  ;;  %v7522_v9 = vld [vmem:[#allocation8_spill] sm:$0xff] }
 0x1d0   : > { %4426 = vst.msk [vmem:[%s7214_s19 + $0x28] sm:$0xf] %vm4415_vm4, %v4889_v56  ;;  %v4266_v38 = vmax.f32 %v4234_v45, 0.0  ;;  %v4232_v6 = vadd.f32 %v7194_v46, %v4129_v29  ;;  %v4134_v0 = vadd.f32 %v5352_v52, %v3696_v51  ;;  %v3694_v54 = vadd.f32 %v3571_v39, %v3208_v30  ;;  %v5353_v18 = vpop.f32.mrf.mxu0 }
 0x1d1   : > { %v4887_v36 = vpack.c.bf16 %v4263_v43, %v4263_v43  ;;  %v5319_v31 = vpop.f32.mrf.mxu1  ;;  %v7513_v43 = vld [vmem:[#allocation12_spill] sm:$0xff] }
 0x1d2   : > { %v4890_v19 = vpack.c.bf16 %v4266_v38, %v4266_v38  ;;  %v4264_v10 = vmax.f32 %v4232_v6, 0.0  ;;  %v4237_v14 = vadd.f32 %v7194_v46, %v4134_v0  ;;  %v4132_v57 = vadd.f32 %v4009_v33, %v3694_v54  ;;  %v4012_v1 = vpop.f32.mrf.mxu0  ;;  %v7514_v38 = vld [vmem:[#allocation16_spill] sm:$0xff]  ;;  %v7515_v0 = vld [vmem:[#allocation21_spill] sm:$0xff]  ;;  %v7516_v54 = vld [vmem:[#allocation26_spill] sm:$0xff] }
 0x1d3   : > { %4424 = vst.msk [vmem:[%s7214_s19 + $0x20] sm:$0xf] %vm4415_vm4, %v4887_v36  ;;  %v3697_v37 = vadd.f32 %v5319_v31, %v3211_v16  ;;  %v3574_v63 = vpop.f32.mrf.mxu1  ;;  %v3213_v39 = vadd.f32 %v7513_v43, %v2787_v47  ;;  %v3218_v6 = vadd.f32 %v7514_v38, %v2792_v11  ;;  %v7525_v47 = vld [vmem:[#allocation33_spill] sm:$0xff]  ;;  %v7529_v43 = vld [vmem:[#allocation32_spill] sm:$0xff] }
 0x1d4   : > { %4427 = vst.msk [vmem:[%s7214_s19 + $0x2c] sm:$0xf] %vm4415_vm4, %v4890_v19  ;;  %v4888_v61 = vpack.c.bf16 %v4264_v10, %v4264_v10  ;;  %v4269_v8 = vmax.f32 %v4237_v14, 0.0  ;;  %v4235_v32 = vadd.f32 %v7194_v46, %v4132_v57  ;;  %v3695_v34 = vadd.f32 %v3574_v63, %v3209_v5  ;;  %v5356_v7 = vpop.f32.mrf.mxu0  ;;  %v7517_v14 = vld [vmem:[#allocation20_spill] sm:$0xff] }
 0x1d5   : > { %v4135_v27 = vadd.f32 %v5353_v18, %v3697_v37  ;;  %v5322_v20 = vpop.f32.mrf.mxu1  ;;  %v2793_v18 = vadd.f32 %v7516_v54, %v7515_v0  ;;  %v3216_v57 = vadd.f32 %v7517_v14, %v2790_v55  ;;  %v2794_v41 = vadd.f32 %v7525_v47, %v7524_v42  ;;  %v7530_v38 = vld [vmem:[#allocation4_spill] sm:$0xff]  ;;  %v7533_v14 = vld [vmem:[#allocation5_spill] sm:$0xff] }
 0x1d6   : > { %4425 = vst.msk [vmem:[%s7214_s19 + $0x24] sm:$0xf] %vm4415_vm4, %v4888_v61  ;;  %v4893_v3 = vpack.c.bf16 %v4269_v8, %v4269_v8  ;;  %v4267_v2 = vmax.f32 %v4235_v32, 0.0  ;;  %v4133_v53 = vadd.f32 %v4012_v1, %v3695_v34  ;;  %v3700_v40 = vadd.f32 %v5322_v20, %v3214_v26  ;;  %v4025_v49 = vpop.f32.mrf.mxu0  ;;  %v7518_v1 = vld [vmem:[#allocation23_spill] sm:$0xff]  ;;  %v7519_v26 = vld [vmem:[#allocation29_spill] sm:$0xff]  ;;  %v7520_v34 = vld [vmem:[#allocation24_spill] sm:$0xff] }
 0x1d7   : > { %v4238_v28 = vadd.f32 %v7194_v46, %v4135_v27  ;;  %v3587_v59 = vpop.f32.mrf.mxu1  ;;  %v2791_v17 = vadd.f32 %v7519_v26, %v7518_v1 }
 0x1d8   : > { %4430 = vst.msk [vmem:[%s7214_s19 + $0x38] sm:$0xf] %vm4415_vm4, %v4893_v3  ;;  %v4891_v48 = vpack.c.bf16 %v4267_v2, %v4267_v2  ;;  %v4236_v12 = vadd.f32 %v7194_v46, %v4133_v53  ;;  %v4138_v25 = vadd.f32 %v5356_v7, %v3700_v40  ;;  %v3698_v52 = vadd.f32 %v3587_v59, %v3212_v62  ;;  %v5357_v30 = vpop.f32.mrf.mxu0  ;;  %v7521_v40 = vld [vmem:[#allocation28_spill] sm:$0xff] }
 0x1d9   : > { %v4270_v35 = vmax.f32 %v4238_v28, 0.0  ;;  %v5323_v56 = vpop.f32.mrf.mxu1  ;;  %v3219_v7 = vadd.f32 %v7520_v34, %v2793_v18 }
 0x1da   : > { %4428 = vst.msk [vmem:[%s7214_s19 + $0x30] sm:$0xf] %vm4415_vm4, %v4891_v48  ;;  %v4268_v45 = vmax.f32 %v4236_v12, 0.0  ;;  %v4241_v29 = vadd.f32 %v7194_v46, %v4138_v25  ;;  %v4136_v51 = vadd.f32 %v4025_v49, %v3698_v52  ;;  %v3701_v33 = vadd.f32 %v5323_v56, %v3215_v60  ;;  %v4028_v24 = vpop.f32.mrf.mxu0  ;;  %v7523_v60 = vld [vmem:[#allocation31_spill] sm:$0xff] }
 0x1db   : > { %v4894_v16 = vpack.c.bf16 %v4270_v35, %v4270_v35  ;;  %v3590_v5 = vpop.f32.mrf.mxu1  ;;  %v3217_v49 = vadd.f32 %v7521_v40, %v2791_v17  ;;  %v2796_v15 = vadd.f32 %v7523_v60, %v7522_v9  ;;  %v7526_v52 = vld [vmem:[#allocation3_spill] sm:$0xff]  ;;  %v7537_v40 = vld [vmem:[#allocation13_spill] sm:$0xff]  ;;  %v7539_v60 = vld [vmem:[#allocation6_spill] sm:$0xff] }
 0x1dc   : > { %v4892_v50 = vpack.c.bf16 %v4268_v45, %v4268_v45  ;;  %v4273_v36 = vmax.f32 %v4241_v29, 0.0  ;;  %v4239_v31 = vadd.f32 %v7194_v46, %v4136_v51  ;;  %v4139_v19 = vadd.f32 %v5357_v30, %v3701_v33  ;;  %v5360_v10 = vpop.f32.mrf.mxu0  ;;  %v7527_v30 = vld [vmem:[#allocation35_spill] sm:$0xff]  ;;  %v7528_v33 = vld [vmem:[#allocation30_spill] sm:$0xff] }
 0x1dd   : > { %4431 = vst.msk [vmem:[%s7214_s19 + $0x3c] sm:$0xf] %vm4415_vm4, %v4894_v16  ;;  %v3699_v22 = vadd.f32 %v3590_v5, %v3213_v39  ;;  %v5326_v13 = vpop.f32.mrf.mxu1  ;;  %v2797_v23 = vadd.f32 %v7527_v30, %v7526_v52  ;;  %v3220_v39 = vadd.f32 %v7529_v43, %v2794_v41 }
 0x1de   : > { %4429 = vst.msk [vmem:[%s7214_s19 + $0x34] sm:$0xf] %vm4415_vm4, %v4892_v50  ;;  %v4897_v37 = vpack.c.bf16 %v4273_v36, %v4273_v36  ;;  %v4271_v63 = vmax.f32 %v4239_v31, 0.0  ;;  %v4242_v61 = vadd.f32 %v7194_v46, %v4139_v19  ;;  %v3704_v8 = vadd.f32 %v5326_v13, %v3218_v6  ;;  %v4041_v32 = vpop.f32.mrf.mxu0  ;;  %v7531_v6 = vld [vmem:[#allocation37_spill] sm:$0xff]  ;;  %v7532_v19 = vld [vmem:[#allocation34_spill] sm:$0xff] }
 0x1df   : > { %v4137_v44 = vadd.f32 %v4028_v24, %v3699_v22  ;;  %v3603_v62 = vpop.f32.mrf.mxu1  ;;  %v3222_v24 = vadd.f32 %v7528_v33, %v2796_v15  ;;  %v2795_v0 = vadd.f32 %v7531_v6, %v7530_v38  ;;  %v2801_v15 = vadd.f32 %v7179_v21, %v7539_v60 }
 0x1e0   : > { %4434 = vst.msk [vmem:[%s7214_s19 + $0x48] sm:$0xf] %vm4415_vm4, %v4897_v37  ;;  %v4895_v27 = vpack.c.bf16 %v4271_v63, %v4271_v63  ;;  %v4274_v20 = vmax.f32 %v4242_v61, 0.0  ;;  %v4142_v3 = vadd.f32 %v5360_v10, %v3704_v8  ;;  %v3702_v2 = vadd.f32 %v3603_v62, %v3216_v57  ;;  %v5361_v53 = vpop.f32.mrf.mxu0  ;;  %v7534_v57 = vld [vmem:[#allocation39_spill] sm:$0xff]  ;;  %v7535_v8 = vld [vmem:[#allocation36_spill] sm:$0xff] }
 0x1e1   : > { %v4240_v4 = vadd.f32 %v7194_v46, %v4137_v44  ;;  %v5327_v11 = vpop.f32.mrf.mxu1  ;;  %v3223_v10 = vadd.f32 %v7532_v19, %v2797_v23  ;;  %v2800_v1 = vadd.f32 %v7534_v57, %v7533_v14 }
 0x1e2   : > { %4432 = vst.msk [vmem:[%s7214_s19 + $0x40] sm:$0xf] %vm4415_vm4, %v4895_v27  ;;  %v4898_v28 = vpack.c.bf16 %v4274_v20, %v4274_v20  ;;  %v4245_v59 = vadd.f32 %v7194_v46, %v4142_v3  ;;  %v4140_v48 = vadd.f32 %v4041_v32, %v3702_v2  ;;  %v3705_v12 = vadd.f32 %v5327_v11, %v3219_v7  ;;  %v4044_v25 = vpop.f32.mrf.mxu0  ;;  %v7536_v2 = vld [vmem:[#allocation38_spill] sm:$0xff] }
 0x1e3   : > { %v4272_v58 = vmax.f32 %v4240_v4, 0.0  ;;  %v3606_v55 = vpop.f32.mrf.mxu1  ;;  %v3221_v32 = vadd.f32 %v7535_v8, %v2795_v0  ;;  %v7544_v0 = vld [vmem:[#allocation43_spill] sm:$0xff] }
 0x1e4   : > { %4435 = vst.msk [vmem:[%s7214_s19 + $0x4c] sm:$0xf] %vm4415_vm4, %v4898_v28  ;;  %v4277_v35 = vmax.f32 %v4245_v59, 0.0  ;;  %v4243_v56 = vadd.f32 %v7194_v46, %v4140_v48  ;;  %v4143_v45 = vadd.f32 %v5361_v53, %v3705_v12  ;;  %v3703_v29 = vadd.f32 %v3606_v55, %v3217_v49  ;;  %v5364_v51 = vpop.f32.mrf.mxu0  ;;  %v7538_v49 = vld [vmem:[#allocation41_spill] sm:$0xff]  ;;  %v7540_v48 = vld [vmem:[#allocation7_spill] sm:$0xff]  ;;  %v7541_v12 = vld [vmem:[#allocation44_spill] sm:$0xff] }
 0x1e5   : > { %v4896_v54 = vpack.c.bf16 %v4272_v58, %v4272_v58  ;;  %v5330_v18 = vpop.f32.mrf.mxu1  ;;  %v3226_v53 = vadd.f32 %v7536_v2, %v2800_v1  ;;  %v2798_v9 = vadd.f32 %v7538_v49, %v7537_v40 }
 0x1e6   : > { %v4901_v16 = vpack.c.bf16 %v4277_v35, %v4277_v35  ;;  %v4275_v5 = vmax.f32 %v4243_v56, 0.0  ;;  %v4246_v50 = vadd.f32 %v7194_v46, %v4143_v45  ;;  %v4141_v36 = vadd.f32 %v4044_v25, %v3703_v29  ;;  %v4057_v31 = vpop.f32.mrf.mxu0  ;;  %v7542_v56 = vld [vmem:[#allocation40_spill] sm:$0xff]  ;;  %v7543_v29 = vld [vmem:[#allocation42_spill] sm:$0xff] }
 0x1e7   : > { %4433 = vst.msk [vmem:[%s7214_s19 + $0x44] sm:$0xf] %vm4415_vm4, %v4896_v54  ;;  %v3708_v26 = vadd.f32 %v5330_v18, %v3222_v24  ;;  %v3619_v17 = vpop.f32.mrf.mxu1  ;;  %v2799_v25 = vadd.f32 %v7541_v12, %v7540_v48  ;;  %v3224_v45 = vadd.f32 %v7542_v56, %v2798_v9 }
 0x1e8   : > { %4438 = vst.msk [vmem:[%s7214_s19 + $0x58] sm:$0xf] %vm4415_vm4, %v4901_v16  ;;  %v4899_v22 = vpack.c.bf16 %v4275_v5, %v4275_v5  ;;  %v4278_v13 = vmax.f32 %v4246_v50, 0.0  ;;  %v4244_v37 = vadd.f32 %v7194_v46, %v4141_v36  ;;  %v3706_v63 = vadd.f32 %v3619_v17, %v3220_v39  ;;  %v5365_v61 = vpop.f32.mrf.mxu0 }
 0x1e9   : > { %v4146_v34 = vadd.f32 %v5364_v51, %v3708_v26  ;;  %v5331_v7 = vpop.f32.mrf.mxu1  ;;  %v3227_v51 = vadd.f32 %v7543_v29, %v2801_v15  ;;  %v3225_v54 = vadd.f32 %v7544_v0, %v2799_v25 }
 0x1ea   : > { %4436 = vst.msk [vmem:[%s7214_s19 + $0x50] sm:$0xf] %vm4415_vm4, %v4899_v22  ;;  %v4902_v44 = vpack.c.bf16 %v4278_v13, %v4278_v13  ;;  %v4276_v62 = vmax.f32 %v4244_v37, 0.0  ;;  %v4144_v27 = vadd.f32 %v4057_v31, %v3706_v63  ;;  %v3709_v20 = vadd.f32 %v5331_v7, %v3223_v10  ;;  %v4060_v3 = vpop.f32.mrf.mxu0 }
 0x1eb   : > { %v4249_v42 = vadd.f32 %v7194_v46, %v4146_v34  ;;  %v3622_v47 = vpop.f32.mrf.mxu1 }
 0x1ec   : > { %4439 = vst.msk [vmem:[%s7214_s19 + $0x5c] sm:$0xf] %vm4415_vm4, %v4902_v44  ;;  %v4900_v41 = vpack.c.bf16 %v4276_v62, %v4276_v62  ;;  %v4247_v4 = vadd.f32 %v7194_v46, %v4144_v27  ;;  %v4147_v11 = vadd.f32 %v5365_v61, %v3709_v20  ;;  %v3707_v28 = vadd.f32 %v3622_v47, %v3221_v32  ;;  %v5368_v59 = vpop.f32.mrf.mxu0 }
 0x1ed   : > { %v4281_v52 = vmax.f32 %v4249_v42, 0.0  ;;  %v5334_v30 = vpop.f32.mrf.mxu1 }
 0x1ee   : > { %4437 = vst.msk [vmem:[%s7214_s19 + $0x54] sm:$0xf] %vm4415_vm4, %v4900_v41  ;;  %v4279_v21 = vmax.f32 %v4247_v4, 0.0  ;;  %v4250_v23 = vadd.f32 %v7194_v46, %v4147_v11  ;;  %v4145_v58 = vadd.f32 %v4060_v3, %v3707_v28  ;;  %v3712_v55 = vadd.f32 %v5334_v30, %v3226_v53  ;;  %v4073_v35 = vpop.f32.mrf.mxu0 }
 0x1ef   : > { %v4905_v33 = vpack.c.bf16 %v4281_v52, %v4281_v52  ;;  %v3635_v24 = vpop.f32.mrf.mxu1 }
 0x1f0   : > { %v4903_v43 = vpack.c.bf16 %v4279_v21, %v4279_v21  ;;  %v4282_v39 = vmax.f32 %v4250_v23, 0.0  ;;  %v4248_v38 = vadd.f32 %v7194_v46, %v4145_v58  ;;  %v4150_v6 = vadd.f32 %v5368_v59, %v3712_v55  ;;  %v5369_v5 = vpop.f32.mrf.mxu0 }
 0x1f1   : > { %4442 = vst.msk [vmem:[%s7214_s19 + $0x68] sm:$0xf] %vm4415_vm4, %v4905_v33  ;;  %v3710_v18 = vadd.f32 %v3635_v24, %v3224_v45  ;;  %v5335_v16 = vpop.f32.mrf.mxu1 }
 0x1f2   : > { %4440 = vst.msk [vmem:[%s7214_s19 + $0x60] sm:$0xf] %vm4415_vm4, %v4903_v43  ;;  %v4906_v50 = vpack.c.bf16 %v4282_v39, %v4282_v39  ;;  %v4280_v36 = vmax.f32 %v4248_v38, 0.0  ;;  %v4253_v31 = vadd.f32 %v7194_v46, %v4150_v6  ;;  %v3713_v19 = vadd.f32 %v5335_v16, %v3227_v51  ;;  %v4076_v13 = vpop.f32.mrf.mxu0 }
 0x1f3   : > { %v4148_v10 = vadd.f32 %v4073_v35, %v3710_v18  ;;  %v3638_v14 = vpop.f32.mrf.mxu1 }
 0x1f4   : > { %4443 = vst.msk [vmem:[%s7214_s19 + $0x6c] sm:$0xf] %vm4415_vm4, %v4906_v50  ;;  %v4904_v57 = vpack.c.bf16 %v4280_v36, %v4280_v36  ;;  %v4285_v1 = vmax.f32 %v4253_v31, 0.0  ;;  %v4151_v26 = vadd.f32 %v5369_v5, %v3713_v19  ;;  %v3711_v17 = vadd.f32 %v3638_v14, %v3225_v54 }
 0x1f5   : > { %v4251_v22 = vadd.f32 %v7194_v46, %v4148_v10 }
 0x1f6   : > { %4441 = vst.msk [vmem:[%s7214_s19 + $0x64] sm:$0xf] %vm4415_vm4, %v4904_v57  ;;  %v4909_v37 = vpack.c.bf16 %v4285_v1, %v4285_v1  ;;  %v4254_v63 = vadd.f32 %v7194_v46, %v4151_v26  ;;  %v4149_v61 = vadd.f32 %v4076_v13, %v3711_v17 }
 0x1f7   : > { %v4283_v8 = vmax.f32 %v4251_v22, 0.0 }
 0x1f8   : > { %4446 = vst.msk [vmem:[%s7214_s19 + $0x78] sm:$0xf] %vm4415_vm4, %v4909_v37  ;;  %v4286_v32 = vmax.f32 %v4254_v63, 0.0  ;;  %v4252_v34 = vadd.f32 %v7194_v46, %v4149_v61 }
 0x1f9   : > { %v4907_v7 = vpack.c.bf16 %v4283_v8, %v4283_v8 }
 0x1fa   : > { %v4910_v44 = vpack.c.bf16 %v4286_v32, %v4286_v32  ;;  %v4284_v62 = vmax.f32 %v4252_v34, 0.0 }
 0x1fb   : > { %4444 = vst.msk [vmem:[%s7214_s19 + $0x70] sm:$0xf] %vm4415_vm4, %v4907_v7 }
 0x1fc   : > { %4447 = vst.msk [vmem:[%s7214_s19 + $0x7c] sm:$0xf] %vm4415_vm4, %v4910_v44  ;;  %v4908_v27 = vpack.c.bf16 %v4284_v62, %v4284_v62 }
 0x1fe   : > { %4445 = vst.msk [vmem:[%s7214_s19 + $0x74] sm:$0xf] %vm4415_vm4, %v4908_v27 }
 0x1ff PF: > { %s13_s14 = sadd.s32 1, %s5525_s14   ;;  %s7545_s12 = smov %s5521_s13 }
 0x200   : > { %p10_p5 = scmp.ge.s32.totalorder %s13_s14, 4   ;;  %s7546_s13 = smov %s7548_s15 }
 0x202   :  { %12 = sbr.rel (!%p10_p5) target bundleno = 2 (0x2), region = 73 }

</bundles_post_ra>
